<compile_context>
chip_gen: v7x
topology: tpu7x:2x2x1
jax: 0.10.0
libtpu: 0.0.40
codegen_flags: <defaults>
</compile_context>

<pallas_src>
import functools

import jax
import jax.numpy as jnp
import numpy as np
from jax.experimental import pallas as pl
from jax.experimental.pallas import tpu as pltpu


def _round_up(v, m):
    return (v + m - 1) // m * m


# ----------------------- kernel 1: hoisted projections ------------------------
def _proj_kernel(x_ref, w_ref, as_bd_ref, ad_bd_ref, xw_ref, asrc_ref, adst_ref):
    """Per node tile: XW = x @ W plus both attention projections (run ONCE).

    x_ref     : [T, Fpad]  bf16
    w_ref     : [Fpad, W]  bf16  grid-invariant (W = heads * cpad, lane-dense)
    as_bd_ref : [W, 128]   bf16  block-diagonal attention vecs (column h = head h)
    ad_bd_ref : [W, 128]   bf16  grid-invariant
    xw_ref    : [T, W]     bf16  out
    asrc_ref  : [T, 128]   f32   out (column h = alpha_src of head h)
    adst_ref  : [T, 128]   f32   out (column h = alpha_dst of head h)
    """
    xw = jnp.dot(x_ref[...], w_ref[...], preferred_element_type=jnp.float32)
    xw_bf = xw.astype(jnp.bfloat16)                 # bf16 MXU operands downstream
    xw_ref[...] = xw_bf
    asrc_ref[...] = jnp.dot(xw_bf, as_bd_ref[...], preferred_element_type=jnp.float32)
    adst_ref[...] = jnp.dot(xw_bf, ad_bd_ref[...], preferred_element_type=jnp.float32)


# --------------------- kernel 2: masked softmax + aggregation -----------------
def _attn_kernel(xw_ref, asrct_ref, adst_ref, adj_ref, bias_ref, out_ref,
                 acc_ref, *, heads, cpad, negative_slope, apply_elu):
    """One GATConv attention pass (+ optional fused ELU) per destination tile.

    xw_ref    : [Npad, W]   bf16  all transformed sources (grid-invariant, 1-buffered)
    asrct_ref : [128, Npad] f32   row h = alpha_src of head h (grid-invariant)
    adst_ref  : [T, 128]    f32   destination-tile alpha_dst (column h = head h)
    adj_ref   : [T, Npad]   int8  1 = edge j->i (incl. self loop), 0 = no edge
    bias_ref  : [1, W]      f32   grid-invariant
    out_ref   : [T, W]      out dtype (bf16 for layer 1, f32 for layer 2)
    acc_ref   : [T, W]      f32   VMEM scratch accumulator
    """
    # Additive adjacency mask, expanded once (hoisted out of the head loop):
    # adj==1 -> 0.0, adj==0 -> -1e9.
    mask = (adj_ref[...].astype(jnp.float32) - 1.0) * 1e9                  # [T, Npad]
    a_dst = adst_ref[...]

    for h in range(heads):                    # static python loop; heads is 8 / 1
        # e[i, j] = LeakyReLU(alpha_dst[i] + alpha_src[j]) + mask[i, j]
        logits = a_dst[:, h:h + 1] + asrct_ref[h:h + 1, :]                 # [T, Npad]
        logits = jnp.where(logits > 0, logits, negative_slope * logits)
        logits = logits + mask
        # softmax over source nodes j (per destination i)
        m = jnp.max(logits, axis=1, keepdims=True)
        p = jnp.exp(logits - m)
        s = jnp.sum(p, axis=1, keepdims=True)
        attn = (p * pl.reciprocal(s, approx=True)).astype(jnp.bfloat16)    # EUP vrcp
        # aggregate: out_i = sum_j attn[i, j] * xw[j, head h]   (bf16 MXU, f32 acc)
        lo = h * cpad
        acc_ref[:, lo:lo + cpad] = jnp.dot(attn, xw_ref[:, lo:lo + cpad],
                                           preferred_element_type=jnp.float32)

    out = acc_ref[...] + bias_ref[...]
    if apply_elu:
        out = jnp.maximum(out, 0.0) + (jnp.exp(jnp.minimum(out, 0.0)) - 1.0)
    out_ref[...] = out.astype(out_ref.dtype)            # one lane-dense store


# --------------------------------- wrapper -----------------------------------
def gat_conv_pallas(x_pad, w, att_src, att_dst, bias, adj_i8, *, heads,
                    out_channels, negative_slope=0.2, apply_elu=False,
                    out_dtype=jnp.float32, tile_dst=256,
                    single_buffer_invariants=True):
    """x_pad: [Npad, F_in] (rows already padded); adj_i8: [Npad, Npad] int8."""
    npad, fin = x_pad.shape
    assert npad % 128 == 0 and npad % tile_dst == 0
    assert tile_dst % 32 == 0            # int8 adjacency sublane tiling
    assert adj_i8.shape == (npad, npad) and adj_i8.dtype == jnp.int8

    # Lane-dense padded widths.
    fpad = _round_up(fin, 128)
    if 128 % heads == 0:
        cpad = _round_up(out_channels, 128 // heads)
    else:
        cpad = _round_up(out_channels, 8)
    wout = heads * cpad
    assert wout % 128 == 0, "per-head padding must keep the output lane-dense"

    # Pad / re-layout parameters (trace-time constants): per-head channel blocks
    # of width cpad plus block-diagonal attention matrices (column h = head h).
    w_p = jnp.zeros((fpad, wout), jnp.float32)
    b_p = jnp.zeros((1, wout), jnp.float32)
    as_bd = jnp.zeros((wout, 128), jnp.float32)
    ad_bd = jnp.zeros((wout, 128), jnp.float32)
    for h in range(heads):
        s_lo, d_lo = h * out_channels, h * cpad
        w_p = w_p.at[:fin, d_lo:d_lo + out_channels].set(
            w[:, s_lo:s_lo + out_channels])
        b_p = b_p.at[:, d_lo:d_lo + out_channels].set(
            bias[:, s_lo:s_lo + out_channels])
        as_bd = as_bd.at[d_lo:d_lo + out_channels, h].set(att_src[h])
        ad_bd = ad_bd.at[d_lo:d_lo + out_channels, h].set(att_dst[h])

    x_bf = jnp.zeros((npad, fpad), jnp.bfloat16).at[:, :fin].set(
        x_pad.astype(jnp.bfloat16))
    w_bf = w_p.astype(jnp.bfloat16)
    as_bf = as_bd.astype(jnp.bfloat16)
    ad_bf = ad_bd.astype(jnp.bfloat16)

    n_tiles = npad // tile_dst
    inv_kw = (dict(pipeline_mode=pl.Buffered(1))       # single-buffer invariants
              if single_buffer_invariants else {})

    # ---- pass 1: XW + alpha projections, once over the whole graph ----------
    xw, a_src, a_dst = pl.pallas_call(
        _proj_kernel,
        out_shape=(jax.ShapeDtypeStruct((npad, wout), jnp.bfloat16),
                   jax.ShapeDtypeStruct((npad, 128), jnp.float32),
                   jax.ShapeDtypeStruct((npad, 128), jnp.float32)),
        grid=(n_tiles,),
        in_specs=[
            pl.BlockSpec((tile_dst, fpad), lambda g: (g, 0)),        # x tile
            pl.BlockSpec((fpad, wout), lambda g: (0, 0), **inv_kw),  # W
            pl.BlockSpec((wout, 128), lambda g: (0, 0), **inv_kw),   # att_src bd
            pl.BlockSpec((wout, 128), lambda g: (0, 0), **inv_kw),   # att_dst bd
        ],
        out_specs=(pl.BlockSpec((tile_dst, wout), lambda g: (g, 0)),
                   pl.BlockSpec((tile_dst, 128), lambda g: (g, 0)),
                   pl.BlockSpec((tile_dst, 128), lambda g: (g, 0))),
        compiler_params=pltpu.CompilerParams(dimension_semantics=("parallel",)),
        cost_estimate=pl.CostEstimate(
            flops=int(2 * npad * fpad * wout + 4 * npad * wout * 128),
            transcendentals=0,
            bytes_accessed=int(2 * npad * fpad + 2 * fpad * wout + 4 * wout * 128
                               + 2 * npad * wout + 8 * npad * 128)),
    )(x_bf, w_bf, as_bf, ad_bf)

    # One tiny XLA transpose, OUTSIDE the grid loop, so alpha_src lies along
    # lanes (source axis) inside the attention kernel.
    a_src_t = jnp.transpose(a_src)                                   # [128, npad]

    # ---- pass 2: masked softmax + aggregation per destination tile ----------
    kern = functools.partial(_attn_kernel, heads=heads, cpad=cpad,
                             negative_slope=negative_slope, apply_elu=apply_elu)

    out_itemsize = jnp.dtype(out_dtype).itemsize
    # VMEM budget from the actual buffers (invariants x1, streamed x2 buffers),
    # plus headroom for the [T, Npad] f32 logits temporaries; capped at 48 MiB.
    resident = npad * wout * 2 + 128 * npad * 4 + wout * 4
    streamed = 2 * (tile_dst * 128 * 4 + tile_dst * npad * 1
                    + tile_dst * wout * out_itemsize)
    scratch_b = tile_dst * wout * 4
    temps = 4 * tile_dst * npad * 4
    vmem_limit = int(min(48 * 2**20,
                         max(16 * 2**20,
                             2 * (resident + streamed + scratch_b + temps))))

    flops = int(heads * (2 * npad * npad * cpad      # attn @ xw_h
                         + 7 * npad * npad)          # leaky / mask / softmax VPU
                + 4 * npad * wout)                   # bias + ELU epilogue
    transcendentals = int(heads * npad * npad + heads * npad)
    bytes_accessed = int(npad * wout * 2             # xw (read once; invariant)
                         + 128 * npad * 4            # a_src^T (once)
                         + npad * 128 * 4            # a_dst
                         + npad * npad * 1           # adjacency int8
                         + wout * 4                  # bias
                         + npad * wout * out_itemsize)

    out = pl.pallas_call(
        kern,
        out_shape=jax.ShapeDtypeStruct((npad, wout), out_dtype),
        grid=(n_tiles,),
        in_specs=[
            pl.BlockSpec((npad, wout), lambda g: (0, 0), **inv_kw),   # xw (all src)
            pl.BlockSpec((128, npad), lambda g: (0, 0), **inv_kw),    # alpha_src^T
            pl.BlockSpec((tile_dst, 128), lambda g: (g, 0)),          # alpha_dst tile
            pl.BlockSpec((tile_dst, npad), lambda g: (g, 0)),         # adjacency int8
            pl.BlockSpec((1, wout), lambda g: (0, 0), **inv_kw),      # bias
        ],
        out_specs=pl.BlockSpec((tile_dst, wout), lambda g: (g, 0)),
        scratch_shapes=[pltpu.VMEM((tile_dst, wout), jnp.float32)],
        compiler_params=pltpu.CompilerParams(
            dimension_semantics=("parallel",),      # v7x: 2 TCs split dst tiles
            vmem_limit_bytes=vmem_limit),
        cost_estimate=pl.CostEstimate(flops=flops,
                                      transcendentals=transcendentals,
                                      bytes_accessed=bytes_accessed),
    )(xw, a_src_t, a_dst, adj_i8, b_p)

    if cpad != out_channels:     # drop channel padding (layer 2: 128 -> num_classes)
        cols = np.concatenate([np.arange(h * cpad, h * cpad + out_channels)
                               for h in range(heads)])
        out = out[:, cols]
    return out                   # [npad, heads * out_channels]


# ------------------------- pure-JAX reference (for check) --------------------
def gat_conv_ref(x, w, att_src, att_dst, bias, adj, *, heads, out_channels,
                 negative_slope=0.2, apply_elu=False):
    n = x.shape[0]
    xw = (x @ w).reshape(n, heads, out_channels)                  # [N, H, C]
    a_src = jnp.einsum('nhc,hc->nh', xw, att_src)                 # [N, H]
    a_dst = jnp.einsum('nhc,hc->nh', xw, att_dst)                 # [N, H]
    logits = a_dst[:, None, :] + a_src[None, :, :]                # [Ndst, Nsrc, H]
    logits = jnp.where(logits > 0, logits, negative_slope * logits)
    logits = jnp.where(adj[:, :, None] > 0, logits, -1e9)
    attn = jax.nn.softmax(logits, axis=1)
    out = jnp.einsum('ijh,jhc->ihc', attn, xw).reshape(n, heads * out_channels)
    out = out + bias[0]
    if apply_elu:
        out = jnp.where(out > 0, out, jnp.exp(out) - 1.0)
    return out


# ------------------------------- glue / wrapper -------------------------------
def build_dense_adj(edge_index, num_nodes):
    # edge_index[0] = source nodes, edge_index[1] = target nodes (PyG convention).
    src, dst = edge_index[0], edge_index[1]
    adj = jnp.zeros((num_nodes, num_nodes), jnp.float32)
    adj = adj.at[dst, src].set(1.0)
    # GATConv: remove_self_loops + add_self_loops -> diagonal forced to 1
    adj = adj.at[jnp.arange(num_nodes), jnp.arange(num_nodes)].set(1.0)
    return adj


def init_params(key, num_features, hidden_channels, num_classes, heads):
    ks = jax.random.split(key, 8)
    scale = 0.2
    return {
        # layer 1: GATConv(num_features, hidden, heads=8)
        'w1': jax.random.normal(ks[0], (num_features, heads * hidden_channels), jnp.float32) * scale,
        'as1': jax.random.normal(ks[1], (heads, hidden_channels), jnp.float32) * scale,
        'ad1': jax.random.normal(ks[2], (heads, hidden_channels), jnp.float32) * scale,
        'b1': jax.random.normal(ks[3], (1, heads * hidden_channels), jnp.float32) * scale,
        # layer 2: GATConv(heads*hidden, num_classes, heads=1)
        'w2': jax.random.normal(ks[4], (heads * hidden_channels, num_classes), jnp.float32) * scale,
        'as2': jax.random.normal(ks[5], (1, num_classes), jnp.float32) * scale,
        'ad2': jax.random.normal(ks[6], (1, num_classes), jnp.float32) * scale,
        'b2': jax.random.normal(ks[7], (1, num_classes), jnp.float32) * scale,
    }


def gat_forward(x, adj, params, *, hidden_channels, num_classes, heads,
                tile_dst=256, single_buffer_invariants=True):
    n = x.shape[0]
    npad = _round_up(n, max(128, tile_dst))
    # Zero-pad nodes; padded rows/cols carry a 0 (no-edge) adjacency entry so
    # they never contribute to real destinations; their own (garbage) rows are
    # sliced off at the end.
    x_pad = jnp.zeros((npad, x.shape[1]), jnp.float32).at[:n, :].set(x)
    adj_i8 = jnp.zeros((npad, npad), jnp.int8).at[:n, :n].set(
        (adj > 0).astype(jnp.int8))

    # eval mode: F.dropout(p=0.6, training=False) is identity -> skipped.
    h1 = gat_conv_pallas(x_pad, params['w1'], params['as1'], params['ad1'],
                         params['b1'], adj_i8, heads=heads,
                         out_channels=hidden_channels, apply_elu=True,
                         out_dtype=jnp.bfloat16, tile_dst=tile_dst,
                         single_buffer_invariants=single_buffer_invariants)
    z = gat_conv_pallas(h1, params['w2'], params['as2'], params['ad2'],
                        params['b2'], adj_i8, heads=1,
                        out_channels=num_classes, apply_elu=False,
                        out_dtype=jnp.float32, tile_dst=tile_dst,
                        single_buffer_invariants=single_buffer_invariants)
    # Module computes F.log_softmax(x, dim=1) but returns Z (pre-softmax logits).
    return z[:n]


def gat_forward_ref(x, adj, params, *, hidden_channels, num_classes, heads):
    h1 = gat_conv_ref(x, params['w1'], params['as1'], params['ad1'],
                      params['b1'], adj, heads=heads,
                      out_channels=hidden_channels, apply_elu=True)
    z = gat_conv_ref(h1, params['w2'], params['as2'], params['ad2'],
                     params['b2'], adj, heads=1,
                     out_channels=num_classes, apply_elu=False)
    return z


if __name__ == "__main__":
    N = 32                 # nodes
    NUM_FEATURES = 8       # dataset.num_features
    HIDDEN = 16            # hidden_channels
    HEADS = 8
    NUM_CLASSES = 4        # dataset.num_classes
    NUM_EDGES = 64
    TILE_DST = 64          # toy graph pads to 128 nodes -> 2 even dst tiles;
                           # use the default tile_dst=256 for realistic graphs.

    key = jax.random.PRNGKey(0)
    k_x, k_src, k_dst, k_p = jax.random.split(key, 4)

    x = jax.random.normal(k_x, (N, NUM_FEATURES), jnp.float32)
    src = jax.random.randint(k_src, (NUM_EDGES,), 0, N)
    dst = jax.random.randint(k_dst, (NUM_EDGES,), 0, N)
    edge_index = jnp.stack([src, dst], axis=0)                     # [2, E]
    adj = build_dense_adj(edge_index, N)                           # [N, N]

    params = init_params(k_p, NUM_FEATURES, HIDDEN, NUM_CLASSES, HEADS)

    def run(single_buffer):
        fwd = jax.jit(functools.partial(
            gat_forward, hidden_channels=HIDDEN, num_classes=NUM_CLASSES,
            heads=HEADS, tile_dst=TILE_DST,
            single_buffer_invariants=single_buffer))
        return jax.block_until_ready(fwd(x, adj, params))

    try:
        z = run(True)
    except Exception:
        # Fallback for JAX versions without per-operand pipeline_mode support:
        # identical kernels, default double-buffering on invariant inputs.
        z = run(False)

    z_ref = gat_forward_ref(x, adj, params, hidden_channels=HIDDEN,
                            num_classes=NUM_CLASSES, heads=HEADS)
    # bf16 MXU operands, bf16 attention params and approx softmax reciprocal
    # -> intentionally loosened tolerance.
    np.testing.assert_allclose(np.asarray(z), np.asarray(z_ref),
                               rtol=6e-2, atol=6e-2)

    print("KERNEL_OK")
</pallas_src>

<mosaic_0001>
module attributes {stable_mosaic.version = 11 : i64} {
  func.func @_proj_kernel(%arg0: i32, %arg1: memref<64x128xbf16, #tpu.memory_space<vmem>>, %arg2: memref<128x128xbf16, #tpu.memory_space<vmem>>, %arg3: memref<128x128xbf16, #tpu.memory_space<vmem>>, %arg4: memref<128x128xbf16, #tpu.memory_space<vmem>>, %arg5: memref<64x128xbf16, #tpu.memory_space<vmem>>, %arg6: memref<64x128xf32, #tpu.memory_space<vmem>>, %arg7: memref<64x128xf32, #tpu.memory_space<vmem>>) attributes {dimension_semantics = [#tpu.dimension_semantics<parallel>], iteration_bounds = array<i64: 2>, scalar_prefetch = 0 : i64, scratch_operands = 0 : i64, tpu.core_type = #tpu.core_type<tc>, window_params = [{transform_indices = @transform_0, window_bounds = array<i64: 64, 128>}, {pipeline_mode = #tpu.pipeline_mode<synchronous>, transform_indices = @transform_1, window_bounds = array<i64: 128, 128>}, {pipeline_mode = #tpu.pipeline_mode<synchronous>, transform_indices = @transform_2, window_bounds = array<i64: 128, 128>}, {pipeline_mode = #tpu.pipeline_mode<synchronous>, transform_indices = @transform_3, window_bounds = array<i64: 128, 128>}, {transform_indices = @transform_4, window_bounds = array<i64: 64, 128>}, {transform_indices = @transform_5, window_bounds = array<i64: 64, 128>}, {transform_indices = @transform_6, window_bounds = array<i64: 64, 128>}]} {
    %c0 = arith.constant 0 : index
    %c0_0 = arith.constant 0 : index
    %0 = vector.load %arg1[%c0, %c0_0] : memref<64x128xbf16, #tpu.memory_space<vmem>>, vector<64x128xbf16>
    %c0_1 = arith.constant 0 : index
    %c0_2 = arith.constant 0 : index
    %1 = vector.load %arg2[%c0_1, %c0_2] : memref<128x128xbf16, #tpu.memory_space<vmem>>, vector<128x128xbf16>
    %cst = arith.constant dense<0.000000e+00> : vector<64x128xf32>
    %2 = tpu.matmul %0, %1, %cst {dimension_numbers = #tpu.dot_dimension_numbers<[1], [0], [0], [1], [0, 0, 1, 1], [], []>} : vector<64x128xbf16>, vector<128x128xbf16>, vector<64x128xf32> -> vector<64x128xf32>
    %3 = arith.truncf %2 : vector<64x128xf32> to vector<64x128xbf16>
    %c0_3 = arith.constant 0 : index
    %c0_4 = arith.constant 0 : index
    %4 = vector.load %arg5[%c0_3, %c0_4] : memref<64x128xbf16, #tpu.memory_space<vmem>>, vector<64x128xbf16>
    tpu.vector_store %arg5[%c0_3, %c0_4], %3 {strides = array<i32>} : memref<64x128xbf16, #tpu.memory_space<vmem>>, vector<64x128xbf16>,
    %c0_5 = arith.constant 0 : index
    %c0_6 = arith.constant 0 : index
    %5 = vector.load %arg3[%c0_5, %c0_6] : memref<128x128xbf16, #tpu.memory_space<vmem>>, vector<128x128xbf16>
    %cst_7 = arith.constant dense<0.000000e+00> : vector<64x128xf32>
    %6 = tpu.matmul %3, %5, %cst_7 {dimension_numbers = #tpu.dot_dimension_numbers<[1], [0], [0], [1], [0, 0, 1, 1], [], []>} : vector<64x128xbf16>, vector<128x128xbf16>, vector<64x128xf32> -> vector<64x128xf32>
    %c0_8 = arith.constant 0 : index
    %c0_9 = arith.constant 0 : index
    %7 = vector.load %arg6[%c0_8, %c0_9] : memref<64x128xf32, #tpu.memory_space<vmem>>, vector<64x128xf32>
    tpu.vector_store %arg6[%c0_8, %c0_9], %6 {strides = array<i32>} : memref<64x128xf32, #tpu.memory_space<vmem>>, vector<64x128xf32>,
    %c0_10 = arith.constant 0 : index
    %c0_11 = arith.constant 0 : index
    %8 = vector.load %arg4[%c0_10, %c0_11] : memref<128x128xbf16, #tpu.memory_space<vmem>>, vector<128x128xbf16>
    %cst_12 = arith.constant dense<0.000000e+00> : vector<64x128xf32>
    %9 = tpu.matmul %3, %8, %cst_12 {dimension_numbers = #tpu.dot_dimension_numbers<[1], [0], [0], [1], [0, 0, 1, 1], [], []>} : vector<64x128xbf16>, vector<128x128xbf16>, vector<64x128xf32> -> vector<64x128xf32>
    %c0_13 = arith.constant 0 : index
    %c0_14 = arith.constant 0 : index
    %10 = vector.load %arg7[%c0_13, %c0_14] : memref<64x128xf32, #tpu.memory_space<vmem>>, vector<64x128xf32>
    tpu.vector_store %arg7[%c0_13, %c0_14], %9 {strides = array<i32>} : memref<64x128xf32, #tpu.memory_space<vmem>>, vector<64x128xf32>,
    return
  }
  func.func @transform_0(%arg0: i32) -> (i32, i32) {
    %c0_i32 = arith.constant 0 : i32
    %c0_i32_0 = arith.constant 0 : i32
    return %arg0, %c0_i32 : i32, i32
  }
  func.func @transform_1(%arg0: i32) -> (i32, i32) {
    %c0_i32 = arith.constant 0 : i32
    %c0_i32_0 = arith.constant 0 : i32
    %c0_i32_1 = arith.constant 0 : i32
    return %c0_i32, %c0_i32_0 : i32, i32
  }
  func.func @transform_2(%arg0: i32) -> (i32, i32) {
    %c0_i32 = arith.constant 0 : i32
    %c0_i32_0 = arith.constant 0 : i32
    %c0_i32_1 = arith.constant 0 : i32
    return %c0_i32, %c0_i32_0 : i32, i32
  }
  func.func @transform_3(%arg0: i32) -> (i32, i32) {
    %c0_i32 = arith.constant 0 : i32
    %c0_i32_0 = arith.constant 0 : i32
    %c0_i32_1 = arith.constant 0 : i32
    return %c0_i32, %c0_i32_0 : i32, i32
  }
  func.func @transform_4(%arg0: i32) -> (i32, i32) {
    %c0_i32 = arith.constant 0 : i32
    %c0_i32_0 = arith.constant 0 : i32
    return %arg0, %c0_i32 : i32, i32
  }
  func.func @transform_5(%arg0: i32) -> (i32, i32) {
    %c0_i32 = arith.constant 0 : i32
    %c0_i32_0 = arith.constant 0 : i32
    return %arg0, %c0_i32 : i32, i32
  }
  func.func @transform_6(%arg0: i32) -> (i32, i32) {
    %c0_i32 = arith.constant 0 : i32
    %c0_i32_0 = arith.constant 0 : i32
    return %arg0, %c0_i32 : i32, i32
  }
}

module attributes {stable_mosaic.version = 11 : i64} {
  func.func @_attn_kernel(%arg0: i32, %arg1: memref<128x128xbf16, #tpu.memory_space<vmem>>, %arg2: memref<128x128xf32, #tpu.memory_space<vmem>>, %arg3: memref<64x128xf32, #tpu.memory_space<vmem>>, %arg4: memref<64x128xi8, #tpu.memory_space<vmem>>, %arg5: memref<1x128xf32, #tpu.memory_space<vmem>>, %arg6: memref<64x128xbf16, #tpu.memory_space<vmem>>, %arg7: memref<64x128xf32, #tpu.memory_space<vmem>>) attributes {dimension_semantics = [#tpu.dimension_semantics<parallel>], iteration_bounds = array<i64: 2>, scalar_prefetch = 0 : i64, scratch_operands = 1 : i64, tpu.core_type = #tpu.core_type<tc>, window_params = [{pipeline_mode = #tpu.pipeline_mode<synchronous>, transform_indices = @transform_0, window_bounds = array<i64: 128, 128>}, {pipeline_mode = #tpu.pipeline_mode<synchronous>, transform_indices = @transform_1, window_bounds = array<i64: 128, 128>}, {transform_indices = @transform_2, window_bounds = array<i64: 64, 128>}, {transform_indices = @transform_3, window_bounds = array<i64: 64, 128>}, {pipeline_mode = #tpu.pipeline_mode<synchronous>, transform_indices = @transform_4, window_bounds = array<i64: 1, 128>}, {transform_indices = @transform_5, window_bounds = array<i64: 64, 128>}]} {
    %c0 = arith.constant 0 : index
    %c0_0 = arith.constant 0 : index
    %0 = vector.load %arg4[%c0, %c0_0] : memref<64x128xi8, #tpu.memory_space<vmem>>, vector<64x128xi8>
    %1 = arith.sitofp %0 : vector<64x128xi8> to vector<64x128xf32>
    %cst = arith.constant 1.000000e+00 : f32
    %2 = vector.broadcast %cst : f32 to vector<64x128xf32>
    %3 = arith.subf %1, %2 : vector<64x128xf32>
    %cst_1 = arith.constant 1.000000e+09 : f32
    %4 = vector.broadcast %cst_1 : f32 to vector<64x128xf32>
    %5 = arith.mulf %3, %4 : vector<64x128xf32>
    %c0_2 = arith.constant 0 : index
    %c0_3 = arith.constant 0 : index
    %6 = vector.load %arg3[%c0_2, %c0_3] : memref<64x128xf32, #tpu.memory_space<vmem>>, vector<64x128xf32>
    %7 = vector.extract_strided_slice %6 {offsets = [0, 0], sizes = [64, 1], strides = [1, 1]} : vector<64x128xf32> to vector<64x1xf32>
    %c0_4 = arith.constant 0 : index
    %c0_5 = arith.constant 0 : index
    %8 = vector.load %arg2[%c0_4, %c0_5] : memref<128x128xf32, #tpu.memory_space<vmem>>, vector<1x128xf32>
    %9 = vector.broadcast %7 : vector<64x1xf32> to vector<64x128xf32>
    %10 = vector.broadcast %8 : vector<1x128xf32> to vector<64x128xf32>
    %11 = arith.addf %9, %10 : vector<64x128xf32>
    %cst_6 = arith.constant 0.000000e+00 : f32
    %12 = vector.broadcast %cst_6 : f32 to vector<64x128xf32>
    %13 = arith.cmpf ogt, %11, %12 : vector<64x128xf32>
    %cst_7 = arith.constant 2.000000e-01 : f32
    %14 = vector.broadcast %cst_7 : f32 to vector<64x128xf32>
    %15 = arith.mulf %14, %11 : vector<64x128xf32>
    %16 = arith.select %13, %11, %15 : vector<64x128xi1>, vector<64x128xf32>
    %17 = arith.addf %16, %5 : vector<64x128xf32>
    %cst_8 = arith.constant dense<0xFF800000> : vector<64xf32>
    %18 = vector.multi_reduction <maximumf>, %17, %cst_8 [1] : vector<64x128xf32> to vector<64xf32>
    %19 = vector.shape_cast %18 : vector<64xf32> to vector<64x1xf32>
    %20 = vector.broadcast %19 : vector<64x1xf32> to vector<64x128xf32>
    %21 = arith.subf %17, %20 : vector<64x128xf32>
    %22 = math.exp %21 : vector<64x128xf32>
    %cst_9 = arith.constant dense<0.000000e+00> : vector<64xf32>
    %23 = vector.multi_reduction <add>, %22, %cst_9 [1] : vector<64x128xf32> to vector<64xf32>
    %24 = vector.shape_cast %23 : vector<64xf32> to vector<64x1xf32>
    %25 = tpu.reciprocal %24 {approx = true} : vector<64x1xf32> -> vector<64x1xf32>
    %26 = vector.broadcast %25 : vector<64x1xf32> to vector<64x128xf32>
    %27 = arith.mulf %22, %26 : vector<64x128xf32>
    %28 = arith.truncf %27 : vector<64x128xf32> to vector<64x128xbf16>
    %c0_10 = arith.constant 0 : index
    %c0_11 = arith.constant 0 : index
    %29 = vector.load %arg1[%c0_10, %c0_11] : memref<128x128xbf16, #tpu.memory_space<vmem>>, vector<128x16xbf16>
    %cst_12 = arith.constant dense<0.000000e+00> : vector<64x16xf32>
    %30 = tpu.matmul %28, %29, %cst_12 {dimension_numbers = #tpu.dot_dimension_numbers<[1], [0], [0], [1], [0, 0, 1, 1], [], []>} : vector<64x128xbf16>, vector<128x16xbf16>, vector<64x16xf32> -> vector<64x16xf32>
    %c0_13 = arith.constant 0 : index
    %c0_14 = arith.constant 0 : index
    %31 = vector.load %arg7[%c0_13, %c0_14] : memref<64x128xf32, #tpu.memory_space<vmem>>, vector<64x16xf32>
    tpu.vector_store %arg7[%c0_13, %c0_14], %30 {strides = array<i32>} : memref<64x128xf32, #tpu.memory_space<vmem>>, vector<64x16xf32>,
    %32 = vector.extract_strided_slice %6 {offsets = [0, 1], sizes = [64, 1], strides = [1, 1]} : vector<64x128xf32> to vector<64x1xf32>
    %c1 = arith.constant 1 : index
    %c0_15 = arith.constant 0 : index
    %33 = vector.load %arg2[%c1, %c0_15] : memref<128x128xf32, #tpu.memory_space<vmem>>, vector<1x128xf32>
    %34 = vector.broadcast %32 : vector<64x1xf32> to vector<64x128xf32>
    %35 = vector.broadcast %33 : vector<1x128xf32> to vector<64x128xf32>
    %36 = arith.addf %34, %35 : vector<64x128xf32>
    %cst_16 = arith.constant 0.000000e+00 : f32
    %37 = vector.broadcast %cst_16 : f32 to vector<64x128xf32>
    %38 = arith.cmpf ogt, %36, %37 : vector<64x128xf32>
    %cst_17 = arith.constant 2.000000e-01 : f32
    %39 = vector.broadcast %cst_17 : f32 to vector<64x128xf32>
    %40 = arith.mulf %39, %36 : vector<64x128xf32>
    %41 = arith.select %38, %36, %40 : vector<64x128xi1>, vector<64x128xf32>
    %42 = arith.addf %41, %5 : vector<64x128xf32>
    %cst_18 = arith.constant dense<0xFF800000> : vector<64xf32>
    %43 = vector.multi_reduction <maximumf>, %42, %cst_18 [1] : vector<64x128xf32> to vector<64xf32>
    %44 = vector.shape_cast %43 : vector<64xf32> to vector<64x1xf32>
    %45 = vector.broadcast %44 : vector<64x1xf32> to vector<64x128xf32>
    %46 = arith.subf %42, %45 : vector<64x128xf32>
    %47 = math.exp %46 : vector<64x128xf32>
    %cst_19 = arith.constant dense<0.000000e+00> : vector<64xf32>
    %48 = vector.multi_reduction <add>, %47, %cst_19 [1] : vector<64x128xf32> to vector<64xf32>
    %49 = vector.shape_cast %48 : vector<64xf32> to vector<64x1xf32>
    %50 = tpu.reciprocal %49 {approx = true} : vector<64x1xf32> -> vector<64x1xf32>
    %51 = vector.broadcast %50 : vector<64x1xf32> to vector<64x128xf32>
    %52 = arith.mulf %47, %51 : vector<64x128xf32>
    %53 = arith.truncf %52 : vector<64x128xf32> to vector<64x128xbf16>
    %c0_20 = arith.constant 0 : index
    %c16 = arith.constant 16 : index
    %54 = vector.load %arg1[%c0_20, %c16] : memref<128x128xbf16, #tpu.memory_space<vmem>>, vector<128x16xbf16>
    %cst_21 = arith.constant dense<0.000000e+00> : vector<64x16xf32>
    %55 = tpu.matmul %53, %54, %cst_21 {dimension_numbers = #tpu.dot_dimension_numbers<[1], [0], [0], [1], [0, 0, 1, 1], [], []>} : vector<64x128xbf16>, vector<128x16xbf16>, vector<64x16xf32> -> vector<64x16xf32>
    %c0_22 = arith.constant 0 : index
    %c16_23 = arith.constant 16 : index
    %56 = vector.load %arg7[%c0_22, %c16_23] : memref<64x128xf32, #tpu.memory_space<vmem>>, vector<64x16xf32>
    tpu.vector_store %arg7[%c0_22, %c16_23], %55 {strides = array<i32>} : memref<64x128xf32, #tpu.memory_space<vmem>>, vector<64x16xf32>,
    %57 = vector.extract_strided_slice %6 {offsets = [0, 2], sizes = [64, 1], strides = [1, 1]} : vector<64x128xf32> to vector<64x1xf32>
    %c2 = arith.constant 2 : index
    %c0_24 = arith.constant 0 : index
    %58 = vector.load %arg2[%c2, %c0_24] : memref<128x128xf32, #tpu.memory_space<vmem>>, vector<1x128xf32>
    %59 = vector.broadcast %57 : vector<64x1xf32> to vector<64x128xf32>
    %60 = vector.broadcast %58 : vector<1x128xf32> to vector<64x128xf32>
    %61 = arith.addf %59, %60 : vector<64x128xf32>
    %cst_25 = arith.constant 0.000000e+00 : f32
    %62 = vector.broadcast %cst_25 : f32 to vector<64x128xf32>
    %63 = arith.cmpf ogt, %61, %62 : vector<64x128xf32>
    %cst_26 = arith.constant 2.000000e-01 : f32
    %64 = vector.broadcast %cst_26 : f32 to vector<64x128xf32>
    %65 = arith.mulf %64, %61 : vector<64x128xf32>
    %66 = arith.select %63, %61, %65 : vector<64x128xi1>, vector<64x128xf32>
    %67 = arith.addf %66, %5 : vector<64x128xf32>
    %cst_27 = arith.constant dense<0xFF800000> : vector<64xf32>
    %68 = vector.multi_reduction <maximumf>, %67, %cst_27 [1] : vector<64x128xf32> to vector<64xf32>
    %69 = vector.shape_cast %68 : vector<64xf32> to vector<64x1xf32>
    %70 = vector.broadcast %69 : vector<64x1xf32> to vector<64x128xf32>
    %71 = arith.subf %67, %70 : vector<64x128xf32>
    %72 = math.exp %71 : vector<64x128xf32>
    %cst_28 = arith.constant dense<0.000000e+00> : vector<64xf32>
    %73 = vector.multi_reduction <add>, %72, %cst_28 [1] : vector<64x128xf32> to vector<64xf32>
    %74 = vector.shape_cast %73 : vector<64xf32> to vector<64x1xf32>
    %75 = tpu.reciprocal %74 {approx = true} : vector<64x1xf32> -> vector<64x1xf32>
    %76 = vector.broadcast %75 : vector<64x1xf32> to vector<64x128xf32>
    %77 = arith.mulf %72, %76 : vector<64x128xf32>
    %78 = arith.truncf %77 : vector<64x128xf32> to vector<64x128xbf16>
    %c0_29 = arith.constant 0 : index
    %c32 = arith.constant 32 : index
    %79 = vector.load %arg1[%c0_29, %c32] : memref<128x128xbf16, #tpu.memory_space<vmem>>, vector<128x16xbf16>
    %cst_30 = arith.constant dense<0.000000e+00> : vector<64x16xf32>
    %80 = tpu.matmul %78, %79, %cst_30 {dimension_numbers = #tpu.dot_dimension_numbers<[1], [0], [0], [1], [0, 0, 1, 1], [], []>} : vector<64x128xbf16>, vector<128x16xbf16>, vector<64x16xf32> -> vector<64x16xf32>
    %c0_31 = arith.constant 0 : index
    %c32_32 = arith.constant 32 : index
    %81 = vector.load %arg7[%c0_31, %c32_32] : memref<64x128xf32, #tpu.memory_space<vmem>>, vector<64x16xf32>
    tpu.vector_store %arg7[%c0_31, %c32_32], %80 {strides = array<i32>} : memref<64x128xf32, #tpu.memory_space<vmem>>, vector<64x16xf32>,
    %82 = vector.extract_strided_slice %6 {offsets = [0, 3], sizes = [64, 1], strides = [1, 1]} : vector<64x128xf32> to vector<64x1xf32>
    %c3 = arith.constant 3 : index
    %c0_33 = arith.constant 0 : index
    %83 = vector.load %arg2[%c3, %c0_33] : memref<128x128xf32, #tpu.memory_space<vmem>>, vector<1x128xf32>
    %84 = vector.broadcast %82 : vector<64x1xf32> to vector<64x128xf32>
    %85 = vector.broadcast %83 : vector<1x128xf32> to vector<64x128xf32>
    %86 = arith.addf %84, %85 : vector<64x128xf32>
    %cst_34 = arith.constant 0.000000e+00 : f32
    %87 = vector.broadcast %cst_34 : f32 to vector<64x128xf32>
    %88 = arith.cmpf ogt, %86, %87 : vector<64x128xf32>
    %cst_35 = arith.constant 2.000000e-01 : f32
    %89 = vector.broadcast %cst_35 : f32 to vector<64x128xf32>
    %90 = arith.mulf %89, %86 : vector<64x128xf32>
    %91 = arith.select %88, %86, %90 : vector<64x128xi1>, vector<64x128xf32>
    %92 = arith.addf %91, %5 : vector<64x128xf32>
    %cst_36 = arith.constant dense<0xFF800000> : vector<64xf32>
    %93 = vector.multi_reduction <maximumf>, %92, %cst_36 [1] : vector<64x128xf32> to vector<64xf32>
    %94 = vector.shape_cast %93 : vector<64xf32> to vector<64x1xf32>
    %95 = vector.broadcast %94 : vector<64x1xf32> to vector<64x128xf32>
    %96 = arith.subf %92, %95 : vector<64x128xf32>
    %97 = math.exp %96 : vector<64x128xf32>
    %cst_37 = arith.constant dense<0.000000e+00> : vector<64xf32>
    %98 = vector.multi_reduction <add>, %97, %cst_37 [1] : vector<64x128xf32> to vector<64xf32>
    %99 = vector.shape_cast %98 : vector<64xf32> to vector<64x1xf32>
    %100 = tpu.reciprocal %99 {approx = true} : vector<64x1xf32> -> vector<64x1xf32>
    %101 = vector.broadcast %100 : vector<64x1xf32> to vector<64x128xf32>
    %102 = arith.mulf %97, %101 : vector<64x128xf32>
    %103 = arith.truncf %102 : vector<64x128xf32> to vector<64x128xbf16>
    %c0_38 = arith.constant 0 : index
    %c48 = arith.constant 48 : index
    %104 = vector.load %arg1[%c0_38, %c48] : memref<128x128xbf16, #tpu.memory_space<vmem>>, vector<128x16xbf16>
    %cst_39 = arith.constant dense<0.000000e+00> : vector<64x16xf32>
    %105 = tpu.matmul %103, %104, %cst_39 {dimension_numbers = #tpu.dot_dimension_numbers<[1], [0], [0], [1], [0, 0, 1, 1], [], []>} : vector<64x128xbf16>, vector<128x16xbf16>, vector<64x16xf32> -> vector<64x16xf32>
    %c0_40 = arith.constant 0 : index
    %c48_41 = arith.constant 48 : index
    %106 = vector.load %arg7[%c0_40, %c48_41] : memref<64x128xf32, #tpu.memory_space<vmem>>, vector<64x16xf32>
    tpu.vector_store %arg7[%c0_40, %c48_41], %105 {strides = array<i32>} : memref<64x128xf32, #tpu.memory_space<vmem>>, vector<64x16xf32>,
    %107 = vector.extract_strided_slice %6 {offsets = [0, 4], sizes = [64, 1], strides = [1, 1]} : vector<64x128xf32> to vector<64x1xf32>
    %c4 = arith.constant 4 : index
    %c0_42 = arith.constant 0 : index
    %108 = vector.load %arg2[%c4, %c0_42] : memref<128x128xf32, #tpu.memory_space<vmem>>, vector<1x128xf32>
    %109 = vector.broadcast %107 : vector<64x1xf32> to vector<64x128xf32>
    %110 = vector.broadcast %108 : vector<1x128xf32> to vector<64x128xf32>
    %111 = arith.addf %109, %110 : vector<64x128xf32>
    %cst_43 = arith.constant 0.000000e+00 : f32
    %112 = vector.broadcast %cst_43 : f32 to vector<64x128xf32>
    %113 = arith.cmpf ogt, %111, %112 : vector<64x128xf32>
    %cst_44 = arith.constant 2.000000e-01 : f32
    %114 = vector.broadcast %cst_44 : f32 to vector<64x128xf32>
    %115 = arith.mulf %114, %111 : vector<64x128xf32>
    %116 = arith.select %113, %111, %115 : vector<64x128xi1>, vector<64x128xf32>
    %117 = arith.addf %116, %5 : vector<64x128xf32>
    %cst_45 = arith.constant dense<0xFF800000> : vector<64xf32>
    %118 = vector.multi_reduction <maximumf>, %117, %cst_45 [1] : vector<64x128xf32> to vector<64xf32>
    %119 = vector.shape_cast %118 : vector<64xf32> to vector<64x1xf32>
    %120 = vector.broadcast %119 : vector<64x1xf32> to vector<64x128xf32>
    %121 = arith.subf %117, %120 : vector<64x128xf32>
    %122 = math.exp %121 : vector<64x128xf32>
    %cst_46 = arith.constant dense<0.000000e+00> : vector<64xf32>
    %123 = vector.multi_reduction <add>, %122, %cst_46 [1] : vector<64x128xf32> to vector<64xf32>
    %124 = vector.shape_cast %123 : vector<64xf32> to vector<64x1xf32>
    %125 = tpu.reciprocal %124 {approx = true} : vector<64x1xf32> -> vector<64x1xf32>
    %126 = vector.broadcast %125 : vector<64x1xf32> to vector<64x128xf32>
    %127 = arith.mulf %122, %126 : vector<64x128xf32>
    %128 = arith.truncf %127 : vector<64x128xf32> to vector<64x128xbf16>
    %c0_47 = arith.constant 0 : index
    %c64 = arith.constant 64 : index
    %129 = vector.load %arg1[%c0_47, %c64] : memref<128x128xbf16, #tpu.memory_space<vmem>>, vector<128x16xbf16>
    %cst_48 = arith.constant dense<0.000000e+00> : vector<64x16xf32>
    %130 = tpu.matmul %128, %129, %cst_48 {dimension_numbers = #tpu.dot_dimension_numbers<[1], [0], [0], [1], [0, 0, 1, 1], [], []>} : vector<64x128xbf16>, vector<128x16xbf16>, vector<64x16xf32> -> vector<64x16xf32>
    %c0_49 = arith.constant 0 : index
    %c64_50 = arith.constant 64 : index
    %131 = vector.load %arg7[%c0_49, %c64_50] : memref<64x128xf32, #tpu.memory_space<vmem>>, vector<64x16xf32>
    tpu.vector_store %arg7[%c0_49, %c64_50], %130 {strides = array<i32>} : memref<64x128xf32, #tpu.memory_space<vmem>>, vector<64x16xf32>,
    %132 = vector.extract_strided_slice %6 {offsets = [0, 5], sizes = [64, 1], strides = [1, 1]} : vector<64x128xf32> to vector<64x1xf32>
    %c5 = arith.constant 5 : index
    %c0_51 = arith.constant 0 : index
    %133 = vector.load %arg2[%c5, %c0_51] : memref<128x128xf32, #tpu.memory_space<vmem>>, vector<1x128xf32>
    %134 = vector.broadcast %132 : vector<64x1xf32> to vector<64x128xf32>
    %135 = vector.broadcast %133 : vector<1x128xf32> to vector<64x128xf32>
    %136 = arith.addf %134, %135 : vector<64x128xf32>
    %cst_52 = arith.constant 0.000000e+00 : f32
    %137 = vector.broadcast %cst_52 : f32 to vector<64x128xf32>
    %138 = arith.cmpf ogt, %136, %137 : vector<64x128xf32>
    %cst_53 = arith.constant 2.000000e-01 : f32
    %139 = vector.broadcast %cst_53 : f32 to vector<64x128xf32>
    %140 = arith.mulf %139, %136 : vector<64x128xf32>
    %141 = arith.select %138, %136, %140 : vector<64x128xi1>, vector<64x128xf32>
    %142 = arith.addf %141, %5 : vector<64x128xf32>
    %cst_54 = arith.constant dense<0xFF800000> : vector<64xf32>
    %143 = vector.multi_reduction <maximumf>, %142, %cst_54 [1] : vector<64x128xf32> to vector<64xf32>
    %144 = vector.shape_cast %143 : vector<64xf32> to vector<64x1xf32>
    %145 = vector.broadcast %144 : vector<64x1xf32> to vector<64x128xf32>
    %146 = arith.subf %142, %145 : vector<64x128xf32>
    %147 = math.exp %146 : vector<64x128xf32>
    %cst_55 = arith.constant dense<0.000000e+00> : vector<64xf32>
    %148 = vector.multi_reduction <add>, %147, %cst_55 [1] : vector<64x128xf32> to vector<64xf32>
    %149 = vector.shape_cast %148 : vector<64xf32> to vector<64x1xf32>
    %150 = tpu.reciprocal %149 {approx = true} : vector<64x1xf32> -> vector<64x1xf32>
    %151 = vector.broadcast %150 : vector<64x1xf32> to vector<64x128xf32>
    %152 = arith.mulf %147, %151 : vector<64x128xf32>
    %153 = arith.truncf %152 : vector<64x128xf32> to vector<64x128xbf16>
    %c0_56 = arith.constant 0 : index
    %c80 = arith.constant 80 : index
    %154 = vector.load %arg1[%c0_56, %c80] : memref<128x128xbf16, #tpu.memory_space<vmem>>, vector<128x16xbf16>
    %cst_57 = arith.constant dense<0.000000e+00> : vector<64x16xf32>
    %155 = tpu.matmul %153, %154, %cst_57 {dimension_numbers = #tpu.dot_dimension_numbers<[1], [0], [0], [1], [0, 0, 1, 1], [], []>} : vector<64x128xbf16>, vector<128x16xbf16>, vector<64x16xf32> -> vector<64x16xf32>
    %c0_58 = arith.constant 0 : index
    %c80_59 = arith.constant 80 : index
    %156 = vector.load %arg7[%c0_58, %c80_59] : memref<64x128xf32, #tpu.memory_space<vmem>>, vector<64x16xf32>
    tpu.vector_store %arg7[%c0_58, %c80_59], %155 {strides = array<i32>} : memref<64x128xf32, #tpu.memory_space<vmem>>, vector<64x16xf32>,
    %157 = vector.extract_strided_slice %6 {offsets = [0, 6], sizes = [64, 1], strides = [1, 1]} : vector<64x128xf32> to vector<64x1xf32>
    %c6 = arith.constant 6 : index
    %c0_60 = arith.constant 0 : index
    %158 = vector.load %arg2[%c6, %c0_60] : memref<128x128xf32, #tpu.memory_space<vmem>>, vector<1x128xf32>
    %159 = vector.broadcast %157 : vector<64x1xf32> to vector<64x128xf32>
    %160 = vector.broadcast %158 : vector<1x128xf32> to vector<64x128xf32>
    %161 = arith.addf %159, %160 : vector<64x128xf32>
    %cst_61 = arith.constant 0.000000e+00 : f32
    %162 = vector.broadcast %cst_61 : f32 to vector<64x128xf32>
    %163 = arith.cmpf ogt, %161, %162 : vector<64x128xf32>
    %cst_62 = arith.constant 2.000000e-01 : f32
    %164 = vector.broadcast %cst_62 : f32 to vector<64x128xf32>
    %165 = arith.mulf %164, %161 : vector<64x128xf32>
    %166 = arith.select %163, %161, %165 : vector<64x128xi1>, vector<64x128xf32>
    %167 = arith.addf %166, %5 : vector<64x128xf32>
    %cst_63 = arith.constant dense<0xFF800000> : vector<64xf32>
    %168 = vector.multi_reduction <maximumf>, %167, %cst_63 [1] : vector<64x128xf32> to vector<64xf32>
    %169 = vector.shape_cast %168 : vector<64xf32> to vector<64x1xf32>
    %170 = vector.broadcast %169 : vector<64x1xf32> to vector<64x128xf32>
    %171 = arith.subf %167, %170 : vector<64x128xf32>
    %172 = math.exp %171 : vector<64x128xf32>
    %cst_64 = arith.constant dense<0.000000e+00> : vector<64xf32>
    %173 = vector.multi_reduction <add>, %172, %cst_64 [1] : vector<64x128xf32> to vector<64xf32>
    %174 = vector.shape_cast %173 : vector<64xf32> to vector<64x1xf32>
    %175 = tpu.reciprocal %174 {approx = true} : vector<64x1xf32> -> vector<64x1xf32>
    %176 = vector.broadcast %175 : vector<64x1xf32> to vector<64x128xf32>
    %177 = arith.mulf %172, %176 : vector<64x128xf32>
    %178 = arith.truncf %177 : vector<64x128xf32> to vector<64x128xbf16>
    %c0_65 = arith.constant 0 : index
    %c96 = arith.constant 96 : index
    %179 = vector.load %arg1[%c0_65, %c96] : memref<128x128xbf16, #tpu.memory_space<vmem>>, vector<128x16xbf16>
    %cst_66 = arith.constant dense<0.000000e+00> : vector<64x16xf32>
    %180 = tpu.matmul %178, %179, %cst_66 {dimension_numbers = #tpu.dot_dimension_numbers<[1], [0], [0], [1], [0, 0, 1, 1], [], []>} : vector<64x128xbf16>, vector<128x16xbf16>, vector<64x16xf32> -> vector<64x16xf32>
    %c0_67 = arith.constant 0 : index
    %c96_68 = arith.constant 96 : index
    %181 = vector.load %arg7[%c0_67, %c96_68] : memref<64x128xf32, #tpu.memory_space<vmem>>, vector<64x16xf32>
    tpu.vector_store %arg7[%c0_67, %c96_68], %180 {strides = array<i32>} : memref<64x128xf32, #tpu.memory_space<vmem>>, vector<64x16xf32>,
    %182 = vector.extract_strided_slice %6 {offsets = [0, 7], sizes = [64, 1], strides = [1, 1]} : vector<64x128xf32> to vector<64x1xf32>
    %c7 = arith.constant 7 : index
    %c0_69 = arith.constant 0 : index
    %183 = vector.load %arg2[%c7, %c0_69] : memref<128x128xf32, #tpu.memory_space<vmem>>, vector<1x128xf32>
    %184 = vector.broadcast %182 : vector<64x1xf32> to vector<64x128xf32>
    %185 = vector.broadcast %183 : vector<1x128xf32> to vector<64x128xf32>
    %186 = arith.addf %184, %185 : vector<64x128xf32>
    %cst_70 = arith.constant 0.000000e+00 : f32
    %187 = vector.broadcast %cst_70 : f32 to vector<64x128xf32>
    %188 = arith.cmpf ogt, %186, %187 : vector<64x128xf32>
    %cst_71 = arith.constant 2.000000e-01 : f32
    %189 = vector.broadcast %cst_71 : f32 to vector<64x128xf32>
    %190 = arith.mulf %189, %186 : vector<64x128xf32>
    %191 = arith.select %188, %186, %190 : vector<64x128xi1>, vector<64x128xf32>
    %192 = arith.addf %191, %5 : vector<64x128xf32>
    %cst_72 = arith.constant dense<0xFF800000> : vector<64xf32>
    %193 = vector.multi_reduction <maximumf>, %192, %cst_72 [1] : vector<64x128xf32> to vector<64xf32>
    %194 = vector.shape_cast %193 : vector<64xf32> to vector<64x1xf32>
    %195 = vector.broadcast %194 : vector<64x1xf32> to vector<64x128xf32>
    %196 = arith.subf %192, %195 : vector<64x128xf32>
    %197 = math.exp %196 : vector<64x128xf32>
    %cst_73 = arith.constant dense<0.000000e+00> : vector<64xf32>
    %198 = vector.multi_reduction <add>, %197, %cst_73 [1] : vector<64x128xf32> to vector<64xf32>
    %199 = vector.shape_cast %198 : vector<64xf32> to vector<64x1xf32>
    %200 = tpu.reciprocal %199 {approx = true} : vector<64x1xf32> -> vector<64x1xf32>
    %201 = vector.broadcast %200 : vector<64x1xf32> to vector<64x128xf32>
    %202 = arith.mulf %197, %201 : vector<64x128xf32>
    %203 = arith.truncf %202 : vector<64x128xf32> to vector<64x128xbf16>
    %c0_74 = arith.constant 0 : index
    %c112 = arith.constant 112 : index
    %204 = vector.load %arg1[%c0_74, %c112] : memref<128x128xbf16, #tpu.memory_space<vmem>>, vector<128x16xbf16>
    %cst_75 = arith.constant dense<0.000000e+00> : vector<64x16xf32>
    %205 = tpu.matmul %203, %204, %cst_75 {dimension_numbers = #tpu.dot_dimension_numbers<[1], [0], [0], [1], [0, 0, 1, 1], [], []>} : vector<64x128xbf16>, vector<128x16xbf16>, vector<64x16xf32> -> vector<64x16xf32>
    %c0_76 = arith.constant 0 : index
    %c112_77 = arith.constant 112 : index
    %206 = vector.load %arg7[%c0_76, %c112_77] : memref<64x128xf32, #tpu.memory_space<vmem>>, vector<64x16xf32>
    tpu.vector_store %arg7[%c0_76, %c112_77], %205 {strides = array<i32>} : memref<64x128xf32, #tpu.memory_space<vmem>>, vector<64x16xf32>,
    %c0_78 = arith.constant 0 : index
    %c0_79 = arith.constant 0 : index
    %207 = vector.load %arg7[%c0_78, %c0_79] : memref<64x128xf32, #tpu.memory_space<vmem>>, vector<64x128xf32>
    %c0_80 = arith.constant 0 : index
    %c0_81 = arith.constant 0 : index
    %208 = vector.load %arg5[%c0_80, %c0_81] : memref<1x128xf32, #tpu.memory_space<vmem>>, vector<1x128xf32>
    %209 = vector.broadcast %208 : vector<1x128xf32> to vector<64x128xf32>
    %210 = arith.addf %207, %209 : vector<64x128xf32>
    %cst_82 = arith.constant 0.000000e+00 : f32
    %211 = vector.broadcast %cst_82 : f32 to vector<64x128xf32>
    %212 = arith.maximumf %210, %211 : vector<64x128xf32>
    %cst_83 = arith.constant 0.000000e+00 : f32
    %213 = vector.broadcast %cst_83 : f32 to vector<64x128xf32>
    %214 = arith.minimumf %210, %213 : vector<64x128xf32>
    %215 = math.exp %214 : vector<64x128xf32>
    %cst_84 = arith.constant 1.000000e+00 : f32
    %216 = vector.broadcast %cst_84 : f32 to vector<64x128xf32>
    %217 = arith.subf %215, %216 : vector<64x128xf32>
    %218 = arith.addf %212, %217 : vector<64x128xf32>
    %219 = arith.truncf %218 : vector<64x128xf32> to vector<64x128xbf16>
    %c0_85 = arith.constant 0 : index
    %c0_86 = arith.constant 0 : index
    %220 = vector.load %arg6[%c0_85, %c0_86] : memref<64x128xbf16, #tpu.memory_space<vmem>>, vector<64x128xbf16>
    tpu.vector_store %arg6[%c0_85, %c0_86], %219 {strides = array<i32>} : memref<64x128xbf16, #tpu.memory_space<vmem>>, vector<64x128xbf16>,
    return
  }
  func.func @transform_0(%arg0: i32) -> (i32, i32) {
    %c0_i32 = arith.constant 0 : i32
    %c0_i32_0 = arith.constant 0 : i32
    %c0_i32_1 = arith.constant 0 : i32
    return %c0_i32, %c0_i32_0 : i32, i32
  }
  func.func @transform_1(%arg0: i32) -> (i32, i32) {
    %c0_i32 = arith.constant 0 : i32
    %c0_i32_0 = arith.constant 0 : i32
    %c0_i32_1 = arith.constant 0 : i32
    return %c0_i32, %c0_i32_0 : i32, i32
  }
  func.func @transform_2(%arg0: i32) -> (i32, i32) {
    %c0_i32 = arith.constant 0 : i32
    %c0_i32_0 = arith.constant 0 : i32
    return %arg0, %c0_i32 : i32, i32
  }
  func.func @transform_3(%arg0: i32) -> (i32, i32) {
    %c0_i32 = arith.constant 0 : i32
    %c0_i32_0 = arith.constant 0 : i32
    return %arg0, %c0_i32 : i32, i32
  }
  func.func @transform_4(%arg0: i32) -> (i32, i32) {
    %c0_i32 = arith.constant 0 : i32
    %c0_i32_0 = arith.constant 0 : i32
    %c0_i32_1 = arith.constant 0 : i32
    return %c0_i32, %c0_i32_0 : i32, i32
  }
  func.func @transform_5(%arg0: i32) -> (i32, i32) {
    %c0_i32 = arith.constant 0 : i32
    %c0_i32_0 = arith.constant 0 : i32
    return %arg0, %c0_i32 : i32, i32
  }
}

module attributes {stable_mosaic.version = 11 : i64} {
  func.func @_attn_kernel(%arg0: i32, %arg1: memref<128x128xbf16, #tpu.memory_space<vmem>>, %arg2: memref<128x128xf32, #tpu.memory_space<vmem>>, %arg3: memref<64x128xf32, #tpu.memory_space<vmem>>, %arg4: memref<64x128xi8, #tpu.memory_space<vmem>>, %arg5: memref<1x128xf32, #tpu.memory_space<vmem>>, %arg6: memref<64x128xf32, #tpu.memory_space<vmem>>, %arg7: memref<64x128xf32, #tpu.memory_space<vmem>>) attributes {dimension_semantics = [#tpu.dimension_semantics<parallel>], iteration_bounds = array<i64: 2>, scalar_prefetch = 0 : i64, scratch_operands = 1 : i64, tpu.core_type = #tpu.core_type<tc>, window_params = [{pipeline_mode = #tpu.pipeline_mode<synchronous>, transform_indices = @transform_0, window_bounds = array<i64: 128, 128>}, {pipeline_mode = #tpu.pipeline_mode<synchronous>, transform_indices = @transform_1, window_bounds = array<i64: 128, 128>}, {transform_indices = @transform_2, window_bounds = array<i64: 64, 128>}, {transform_indices = @transform_3, window_bounds = array<i64: 64, 128>}, {pipeline_mode = #tpu.pipeline_mode<synchronous>, transform_indices = @transform_4, window_bounds = array<i64: 1, 128>}, {transform_indices = @transform_5, window_bounds = array<i64: 64, 128>}]} {
    %c0 = arith.constant 0 : index
    %c0_0 = arith.constant 0 : index
    %0 = vector.load %arg4[%c0, %c0_0] : memref<64x128xi8, #tpu.memory_space<vmem>>, vector<64x128xi8>
    %1 = arith.sitofp %0 : vector<64x128xi8> to vector<64x128xf32>
    %cst = arith.constant 1.000000e+00 : f32
    %2 = vector.broadcast %cst : f32 to vector<64x128xf32>
    %3 = arith.subf %1, %2 : vector<64x128xf32>
    %cst_1 = arith.constant 1.000000e+09 : f32
    %4 = vector.broadcast %cst_1 : f32 to vector<64x128xf32>
    %5 = arith.mulf %3, %4 : vector<64x128xf32>
    %c0_2 = arith.constant 0 : index
    %c0_3 = arith.constant 0 : index
    %6 = vector.load %arg3[%c0_2, %c0_3] : memref<64x128xf32, #tpu.memory_space<vmem>>, vector<64x128xf32>
    %7 = vector.extract_strided_slice %6 {offsets = [0, 0], sizes = [64, 1], strides = [1, 1]} : vector<64x128xf32> to vector<64x1xf32>
    %c0_4 = arith.constant 0 : index
    %c0_5 = arith.constant 0 : index
    %8 = vector.load %arg2[%c0_4, %c0_5] : memref<128x128xf32, #tpu.memory_space<vmem>>, vector<1x128xf32>
    %9 = vector.broadcast %7 : vector<64x1xf32> to vector<64x128xf32>
    %10 = vector.broadcast %8 : vector<1x128xf32> to vector<64x128xf32>
    %11 = arith.addf %9, %10 : vector<64x128xf32>
    %cst_6 = arith.constant 0.000000e+00 : f32
    %12 = vector.broadcast %cst_6 : f32 to vector<64x128xf32>
    %13 = arith.cmpf ogt, %11, %12 : vector<64x128xf32>
    %cst_7 = arith.constant 2.000000e-01 : f32
    %14 = vector.broadcast %cst_7 : f32 to vector<64x128xf32>
    %15 = arith.mulf %14, %11 : vector<64x128xf32>
    %16 = arith.select %13, %11, %15 : vector<64x128xi1>, vector<64x128xf32>
    %17 = arith.addf %16, %5 : vector<64x128xf32>
    %cst_8 = arith.constant dense<0xFF800000> : vector<64xf32>
    %18 = vector.multi_reduction <maximumf>, %17, %cst_8 [1] : vector<64x128xf32> to vector<64xf32>
    %19 = vector.shape_cast %18 : vector<64xf32> to vector<64x1xf32>
    %20 = vector.broadcast %19 : vector<64x1xf32> to vector<64x128xf32>
    %21 = arith.subf %17, %20 : vector<64x128xf32>
    %22 = math.exp %21 : vector<64x128xf32>
    %cst_9 = arith.constant dense<0.000000e+00> : vector<64xf32>
    %23 = vector.multi_reduction <add>, %22, %cst_9 [1] : vector<64x128xf32> to vector<64xf32>
    %24 = vector.shape_cast %23 : vector<64xf32> to vector<64x1xf32>
    %25 = tpu.reciprocal %24 {approx = true} : vector<64x1xf32> -> vector<64x1xf32>
    %26 = vector.broadcast %25 : vector<64x1xf32> to vector<64x128xf32>
    %27 = arith.mulf %22, %26 : vector<64x128xf32>
    %28 = arith.truncf %27 : vector<64x128xf32> to vector<64x128xbf16>
    %c0_10 = arith.constant 0 : index
    %c0_11 = arith.constant 0 : index
    %29 = vector.load %arg1[%c0_10, %c0_11] : memref<128x128xbf16, #tpu.memory_space<vmem>>, vector<128x128xbf16>
    %cst_12 = arith.constant dense<0.000000e+00> : vector<64x128xf32>
    %30 = tpu.matmul %28, %29, %cst_12 {dimension_numbers = #tpu.dot_dimension_numbers<[1], [0], [0], [1], [0, 0, 1, 1], [], []>} : vector<64x128xbf16>, vector<128x128xbf16>, vector<64x128xf32> -> vector<64x128xf32>
    %c0_13 = arith.constant 0 : index
    %c0_14 = arith.constant 0 : index
    %31 = vector.load %arg7[%c0_13, %c0_14] : memref<64x128xf32, #tpu.memory_space<vmem>>, vector<64x128xf32>
    tpu.vector_store %arg7[%c0_13, %c0_14], %30 {strides = array<i32>} : memref<64x128xf32, #tpu.memory_space<vmem>>, vector<64x128xf32>,
    %c0_15 = arith.constant 0 : index
    %c0_16 = arith.constant 0 : index
    %32 = vector.load %arg7[%c0_15, %c0_16] : memref<64x128xf32, #tpu.memory_space<vmem>>, vector<64x128xf32>
    %c0_17 = arith.constant 0 : index
    %c0_18 = arith.constant 0 : index
    %33 = vector.load %arg5[%c0_17, %c0_18] : memref<1x128xf32, #tpu.memory_space<vmem>>, vector<1x128xf32>
    %34 = vector.broadcast %33 : vector<1x128xf32> to vector<64x128xf32>
    %35 = arith.addf %32, %34 : vector<64x128xf32>
    %c0_19 = arith.constant 0 : index
    %c0_20 = arith.constant 0 : index
    %36 = vector.load %arg6[%c0_19, %c0_20] : memref<64x128xf32, #tpu.memory_space<vmem>>, vector<64x128xf32>
    tpu.vector_store %arg6[%c0_19, %c0_20], %35 {strides = array<i32>} : memref<64x128xf32, #tpu.memory_space<vmem>>, vector<64x128xf32>,
    return
  }
  func.func @transform_0(%arg0: i32) -> (i32, i32) {
    %c0_i32 = arith.constant 0 : i32
    %c0_i32_0 = arith.constant 0 : i32
    %c0_i32_1 = arith.constant 0 : i32
    return %c0_i32, %c0_i32_0 : i32, i32
  }
  func.func @transform_1(%arg0: i32) -> (i32, i32) {
    %c0_i32 = arith.constant 0 : i32
    %c0_i32_0 = arith.constant 0 : i32
    %c0_i32_1 = arith.constant 0 : i32
    return %c0_i32, %c0_i32_0 : i32, i32
  }
  func.func @transform_2(%arg0: i32) -> (i32, i32) {
    %c0_i32 = arith.constant 0 : i32
    %c0_i32_0 = arith.constant 0 : i32
    return %arg0, %c0_i32 : i32, i32
  }
  func.func @transform_3(%arg0: i32) -> (i32, i32) {
    %c0_i32 = arith.constant 0 : i32
    %c0_i32_0 = arith.constant 0 : i32
    return %arg0, %c0_i32 : i32, i32
  }
  func.func @transform_4(%arg0: i32) -> (i32, i32) {
    %c0_i32 = arith.constant 0 : i32
    %c0_i32_0 = arith.constant 0 : i32
    %c0_i32_1 = arith.constant 0 : i32
    return %c0_i32, %c0_i32_0 : i32, i32
  }
  func.func @transform_5(%arg0: i32) -> (i32, i32) {
    %c0_i32 = arith.constant 0 : i32
    %c0_i32_0 = arith.constant 0 : i32
    return %arg0, %c0_i32 : i32, i32
  }
}

module attributes {stable_mosaic.version = 11 : i64} {
  func.func @_proj_kernel(%arg0: i32, %arg1: memref<64x128xbf16, #tpu.memory_space<vmem>>, %arg2: memref<128x128xbf16, #tpu.memory_space<vmem>>, %arg3: memref<128x128xbf16, #tpu.memory_space<vmem>>, %arg4: memref<128x128xbf16, #tpu.memory_space<vmem>>, %arg5: memref<64x128xbf16, #tpu.memory_space<vmem>>, %arg6: memref<64x128xf32, #tpu.memory_space<vmem>>, %arg7: memref<64x128xf32, #tpu.memory_space<vmem>>) attributes {dimension_semantics = [#tpu.dimension_semantics<parallel>], iteration_bounds = array<i64: 2>, scalar_prefetch = 0 : i64, scratch_operands = 0 : i64, tpu.core_type = #tpu.core_type<tc>, window_params = [{transform_indices = @transform_0, window_bounds = array<i64: 64, 128>}, {pipeline_mode = #tpu.pipeline_mode<synchronous>, transform_indices = @transform_1, window_bounds = array<i64: 128, 128>}, {pipeline_mode = #tpu.pipeline_mode<synchronous>, transform_indices = @transform_2, window_bounds = array<i64: 128, 128>}, {pipeline_mode = #tpu.pipeline_mode<synchronous>, transform_indices = @transform_3, window_bounds = array<i64: 128, 128>}, {transform_indices = @transform_4, window_bounds = array<i64: 64, 128>}, {transform_indices = @transform_5, window_bounds = array<i64: 64, 128>}, {transform_indices = @transform_6, window_bounds = array<i64: 64, 128>}]} {
    %c0 = arith.constant 0 : index
    %c0_0 = arith.constant 0 : index
    %0 = vector.load %arg1[%c0, %c0_0] : memref<64x128xbf16, #tpu.memory_space<vmem>>, vector<64x128xbf16>
    %c0_1 = arith.constant 0 : index
    %c0_2 = arith.constant 0 : index
    %1 = vector.load %arg2[%c0_1, %c0_2] : memref<128x128xbf16, #tpu.memory_space<vmem>>, vector<128x128xbf16>
    %cst = arith.constant dense<0.000000e+00> : vector<64x128xf32>
    %2 = tpu.matmul %0, %1, %cst {dimension_numbers = #tpu.dot_dimension_numbers<[1], [0], [0], [1], [0, 0, 1, 1], [], []>} : vector<64x128xbf16>, vector<128x128xbf16>, vector<64x128xf32> -> vector<64x128xf32>
    %3 = arith.truncf %2 : vector<64x128xf32> to vector<64x128xbf16>
    %c0_3 = arith.constant 0 : index
    %c0_4 = arith.constant 0 : index
    %4 = vector.load %arg5[%c0_3, %c0_4] : memref<64x128xbf16, #tpu.memory_space<vmem>>, vector<64x128xbf16>
    tpu.vector_store %arg5[%c0_3, %c0_4], %3 {strides = array<i32>} : memref<64x128xbf16, #tpu.memory_space<vmem>>, vector<64x128xbf16>,
    %c0_5 = arith.constant 0 : index
    %c0_6 = arith.constant 0 : index
    %5 = vector.load %arg3[%c0_5, %c0_6] : memref<128x128xbf16, #tpu.memory_space<vmem>>, vector<128x128xbf16>
    %cst_7 = arith.constant dense<0.000000e+00> : vector<64x128xf32>
    %6 = tpu.matmul %3, %5, %cst_7 {dimension_numbers = #tpu.dot_dimension_numbers<[1], [0], [0], [1], [0, 0, 1, 1], [], []>} : vector<64x128xbf16>, vector<128x128xbf16>, vector<64x128xf32> -> vector<64x128xf32>
    %c0_8 = arith.constant 0 : index
    %c0_9 = arith.constant 0 : index
    %7 = vector.load %arg6[%c0_8, %c0_9] : memref<64x128xf32, #tpu.memory_space<vmem>>, vector<64x128xf32>
    tpu.vector_store %arg6[%c0_8, %c0_9], %6 {strides = array<i32>} : memref<64x128xf32, #tpu.memory_space<vmem>>, vector<64x128xf32>,
    %c0_10 = arith.constant 0 : index
    %c0_11 = arith.constant 0 : index
    %8 = vector.load %arg4[%c0_10, %c0_11] : memref<128x128xbf16, #tpu.memory_space<vmem>>, vector<128x128xbf16>
    %cst_12 = arith.constant dense<0.000000e+00> : vector<64x128xf32>
    %9 = tpu.matmul %3, %8, %cst_12 {dimension_numbers = #tpu.dot_dimension_numbers<[1], [0], [0], [1], [0, 0, 1, 1], [], []>} : vector<64x128xbf16>, vector<128x128xbf16>, vector<64x128xf32> -> vector<64x128xf32>
    %c0_13 = arith.constant 0 : index
    %c0_14 = arith.constant 0 : index
    %10 = vector.load %arg7[%c0_13, %c0_14] : memref<64x128xf32, #tpu.memory_space<vmem>>, vector<64x128xf32>
    tpu.vector_store %arg7[%c0_13, %c0_14], %9 {strides = array<i32>} : memref<64x128xf32, #tpu.memory_space<vmem>>, vector<64x128xf32>,
    return
  }
  func.func @transform_0(%arg0: i32) -> (i32, i32) {
    %c0_i32 = arith.constant 0 : i32
    %c0_i32_0 = arith.constant 0 : i32
    return %arg0, %c0_i32 : i32, i32
  }
  func.func @transform_1(%arg0: i32) -> (i32, i32) {
    %c0_i32 = arith.constant 0 : i32
    %c0_i32_0 = arith.constant 0 : i32
    %c0_i32_1 = arith.constant 0 : i32
    return %c0_i32, %c0_i32_0 : i32, i32
  }
  func.func @transform_2(%arg0: i32) -> (i32, i32) {
    %c0_i32 = arith.constant 0 : i32
    %c0_i32_0 = arith.constant 0 : i32
    %c0_i32_1 = arith.constant 0 : i32
    return %c0_i32, %c0_i32_0 : i32, i32
  }
  func.func @transform_3(%arg0: i32) -> (i32, i32) {
    %c0_i32 = arith.constant 0 : i32
    %c0_i32_0 = arith.constant 0 : i32
    %c0_i32_1 = arith.constant 0 : i32
    return %c0_i32, %c0_i32_0 : i32, i32
  }
  func.func @transform_4(%arg0: i32) -> (i32, i32) {
    %c0_i32 = arith.constant 0 : i32
    %c0_i32_0 = arith.constant 0 : i32
    return %arg0, %c0_i32 : i32, i32
  }
  func.func @transform_5(%arg0: i32) -> (i32, i32) {
    %c0_i32 = arith.constant 0 : i32
    %c0_i32_0 = arith.constant 0 : i32
    return %arg0, %c0_i32 : i32, i32
  }
  func.func @transform_6(%arg0: i32) -> (i32, i32) {
    %c0_i32 = arith.constant 0 : i32
    %c0_i32_0 = arith.constant 0 : i32
    return %arg0, %c0_i32 : i32, i32
  }
}

module attributes {stable_mosaic.version = 11 : i64} {
  func.func @_attn_kernel(%arg0: i32, %arg1: memref<128x128xbf16, #tpu.memory_space<vmem>>, %arg2: memref<128x128xf32, #tpu.memory_space<vmem>>, %arg3: memref<64x128xf32, #tpu.memory_space<vmem>>, %arg4: memref<64x128xi8, #tpu.memory_space<vmem>>, %arg5: memref<1x128xf32, #tpu.memory_space<vmem>>, %arg6: memref<64x128xbf16, #tpu.memory_space<vmem>>, %arg7: memref<64x128xf32, #tpu.memory_space<vmem>>) attributes {dimension_semantics = [#tpu.dimension_semantics<parallel>], iteration_bounds = array<i64: 2>, scalar_prefetch = 0 : i64, scratch_operands = 1 : i64, tpu.core_type = #tpu.core_type<tc>, window_params = [{pipeline_mode = #tpu.pipeline_mode<synchronous>, transform_indices = @transform_0, window_bounds = array<i64: 128, 128>}, {pipeline_mode = #tpu.pipeline_mode<synchronous>, transform_indices = @transform_1, window_bounds = array<i64: 128, 128>}, {transform_indices = @transform_2, window_bounds = array<i64: 64, 128>}, {transform_indices = @transform_3, window_bounds = array<i64: 64, 128>}, {pipeline_mode = #tpu.pipeline_mode<synchronous>, transform_indices = @transform_4, window_bounds = array<i64: 1, 128>}, {transform_indices = @transform_5, window_bounds = array<i64: 64, 128>}]} {
    %c0 = arith.constant 0 : index
    %c0_0 = arith.constant 0 : index
    %0 = vector.load %arg4[%c0, %c0_0] : memref<64x128xi8, #tpu.memory_space<vmem>>, vector<64x128xi8>
    %1 = arith.sitofp %0 : vector<64x128xi8> to vector<64x128xf32>
    %cst = arith.constant 1.000000e+00 : f32
    %2 = vector.broadcast %cst : f32 to vector<64x128xf32>
    %3 = arith.subf %1, %2 : vector<64x128xf32>
    %cst_1 = arith.constant 1.000000e+09 : f32
    %4 = vector.broadcast %cst_1 : f32 to vector<64x128xf32>
    %5 = arith.mulf %3, %4 : vector<64x128xf32>
    %c0_2 = arith.constant 0 : index
    %c0_3 = arith.constant 0 : index
    %6 = vector.load %arg3[%c0_2, %c0_3] : memref<64x128xf32, #tpu.memory_space<vmem>>, vector<64x128xf32>
    %7 = vector.extract_strided_slice %6 {offsets = [0, 0], sizes = [64, 1], strides = [1, 1]} : vector<64x128xf32> to vector<64x1xf32>
    %c0_4 = arith.constant 0 : index
    %c0_5 = arith.constant 0 : index
    %8 = vector.load %arg2[%c0_4, %c0_5] : memref<128x128xf32, #tpu.memory_space<vmem>>, vector<1x128xf32>
    %9 = vector.broadcast %7 : vector<64x1xf32> to vector<64x128xf32>
    %10 = vector.broadcast %8 : vector<1x128xf32> to vector<64x128xf32>
    %11 = arith.addf %9, %10 : vector<64x128xf32>
    %cst_6 = arith.constant 0.000000e+00 : f32
    %12 = vector.broadcast %cst_6 : f32 to vector<64x128xf32>
    %13 = arith.cmpf ogt, %11, %12 : vector<64x128xf32>
    %cst_7 = arith.constant 2.000000e-01 : f32
    %14 = vector.broadcast %cst_7 : f32 to vector<64x128xf32>
    %15 = arith.mulf %14, %11 : vector<64x128xf32>
    %16 = arith.select %13, %11, %15 : vector<64x128xi1>, vector<64x128xf32>
    %17 = arith.addf %16, %5 : vector<64x128xf32>
    %cst_8 = arith.constant dense<0xFF800000> : vector<64xf32>
    %18 = vector.multi_reduction <maximumf>, %17, %cst_8 [1] : vector<64x128xf32> to vector<64xf32>
    %19 = vector.shape_cast %18 : vector<64xf32> to vector<64x1xf32>
    %20 = vector.broadcast %19 : vector<64x1xf32> to vector<64x128xf32>
    %21 = arith.subf %17, %20 : vector<64x128xf32>
    %22 = math.exp %21 : vector<64x128xf32>
    %cst_9 = arith.constant dense<0.000000e+00> : vector<64xf32>
    %23 = vector.multi_reduction <add>, %22, %cst_9 [1] : vector<64x128xf32> to vector<64xf32>
    %24 = vector.shape_cast %23 : vector<64xf32> to vector<64x1xf32>
    %25 = tpu.reciprocal %24 {approx = true} : vector<64x1xf32> -> vector<64x1xf32>
    %26 = vector.broadcast %25 : vector<64x1xf32> to vector<64x128xf32>
    %27 = arith.mulf %22, %26 : vector<64x128xf32>
    %28 = arith.truncf %27 : vector<64x128xf32> to vector<64x128xbf16>
    %c0_10 = arith.constant 0 : index
    %c0_11 = arith.constant 0 : index
    %29 = vector.load %arg1[%c0_10, %c0_11] : memref<128x128xbf16, #tpu.memory_space<vmem>>, vector<128x16xbf16>
    %cst_12 = arith.constant dense<0.000000e+00> : vector<64x16xf32>
    %30 = tpu.matmul %28, %29, %cst_12 {dimension_numbers = #tpu.dot_dimension_numbers<[1], [0], [0], [1], [0, 0, 1, 1], [], []>} : vector<64x128xbf16>, vector<128x16xbf16>, vector<64x16xf32> -> vector<64x16xf32>
    %c0_13 = arith.constant 0 : index
    %c0_14 = arith.constant 0 : index
    %31 = vector.load %arg7[%c0_13, %c0_14] : memref<64x128xf32, #tpu.memory_space<vmem>>, vector<64x16xf32>
    tpu.vector_store %arg7[%c0_13, %c0_14], %30 {strides = array<i32>} : memref<64x128xf32, #tpu.memory_space<vmem>>, vector<64x16xf32>,
    %32 = vector.extract_strided_slice %6 {offsets = [0, 1], sizes = [64, 1], strides = [1, 1]} : vector<64x128xf32> to vector<64x1xf32>
    %c1 = arith.constant 1 : index
    %c0_15 = arith.constant 0 : index
    %33 = vector.load %arg2[%c1, %c0_15] : memref<128x128xf32, #tpu.memory_space<vmem>>, vector<1x128xf32>
    %34 = vector.broadcast %32 : vector<64x1xf32> to vector<64x128xf32>
    %35 = vector.broadcast %33 : vector<1x128xf32> to vector<64x128xf32>
    %36 = arith.addf %34, %35 : vector<64x128xf32>
    %cst_16 = arith.constant 0.000000e+00 : f32
    %37 = vector.broadcast %cst_16 : f32 to vector<64x128xf32>
    %38 = arith.cmpf ogt, %36, %37 : vector<64x128xf32>
    %cst_17 = arith.constant 2.000000e-01 : f32
    %39 = vector.broadcast %cst_17 : f32 to vector<64x128xf32>
    %40 = arith.mulf %39, %36 : vector<64x128xf32>
    %41 = arith.select %38, %36, %40 : vector<64x128xi1>, vector<64x128xf32>
    %42 = arith.addf %41, %5 : vector<64x128xf32>
    %cst_18 = arith.constant dense<0xFF800000> : vector<64xf32>
    %43 = vector.multi_reduction <maximumf>, %42, %cst_18 [1] : vector<64x128xf32> to vector<64xf32>
    %44 = vector.shape_cast %43 : vector<64xf32> to vector<64x1xf32>
    %45 = vector.broadcast %44 : vector<64x1xf32> to vector<64x128xf32>
    %46 = arith.subf %42, %45 : vector<64x128xf32>
    %47 = math.exp %46 : vector<64x128xf32>
    %cst_19 = arith.constant dense<0.000000e+00> : vector<64xf32>
    %48 = vector.multi_reduction <add>, %47, %cst_19 [1] : vector<64x128xf32> to vector<64xf32>
    %49 = vector.shape_cast %48 : vector<64xf32> to vector<64x1xf32>
    %50 = tpu.reciprocal %49 {approx = true} : vector<64x1xf32> -> vector<64x1xf32>
    %51 = vector.broadcast %50 : vector<64x1xf32> to vector<64x128xf32>
    %52 = arith.mulf %47, %51 : vector<64x128xf32>
    %53 = arith.truncf %52 : vector<64x128xf32> to vector<64x128xbf16>
    %c0_20 = arith.constant 0 : index
    %c16 = arith.constant 16 : index
    %54 = vector.load %arg1[%c0_20, %c16] : memref<128x128xbf16, #tpu.memory_space<vmem>>, vector<128x16xbf16>
    %cst_21 = arith.constant dense<0.000000e+00> : vector<64x16xf32>
    %55 = tpu.matmul %53, %54, %cst_21 {dimension_numbers = #tpu.dot_dimension_numbers<[1], [0], [0], [1], [0, 0, 1, 1], [], []>} : vector<64x128xbf16>, vector<128x16xbf16>, vector<64x16xf32> -> vector<64x16xf32>
    %c0_22 = arith.constant 0 : index
    %c16_23 = arith.constant 16 : index
    %56 = vector.load %arg7[%c0_22, %c16_23] : memref<64x128xf32, #tpu.memory_space<vmem>>, vector<64x16xf32>
    tpu.vector_store %arg7[%c0_22, %c16_23], %55 {strides = array<i32>} : memref<64x128xf32, #tpu.memory_space<vmem>>, vector<64x16xf32>,
    %57 = vector.extract_strided_slice %6 {offsets = [0, 2], sizes = [64, 1], strides = [1, 1]} : vector<64x128xf32> to vector<64x1xf32>
    %c2 = arith.constant 2 : index
    %c0_24 = arith.constant 0 : index
    %58 = vector.load %arg2[%c2, %c0_24] : memref<128x128xf32, #tpu.memory_space<vmem>>, vector<1x128xf32>
    %59 = vector.broadcast %57 : vector<64x1xf32> to vector<64x128xf32>
    %60 = vector.broadcast %58 : vector<1x128xf32> to vector<64x128xf32>
    %61 = arith.addf %59, %60 : vector<64x128xf32>
    %cst_25 = arith.constant 0.000000e+00 : f32
    %62 = vector.broadcast %cst_25 : f32 to vector<64x128xf32>
    %63 = arith.cmpf ogt, %61, %62 : vector<64x128xf32>
    %cst_26 = arith.constant 2.000000e-01 : f32
    %64 = vector.broadcast %cst_26 : f32 to vector<64x128xf32>
    %65 = arith.mulf %64, %61 : vector<64x128xf32>
    %66 = arith.select %63, %61, %65 : vector<64x128xi1>, vector<64x128xf32>
    %67 = arith.addf %66, %5 : vector<64x128xf32>
    %cst_27 = arith.constant dense<0xFF800000> : vector<64xf32>
    %68 = vector.multi_reduction <maximumf>, %67, %cst_27 [1] : vector<64x128xf32> to vector<64xf32>
    %69 = vector.shape_cast %68 : vector<64xf32> to vector<64x1xf32>
    %70 = vector.broadcast %69 : vector<64x1xf32> to vector<64x128xf32>
    %71 = arith.subf %67, %70 : vector<64x128xf32>
    %72 = math.exp %71 : vector<64x128xf32>
    %cst_28 = arith.constant dense<0.000000e+00> : vector<64xf32>
    %73 = vector.multi_reduction <add>, %72, %cst_28 [1] : vector<64x128xf32> to vector<64xf32>
    %74 = vector.shape_cast %73 : vector<64xf32> to vector<64x1xf32>
    %75 = tpu.reciprocal %74 {approx = true} : vector<64x1xf32> -> vector<64x1xf32>
    %76 = vector.broadcast %75 : vector<64x1xf32> to vector<64x128xf32>
    %77 = arith.mulf %72, %76 : vector<64x128xf32>
    %78 = arith.truncf %77 : vector<64x128xf32> to vector<64x128xbf16>
    %c0_29 = arith.constant 0 : index
    %c32 = arith.constant 32 : index
    %79 = vector.load %arg1[%c0_29, %c32] : memref<128x128xbf16, #tpu.memory_space<vmem>>, vector<128x16xbf16>
    %cst_30 = arith.constant dense<0.000000e+00> : vector<64x16xf32>
    %80 = tpu.matmul %78, %79, %cst_30 {dimension_numbers = #tpu.dot_dimension_numbers<[1], [0], [0], [1], [0, 0, 1, 1], [], []>} : vector<64x128xbf16>, vector<128x16xbf16>, vector<64x16xf32> -> vector<64x16xf32>
    %c0_31 = arith.constant 0 : index
    %c32_32 = arith.constant 32 : index
    %81 = vector.load %arg7[%c0_31, %c32_32] : memref<64x128xf32, #tpu.memory_space<vmem>>, vector<64x16xf32>
    tpu.vector_store %arg7[%c0_31, %c32_32], %80 {strides = array<i32>} : memref<64x128xf32, #tpu.memory_space<vmem>>, vector<64x16xf32>,
    %82 = vector.extract_strided_slice %6 {offsets = [0, 3], sizes = [64, 1], strides = [1, 1]} : vector<64x128xf32> to vector<64x1xf32>
    %c3 = arith.constant 3 : index
    %c0_33 = arith.constant 0 : index
    %83 = vector.load %arg2[%c3, %c0_33] : memref<128x128xf32, #tpu.memory_space<vmem>>, vector<1x128xf32>
    %84 = vector.broadcast %82 : vector<64x1xf32> to vector<64x128xf32>
    %85 = vector.broadcast %83 : vector<1x128xf32> to vector<64x128xf32>
    %86 = arith.addf %84, %85 : vector<64x128xf32>
    %cst_34 = arith.constant 0.000000e+00 : f32
    %87 = vector.broadcast %cst_34 : f32 to vector<64x128xf32>
    %88 = arith.cmpf ogt, %86, %87 : vector<64x128xf32>
    %cst_35 = arith.constant 2.000000e-01 : f32
    %89 = vector.broadcast %cst_35 : f32 to vector<64x128xf32>
    %90 = arith.mulf %89, %86 : vector<64x128xf32>
    %91 = arith.select %88, %86, %90 : vector<64x128xi1>, vector<64x128xf32>
    %92 = arith.addf %91, %5 : vector<64x128xf32>
    %cst_36 = arith.constant dense<0xFF800000> : vector<64xf32>
    %93 = vector.multi_reduction <maximumf>, %92, %cst_36 [1] : vector<64x128xf32> to vector<64xf32>
    %94 = vector.shape_cast %93 : vector<64xf32> to vector<64x1xf32>
    %95 = vector.broadcast %94 : vector<64x1xf32> to vector<64x128xf32>
    %96 = arith.subf %92, %95 : vector<64x128xf32>
    %97 = math.exp %96 : vector<64x128xf32>
    %cst_37 = arith.constant dense<0.000000e+00> : vector<64xf32>
    %98 = vector.multi_reduction <add>, %97, %cst_37 [1] : vector<64x128xf32> to vector<64xf32>
    %99 = vector.shape_cast %98 : vector<64xf32> to vector<64x1xf32>
    %100 = tpu.reciprocal %99 {approx = true} : vector<64x1xf32> -> vector<64x1xf32>
    %101 = vector.broadcast %100 : vector<64x1xf32> to vector<64x128xf32>
    %102 = arith.mulf %97, %101 : vector<64x128xf32>
    %103 = arith.truncf %102 : vector<64x128xf32> to vector<64x128xbf16>
    %c0_38 = arith.constant 0 : index
    %c48 = arith.constant 48 : index
    %104 = vector.load %arg1[%c0_38, %c48] : memref<128x128xbf16, #tpu.memory_space<vmem>>, vector<128x16xbf16>
    %cst_39 = arith.constant dense<0.000000e+00> : vector<64x16xf32>
    %105 = tpu.matmul %103, %104, %cst_39 {dimension_numbers = #tpu.dot_dimension_numbers<[1], [0], [0], [1], [0, 0, 1, 1], [], []>} : vector<64x128xbf16>, vector<128x16xbf16>, vector<64x16xf32> -> vector<64x16xf32>
    %c0_40 = arith.constant 0 : index
    %c48_41 = arith.constant 48 : index
    %106 = vector.load %arg7[%c0_40, %c48_41] : memref<64x128xf32, #tpu.memory_space<vmem>>, vector<64x16xf32>
    tpu.vector_store %arg7[%c0_40, %c48_41], %105 {strides = array<i32>} : memref<64x128xf32, #tpu.memory_space<vmem>>, vector<64x16xf32>,
    %107 = vector.extract_strided_slice %6 {offsets = [0, 4], sizes = [64, 1], strides = [1, 1]} : vector<64x128xf32> to vector<64x1xf32>
    %c4 = arith.constant 4 : index
    %c0_42 = arith.constant 0 : index
    %108 = vector.load %arg2[%c4, %c0_42] : memref<128x128xf32, #tpu.memory_space<vmem>>, vector<1x128xf32>
    %109 = vector.broadcast %107 : vector<64x1xf32> to vector<64x128xf32>
    %110 = vector.broadcast %108 : vector<1x128xf32> to vector<64x128xf32>
    %111 = arith.addf %109, %110 : vector<64x128xf32>
    %cst_43 = arith.constant 0.000000e+00 : f32
    %112 = vector.broadcast %cst_43 : f32 to vector<64x128xf32>
    %113 = arith.cmpf ogt, %111, %112 : vector<64x128xf32>
    %cst_44 = arith.constant 2.000000e-01 : f32
    %114 = vector.broadcast %cst_44 : f32 to vector<64x128xf32>
    %115 = arith.mulf %114, %111 : vector<64x128xf32>
    %116 = arith.select %113, %111, %115 : vector<64x128xi1>, vector<64x128xf32>
    %117 = arith.addf %116, %5 : vector<64x128xf32>
    %cst_45 = arith.constant dense<0xFF800000> : vector<64xf32>
    %118 = vector.multi_reduction <maximumf>, %117, %cst_45 [1] : vector<64x128xf32> to vector<64xf32>
    %119 = vector.shape_cast %118 : vector<64xf32> to vector<64x1xf32>
    %120 = vector.broadcast %119 : vector<64x1xf32> to vector<64x128xf32>
    %121 = arith.subf %117, %120 : vector<64x128xf32>
    %122 = math.exp %121 : vector<64x128xf32>
    %cst_46 = arith.constant dense<0.000000e+00> : vector<64xf32>
    %123 = vector.multi_reduction <add>, %122, %cst_46 [1] : vector<64x128xf32> to vector<64xf32>
    %124 = vector.shape_cast %123 : vector<64xf32> to vector<64x1xf32>
    %125 = tpu.reciprocal %124 {approx = true} : vector<64x1xf32> -> vector<64x1xf32>
    %126 = vector.broadcast %125 : vector<64x1xf32> to vector<64x128xf32>
    %127 = arith.mulf %122, %126 : vector<64x128xf32>
    %128 = arith.truncf %127 : vector<64x128xf32> to vector<64x128xbf16>
    %c0_47 = arith.constant 0 : index
    %c64 = arith.constant 64 : index
    %129 = vector.load %arg1[%c0_47, %c64] : memref<128x128xbf16, #tpu.memory_space<vmem>>, vector<128x16xbf16>
    %cst_48 = arith.constant dense<0.000000e+00> : vector<64x16xf32>
    %130 = tpu.matmul %128, %129, %cst_48 {dimension_numbers = #tpu.dot_dimension_numbers<[1], [0], [0], [1], [0, 0, 1, 1], [], []>} : vector<64x128xbf16>, vector<128x16xbf16>, vector<64x16xf32> -> vector<64x16xf32>
    %c0_49 = arith.constant 0 : index
    %c64_50 = arith.constant 64 : index
    %131 = vector.load %arg7[%c0_49, %c64_50] : memref<64x128xf32, #tpu.memory_space<vmem>>, vector<64x16xf32>
    tpu.vector_store %arg7[%c0_49, %c64_50], %130 {strides = array<i32>} : memref<64x128xf32, #tpu.memory_space<vmem>>, vector<64x16xf32>,
    %132 = vector.extract_strided_slice %6 {offsets = [0, 5], sizes = [64, 1], strides = [1, 1]} : vector<64x128xf32> to vector<64x1xf32>
    %c5 = arith.constant 5 : index
    %c0_51 = arith.constant 0 : index
    %133 = vector.load %arg2[%c5, %c0_51] : memref<128x128xf32, #tpu.memory_space<vmem>>, vector<1x128xf32>
    %134 = vector.broadcast %132 : vector<64x1xf32> to vector<64x128xf32>
    %135 = vector.broadcast %133 : vector<1x128xf32> to vector<64x128xf32>
    %136 = arith.addf %134, %135 : vector<64x128xf32>
    %cst_52 = arith.constant 0.000000e+00 : f32
    %137 = vector.broadcast %cst_52 : f32 to vector<64x128xf32>
    %138 = arith.cmpf ogt, %136, %137 : vector<64x128xf32>
    %cst_53 = arith.constant 2.000000e-01 : f32
    %139 = vector.broadcast %cst_53 : f32 to vector<64x128xf32>
    %140 = arith.mulf %139, %136 : vector<64x128xf32>
    %141 = arith.select %138, %136, %140 : vector<64x128xi1>, vector<64x128xf32>
    %142 = arith.addf %141, %5 : vector<64x128xf32>
    %cst_54 = arith.constant dense<0xFF800000> : vector<64xf32>
    %143 = vector.multi_reduction <maximumf>, %142, %cst_54 [1] : vector<64x128xf32> to vector<64xf32>
    %144 = vector.shape_cast %143 : vector<64xf32> to vector<64x1xf32>
    %145 = vector.broadcast %144 : vector<64x1xf32> to vector<64x128xf32>
    %146 = arith.subf %142, %145 : vector<64x128xf32>
    %147 = math.exp %146 : vector<64x128xf32>
    %cst_55 = arith.constant dense<0.000000e+00> : vector<64xf32>
    %148 = vector.multi_reduction <add>, %147, %cst_55 [1] : vector<64x128xf32> to vector<64xf32>
    %149 = vector.shape_cast %148 : vector<64xf32> to vector<64x1xf32>
    %150 = tpu.reciprocal %149 {approx = true} : vector<64x1xf32> -> vector<64x1xf32>
    %151 = vector.broadcast %150 : vector<64x1xf32> to vector<64x128xf32>
    %152 = arith.mulf %147, %151 : vector<64x128xf32>
    %153 = arith.truncf %152 : vector<64x128xf32> to vector<64x128xbf16>
    %c0_56 = arith.constant 0 : index
    %c80 = arith.constant 80 : index
    %154 = vector.load %arg1[%c0_56, %c80] : memref<128x128xbf16, #tpu.memory_space<vmem>>, vector<128x16xbf16>
    %cst_57 = arith.constant dense<0.000000e+00> : vector<64x16xf32>
    %155 = tpu.matmul %153, %154, %cst_57 {dimension_numbers = #tpu.dot_dimension_numbers<[1], [0], [0], [1], [0, 0, 1, 1], [], []>} : vector<64x128xbf16>, vector<128x16xbf16>, vector<64x16xf32> -> vector<64x16xf32>
    %c0_58 = arith.constant 0 : index
    %c80_59 = arith.constant 80 : index
    %156 = vector.load %arg7[%c0_58, %c80_59] : memref<64x128xf32, #tpu.memory_space<vmem>>, vector<64x16xf32>
    tpu.vector_store %arg7[%c0_58, %c80_59], %155 {strides = array<i32>} : memref<64x128xf32, #tpu.memory_space<vmem>>, vector<64x16xf32>,
    %157 = vector.extract_strided_slice %6 {offsets = [0, 6], sizes = [64, 1], strides = [1, 1]} : vector<64x128xf32> to vector<64x1xf32>
    %c6 = arith.constant 6 : index
    %c0_60 = arith.constant 0 : index
    %158 = vector.load %arg2[%c6, %c0_60] : memref<128x128xf32, #tpu.memory_space<vmem>>, vector<1x128xf32>
    %159 = vector.broadcast %157 : vector<64x1xf32> to vector<64x128xf32>
    %160 = vector.broadcast %158 : vector<1x128xf32> to vector<64x128xf32>
    %161 = arith.addf %159, %160 : vector<64x128xf32>
    %cst_61 = arith.constant 0.000000e+00 : f32
    %162 = vector.broadcast %cst_61 : f32 to vector<64x128xf32>
    %163 = arith.cmpf ogt, %161, %162 : vector<64x128xf32>
    %cst_62 = arith.constant 2.000000e-01 : f32
    %164 = vector.broadcast %cst_62 : f32 to vector<64x128xf32>
    %165 = arith.mulf %164, %161 : vector<64x128xf32>
    %166 = arith.select %163, %161, %165 : vector<64x128xi1>, vector<64x128xf32>
    %167 = arith.addf %166, %5 : vector<64x128xf32>
    %cst_63 = arith.constant dense<0xFF800000> : vector<64xf32>
    %168 = vector.multi_reduction <maximumf>, %167, %cst_63 [1] : vector<64x128xf32> to vector<64xf32>
    %169 = vector.shape_cast %168 : vector<64xf32> to vector<64x1xf32>
    %170 = vector.broadcast %169 : vector<64x1xf32> to vector<64x128xf32>
    %171 = arith.subf %167, %170 : vector<64x128xf32>
    %172 = math.exp %171 : vector<64x128xf32>
    %cst_64 = arith.constant dense<0.000000e+00> : vector<64xf32>
    %173 = vector.multi_reduction <add>, %172, %cst_64 [1] : vector<64x128xf32> to vector<64xf32>
    %174 = vector.shape_cast %173 : vector<64xf32> to vector<64x1xf32>
    %175 = tpu.reciprocal %174 {approx = true} : vector<64x1xf32> -> vector<64x1xf32>
    %176 = vector.broadcast %175 : vector<64x1xf32> to vector<64x128xf32>
    %177 = arith.mulf %172, %176 : vector<64x128xf32>
    %178 = arith.truncf %177 : vector<64x128xf32> to vector<64x128xbf16>
    %c0_65 = arith.constant 0 : index
    %c96 = arith.constant 96 : index
    %179 = vector.load %arg1[%c0_65, %c96] : memref<128x128xbf16, #tpu.memory_space<vmem>>, vector<128x16xbf16>
    %cst_66 = arith.constant dense<0.000000e+00> : vector<64x16xf32>
    %180 = tpu.matmul %178, %179, %cst_66 {dimension_numbers = #tpu.dot_dimension_numbers<[1], [0], [0], [1], [0, 0, 1, 1], [], []>} : vector<64x128xbf16>, vector<128x16xbf16>, vector<64x16xf32> -> vector<64x16xf32>
    %c0_67 = arith.constant 0 : index
    %c96_68 = arith.constant 96 : index
    %181 = vector.load %arg7[%c0_67, %c96_68] : memref<64x128xf32, #tpu.memory_space<vmem>>, vector<64x16xf32>
    tpu.vector_store %arg7[%c0_67, %c96_68], %180 {strides = array<i32>} : memref<64x128xf32, #tpu.memory_space<vmem>>, vector<64x16xf32>,
    %182 = vector.extract_strided_slice %6 {offsets = [0, 7], sizes = [64, 1], strides = [1, 1]} : vector<64x128xf32> to vector<64x1xf32>
    %c7 = arith.constant 7 : index
    %c0_69 = arith.constant 0 : index
    %183 = vector.load %arg2[%c7, %c0_69] : memref<128x128xf32, #tpu.memory_space<vmem>>, vector<1x128xf32>
    %184 = vector.broadcast %182 : vector<64x1xf32> to vector<64x128xf32>
    %185 = vector.broadcast %183 : vector<1x128xf32> to vector<64x128xf32>
    %186 = arith.addf %184, %185 : vector<64x128xf32>
    %cst_70 = arith.constant 0.000000e+00 : f32
    %187 = vector.broadcast %cst_70 : f32 to vector<64x128xf32>
    %188 = arith.cmpf ogt, %186, %187 : vector<64x128xf32>
    %cst_71 = arith.constant 2.000000e-01 : f32
    %189 = vector.broadcast %cst_71 : f32 to vector<64x128xf32>
    %190 = arith.mulf %189, %186 : vector<64x128xf32>
    %191 = arith.select %188, %186, %190 : vector<64x128xi1>, vector<64x128xf32>
    %192 = arith.addf %191, %5 : vector<64x128xf32>
    %cst_72 = arith.constant dense<0xFF800000> : vector<64xf32>
    %193 = vector.multi_reduction <maximumf>, %192, %cst_72 [1] : vector<64x128xf32> to vector<64xf32>
    %194 = vector.shape_cast %193 : vector<64xf32> to vector<64x1xf32>
    %195 = vector.broadcast %194 : vector<64x1xf32> to vector<64x128xf32>
    %196 = arith.subf %192, %195 : vector<64x128xf32>
    %197 = math.exp %196 : vector<64x128xf32>
    %cst_73 = arith.constant dense<0.000000e+00> : vector<64xf32>
    %198 = vector.multi_reduction <add>, %197, %cst_73 [1] : vector<64x128xf32> to vector<64xf32>
    %199 = vector.shape_cast %198 : vector<64xf32> to vector<64x1xf32>
    %200 = tpu.reciprocal %199 {approx = true} : vector<64x1xf32> -> vector<64x1xf32>
    %201 = vector.broadcast %200 : vector<64x1xf32> to vector<64x128xf32>
    %202 = arith.mulf %197, %201 : vector<64x128xf32>
    %203 = arith.truncf %202 : vector<64x128xf32> to vector<64x128xbf16>
    %c0_74 = arith.constant 0 : index
    %c112 = arith.constant 112 : index
    %204 = vector.load %arg1[%c0_74, %c112] : memref<128x128xbf16, #tpu.memory_space<vmem>>, vector<128x16xbf16>
    %cst_75 = arith.constant dense<0.000000e+00> : vector<64x16xf32>
    %205 = tpu.matmul %203, %204, %cst_75 {dimension_numbers = #tpu.dot_dimension_numbers<[1], [0], [0], [1], [0, 0, 1, 1], [], []>} : vector<64x128xbf16>, vector<128x16xbf16>, vector<64x16xf32> -> vector<64x16xf32>
    %c0_76 = arith.constant 0 : index
    %c112_77 = arith.constant 112 : index
    %206 = vector.load %arg7[%c0_76, %c112_77] : memref<64x128xf32, #tpu.memory_space<vmem>>, vector<64x16xf32>
    tpu.vector_store %arg7[%c0_76, %c112_77], %205 {strides = array<i32>} : memref<64x128xf32, #tpu.memory_space<vmem>>, vector<64x16xf32>,
    %c0_78 = arith.constant 0 : index
    %c0_79 = arith.constant 0 : index
    %207 = vector.load %arg7[%c0_78, %c0_79] : memref<64x128xf32, #tpu.memory_space<vmem>>, vector<64x128xf32>
    %c0_80 = arith.constant 0 : index
    %c0_81 = arith.constant 0 : index
    %208 = vector.load %arg5[%c0_80, %c0_81] : memref<1x128xf32, #tpu.memory_space<vmem>>, vector<1x128xf32>
    %209 = vector.broadcast %208 : vector<1x128xf32> to vector<64x128xf32>
    %210 = arith.addf %207, %209 : vector<64x128xf32>
    %cst_82 = arith.constant 0.000000e+00 : f32
    %211 = vector.broadcast %cst_82 : f32 to vector<64x128xf32>
    %212 = arith.maximumf %210, %211 : vector<64x128xf32>
    %cst_83 = arith.constant 0.000000e+00 : f32
    %213 = vector.broadcast %cst_83 : f32 to vector<64x128xf32>
    %214 = arith.minimumf %210, %213 : vector<64x128xf32>
    %215 = math.exp %214 : vector<64x128xf32>
    %cst_84 = arith.constant 1.000000e+00 : f32
    %216 = vector.broadcast %cst_84 : f32 to vector<64x128xf32>
    %217 = arith.subf %215, %216 : vector<64x128xf32>
    %218 = arith.addf %212, %217 : vector<64x128xf32>
    %219 = arith.truncf %218 : vector<64x128xf32> to vector<64x128xbf16>
    %c0_85 = arith.constant 0 : index
    %c0_86 = arith.constant 0 : index
    %220 = vector.load %arg6[%c0_85, %c0_86] : memref<64x128xbf16, #tpu.memory_space<vmem>>, vector<64x128xbf16>
    tpu.vector_store %arg6[%c0_85, %c0_86], %219 {strides = array<i32>} : memref<64x128xbf16, #tpu.memory_space<vmem>>, vector<64x128xbf16>,
    return
  }
  func.func @transform_0(%arg0: i32) -> (i32, i32) {
    %c0_i32 = arith.constant 0 : i32
    %c0_i32_0 = arith.constant 0 : i32
    %c0_i32_1 = arith.constant 0 : i32
    return %c0_i32, %c0_i32_0 : i32, i32
  }
  func.func @transform_1(%arg0: i32) -> (i32, i32) {
    %c0_i32 = arith.constant 0 : i32
    %c0_i32_0 = arith.constant 0 : i32
    %c0_i32_1 = arith.constant 0 : i32
    return %c0_i32, %c0_i32_0 : i32, i32
  }
  func.func @transform_2(%arg0: i32) -> (i32, i32) {
    %c0_i32 = arith.constant 0 : i32
    %c0_i32_0 = arith.constant 0 : i32
    return %arg0, %c0_i32 : i32, i32
  }
  func.func @transform_3(%arg0: i32) -> (i32, i32) {
    %c0_i32 = arith.constant 0 : i32
    %c0_i32_0 = arith.constant 0 : i32
    return %arg0, %c0_i32 : i32, i32
  }
  func.func @transform_4(%arg0: i32) -> (i32, i32) {
    %c0_i32 = arith.constant 0 : i32
    %c0_i32_0 = arith.constant 0 : i32
    %c0_i32_1 = arith.constant 0 : i32
    return %c0_i32, %c0_i32_0 : i32, i32
  }
  func.func @transform_5(%arg0: i32) -> (i32, i32) {
    %c0_i32 = arith.constant 0 : i32
    %c0_i32_0 = arith.constant 0 : i32
    return %arg0, %c0_i32 : i32, i32
  }
}

module attributes {stable_mosaic.version = 11 : i64} {
  func.func @_attn_kernel(%arg0: i32, %arg1: memref<128x128xbf16, #tpu.memory_space<vmem>>, %arg2: memref<128x128xf32, #tpu.memory_space<vmem>>, %arg3: memref<64x128xf32, #tpu.memory_space<vmem>>, %arg4: memref<64x128xi8, #tpu.memory_space<vmem>>, %arg5: memref<1x128xf32, #tpu.memory_space<vmem>>, %arg6: memref<64x128xf32, #tpu.memory_space<vmem>>, %arg7: memref<64x128xf32, #tpu.memory_space<vmem>>) attributes {dimension_semantics = [#tpu.dimension_semantics<parallel>], iteration_bounds = array<i64: 2>, scalar_prefetch = 0 : i64, scratch_operands = 1 : i64, tpu.core_type = #tpu.core_type<tc>, window_params = [{pipeline_mode = #tpu.pipeline_mode<synchronous>, transform_indices = @transform_0, window_bounds = array<i64: 128, 128>}, {pipeline_mode = #tpu.pipeline_mode<synchronous>, transform_indices = @transform_1, window_bounds = array<i64: 128, 128>}, {transform_indices = @transform_2, window_bounds = array<i64: 64, 128>}, {transform_indices = @transform_3, window_bounds = array<i64: 64, 128>}, {pipeline_mode = #tpu.pipeline_mode<synchronous>, transform_indices = @transform_4, window_bounds = array<i64: 1, 128>}, {transform_indices = @transform_5, window_bounds = array<i64: 64, 128>}]} {
    %c0 = arith.constant 0 : index
    %c0_0 = arith.constant 0 : index
    %0 = vector.load %arg4[%c0, %c0_0] : memref<64x128xi8, #tpu.memory_space<vmem>>, vector<64x128xi8>
    %1 = arith.sitofp %0 : vector<64x128xi8> to vector<64x128xf32>
    %cst = arith.constant 1.000000e+00 : f32
    %2 = vector.broadcast %cst : f32 to vector<64x128xf32>
    %3 = arith.subf %1, %2 : vector<64x128xf32>
    %cst_1 = arith.constant 1.000000e+09 : f32
    %4 = vector.broadcast %cst_1 : f32 to vector<64x128xf32>
    %5 = arith.mulf %3, %4 : vector<64x128xf32>
    %c0_2 = arith.constant 0 : index
    %c0_3 = arith.constant 0 : index
    %6 = vector.load %arg3[%c0_2, %c0_3] : memref<64x128xf32, #tpu.memory_space<vmem>>, vector<64x128xf32>
    %7 = vector.extract_strided_slice %6 {offsets = [0, 0], sizes = [64, 1], strides = [1, 1]} : vector<64x128xf32> to vector<64x1xf32>
    %c0_4 = arith.constant 0 : index
    %c0_5 = arith.constant 0 : index
    %8 = vector.load %arg2[%c0_4, %c0_5] : memref<128x128xf32, #tpu.memory_space<vmem>>, vector<1x128xf32>
    %9 = vector.broadcast %7 : vector<64x1xf32> to vector<64x128xf32>
    %10 = vector.broadcast %8 : vector<1x128xf32> to vector<64x128xf32>
    %11 = arith.addf %9, %10 : vector<64x128xf32>
    %cst_6 = arith.constant 0.000000e+00 : f32
    %12 = vector.broadcast %cst_6 : f32 to vector<64x128xf32>
    %13 = arith.cmpf ogt, %11, %12 : vector<64x128xf32>
    %cst_7 = arith.constant 2.000000e-01 : f32
    %14 = vector.broadcast %cst_7 : f32 to vector<64x128xf32>
    %15 = arith.mulf %14, %11 : vector<64x128xf32>
    %16 = arith.select %13, %11, %15 : vector<64x128xi1>, vector<64x128xf32>
    %17 = arith.addf %16, %5 : vector<64x128xf32>
    %cst_8 = arith.constant dense<0xFF800000> : vector<64xf32>
    %18 = vector.multi_reduction <maximumf>, %17, %cst_8 [1] : vector<64x128xf32> to vector<64xf32>
    %19 = vector.shape_cast %18 : vector<64xf32> to vector<64x1xf32>
    %20 = vector.broadcast %19 : vector<64x1xf32> to vector<64x128xf32>
    %21 = arith.subf %17, %20 : vector<64x128xf32>
    %22 = math.exp %21 : vector<64x128xf32>
    %cst_9 = arith.constant dense<0.000000e+00> : vector<64xf32>
    %23 = vector.multi_reduction <add>, %22, %cst_9 [1] : vector<64x128xf32> to vector<64xf32>
    %24 = vector.shape_cast %23 : vector<64xf32> to vector<64x1xf32>
    %25 = tpu.reciprocal %24 {approx = true} : vector<64x1xf32> -> vector<64x1xf32>
    %26 = vector.broadcast %25 : vector<64x1xf32> to vector<64x128xf32>
    %27 = arith.mulf %22, %26 : vector<64x128xf32>
    %28 = arith.truncf %27 : vector<64x128xf32> to vector<64x128xbf16>
    %c0_10 = arith.constant 0 : index
    %c0_11 = arith.constant 0 : index
    %29 = vector.load %arg1[%c0_10, %c0_11] : memref<128x128xbf16, #tpu.memory_space<vmem>>, vector<128x128xbf16>
    %cst_12 = arith.constant dense<0.000000e+00> : vector<64x128xf32>
    %30 = tpu.matmul %28, %29, %cst_12 {dimension_numbers = #tpu.dot_dimension_numbers<[1], [0], [0], [1], [0, 0, 1, 1], [], []>} : vector<64x128xbf16>, vector<128x128xbf16>, vector<64x128xf32> -> vector<64x128xf32>
    %c0_13 = arith.constant 0 : index
    %c0_14 = arith.constant 0 : index
    %31 = vector.load %arg7[%c0_13, %c0_14] : memref<64x128xf32, #tpu.memory_space<vmem>>, vector<64x128xf32>
    tpu.vector_store %arg7[%c0_13, %c0_14], %30 {strides = array<i32>} : memref<64x128xf32, #tpu.memory_space<vmem>>, vector<64x128xf32>,
    %c0_15 = arith.constant 0 : index
    %c0_16 = arith.constant 0 : index
    %32 = vector.load %arg7[%c0_15, %c0_16] : memref<64x128xf32, #tpu.memory_space<vmem>>, vector<64x128xf32>
    %c0_17 = arith.constant 0 : index
    %c0_18 = arith.constant 0 : index
    %33 = vector.load %arg5[%c0_17, %c0_18] : memref<1x128xf32, #tpu.memory_space<vmem>>, vector<1x128xf32>
    %34 = vector.broadcast %33 : vector<1x128xf32> to vector<64x128xf32>
    %35 = arith.addf %32, %34 : vector<64x128xf32>
    %c0_19 = arith.constant 0 : index
    %c0_20 = arith.constant 0 : index
    %36 = vector.load %arg6[%c0_19, %c0_20] : memref<64x128xf32, #tpu.memory_space<vmem>>, vector<64x128xf32>
    tpu.vector_store %arg6[%c0_19, %c0_20], %35 {strides = array<i32>} : memref<64x128xf32, #tpu.memory_space<vmem>>, vector<64x128xf32>,
    return
  }
  func.func @transform_0(%arg0: i32) -> (i32, i32) {
    %c0_i32 = arith.constant 0 : i32
    %c0_i32_0 = arith.constant 0 : i32
    %c0_i32_1 = arith.constant 0 : i32
    return %c0_i32, %c0_i32_0 : i32, i32
  }
  func.func @transform_1(%arg0: i32) -> (i32, i32) {
    %c0_i32 = arith.constant 0 : i32
    %c0_i32_0 = arith.constant 0 : i32
    %c0_i32_1 = arith.constant 0 : i32
    return %c0_i32, %c0_i32_0 : i32, i32
  }
  func.func @transform_2(%arg0: i32) -> (i32, i32) {
    %c0_i32 = arith.constant 0 : i32
    %c0_i32_0 = arith.constant 0 : i32
    return %arg0, %c0_i32 : i32, i32
  }
  func.func @transform_3(%arg0: i32) -> (i32, i32) {
    %c0_i32 = arith.constant 0 : i32
    %c0_i32_0 = arith.constant 0 : i32
    return %arg0, %c0_i32 : i32, i32
  }
  func.func @transform_4(%arg0: i32) -> (i32, i32) {
    %c0_i32 = arith.constant 0 : i32
    %c0_i32_0 = arith.constant 0 : i32
    %c0_i32_1 = arith.constant 0 : i32
    return %c0_i32, %c0_i32_0 : i32, i32
  }
  func.func @transform_5(%arg0: i32) -> (i32, i32) {
    %c0_i32 = arith.constant 0 : i32
    %c0_i32_0 = arith.constant 0 : i32
    return %arg0, %c0_i32 : i32, i32
  }
}

</mosaic_0001>

<bundles_post_ra>
// kernel: gat_forward.4
= control target key start
LH: loop header
LB: loop body
LE: loop exit
PB: predicated region body
PF: predicated region fallthrough
CT: control target
= control target key end

     0   :  { %s1167_s21 = smov 0   ;;  %s1286_s0 = inlined_call_operand.vmem [shape: bf16[128,128], index: 0, kind: input, shape index: {}]   ;;  %s1287_s1 = inlined_call_operand.vmem [shape: bf16[128,128], index: 1, kind: input, shape index: {}]   ;;  %s1288_s2 = inlined_call_operand.vmem [shape: bf16[128,128], index: 2, kind: input, shape index: {}]   ;;  %s1289_s3 = inlined_call_operand.vmem [shape: bf16[128,128], index: 3, kind: input, shape index: {}]   ;;  %s1290_s4 = inlined_call_operand.vmem [shape: bf16[128,128], index: 4, kind: output, shape index: {0}]   ;;  %s1291_s5 = inlined_call_operand.vmem [shape: f32[128,128], index: 5, kind: output, shape index: {1}]   ;;  %s1292_s6 = inlined_call_operand.vmem [shape: f32[128,128], index: 6, kind: output, shape index: {2}]  }
   0x1 LB: > { %s882_s22 = sadd.s32 4294967295, %s1130_s21   ;;  %p886_p0 = scmp.ge.s32.totalorder %s1130_s21, 1  ;;  %s1130_s21 = sphi %s1167_s21, %s17_s21  }
   0x2   : > { %p218_p1 = scmp.lt.s32.totalorder %s1130_s21, 3 }
   0x4   : > { %p219_p2 = pnand %p886_p0, %p218_p1 }
   0x5   : > { %v1096_v0 = vld [vmem:[%s1287_s1] sm:$0xff] (!%p219_p2)   ;;  %s887_s25 = sshll.u32 (!%p219_p2), %s882_s22, 3  ;;  %v1097_v1 = vld [vmem:[%s1287_s1 + $0x8] sm:$0xff] (!%p219_p2)   ;;  %v1098_v2 = vld [vmem:[%s1287_s1 + $0x10] sm:$0xff] (!%p219_p2)  }
   0x6   : > { %222 = sbr.rel (%p219_p2) target bundleno = 504 (0x1f8), region = 36  ;;  %p259_p3 = scmp.lt.s32.totalorder (!%p219_p2), %s887_s25, 15  ;;  %1000 = vmatprep.subr.bf16.mxu0 (!%p219_p2), %v1096_v0  ;;  %v1099_v3 = vld [vmem:[%s1287_s1 + $0x18] sm:$0xff] (!%p219_p2)   ;;  %v1100_v5 = vld [vmem:[%s1287_s1 + $0x20] sm:$0xff] (!%p219_p2)   ;;  %v1110_v7 = vld [vmem:[%s1288_s2 + $0x8] sm:$0xff] (!%p219_p2)  }
   0x7   : > { %1001 = vmatpush3.bf16.msra.mxu0 (!%p219_p2), %v1096_v0  ;;  %v1108_v6 = vld [vmem:[%s1288_s2] sm:$0xff] (!%p219_p2)   ;;  %v1101_v8 = vld [vmem:[%s1287_s1 + $0x28] sm:$0xff] (!%p219_p2)   ;;  %v1112_v9 = vld [vmem:[%s1288_s2 + $0x10] sm:$0xff] (!%p219_p2)  }
   0x8   : > { %1002 = vmatprep.subr.bf16.mxu0 (!%p219_p2), %v1097_v1  ;;  %1024 = vmatprep.subr.bf16.mxu1 (!%p219_p2), %v1108_v6  ;;  %v1102_v10 = vld [vmem:[%s1287_s1 + $0x30] sm:$0xff] (!%p219_p2)   ;;  %v1114_v11 = vld [vmem:[%s1288_s2 + $0x18] sm:$0xff] (!%p219_p2)   ;;  %v1116_v13 = vld [vmem:[%s1288_s2 + $0x20] sm:$0xff] (!%p219_p2)  }
   0x9   : > { %1025 = vmatpush3.bf16.msra.mxu1 (!%p219_p2), %v1108_v6  ;;  %v1103_v12 = vld [vmem:[%s1287_s1 + $0x38] sm:$0xff] (!%p219_p2)   ;;  %v1109_v14 = vld [vmem:[%s1289_s3] sm:$0xff] (!%p219_p2)   ;;  %v1118_v15 = vld [vmem:[%s1288_s2 + $0x28] sm:$0xff] (!%p219_p2)  }
   0xa   : > { %1026 = vmatprep.subr.bf16.mxu1 (!%p219_p2), %v1110_v7  ;;  %v1111_v18 = vld [vmem:[%s1289_s3 + $0x8] sm:$0xff] (!%p219_p2)   ;;  %v1120_v19 = vld [vmem:[%s1288_s2 + $0x30] sm:$0xff] (!%p219_p2)   ;;  %v1115_v22 = vld [vmem:[%s1289_s3 + $0x18] sm:$0xff] (!%p219_p2)  }
   0xb   : > { %1003 = vmatpush3.bf16.msra.mxu0 (!%p219_p2), %v1097_v1  ;;  %v1113_v20 = vld [vmem:[%s1289_s3 + $0x10] sm:$0xff] (!%p219_p2)   ;;  %v1117_v23 = vld [vmem:[%s1289_s3 + $0x20] sm:$0xff] (!%p219_p2)   ;;  %v1119_v24 = vld [vmem:[%s1289_s3 + $0x28] sm:$0xff] (!%p219_p2)  }
   0xc   : > { %1004 = vmatprep.subr.bf16.mxu0 (!%p219_p2), %v1098_v2  ;;  %v1121_v25 = vld [vmem:[%s1289_s3 + $0x30] sm:$0xff] (!%p219_p2)   ;;  %v1122_v26 = vld [vmem:[%s1288_s2 + $0x38] sm:$0xff] (!%p219_p2)  }
   0xd   : > { %s1294_s25 = smov (!%p259_p3, %s887_s25), 15  ;;  %1027 = vmatpush3.bf16.msra.mxu1 %v1110_v7  ;;  %v1123_v27 = vld [vmem:[%s1289_s3 + $0x38] sm:$0xff]  }
   0xe   : > { %s888_s30 = sshll.u32 %s1294_s25, 2  ;;  %1028 = vmatprep.subr.bf16.mxu1 %v1112_v9 }
   0xf   : > { %s1192_s9 = scalar_lea.vmem %s1286_s0, %s888_s30  ;;  %1005 = vmatpush3.bf16.msra.mxu0 %v1098_v2  ;;  %s268_s13 = scalar_lea.vmem %s1290_s4, %s888_s30 }
  0x10   : > { %v1104_v4 = vld [vmem:[%s1192_s9] sm:$0xff]   ;;  %1006 = vmatprep.subr.bf16.mxu0 %v1099_v3  ;;  %v1105_v16 = vld [vmem:[%s1192_s9 + $0x8] sm:$0xff]   ;;  %v1106_v17 = vld [vmem:[%s1192_s9 + $0x10] sm:$0xff]   ;;  %s892_s30 = sshll.u32 %s1294_s25, 3 }
  0x11   : > { %1016 = vmatprep.mubr.bf16.mxu0 %v1104_v4  ;;  %1029 = vmatpush3.bf16.msra.mxu1 %v1112_v9  ;;  %v1107_v21 = vld [vmem:[%s1192_s9 + $0x18] sm:$0xff]   ;;  %s274_s16 = scalar_lea.vmem %s1291_s5, %s892_s30  ;;  %s1273_s19 = scalar_lea.vmem %s1292_s6, %s892_s30 }
  0x12   : > { %1030 = vmatprep.subr.bf16.mxu1 %v1114_v11 }
  0x13   : > { %1007 = vmatpush3.bf16.msra.mxu0 %v1099_v3 }
  0x14   : > { %1008 = vmatprep.subr.bf16.mxu0 %v1100_v5 }
  0x15   : > { %1031 = vmatpush3.bf16.msra.mxu1 %v1114_v11 }
  0x16   : > { %1032 = vmatprep.subr.bf16.mxu1 %v1116_v13 }
  0x17   : > { %1009 = vmatpush3.bf16.msra.mxu0 %v1100_v5 }
  0x18   : > { %1010 = vmatprep.subr.bf16.mxu0 %v1101_v8 }
  0x19   : > { %1033 = vmatpush3.bf16.msra.mxu1 %v1116_v13 }
  0x1a   : > { %1034 = vmatprep.subr.bf16.mxu1 %v1118_v15 }
  0x1b   : > { %1011 = vmatpush3.bf16.msra.mxu0 %v1101_v8 }
  0x1c   : > { %1012 = vmatprep.subr.bf16.mxu0 %v1102_v10 }
  0x1d   : > { %1035 = vmatpush3.bf16.msra.mxu1 %v1118_v15 }
  0x1e   : > { %1036 = vmatprep.subr.bf16.mxu1 %v1120_v19 }
  0x1f   : > { %1013 = vmatpush3.bf16.msra.mxu0 %v1102_v10 }
  0x20   : > { %1014 = vmatprep.subr.bf16.mxu0 %v1103_v12 }
  0x21   : > { %1037 = vmatpush3.bf16.msra.mxu1 %v1120_v19 }
  0x22   : > { %1038 = vmatprep.subr.bf16.mxu1 %v1122_v26 }
  0x23   : > { %1015 = vmatpush3.bf16.msra.mxu0 %v1103_v12 }
  0x24   : > { %1048 = vmatprep.subr.bf16.mxu0 %v1109_v14 }
  0x25   : > { %1039 = vmatpush3.bf16.msra.mxu1 %v1122_v26 }
  0x26   : > { %1017 = vmatmul.mubr.bf16.vlgmr.msra.gmra.mrb[0].mxu0 %v1105_v16  ;;  %1072 = vmatprep.subr.bf16.mxu1 %v1109_v14 }
  0x27   : > { %1020 = vmatprep.mubr.bf16.mxu0 %v1106_v17  ;;  %1049 = vmatpush3.bf16.msra.mxu0 %v1109_v14 }
  0x28   : > { %1050 = vmatprep.subr.bf16.mxu0 %v1111_v18 }
  0x2b   : > { %1051 = vmatpush3.bf16.msra.mxu0 %v1111_v18 }
  0x2c   : > { %1052 = vmatprep.subr.bf16.mxu0 %v1113_v20 }
  0x2e   : > { %1021 = vmatmul.mubr.bf16.gmra.mrb[4].mxu0 %v1107_v21 }
  0x2f   : > { %1053 = vmatpush3.bf16.msra.mxu0 %v1113_v20 }
  0x30   : > { %1054 = vmatprep.subr.bf16.mxu0 %v1115_v22 }
  0x33   : > { %1055 = vmatpush3.bf16.msra.mxu0 %v1115_v22 }
  0x34   : > { %1056 = vmatprep.subr.bf16.mxu0 %v1117_v23 }
  0x37   : > { %1057 = vmatpush3.bf16.msra.mxu0 %v1117_v23 }
  0x38   : > { %1058 = vmatprep.subr.bf16.mxu0 %v1119_v24 }
  0x3b   : > { %1059 = vmatpush3.bf16.msra.mxu0 %v1119_v24 }
  0x3c   : > { %1060 = vmatprep.subr.bf16.mxu0 %v1121_v25 }
  0x3f   : > { %1061 = vmatpush3.bf16.msra.mxu0 %v1121_v25 }
  0x40   : > { %1062 = vmatprep.subr.bf16.mxu0 %v1123_v27 }
  0x43   : > { %1063 = vmatpush3.bf16.msra.mxu0 %v1123_v27 }
  0xf9   : > { %v1018_v28 = vpop.f32.mrb[0].mxu0 }
  0xfa   : > { %v413_v29 = vpop.f32.mrb[1].mxu0 }
  0xfb   : > { %v1019_v30 = vpop.f32.mrb[2].mxu0 }
  0xfc   : > { %v445_v31 = vpack.c.bf16 %v1019_v30, %v1018_v28  ;;  %v416_v32 = vpop.f32.mrb[3].mxu0 }
  0xfd   : > { %v444_v33 = vpack.c.bf16 %v416_v32, %v413_v29 }
  0xfe   : > { %961 = vst [vmem:[%s268_s13 + $0x8] sm:$0xff] %v445_v31  }
  0xff   : > { %945 = vst [vmem:[%s268_s13] sm:$0xff] %v444_v33   ;;  %1040 = vmatprep.mubr.bf16.mxu1 %v444_v33  ;;  %1064 = vmatprep.mubr.bf16.mxu0 %v444_v33 }
 0x100   : > { %1041 = vmatmul.mubr.bf16.vlgmr.msra.gmra.mrb[0].mxu1 %v445_v31  ;;  %1065 = vmatmul.mubr.bf16.vlgmr.msra.gmra.mrb[8].mxu0 %v445_v31 }
 0x101   : > { %1080 = vmatpush3.bf16.msra.mxu1 %v1109_v14  ;;  %v1022_v34 = vpop.f32.mrb[4].mxu0 }
 0x102   : > { %1073 = vmatprep.subr.bf16.mxu1 %v1111_v18  ;;  %v429_v35 = vpop.f32.mrb[5].mxu0 }
 0x103   : > { %v1023_v36 = vpop.f32.mrb[6].mxu0 }
 0x104   : > { %v447_v37 = vpack.c.bf16 %v1023_v36, %v1022_v34  ;;  %v432_v38 = vpop.f32.mrb[7].mxu0 }
 0x105   : > { %1081 = vmatpush3.bf16.msra.mxu1 %v1111_v18  ;;  %v446_v39 = vpack.c.bf16 %v432_v38, %v429_v35 }
 0x106   : > { %1074 = vmatprep.subr.bf16.mxu1 %v1113_v20  ;;  %963 = vst [vmem:[%s268_s13 + $0x18] sm:$0xff] %v447_v37  }
 0x107   : > { %962 = vst [vmem:[%s268_s13 + $0x10] sm:$0xff] %v446_v39   ;;  %1044 = vmatprep.mubr.bf16.mxu1 %v446_v39 }
 0x108   : > { %1045 = vmatmul.mubr.bf16.gmra.mrb[4].mxu1 %v447_v37 }
 0x109   : > { %1082 = vmatpush3.bf16.msra.mxu1 %v1113_v20  ;;  %1068 = vmatprep.mubr.bf16.mxu1 %v446_v39 }
 0x10a   : > { %1075 = vmatprep.subr.bf16.mxu1 %v1115_v22 }
 0x10d   : > { %1083 = vmatpush3.bf16.msra.mxu1 %v1115_v22 }
 0x10e   : > { %1076 = vmatprep.subr.bf16.mxu1 %v1117_v23 }
 0x111   : > { %1084 = vmatpush3.bf16.msra.mxu1 %v1117_v23 }
 0x112   : > { %1077 = vmatprep.subr.bf16.mxu1 %v1119_v24 }
 0x115   : > { %1085 = vmatpush3.bf16.msra.mxu1 %v1119_v24 }
 0x116   : > { %1078 = vmatprep.subr.bf16.mxu1 %v1121_v25 }
 0x119   : > { %1086 = vmatpush3.bf16.msra.mxu1 %v1121_v25 }
 0x11a   : > { %1079 = vmatprep.subr.bf16.mxu1 %v1123_v27 }
 0x11d   : > { %1087 = vmatpush3.bf16.msra.mxu1 %v1123_v27 }
 0x120   : > { %1069 = vmatmul.mubr.bf16.vlgmr.msra.gmra.mrb[8].mxu1 %v447_v37 }
 0x1d3   : > { %v1042_v40 = vpop.f32.mrb[0].mxu1  ;;  %v1066_v41 = vpop.f32.mrb[8].mxu0 }
 0x1d4   : > { %615 = vst [vmem:[%s274_s16 + $0x10] sm:$0xff] %v1042_v40  ;;  %752 = vst [vmem:[%s1273_s19 + $0x10] sm:$0xff] %v1066_v41  ;;  %v582_v42 = vpop.f32.mrb[1].mxu1  ;;  %v719_v43 = vpop.f32.mrb[9].mxu0 }
 0x1d5   : > { %613 = vst [vmem:[%s274_s16] sm:$0xff] %v582_v42  ;;  %750 = vst [vmem:[%s1273_s19] sm:$0xff] %v719_v43  ;;  %v1043_v44 = vpop.f32.mrb[2].mxu1  ;;  %v1067_v45 = vpop.f32.mrb[10].mxu0 }
 0x1d6   : > { %616 = vst [vmem:[%s274_s16 + $0x18] sm:$0xff] %v1043_v44  ;;  %753 = vst [vmem:[%s1273_s19 + $0x18] sm:$0xff] %v1067_v45  ;;  %v585_v46 = vpop.f32.mrb[3].mxu1  ;;  %v722_v47 = vpop.f32.mrb[11].mxu0 }
 0x1d7   : > { %614 = vst [vmem:[%s274_s16 + $0x8] sm:$0xff] %v585_v46  ;;  %751 = vst [vmem:[%s1273_s19 + $0x8] sm:$0xff] %v722_v47 }
 0x1db   : > { %v1046_v48 = vpop.f32.mrb[4].mxu1 }
 0x1dc   : > { %619 = vst [vmem:[%s274_s16 + $0x30] sm:$0xff] %v1046_v48  ;;  %v598_v49 = vpop.f32.mrb[5].mxu1 }
 0x1dd   : > { %617 = vst [vmem:[%s274_s16 + $0x20] sm:$0xff] %v598_v49  ;;  %v1047_v50 = vpop.f32.mrb[6].mxu1 }
 0x1de   : > { %620 = vst [vmem:[%s274_s16 + $0x38] sm:$0xff] %v1047_v50  ;;  %v601_v51 = vpop.f32.mrb[7].mxu1 }
 0x1df   : > { %618 = vst [vmem:[%s274_s16 + $0x28] sm:$0xff] %v601_v51 }
 0x1f3   : > { %v1070_v52 = vpop.f32.mrb[8].mxu1 }
 0x1f4   : > { %756 = vst [vmem:[%s1273_s19 + $0x30] sm:$0xff] %v1070_v52  ;;  %v735_v53 = vpop.f32.mrb[9].mxu1 }
 0x1f5   : > { %754 = vst [vmem:[%s1273_s19 + $0x20] sm:$0xff] %v735_v53  ;;  %v1071_v54 = vpop.f32.mrb[10].mxu1 }
 0x1f6   : > { %757 = vst [vmem:[%s1273_s19 + $0x38] sm:$0xff] %v1071_v54  ;;  %v738_v55 = vpop.f32.mrb[11].mxu1 }
 0x1f7   : > { %755 = vst [vmem:[%s1273_s19 + $0x28] sm:$0xff] %v738_v55 }
 0x1f8 PF: > { %s17_s21 = sadd.s32 1, %s1130_s21  }
 0x1f9   : > { %p14_p4 = scmp.ge.s32.totalorder %s17_s21, 4  }
 0x1fb   :  { %16 = sbr.rel (!%p14_p4) target bundleno = 1 (0x1), region = 90 }

// kernel: gat_forward.7
= control target key start
LH: loop header
LB: loop body
LE: loop exit
PB: predicated region body
PF: predicated region fallthrough
CT: control target
= control target key end

     0   :  { %s863_s18 = smov 0   ;;  %s956_s0 = inlined_call_operand.vmem [shape: bf16[128,128], index: 0, kind: input, shape index: {}]   ;;  %s957_s1 = inlined_call_operand.vmem [shape: f32[128,128], index: 1, kind: input, shape index: {}]   ;;  %s958_s2 = inlined_call_operand.vmem [shape: f32[128,128], index: 2, kind: input, shape index: {}]   ;;  %s959_s3 = inlined_call_operand.vmem [shape: s8[128,128], index: 3, kind: input, shape index: {}]   ;;  %s960_s4 = inlined_call_operand.vmem [shape: f32[1,128], index: 4, kind: input, shape index: {}]   ;;  %s961_s5 = inlined_call_operand.vmem [shape: f32[128,128], index: 5, kind: output, shape index: {}]  }
   0x1 LB: > { %s690_s19 = sadd.s32 4294967295, %s830_s18   ;;  %p694_p0 = scmp.ge.s32.totalorder %s830_s18, 1  ;;  %s830_s18 = sphi %s863_s18, %s15_s18  }
   0x2   : > { %p199_p1 = scmp.lt.s32.totalorder %s830_s18, 3 }
   0x4   : > { %p200_p2 = pnand %p694_p0, %p199_p1 }
   0x5   : > { %s695_s20 = sshll.u32 (!%p200_p2), %s690_s19, 3  ;;  %v832_v0 = vmov (!%p200_p2), 0   ;;  %s697_s25 = sshll.u32 (!%p200_p2), %s690_s19, 1  ;;  %v709_v18 = vld [vmem:[%s957_s1] ss:$0 sm:$0xff] (!%p200_p2) }
   0x6   : > { %203 = sbr.rel (%p200_p2) target bundleno = 702 (0x2be), region = 40  ;;  %783 = vset.pattern.permute.xlu1 (!%p200_p2), %v832_v0  ;;  %782 = vset.pattern.permute.xlu0 (!%p200_p2), %v832_v0  ;;  %p233_p3 = scmp.lt.s32.totalorder (!%p200_p2), %s695_s20, 15 }
   0x7   : > { %p239_p4 = scmp.lt.s32.totalorder (!%p200_p2), %s697_s25, 3 }
   0xd   : > { %s963_s20 = smov (!%p233_p3, %s695_s20), 15  ;;  %s965_s25 = smov (!%p239_p4, %s697_s25), 3 }
   0xe   : > { %s696_s21 = sshll.u32 %s963_s20, 3  ;;  %s698_s26 = sshll.u32 %s965_s25, 3 }
   0xf   : > { %s236_s24 = scalar_lea.vmem %s958_s2, %s696_s21  ;;  %s242_s29 = scalar_lea.vmem %s959_s3, %s698_s26 }
  0x10   : > { %v289_v1 = vld [vmem:[%s236_s24 + $0x20] sm:$0xff]  ;;  %v290_v3 = vld [vmem:[%s236_s24 + $0x28] sm:$0xff]  ;;  %v288_v5 = vld [vmem:[%s236_s24 + $0x18] sm:$0xff]  ;;  %s248_s30 = scalar_lea.vmem %s961_s5, %s696_s21 }
  0x11   : > { %v285_v2 = vld [vmem:[%s236_s24] sm:$0xff]  ;;  %316 = vperm.xlu1 %783, %v289_v1   ;;  %v286_v4 = vld [vmem:[%s236_s24 + $0x8] sm:$0xff]  ;;  %v287_v6 = vld [vmem:[%s236_s24 + $0x10] sm:$0xff] }
  0x12   : > { %296 = vperm.xlu0 %782, %v285_v2   ;;  %v292_v7 = vld [vmem:[%s236_s24 + $0x38] sm:$0xff]  ;;  %v291_v8 = vld [vmem:[%s236_s24 + $0x30] sm:$0xff]  ;;  %v251_v9 = vld [vmem:[%s242_s29] sm:$0xff] }
  0x13   : > { %v253_v10 = vunpack.c.0.s8 %v251_v9  ;;  %v252_v11 = vld [vmem:[%s242_s29 + $0x8] sm:$0xff]  ;;  %v254_v12 = vunpack.c.1.s8 %v251_v9  ;;  %v255_v17 = vunpack.c.2.s8 %v251_v9  ;;  %v256_v25 = vunpack.c.3.s8 %v251_v9 }
  0x14   : > { %v257_v14 = vunpack.c.0.s8 %v252_v11  ;;  %v258_v16 = vunpack.c.1.s8 %v252_v11  ;;  %v259_v31 = vunpack.c.2.s8 %v252_v11  ;;  %v260_v46 = vunpack.c.3.s8 %v252_v11 }
  0x15   : > { %321 = vperm.xlu1 %783, %v290_v3   ;;  %v261_v13 = vcvt.s32.f32 %v253_v10  ;;  %v262_v15 = vcvt.s32.f32 %v254_v12  ;;  %v263_v28 = vcvt.s32.f32 %v255_v17  ;;  %v264_v38 = vcvt.s32.f32 %v256_v25 }
  0x16   : > { %301 = vperm.xlu0 %782, %v286_v4   ;;  %v265_v20 = vcvt.s32.f32 %v257_v14  ;;  %v266_v24 = vcvt.s32.f32 %v258_v16  ;;  %v267_v45 = vcvt.s32.f32 %v259_v31  ;;  %v268_v61 = vcvt.s32.f32 %v260_v46 }
  0x17   : > { %v701_v19 = vadd.f32 -1.0, %v261_v13  ;;  %v702_v23 = vadd.f32 -1.0, %v262_v15  ;;  %v703_v42 = vadd.f32 -1.0, %v263_v28  ;;  %v704_v53 = vadd.f32 -1.0, %v264_v38 }
  0x18   : > { %v705_v30 = vadd.f32 -1.0, %v265_v20  ;;  %v706_v37 = vadd.f32 -1.0, %v266_v24  ;;  %v707_v60 = vadd.f32 -1.0, %v267_v45  ;;  %v708_v10 = vadd.f32 -1.0, %v268_v61  ;;  %v784_v20 = vld [vmem:[%s956_s0] sm:$0xff]  }
  0x19   : > { %311 = vperm.xlu1 %783, %v288_v5   ;;  %v277_v29 = vmul.f32 1e+09, %v701_v19  ;;  %v278_v36 = vmul.f32 1e+09, %v702_v23  ;;  %v279_v57 = vmul.f32 1e+09, %v703_v42  ;;  %733 = vmatprep.subr.bf16.mxu0 %v784_v20 }
  0x1a   : > { %306 = vperm.xlu0 %782, %v287_v6   ;;  %v281_v44 = vmul.f32 1e+09, %v705_v30  ;;  %v282_v52 = vmul.f32 1e+09, %v706_v37  ;;  %v280_v6 = vmul.f32 1e+09, %v704_v53  ;;  %757 = vmatprep.subr.bf16.mxu1 %v784_v20 }
  0x1b   : > { %v283_v9 = vmul.f32 1e+09, %v707_v60  ;;  %v284_v17 = vmul.f32 1e+09, %v708_v10  ;;  %734 = vmatpush3.bf16.msra.mxu0 %v784_v20  ;;  %765 = vmatpush3.bf16.msra.mxu1 %v784_v20  ;;  %v786_v53 = vld [vmem:[%s956_s0 + $0x10] sm:$0xff]  }
  0x1d   : > { %331 = vperm.xlu1 %783, %v292_v7  }
  0x1e   : > { %326 = vperm.xlu0 %782, %v291_v8  }
  0x90   : > { %v317_v21 = vpop.permute.xlu1 %316 }
  0x91   : > { %v297_v22 = vpop.permute.xlu0 %296  ;;  %v342_v26 = vadd.f32 %v709_v18, %v317_v21  ;;  %v785_v21 = vld [vmem:[%s956_s0 + $0x8] sm:$0xff]  }
  0x92   : > { %v338_v27 = vadd.f32 %v709_v18, %v297_v22  ;;  %735 = vmatprep.subr.bf16.mxu0 %v785_v21  ;;  %758 = vmatprep.subr.bf16.mxu1 %v785_v21 }
  0x93   : > { %v358_v32 = vmul.f32 0.2, %v342_v26  ;;  %vm350_vm1 = vcmp.gt.f32.partialorder %v342_v26, 0.0  ;;  %736 = vmatpush3.bf16.msra.mxu0 %v785_v21  ;;  %766 = vmatpush3.bf16.msra.mxu1 %v785_v21 }
  0x94   : > { %v354_v33 = vmul.f32 0.2, %v338_v27  ;;  %vm346_vm0 = vcmp.gt.f32.partialorder %v338_v27, 0.0  ;;  %v322_v34 = vpop.permute.xlu1 %321  ;;  %737 = vmatprep.subr.bf16.mxu0 %v786_v53  ;;  %759 = vmatprep.subr.bf16.mxu1 %v786_v53 }
  0x95   : > { %v302_v35 = vpop.permute.xlu0 %301  ;;  %v343_v39 = vadd.f32 %v709_v18, %v322_v34  ;;  %v366_v49 = vsel %vm350_vm1, %v342_v26, %v358_v32 }
  0x96   : > { %v339_v40 = vadd.f32 %v709_v18, %v302_v35  ;;  %v362_v41 = vsel %vm346_vm0, %v338_v27, %v354_v33  ;;  %v374_v58 = vadd.f32 %v366_v49, %v281_v44 }
  0x97   : > { %v885_v43 = vadd.f32 %v362_v41, %v277_v29  ;;  %v359_v47 = vmul.f32 0.2, %v343_v39  ;;  %vm351_vm3 = vcmp.gt.f32.partialorder %v343_v39, 0.0  ;;  %738 = vmatpush3.bf16.msra.mxu0 %v786_v53  ;;  %767 = vmatpush3.bf16.msra.mxu1 %v786_v53 }
  0x98   : > { %v355_v48 = vmul.f32 0.2, %v339_v40  ;;  %vm347_vm2 = vcmp.gt.f32.partialorder %v339_v40, 0.0  ;;  %v312_v50 = vpop.permute.xlu1 %311 }
  0x99   : > { %378 = vmax.xlane.f32.xlu0 %v885_v43  ;;  %v307_v51 = vpop.permute.xlu0 %306  ;;  %v341_v54 = vadd.f32 %v709_v18, %v312_v50  ;;  %v367_v0 = vsel %vm351_vm3, %v343_v39, %v359_v47 }
  0x9a   : > { %v340_v55 = vadd.f32 %v709_v18, %v307_v51  ;;  %v363_v56 = vsel %vm347_vm2, %v339_v40, %v355_v48  ;;  %v375_v7 = vadd.f32 %v367_v0, %v282_v52 }
  0x9b   : > { %v371_v59 = vadd.f32 %v363_v56, %v278_v36  ;;  %v357_v62 = vmul.f32 0.2, %v341_v54  ;;  %vm349_vm5 = vcmp.gt.f32.partialorder %v341_v54, 0.0  ;;  %v788_v56 = vld [vmem:[%s956_s0 + $0x20] sm:$0xff]  }
  0x9c   : > { %v356_v63 = vmul.f32 0.2, %v340_v55  ;;  %vm348_vm4 = vcmp.gt.f32.partialorder %v340_v55, 0.0  ;;  %v332_v1 = vpop.permute.xlu1 %331 }
  0x9d   : > { %386 = vmax.xlane.f32.xlu0 %v374_v58  ;;  %380 = vmax.xlane.f32.xlu1 %v371_v59  ;;  %v327_v2 = vpop.permute.xlu0 %326  ;;  %v345_v3 = vadd.f32 %v709_v18, %v332_v1  ;;  %v365_v13 = vsel %vm349_vm5, %v341_v54, %v357_v62 }
  0x9e   : > { %v344_v4 = vadd.f32 %v709_v18, %v327_v2  ;;  %v364_v5 = vsel %vm348_vm4, %v340_v55, %v356_v63  ;;  %v373_v15 = vadd.f32 %v365_v13, %v280_v6  ;;  %v787_v55 = vld [vmem:[%s956_s0 + $0x18] sm:$0xff]  }
  0x9f   : > { %v372_v8 = vadd.f32 %v364_v5, %v279_v57  ;;  %v361_v11 = vmul.f32 0.2, %v345_v3  ;;  %vm353_vm7 = vcmp.gt.f32.partialorder %v345_v3, 0.0  ;;  %739 = vmatprep.subr.bf16.mxu0 %v787_v55  ;;  %760 = vmatprep.subr.bf16.mxu1 %v787_v55  ;;  %v789_v57 = vld [vmem:[%s956_s0 + $0x28] sm:$0xff]  }
  0xa0   : > { %v360_v12 = vmul.f32 0.2, %v344_v4  ;;  %vm352_vm6 = vcmp.gt.f32.partialorder %v344_v4, 0.0  ;;  %740 = vmatpush3.bf16.msra.mxu0 %v787_v55  ;;  %768 = vmatpush3.bf16.msra.mxu1 %v787_v55 }
  0xa1   : > { %388 = vmax.xlane.f32.xlu0 %v375_v7  ;;  %382 = vmax.xlane.f32.xlu1 %v372_v8  ;;  %v369_v19 = vsel %vm353_vm7, %v345_v3, %v361_v11 }
  0xa2   : > { %v368_v14 = vsel %vm352_vm6, %v344_v4, %v360_v12  ;;  %v377_v18 = vadd.f32 %v369_v19, %v284_v17  ;;  %741 = vmatprep.subr.bf16.mxu0 %v788_v56  ;;  %761 = vmatprep.subr.bf16.mxu1 %v788_v56 }
  0xa3   : > { %v376_v16 = vadd.f32 %v368_v14, %v283_v9 }
  0xa4   : > { %742 = vmatpush3.bf16.msra.mxu0 %v788_v56  ;;  %769 = vmatpush3.bf16.msra.mxu1 %v788_v56 }
  0xa5   : > { %384 = vmax.xlane.f32.xlu0 %v373_v15  ;;  %390 = vmax.xlane.f32.xlu1 %v376_v16 }
  0xa6   : > { %743 = vmatprep.subr.bf16.mxu0 %v789_v57  ;;  %762 = vmatprep.subr.bf16.mxu1 %v789_v57 }
  0xa8   : > { %744 = vmatpush3.bf16.msra.mxu0 %v789_v57  ;;  %770 = vmatpush3.bf16.msra.mxu1 %v789_v57 }
  0xa9   : > { %392 = vmax.xlane.f32.xlu0 %v377_v18 }
 0x126   : > { %v379_v22 = vpop.xlane.xlu0 %378 }
 0x127   : > { %v394_v23 = vsub.f32 %v885_v43, %v379_v22 }
 0x129   : > { %v402_v24 = vmul.f32 1.442695, %v394_v23 }
 0x12a   : > { %v381_v25 = vpop.xlane.xlu1 %380  ;;  %v387_v26 = vpop.xlane.xlu0 %386 }
 0x12b   : > { %792 = vpow2.f32 %v402_v24  ;;  %v395_v27 = vsub.f32 %v371_v59, %v381_v25  ;;  %v398_v28 = vsub.f32 %v374_v58, %v387_v26  ;;  %v790_v58 = vld [vmem:[%s956_s0 + $0x30] sm:$0xff]   ;;  %v791_v59 = vld [vmem:[%s956_s0 + $0x38] sm:$0xff]   ;;  %v718_v24 = vld [vmem:[%s960_s4] ss:$0 sm:$0xff] }
 0x12c   : > { %745 = vmatprep.subr.bf16.mxu0 %v790_v58  ;;  %763 = vmatprep.subr.bf16.mxu1 %v790_v58 }
 0x12d   : > { %v404_v29 = vmul.f32 1.442695, %v395_v27  ;;  %v410_v30 = vmul.f32 1.442695, %v398_v28  ;;  %746 = vmatpush3.bf16.msra.mxu0 %v790_v58  ;;  %771 = vmatpush3.bf16.msra.mxu1 %v790_v58 }
 0x12e   : > { %v383_v31 = vpop.xlane.xlu1 %382  ;;  %v389_v32 = vpop.xlane.xlu0 %388  ;;  %747 = vmatprep.subr.bf16.mxu0 %v791_v59  ;;  %764 = vmatprep.subr.bf16.mxu1 %v791_v59 }
 0x12f   : > { %794 = vpow2.f32 %v404_v29  ;;  %v396_v33 = vsub.f32 %v372_v8, %v383_v31  ;;  %v399_v34 = vsub.f32 %v375_v7, %v389_v32 }
 0x130   : > { %796 = vpow2.f32 %v410_v30 }
 0x131   : > { %v406_v35 = vmul.f32 1.442695, %v396_v33  ;;  %v412_v36 = vmul.f32 1.442695, %v399_v34  ;;  %748 = vmatpush3.bf16.msra.mxu0 %v791_v59  ;;  %772 = vmatpush3.bf16.msra.mxu1 %v791_v59 }
 0x132   : > { %v391_v37 = vpop.xlane.xlu1 %390  ;;  %v385_v38 = vpop.xlane.xlu0 %384 }
 0x133   : > { %798 = vpow2.f32 %v406_v35  ;;  %v400_v39 = vsub.f32 %v376_v16, %v391_v37  ;;  %v397_v40 = vsub.f32 %v373_v15, %v385_v38 }
 0x134   : > { %800 = vpow2.f32 %v412_v36 }
 0x135   : > { %v895_v41 = vpop.eup %792  ;;  %v414_v42 = vmul.f32 1.442695, %v400_v39  ;;  %v408_v43 = vmul.f32 1.442695, %v397_v40 }
 0x136   : > { %418 = vadd.xlane.f32.xlu1 %v895_v41  ;;  %v393_v44 = vpop.xlane.xlu0 %392 }
 0x137   : > { %802 = vpow2.f32 %v414_v42  ;;  %v401_v45 = vsub.f32 %v377_v18, %v393_v44 }
 0x138   : > { %804 = vpow2.f32 %v408_v43 }
 0x139   : > { %v898_v46 = vpop.eup %794  ;;  %v416_v47 = vmul.f32 1.442695, %v401_v45 }
 0x13a   : > { %v900_v48 = vpop.eup %796  ;;  %420 = vadd.xlane.f32.xlu0 %v898_v46 }
 0x13b   : > { %806 = vpow2.f32 %v416_v47  ;;  %426 = vadd.xlane.f32.xlu1 %v900_v48 }
 0x13d   : > { %v904_v49 = vpop.eup %798 }
 0x13e   : > { %v906_v50 = vpop.eup %800 }
 0x13f   : > { %422 = vadd.xlane.f32.xlu1 %v904_v49  ;;  %428 = vadd.xlane.f32.xlu0 %v906_v50 }
 0x141   : > { %v910_v51 = vpop.eup %802 }
 0x142   : > { %v912_v52 = vpop.eup %804 }
 0x143   : > { %430 = vadd.xlane.f32.xlu1 %v910_v51  ;;  %424 = vadd.xlane.f32.xlu0 %v912_v52 }
 0x145   : > { %v919_v54 = vpop.eup %806 }
 0x147   : > { %432 = vadd.xlane.f32.xlu0 %v919_v54 }
 0x1c3   : > { %v419_v60 = vpop.xlane.xlu1 %418 }
 0x1c4   : > { %808 = vrcp.f32 %v419_v60 }
 0x1c7   : > { %v421_v61 = vpop.xlane.xlu0 %420 }
 0x1c8   : > { %v427_v62 = vpop.xlane.xlu1 %426  ;;  %810 = vrcp.f32 %v421_v61 }
 0x1c9   : > { %812 = vrcp.f32 %v427_v62 }
 0x1cc   : > { %v423_v63 = vpop.xlane.xlu1 %422  ;;  %v429_v0 = vpop.xlane.xlu0 %428 }
 0x1cd   : > { %814 = vrcp.f32 %v429_v0 }
 0x1ce   : > { %v809_v1 = vpop.eup %808  ;;  %816 = vrcp.f32 %v423_v63 }
 0x1cf   : > { %v442_v5 = vmul.f32 %v809_v1, %v895_v41 }
 0x1d0   : > { %v431_v2 = vpop.xlane.xlu1 %430  ;;  %v425_v3 = vpop.xlane.xlu0 %424 }
 0x1d1   : > { %818 = vrcp.f32 %v425_v3 }
 0x1d2   : > { %v811_v4 = vpop.eup %810  ;;  %820 = vrcp.f32 %v431_v2 }
 0x1d3   : > { %v443_v6 = vmul.f32 %v811_v4, %v898_v46  ;;  %v813_v9 = vpop.eup %812 }
 0x1d4   : > { %v433_v7 = vpop.xlane.xlu0 %432  ;;  %v446_v11 = vmul.f32 %v813_v9, %v900_v48 }
 0x1d5   : > { %822 = vrcp.f32 %v433_v7  ;;  %v450_v8 = vpack.c.bf16 %v443_v6, %v442_v5 }
 0x1d7   : > { %749 = vmatprep.mubr.bf16.mxu0 %v450_v8  ;;  %v815_v10 = vpop.eup %814 }
 0x1d8   : > { %v447_v12 = vmul.f32 %v815_v10, %v906_v50  ;;  %v817_v13 = vpop.eup %816 }
 0x1d9   : > { %v444_v17 = vmul.f32 %v817_v13, %v904_v49 }
 0x1da   : > { %v452_v14 = vpack.c.bf16 %v447_v12, %v446_v11 }
 0x1db   : > { %v819_v15 = vpop.eup %818 }
 0x1dc   : > { %v821_v16 = vpop.eup %820  ;;  %753 = vmatprep.mubr.bf16.mxu1 %v452_v14  ;;  %v445_v19 = vmul.f32 %v819_v15, %v912_v52 }
 0x1dd   : > { %v448_v21 = vmul.f32 %v821_v16, %v910_v51 }
 0x1de   : > { %v451_v20 = vpack.c.bf16 %v445_v19, %v444_v17 }
 0x1df   : > { %v823_v18 = vpop.eup %822 }
 0x1e0   : > { %v449_v22 = vmul.f32 %v823_v18, %v919_v54  ;;  %750 = vmatmul.mubr.bf16.vlgmr.msra.gmra.mrb[0].mxu0 %v451_v20 }
 0x1e2   : > { %v453_v23 = vpack.c.bf16 %v449_v22, %v448_v21 }
 0x1e4   : > { %754 = vmatmul.mubr.bf16.vlgmr.msra.gmra.mrb[0].mxu1 %v453_v23 }
 0x2b3   : > { %v751_v25 = vpop.f32.mrb[0].mxu0 }
 0x2b4   : > { %v608_v26 = vadd.f32 %v751_v25, %v718_v24  ;;  %v552_v27 = vpop.f32.mrb[1].mxu0 }
 0x2b5   : > { %v606_v28 = vadd.f32 %v718_v24, %v552_v27  ;;  %v752_v29 = vpop.f32.mrb[2].mxu0 }
 0x2b6   : > { %616 = vst [vmem:[%s248_s30 + $0x10] sm:$0xff] %v608_v26  ;;  %v609_v30 = vadd.f32 %v752_v29, %v718_v24  ;;  %v555_v31 = vpop.f32.mrb[3].mxu0 }
 0x2b7   : > { %v755_v32 = vpop.f32.mrb[0].mxu1  ;;  %614 = vst [vmem:[%s248_s30] sm:$0xff] %v606_v28  ;;  %v607_v33 = vadd.f32 %v718_v24, %v555_v31 }
 0x2b8   : > { %v612_v34 = vadd.f32 %v755_v32, %v718_v24  ;;  %v568_v35 = vpop.f32.mrb[1].mxu1  ;;  %617 = vst [vmem:[%s248_s30 + $0x18] sm:$0xff] %v609_v30 }
 0x2b9   : > { %v610_v36 = vadd.f32 %v718_v24, %v568_v35  ;;  %v756_v37 = vpop.f32.mrb[2].mxu1  ;;  %615 = vst [vmem:[%s248_s30 + $0x8] sm:$0xff] %v607_v33 }
 0x2ba   : > { %620 = vst [vmem:[%s248_s30 + $0x30] sm:$0xff] %v612_v34  ;;  %v613_v38 = vadd.f32 %v756_v37, %v718_v24  ;;  %v571_v39 = vpop.f32.mrb[3].mxu1 }
 0x2bb   : > { %618 = vst [vmem:[%s248_s30 + $0x20] sm:$0xff] %v610_v36  ;;  %v611_v40 = vadd.f32 %v718_v24, %v571_v39 }
 0x2bc   : > { %621 = vst [vmem:[%s248_s30 + $0x38] sm:$0xff] %v613_v38 }
 0x2bd   : > { %619 = vst [vmem:[%s248_s30 + $0x28] sm:$0xff] %v611_v40 }
 0x2be PF: > { %s15_s18 = sadd.s32 1, %s830_s18  }
 0x2bf   : > { %p12_p5 = scmp.ge.s32.totalorder %s15_s18, 4  }
 0x2c1   :  { %14 = sbr.rel (!%p12_p5) target bundleno = 1 (0x1), region = 73 }

// kernel: gat_forward.5
= control target key start
LH: loop header
LB: loop body
LE: loop exit
PB: predicated region body
PF: predicated region fallthrough
CT: control target
= control target key end

     0   :  { %s4011_s18 = smov 0   ;;  %s5461_s0 = inlined_call_operand.vmem [shape: bf16[128,128], index: 0, kind: input, shape index: {}]   ;;  %s5462_s1 = inlined_call_operand.vmem [shape: f32[128,128], index: 1, kind: input, shape index: {}]   ;;  %s5463_s2 = inlined_call_operand.vmem [shape: f32[128,128], index: 2, kind: input, shape index: {}]   ;;  %s5464_s3 = inlined_call_operand.vmem [shape: s8[128,128], index: 3, kind: input, shape index: {}]   ;;  %s5465_s4 = inlined_call_operand.vmem [shape: f32[1,128], index: 4, kind: input, shape index: {}]   ;;  %s5466_s5 = inlined_call_operand.vmem [shape: bf16[128,128], index: 5, kind: output, shape index: {}]  }
   0x1 LB: > { %s3144_s19 = sadd.s32 4294967295, %s3964_s18   ;;  %p3148_p0 = scmp.ge.s32.totalorder %s3964_s18, 1  ;;  %s3964_s18 = sphi %s4011_s18, %s15_s18  }
   0x2   : > { %p199_p1 = scmp.lt.s32.totalorder %s3964_s18, 3 }
   0x4   : > { %p200_p2 = pnand %p3148_p0, %p199_p1 }
   0x6   : > { %203 = sbr.rel (%p200_p2) target bundleno = 1843 (0x733), region = 40 }
   0xd   : > { %s3149_s20 = sshll.u32 %s3144_s19, 3  ;;  %v3966_v0 = vmov 0   ;;  %v3967_v9 = vmov 1   ;;  %v3968_v10 = vmov 2   ;;  %s3151_s25 = sshll.u32 %s3144_s19, 1 }
   0xe   : > { %3597 = vset.pattern.permute.xlu1 %v3966_v0  ;;  %3596 = vset.pattern.permute.xlu0 %v3966_v0  ;;  %p233_p3 = scmp.lt.s32.totalorder %s3149_s20, 15  ;;  %p239_p4 = scmp.lt.s32.totalorder %s3151_s25, 3  ;;  %v3163_v19 = vld [vmem:[%s5462_s1] ss:$0 sm:$0xff] }
   0xf   : > { %s3969_s11 = smov 112   ;;  %s3971_s28 = smov 96  }
  0x10   : > { %s5545_s20 = smov (!%p233_p3, %s3149_s20), 15  ;;  %s5547_s25 = smov (!%p239_p4, %s3151_s25), 3 }
  0x11   : > { %s3150_s21 = sshll.u32 %s5545_s20, 3  ;;  %s3152_s26 = sshll.u32 %s5547_s25, 3 }
  0x12   : > { %s4027_s24 = scalar_lea.vmem %s5463_s2, %s3150_s21  ;;  %s242_s29 = scalar_lea.vmem %s5464_s3, %s3152_s26 }
  0x13   : > { %v4030_v1 = vld [vmem:[%s4027_s24 + $0x10] sm:$0xff]  ;;  %v4033_v2 = vld [vmem:[%s4027_s24] sm:$0xff]  ;;  %v4038_v3 = vld [vmem:[%s4027_s24 + $0x18] sm:$0xff]  ;;  %s3976_s7 = smov 80   ;;  %s3977_s25 = smov 16  }
  0x14   : > { %306 = vperm.xlu1 %3597, %v4030_v1   ;;  %296 = vperm.xlu0 %3596, %v4033_v2   ;;  %v4041_v4 = vld [vmem:[%s4027_s24 + $0x8] sm:$0xff]  ;;  %v4049_v6 = vld [vmem:[%s4027_s24 + $0x20] sm:$0xff]  ;;  %v4054_v7 = vld [vmem:[%s4027_s24 + $0x38] sm:$0xff]  ;;  %s3978_s6 = smov 64   ;;  %s3979_s10 = smov 48  }
  0x15   : > { %v4044_v5 = vld [vmem:[%s4027_s24 + $0x28] sm:$0xff]  ;;  %v4057_v8 = vld [vmem:[%s4027_s24 + $0x30] sm:$0xff]  ;;  %v251_v11 = vld [vmem:[%s242_s29] sm:$0xff] }
  0x16   : > { %v253_v12 = vunpack.c.0.s8 %v251_v11  ;;  %v255_v13 = vunpack.c.2.s8 %v251_v11  ;;  %v254_v15 = vunpack.c.1.s8 %v251_v11  ;;  %v252_v16 = vld [vmem:[%s242_s29 + $0x8] sm:$0xff]  ;;  %v256_v18 = vunpack.c.3.s8 %v251_v11  ;;  %s3980_s29 = smov 32  }
  0x17   : > { %v257_v22 = vunpack.c.0.s8 %v252_v16  ;;  %v258_v27 = vunpack.c.1.s8 %v252_v16  ;;  %v259_v33 = vunpack.c.2.s8 %v252_v16  ;;  %v260_v44 = vunpack.c.3.s8 %v252_v16 }
  0x18   : > { %311 = vperm.xlu1 %3597, %v4038_v3   ;;  %301 = vperm.xlu0 %3596, %v4041_v4   ;;  %v261_v14 = vcvt.s32.f32 %v253_v12  ;;  %v263_v17 = vcvt.s32.f32 %v255_v13  ;;  %v262_v21 = vcvt.s32.f32 %v254_v15  ;;  %v264_v26 = vcvt.s32.f32 %v256_v18 }
  0x19   : > { %v265_v32 = vcvt.s32.f32 %v257_v22  ;;  %v266_v40 = vcvt.s32.f32 %v258_v27  ;;  %v267_v48 = vcvt.s32.f32 %v259_v33  ;;  %v268_v59 = vcvt.s32.f32 %v260_v44 }
  0x1a   : > { %v3155_v20 = vadd.f32 -1.0, %v261_v14  ;;  %v3157_v25 = vadd.f32 -1.0, %v263_v17  ;;  %v3156_v31 = vadd.f32 -1.0, %v262_v21  ;;  %v3158_v39 = vadd.f32 -1.0, %v264_v26 }
  0x1b   : > { %v3159_v47 = vadd.f32 -1.0, %v265_v32  ;;  %v3160_v55 = vadd.f32 -1.0, %v266_v40  ;;  %v3161_v63 = vadd.f32 -1.0, %v267_v48  ;;  %v3162_v16 = vadd.f32 -1.0, %v268_v59 }
  0x1c   : > { %321 = vperm.xlu1 %3597, %v4044_v5   ;;  %316 = vperm.xlu0 %3596, %v4049_v6   ;;  %v4077_v30 = vmul.f32 1e+09, %v3155_v20  ;;  %v4079_v38 = vmul.f32 1e+09, %v3157_v25  ;;  %v4084_v46 = vmul.f32 1e+09, %v3156_v31 }
  0x1d   : > { %v4087_v54 = vmul.f32 1e+09, %v3158_v39  ;;  %v4095_v62 = vmul.f32 1e+09, %v3159_v47  ;;  %v4108_v20 = vld [vmem:[%s5462_s1 + $0x1] ss:$0 sm:$0xff] }
  0x1e   : > { %v4110_v21 = vmul.f32 1e+09, %v3160_v55  ;;  %v4112_v22 = vmul.f32 1e+09, %v3161_v63 }
  0x20   : > { %331 = vperm.xlu1 %3597, %v4054_v7   ;;  %326 = vperm.xlu0 %3596, %v4057_v8  }
  0x24   : > { %3598 = vset.pattern.permute.xlu1 %v3967_v9  ;;  %3599 = vset.pattern.permute.xlu0 %v3967_v9 }
  0x25   : > { %594 = vperm.xlu1 %3598, %v4033_v2   ;;  %598 = vperm.xlu0 %3599, %v4041_v4  }
  0x29   : > { %602 = vperm.xlu1 %3598, %v4030_v1   ;;  %3600 = vset.pattern.permute.xlu0 %v3968_v10 }
  0x2d   : > { %606 = vperm.xlu1 %3598, %v4038_v3  }
  0x31   : > { %610 = vperm.xlu1 %3598, %v4049_v6  }
  0x35   : > { %614 = vperm.xlu1 %3598, %v4044_v5  }
  0x39   : > { %618 = vperm.xlu1 %3598, %v4057_v8  }
  0x3d   : > { %622 = vperm.xlu1 %3598, %v4054_v7  }
  0x41   : > { %3601 = vset.pattern.permute.xlu1 %v3968_v10 }
  0x93   : > { %v307_v23 = vpop.permute.xlu1 %306  ;;  %v297_v24 = vpop.permute.xlu0 %296 }
  0x94   : > { %v340_v28 = vadd.f32 %v3163_v19, %v307_v23  ;;  %v338_v29 = vadd.f32 %v3163_v19, %v297_v24 }
  0x96   : > { %v356_v34 = vmul.f32 0.2, %v340_v28  ;;  %v354_v35 = vmul.f32 0.2, %v338_v29  ;;  %vm346_vm0 = vcmp.gt.f32.partialorder %v338_v29, 0.0  ;;  %vm348_vm1 = vcmp.gt.f32.partialorder %v340_v28, 0.0 }
  0x97   : > { %v312_v36 = vpop.permute.xlu1 %311  ;;  %v302_v37 = vpop.permute.xlu0 %301 }
  0x98   : > { %v341_v41 = vadd.f32 %v3163_v19, %v312_v36  ;;  %v339_v42 = vadd.f32 %v3163_v19, %v302_v37  ;;  %v362_v43 = vsel %vm346_vm0, %v338_v29, %v354_v35  ;;  %v364_v51 = vsel %vm348_vm1, %v340_v28, %v356_v34 }
  0x99   : > { %v4082_v45 = vadd.f32 %v362_v43, %v4077_v30  ;;  %v4090_v60 = vadd.f32 %v364_v51, %v4079_v38  ;;  %v4116_v28 = vmul.f32 1e+09, %v3162_v16 }
  0x9a   : > { %v357_v49 = vmul.f32 0.2, %v341_v41  ;;  %v355_v50 = vmul.f32 0.2, %v339_v42  ;;  %vm347_vm2 = vcmp.gt.f32.partialorder %v339_v42, 0.0  ;;  %vm349_vm3 = vcmp.gt.f32.partialorder %v341_v41, 0.0 }
  0x9b   : > { %v322_v52 = vpop.permute.xlu1 %321  ;;  %378 = vmax.xlane.f32.xlu0 %v4082_v45  ;;  %v317_v53 = vpop.permute.xlu0 %316 }
  0x9c   : > { %v343_v56 = vadd.f32 %v3163_v19, %v322_v52  ;;  %v342_v57 = vadd.f32 %v3163_v19, %v317_v53  ;;  %v363_v58 = vsel %vm347_vm2, %v339_v42, %v355_v50  ;;  %v365_v10 = vsel %vm349_vm3, %v341_v41, %v357_v49 }
  0x9d   : > { %v4093_v61 = vadd.f32 %v363_v58, %v4084_v46  ;;  %v4100_v17 = vadd.f32 %v365_v10, %v4087_v54 }
  0x9e   : > { %v359_v0 = vmul.f32 0.2, %v343_v56  ;;  %v358_v9 = vmul.f32 0.2, %v342_v57  ;;  %vm350_vm4 = vcmp.gt.f32.partialorder %v342_v57, 0.0  ;;  %vm351_vm5 = vcmp.gt.f32.partialorder %v343_v56, 0.0 }
  0x9f   : > { %v332_v11 = vpop.permute.xlu1 %331  ;;  %382 = vmax.xlane.f32.xlu0 %v4090_v60  ;;  %380 = vmax.xlane.f32.xlu1 %v4093_v61  ;;  %v327_v12 = vpop.permute.xlu0 %326 }
  0xa0   : > { %v345_v13 = vadd.f32 %v3163_v19, %v332_v11  ;;  %v344_v14 = vadd.f32 %v3163_v19, %v327_v12  ;;  %v366_v15 = vsel %vm350_vm4, %v342_v57, %v358_v9  ;;  %v367_v19 = vsel %vm351_vm5, %v343_v56, %v359_v0 }
  0xa1   : > { %v4103_v18 = vadd.f32 %v366_v15, %v4095_v62  ;;  %v4120_v31 = vadd.f32 %v367_v19, %v4110_v21 }
  0xa2   : > { %v361_v23 = vmul.f32 0.2, %v345_v13  ;;  %v360_v24 = vmul.f32 0.2, %v344_v14  ;;  %vm352_vm6 = vcmp.gt.f32.partialorder %v344_v14, 0.0  ;;  %vm353_vm7 = vcmp.gt.f32.partialorder %v345_v13, 0.0 }
  0xa3   : > { %384 = vmax.xlane.f32.xlu0 %v4100_v17  ;;  %386 = vmax.xlane.f32.xlu1 %v4103_v18 }
  0xa4   : > { %v595_v25 = vpop.permute.xlu1 %594  ;;  %v368_v26 = vsel %vm352_vm6, %v344_v14, %v360_v24  ;;  %v599_v27 = vpop.permute.xlu0 %598  ;;  %v369_v34 = vsel %vm353_vm7, %v345_v13, %v361_v23 }
  0xa5   : > { %v629_v29 = vadd.f32 %v4108_v20, %v595_v25  ;;  %v4123_v32 = vadd.f32 %v368_v26, %v4112_v22  ;;  %v630_v33 = vadd.f32 %v4108_v20, %v599_v27  ;;  %v4130_v40 = vadd.f32 %v369_v34, %v4116_v28  ;;  %v3617_v34 = vld [vmem:[%s5461_s0 + $0x8] sm:$0xff]  }
  0xa7   : > { %v645_v35 = vmul.f32 0.2, %v629_v29  ;;  %388 = vmax.xlane.f32.xlu0 %v4120_v31  ;;  %390 = vmax.xlane.f32.xlu1 %v4123_v32  ;;  %v646_v36 = vmul.f32 0.2, %v630_v33  ;;  %vm637_vm8 = vcmp.gt.f32.partialorder %v629_v29, 0.0  ;;  %vm638_vm9 = vcmp.gt.f32.partialorder %v630_v33, 0.0 }
  0xa8   : > { %v603_v37 = vpop.permute.xlu1 %602 }
  0xa9   : > { %v631_v39 = vadd.f32 %v4108_v20, %v603_v37  ;;  %v653_v41 = vsel %vm637_vm8, %v629_v29, %v645_v35  ;;  %v654_v42 = vsel %vm638_vm9, %v630_v33, %v646_v36  ;;  %v3614_v29 = vld [vmem:[%s5461_s0] sm:$0xff]   ;;  %v3616_v33 = vld [vmem:[%s5461_s0 + $0x18] sm:$0xff]   ;;  %v3618_v35 = vld [vmem:[%s5461_s0 + $0x28] sm:$0xff]  }
  0xaa   : > { %v4133_v43 = vadd.f32 %v653_v41, %v4077_v30  ;;  %v4137_v47 = vadd.f32 %v654_v42, %v4084_v46  ;;  %v3619_v36 = vld [vmem:[%s5461_s0 + $0x20] sm:$0xff]   ;;  %v3620_v37 = vld [vmem:[%s5461_s0 + $0x38] sm:$0xff]  }
  0xab   : > { %v647_v44 = vmul.f32 0.2, %v631_v39  ;;  %392 = vmax.xlane.f32.xlu0 %v4130_v40  ;;  %vm639_vm10 = vcmp.gt.f32.partialorder %v631_v39, 0.0 }
  0xac   : > { %v607_v48 = vpop.permute.xlu1 %606  ;;  %669 = vmax.xlane.f32.xlu1 %v4133_v43 }
  0xad   : > { %v632_v49 = vadd.f32 %v4108_v20, %v607_v48  ;;  %v655_v50 = vsel %vm639_vm10, %v631_v39, %v647_v44  ;;  %v3621_v39 = vld [vmem:[%s5461_s0 + $0x30] sm:$0xff]  }
  0xae   : > { %v4142_v51 = vadd.f32 %v655_v50, %v4079_v38 }
  0xaf   : > { %v648_v52 = vmul.f32 0.2, %v632_v49  ;;  %671 = vmax.xlane.f32.xlu0 %v4137_v47  ;;  %vm640_vm11 = vcmp.gt.f32.partialorder %v632_v49, 0.0 }
  0xb0   : > { %v611_v53 = vpop.permute.xlu1 %610  ;;  %673 = vmax.xlane.f32.xlu1 %v4142_v51 }
  0xb1   : > { %v633_v55 = vadd.f32 %v4108_v20, %v611_v53  ;;  %v656_v56 = vsel %vm640_vm11, %v632_v49, %v648_v52  ;;  %vm583_vm11 = vcmask 130048  }
  0xb2   : > { %v4148_v57 = vadd.f32 %v656_v56, %v4087_v54 }
  0xb3   : > { %v649_v58 = vmul.f32 0.2, %v633_v55  ;;  %vm641_vm12 = vcmp.gt.f32.partialorder %v633_v55, 0.0 }
  0xb4   : > { %v615_v59 = vpop.permute.xlu1 %614  ;;  %675 = vmax.xlane.f32.xlu0 %v4148_v57 }
  0xb5   : > { %v634_v63 = vadd.f32 %v4108_v20, %v615_v59  ;;  %v657_v0 = vsel %vm641_vm12, %v633_v55, %v649_v58 }
  0xb6   : > { %v4153_v9 = vadd.f32 %v657_v0, %v4095_v62 }
  0xb7   : > { %v650_v10 = vmul.f32 0.2, %v634_v63  ;;  %vm642_vm13 = vcmp.gt.f32.partialorder %v634_v63, 0.0 }
  0xb8   : > { %v619_v11 = vpop.permute.xlu1 %618  ;;  %677 = vmax.xlane.f32.xlu1 %v4153_v9 }
  0xb9   : > { %v635_v12 = vadd.f32 %v4108_v20, %v619_v11  ;;  %v658_v13 = vsel %vm642_vm13, %v634_v63, %v650_v10 }
  0xba   : > { %v4158_v14 = vadd.f32 %v658_v13, %v4110_v21 }
  0xbb   : > { %v651_v15 = vmul.f32 0.2, %v635_v12  ;;  %vm643_vm14 = vcmp.gt.f32.partialorder %v635_v12, 0.0 }
  0xbc   : > { %v623_v16 = vpop.permute.xlu1 %622  ;;  %679 = vmax.xlane.f32.xlu0 %v4158_v14 }
  0xbd   : > { %v636_v23 = vadd.f32 %v4108_v20, %v623_v16  ;;  %v659_v24 = vsel %vm643_vm14, %v635_v12, %v651_v15  ;;  %v3615_v20 = vld [vmem:[%s5461_s0 + $0x10] sm:$0xff]   ;;  %v3181_v12 = vld [vmem:[%s5462_s1 + $0x2] ss:$0 sm:$0xff] }
  0xbe   : > { %v4163_v19 = vadd.f32 %v659_v24, %v4112_v22 }
  0xbf   : > { %v652_v25 = vmul.f32 0.2, %v636_v23  ;;  %vm644_vm15 = vcmp.gt.f32.partialorder %v636_v23, 0.0 }
  0xc0   : > { %681 = vmax.xlane.f32.xlu1 %v4163_v19 }
  0xc1   : > { %v660_v26 = vsel %vm644_vm15, %v636_v23, %v652_v25 }
  0xc2   : > { %v4167_v27 = vadd.f32 %v660_v26, %v4116_v28 }
  0xc4   : > { %683 = vmax.xlane.f32.xlu0 %v4167_v27 }
  0xd1   : > { %801 = vrot.lane.b32.xlu1 %v3614_v29, %s3969_s11 }
  0xd5   : > { %805 = vrot.lane.b32.xlu1 %v3615_v20, %s3969_s11 }
  0xd9   : > { %807 = vrot.lane.b32.xlu1 %v3616_v33, %s3969_s11 }
  0xda   : > { %803 = vrot.lane.b32.xlu0 %v3617_v34, %s3969_s11 }
  0xdd   : > { %811 = vrot.lane.b32.xlu1 %v3618_v35, %s3969_s11 }
  0xde   : > { %809 = vrot.lane.b32.xlu0 %v3619_v36, %s3969_s11 }
  0xe1   : > { %815 = vrot.lane.b32.xlu1 %v3620_v37, %s3969_s11 }
  0xe2   : > { %813 = vrot.lane.b32.xlu0 %v3621_v39, %s3969_s11 }
  0xe5   : > { %937 = vperm.xlu1 %3601, %v4041_v4  }
  0xe6   : > { %933 = vperm.xlu0 %3600, %v4033_v2  }
  0xe9   : > { %941 = vperm.xlu1 %3601, %v4030_v1  }
  0xea   : > { %945 = vperm.xlu0 %3600, %v4038_v3  }
  0xed   : > { %949 = vperm.xlu1 %3601, %v4049_v6  }
  0xee   : > { %953 = vperm.xlu0 %3600, %v4044_v5  }
  0xf1   : > { %957 = vperm.xlu1 %3601, %v4057_v8  }
  0xf2   : > { %961 = vperm.xlu0 %3600, %v4054_v7  }
 0x128   : > { %v379_v41 = vpop.xlane.xlu0 %378 }
 0x129   : > { %v394_v24 = vsub.f32 %v4082_v45, %v379_v41 }
 0x12b   : > { %v402_v39 = vmul.f32 1.442695, %v394_v24 }
 0x12c   : > { %v4210_v42 = vpop.xlane.xlu0 %382  ;;  %v381_v44 = vpop.xlane.xlu1 %380 }
 0x12d   : > { %v395_v29 = vsub.f32 %v4093_v61, %v381_v44  ;;  %3678 = vpow2.f32 %v402_v39 }
 0x12f   : > { %v404_v61 = vmul.f32 1.442695, %v395_v29 }
 0x130   : > { %v4212_v48 = vpop.xlane.xlu0 %384  ;;  %v4214_v4 = vpop.xlane.xlu1 %386 }
 0x131   : > { %v397_v44 = vsub.f32 %v4100_v17, %v4212_v48  ;;  %3680 = vpow2.f32 %v404_v61 }
 0x133   : > { %v408_v24 = vmul.f32 1.442695, %v397_v44 }
 0x134   : > { %v4216_v2 = vpop.xlane.xlu0 %388  ;;  %v4218_v1 = vpop.xlane.xlu1 %390 }
 0x137   : > { %v4285_v61 = vpop.eup %3678 }
 0x138   : > { %v4220_v3 = vpop.xlane.xlu0 %392 }
 0x139   : > { %v4222_v6 = vpop.xlane.xlu1 %669 }
 0x13b   : > { %v4293_v44 = vpop.eup %3680 }
 0x13c   : > { %v4224_v5 = vpop.xlane.xlu0 %671 }
 0x13d   : > { %v4226_v8 = vpop.xlane.xlu1 %673 }
 0x141   : > { %v4228_v7 = vpop.xlane.xlu0 %675 }
 0x145   : > { %v4230_v49 = vpop.xlane.xlu1 %677 }
 0x149   : > { %v4232_v50 = vpop.xlane.xlu0 %679 }
 0x14d   : > { %v4234_v52 = vpop.xlane.xlu1 %681 }
 0x151   : > { %v802_v53 = vpop.permute.xlu1 %801  ;;  %v4236_v55 = vpop.xlane.xlu0 %683 }
 0x152   : > { %3405 = vmatprep.subr.bf16.mxu1 %v802_v53 }
 0x153   : > { %3406 = vmatpush3.bf16.msra.mxu1 %v802_v53  ;;  %v396_v53 = vsub.f32 %v4090_v60, %v4210_v42 }
 0x155   : > { %v806_v56 = vpop.permute.xlu1 %805  ;;  %v804_v58 = vpop.permute.xlu0 %803 }
 0x156   : > { %3407 = vmatprep.subr.bf16.mxu1 %v804_v58 }
 0x157   : > { %3408 = vmatpush3.bf16.msra.mxu1 %v804_v58 }
 0x158   : > { %3409 = vmatprep.subr.bf16.mxu1 %v806_v56 }
 0x159   : > { %v808_v59 = vpop.permute.xlu1 %807  ;;  %v810_v63 = vpop.permute.xlu0 %809 }
 0x15b   : > { %3410 = vmatpush3.bf16.msra.mxu1 %v806_v56 }
 0x15c   : > { %3411 = vmatprep.subr.bf16.mxu1 %v808_v59 }
 0x15d   : > { %v812_v0 = vpop.permute.xlu1 %811  ;;  %v814_v10 = vpop.permute.xlu0 %813 }
 0x15f   : > { %3412 = vmatpush3.bf16.msra.mxu1 %v808_v59 }
 0x160   : > { %3413 = vmatprep.subr.bf16.mxu1 %v810_v63 }
 0x161   : > { %v816_v11 = vpop.permute.xlu1 %815 }
 0x163   : > { %3414 = vmatpush3.bf16.msra.mxu1 %v810_v63 }
 0x164   : > { %3415 = vmatprep.subr.bf16.mxu1 %v812_v0 }
 0x165   : > { %v938_v13 = vpop.permute.xlu1 %937  ;;  %v934_v15 = vpop.permute.xlu0 %933 }
 0x166   : > { %v969_v16 = vadd.f32 %v3181_v12, %v938_v13  ;;  %v968_v23 = vadd.f32 %v3181_v12, %v934_v15  ;;  %v406_v13 = vmul.f32 1.442695, %v396_v53 }
 0x167   : > { %3416 = vmatpush3.bf16.msra.mxu1 %v812_v0 }
 0x168   : > { %v985_v25 = vmul.f32 0.2, %v969_v16  ;;  %v984_v26 = vmul.f32 0.2, %v968_v23  ;;  %3417 = vmatprep.subr.bf16.mxu1 %v814_v10  ;;  %vm977_vm0 = vcmp.gt.f32.partialorder %v969_v16, 0.0  ;;  %vm976_vm1 = vcmp.gt.f32.partialorder %v968_v23, 0.0 }
 0x169   : > { %v942_v20 = vpop.permute.xlu1 %941  ;;  %v946_v33 = vpop.permute.xlu0 %945  ;;  %3682 = vpow2.f32 %v406_v13  ;;  %v3624_v13 = vld [vmem:[%s5461_s0 + $0x10] sm:$0xff]  }
 0x16a   : > { %v970_v34 = vadd.f32 %v3181_v12, %v942_v20  ;;  %v971_v35 = vadd.f32 %v3181_v12, %v946_v33  ;;  %v993_v36 = vsel %vm977_vm0, %v969_v16, %v985_v25  ;;  %v992_v37 = vsel %vm976_vm1, %v968_v23, %v984_v26 }
 0x16b   : > { %3418 = vmatpush3.bf16.msra.mxu1 %v814_v10  ;;  %v4246_v45 = vadd.f32 %v993_v36, %v4084_v46  ;;  %v4249_v41 = vadd.f32 %v992_v37, %v4077_v30  ;;  %v398_v23 = vsub.f32 %v4103_v18, %v4214_v4  ;;  %v399_v25 = vsub.f32 %v4120_v31, %v4216_v2 }
 0x16c   : > { %v986_v56 = vmul.f32 0.2, %v970_v34  ;;  %v987_v58 = vmul.f32 0.2, %v971_v35  ;;  %3419 = vmatprep.subr.bf16.mxu1 %v816_v11  ;;  %vm978_vm2 = vcmp.gt.f32.partialorder %v970_v34, 0.0  ;;  %vm979_vm3 = vcmp.gt.f32.partialorder %v971_v35, 0.0 }
 0x16d   : > { %v950_v59 = vpop.permute.xlu1 %949  ;;  %1010 = vmax.xlane.f32.xlu0 %v4246_v45  ;;  %1008 = vmax.xlane.f32.xlu1 %v4249_v41  ;;  %v954_v60 = vpop.permute.xlu0 %953  ;;  %v410_v31 = vmul.f32 1.442695, %v398_v23  ;;  %3684 = vpow2.f32 %v408_v24  ;;  %v400_v2 = vsub.f32 %v4123_v32, %v4218_v1  ;;  %v401_v37 = vsub.f32 %v4130_v40, %v4220_v3 }
 0x16e   : > { %v972_v42 = vadd.f32 %v3181_v12, %v950_v59  ;;  %v973_v63 = vadd.f32 %v3181_v12, %v954_v60  ;;  %v994_v0 = vsel %vm978_vm2, %v970_v34, %v986_v56  ;;  %v995_v10 = vsel %vm979_vm3, %v971_v35, %v987_v58 }
 0x16f   : > { %3420 = vmatpush3.bf16.msra.mxu1 %v816_v11  ;;  %v4256_v15 = vadd.f32 %v994_v0, %v4079_v38  ;;  %v4259_v16 = vadd.f32 %v995_v10, %v4087_v54  ;;  %3686 = vpow2.f32 %v410_v31  ;;  %v414_v32 = vmul.f32 1.442695, %v400_v2 }
 0x170   : > { %v988_v17 = vmul.f32 0.2, %v972_v42  ;;  %v989_v48 = vmul.f32 0.2, %v973_v63  ;;  %vm980_vm4 = vcmp.gt.f32.partialorder %v972_v42, 0.0  ;;  %vm981_vm5 = vcmp.gt.f32.partialorder %v973_v63, 0.0 }
 0x171   : > { %v958_v26 = vpop.permute.xlu1 %957  ;;  %1012 = vmax.xlane.f32.xlu0 %v4256_v15  ;;  %1014 = vmax.xlane.f32.xlu1 %v4259_v16  ;;  %v962_v11 = vpop.permute.xlu0 %961  ;;  %v685_v1 = vsub.f32 %v4133_v43, %v4222_v6  ;;  %v416_v40 = vmul.f32 1.442695, %v401_v37  ;;  %v686_v3 = vsub.f32 %v4137_v47, %v4224_v5  ;;  %v3622_v43 = vld [vmem:[%s5461_s0] sm:$0xff]   ;;  %v688_v47 = vsub.f32 %v4148_v57, %v4228_v7 }
 0x172   : > { %v974_v29 = vadd.f32 %v3181_v12, %v958_v26  ;;  %v975_v20 = vadd.f32 %v3181_v12, %v962_v11  ;;  %v996_v33 = vsel %vm980_vm4, %v972_v42, %v988_v17  ;;  %v997_v34 = vsel %vm981_vm5, %v973_v63, %v989_v48  ;;  %3381 = vmatprep.subr.bf16.mxu0 %v3622_v43  ;;  %v3627_v11 = vld [vmem:[%s5461_s0 + $0x28] sm:$0xff]  }
 0x173   : > { %v4268_v35 = vadd.f32 %v996_v33, %v4095_v62  ;;  %v4271_v18 = vadd.f32 %v997_v34, %v4110_v21  ;;  %v412_v12 = vmul.f32 1.442695, %v399_v25  ;;  %v4295_v59 = vpop.eup %3682  ;;  %v693_v60 = vmul.f32 1.442695, %v685_v1  ;;  %3382 = vmatpush3.bf16.msra.mxu0 %v3622_v43  ;;  %v3628_v33 = vld [vmem:[%s5461_s0 + $0x30] sm:$0xff]  }
 0x174   : > { %v990_v4 = vmul.f32 0.2, %v974_v29  ;;  %v991_v36 = vmul.f32 0.2, %v975_v20  ;;  %vm982_vm6 = vcmp.gt.f32.partialorder %v974_v29, 0.0  ;;  %vm983_vm7 = vcmp.gt.f32.partialorder %v975_v20, 0.0 }
 0x175   : > { %1016 = vmax.xlane.f32.xlu0 %v4268_v35  ;;  %1018 = vmax.xlane.f32.xlu1 %v4271_v18  ;;  %3688 = vpow2.f32 %v412_v12  ;;  %v687_v42 = vsub.f32 %v4142_v51, %v4226_v8  ;;  %v695_v6 = vmul.f32 1.442695, %v686_v3  ;;  %v689_v51 = vsub.f32 %v4153_v9, %v4230_v49  ;;  %v3623_v8 = vld [vmem:[%s5461_s0 + $0x8] sm:$0xff]  }
 0x176   : > { %v998_v39 = vsel %vm982_vm6, %v974_v29, %v990_v4  ;;  %v999_v53 = vsel %vm983_vm7, %v975_v20, %v991_v36  ;;  %3690 = vpow2.f32 %v414_v32  ;;  %v699_v0 = vmul.f32 1.442695, %v688_v47  ;;  %3383 = vmatprep.subr.bf16.mxu0 %v3623_v8  ;;  %v3629_v36 = vld [vmem:[%s5461_s0 + $0x38] sm:$0xff]  }
 0x177   : > { %v4280_v56 = vadd.f32 %v998_v39, %v4112_v22  ;;  %v4283_v58 = vadd.f32 %v999_v53, %v4116_v28  ;;  %3692 = vpow2.f32 %v416_v40  ;;  %v4306_v5 = vpop.eup %3684  ;;  %v697_v63 = vmul.f32 1.442695, %v687_v42  ;;  %3384 = vmatpush3.bf16.msra.mxu0 %v3623_v8 }
 0x178   : > { %3694 = vpow2.f32 %v693_v60  ;;  %v690_v57 = vsub.f32 %v4158_v14, %v4232_v50  ;;  %v701_v9 = vmul.f32 1.442695, %v689_v51  ;;  %v691_v49 = vsub.f32 %v4163_v19, %v4234_v52  ;;  %3385 = vmatprep.subr.bf16.mxu0 %v3624_v13  ;;  %v3625_v52 = vld [vmem:[%s5461_s0 + $0x18] sm:$0xff]  }
 0x179   : > { %1020 = vmax.xlane.f32.xlu0 %v4280_v56  ;;  %1022 = vmax.xlane.f32.xlu1 %v4283_v58  ;;  %3696 = vpow2.f32 %v695_v6  ;;  %v4317_v7 = vpop.eup %3686  ;;  %v692_v50 = vsub.f32 %v4167_v27, %v4236_v55  ;;  %v3626_v55 = vld [vmem:[%s5461_s0 + $0x20] sm:$0xff]   ;;  %v3970_v31 = vmov 3  }
 0x17a   : > { %3698 = vpow2.f32 %v697_v63  ;;  %v703_v14 = vmul.f32 1.442695, %v690_v57  ;;  %v705_v19 = vmul.f32 1.442695, %v691_v49  ;;  %3603 = vset.pattern.permute.xlu1 %v3970_v31  ;;  %3602 = vset.pattern.permute.xlu0 %v3970_v31 }
 0x17b   : > { %3700 = vpow2.f32 %v699_v0  ;;  %3386 = vmatpush3.bf16.msra.mxu0 %v3624_v13  ;;  %v707_v23 = vmul.f32 1.442695, %v692_v50 }
 0x17c   : > { %3702 = vpow2.f32 %v701_v9  ;;  %3387 = vmatprep.subr.bf16.mxu0 %v3625_v52 }
 0x17d   : > { %420 = vadd.xlane.f32.xlu0 %v4293_v44  ;;  %418 = vadd.xlane.f32.xlu1 %v4285_v61  ;;  %3704 = vpow2.f32 %v703_v14 }
 0x17e   : > { %3706 = vpow2.f32 %v705_v19 }
 0x17f   : > { %v4319_v10 = vpop.eup %3688  ;;  %3388 = vmatpush3.bf16.msra.mxu0 %v3625_v52  ;;  %3708 = vpow2.f32 %v707_v23 }
 0x180   : > { %v4330_v17 = vpop.eup %3690  ;;  %3389 = vmatprep.subr.bf16.mxu0 %v3626_v55 }
 0x181   : > { %424 = vadd.xlane.f32.xlu0 %v4306_v5  ;;  %422 = vadd.xlane.f32.xlu1 %v4295_v59  ;;  %v4332_v48 = vpop.eup %3692 }
 0x182   : > { %v4339_v24 = vpop.eup %3694 }
 0x183   : > { %v4341_v27 = vpop.eup %3696  ;;  %3390 = vmatpush3.bf16.msra.mxu0 %v3626_v55 }
 0x184   : > { %v4348_v25 = vpop.eup %3698  ;;  %3391 = vmatprep.subr.bf16.mxu0 %v3627_v11 }
 0x185   : > { %428 = vadd.xlane.f32.xlu0 %v4319_v10  ;;  %426 = vadd.xlane.f32.xlu1 %v4317_v7  ;;  %v4350_v26 = vpop.eup %3700 }
 0x186   : > { %v4357_v29 = vpop.eup %3702 }
 0x187   : > { %v4359_v20 = vpop.eup %3704  ;;  %3392 = vmatpush3.bf16.msra.mxu0 %v3627_v11 }
 0x188   : > { %v4366_v34 = vpop.eup %3706  ;;  %3393 = vmatprep.subr.bf16.mxu0 %v3628_v33 }
 0x189   : > { %432 = vadd.xlane.f32.xlu0 %v4332_v48  ;;  %430 = vadd.xlane.f32.xlu1 %v4330_v17  ;;  %v4368_v4 = vpop.eup %3708 }
 0x18b   : > { %3394 = vmatpush3.bf16.msra.mxu0 %v3628_v33 }
 0x18c   : > { %3395 = vmatprep.subr.bf16.mxu0 %v3629_v36 }
 0x18d   : > { %711 = vadd.xlane.f32.xlu0 %v4341_v27  ;;  %709 = vadd.xlane.f32.xlu1 %v4339_v24 }
 0x18f   : > { %3396 = vmatpush3.bf16.msra.mxu0 %v3629_v36 }
 0x191   : > { %715 = vadd.xlane.f32.xlu0 %v4350_v26  ;;  %713 = vadd.xlane.f32.xlu1 %v4348_v25 }
 0x195   : > { %719 = vadd.xlane.f32.xlu0 %v4359_v20  ;;  %717 = vadd.xlane.f32.xlu1 %v4357_v29 }
 0x199   : > { %723 = vadd.xlane.f32.xlu0 %v4368_v4  ;;  %721 = vadd.xlane.f32.xlu1 %v4366_v34 }
 0x1fa   : > { %v1009_v2 = vpop.xlane.xlu1 %1008  ;;  %v1011_v12 = vpop.xlane.xlu0 %1010 }
 0x1fb   : > { %v1024_v37 = vsub.f32 %v4249_v41, %v1009_v2  ;;  %v1025_v39 = vsub.f32 %v4246_v45, %v1011_v12 }
 0x1fd   : > { %v1032_v53 = vmul.f32 1.442695, %v1024_v37  ;;  %v1034_v32 = vmul.f32 1.442695, %v1025_v39 }
 0x1fe   : > { %v1015_v1 = vpop.xlane.xlu1 %1014  ;;  %v1013_v40 = vpop.xlane.xlu0 %1012 }
 0x1ff   : > { %3710 = vpow2.f32 %v1032_v53  ;;  %v1027_v3 = vsub.f32 %v4259_v16, %v1015_v1  ;;  %v1026_v60 = vsub.f32 %v4256_v15, %v1013_v40 }
 0x200   : > { %3712 = vpow2.f32 %v1034_v32 }
 0x201   : > { %v1038_v42 = vmul.f32 1.442695, %v1027_v3  ;;  %v1036_v43 = vmul.f32 1.442695, %v1026_v60 }
 0x202   : > { %v1019_v6 = vpop.xlane.xlu1 %1018  ;;  %v1017_v47 = vpop.xlane.xlu0 %1016 }
 0x203   : > { %3714 = vpow2.f32 %v1038_v42  ;;  %v1029_v63 = vsub.f32 %v4271_v18, %v1019_v6  ;;  %v1028_v41 = vsub.f32 %v4268_v35, %v1017_v47 }
 0x204   : > { %3716 = vpow2.f32 %v1036_v43 }
 0x205   : > { %v1042_v45 = vmul.f32 1.442695, %v1029_v63  ;;  %v1040_v51 = vmul.f32 1.442695, %v1028_v41 }
 0x206   : > { %v1023_v8 = vpop.xlane.xlu1 %1022  ;;  %v1021_v0 = vpop.xlane.xlu0 %1020 }
 0x207   : > { %3718 = vpow2.f32 %v1042_v45  ;;  %v1031_v16 = vsub.f32 %v4283_v58, %v1023_v8  ;;  %v1030_v15 = vsub.f32 %v4280_v56, %v1021_v0 }
 0x208   : > { %3720 = vpow2.f32 %v1040_v51 }
 0x209   : > { %v4383_v57 = vpop.eup %3710  ;;  %v1046_v9 = vmul.f32 1.442695, %v1031_v16  ;;  %v1044_v49 = vmul.f32 1.442695, %v1030_v15 }
 0x20a   : > { %v4385_v13 = vpop.eup %3712  ;;  %1048 = vadd.xlane.f32.xlu0 %v4383_v57  ;;  %v419_v35 = vpop.xlane.xlu1 %418 }
 0x20b   : > { %v421_v18 = vpop.xlane.xlu0 %420  ;;  %3722 = vpow2.f32 %v1046_v9  ;;  %1050 = vadd.xlane.f32.xlu1 %v4385_v13 }
 0x20c   : > { %3724 = vpow2.f32 %v1044_v49 }
 0x20d   : > { %v4389_v14 = vpop.eup %3714  ;;  %3726 = vrcp.f32 %v419_v35 }
 0x20e   : > { %v4391_v58 = vpop.eup %3716  ;;  %3728 = vrcp.f32 %v421_v18  ;;  %v423_v56 = vpop.xlane.xlu1 %422 }
 0x20f   : > { %v425_v50 = vpop.xlane.xlu0 %424  ;;  %3730 = vrcp.f32 %v423_v56  ;;  %1054 = vadd.xlane.f32.xlu1 %v4389_v14  ;;  %1052 = vadd.xlane.f32.xlu0 %v4391_v58 }
 0x210   : > { %3732 = vrcp.f32 %v425_v50 }
 0x211   : > { %v4395_v19 = vpop.eup %3718 }
 0x212   : > { %5492 = vst [vmem:[#allocation3_spill] sm:$0xff] %v4395_v19  ;;  %v4397_v52 = vpop.eup %3720  ;;  %v427_v23 = vpop.xlane.xlu1 %426 }
 0x213   : > { %5493 = vst [vmem:[#allocation4_spill] sm:$0xff] %v4397_v52  ;;  %v429_v55 = vpop.xlane.xlu0 %428  ;;  %3734 = vrcp.f32 %v427_v23  ;;  %1058 = vadd.xlane.f32.xlu1 %v4395_v19  ;;  %1056 = vadd.xlane.f32.xlu0 %v4397_v52  ;;  %v3632_v23 = vld [vmem:[%s5461_s0] sm:$0xff]  }
 0x214   : > { %3736 = vrcp.f32 %v429_v55 }
 0x215   : > { %v4401_v11 = vpop.eup %3722 }
 0x216   : > { %5494 = vst [vmem:[#allocation5_spill] sm:$0xff] %v4401_v11  ;;  %v4403_v33 = vpop.eup %3724  ;;  %v431_v36 = vpop.xlane.xlu1 %430 }
 0x217   : > { %5495 = vst [vmem:[#allocation6_spill] sm:$0xff] %v4403_v33  ;;  %v433_v31 = vpop.xlane.xlu0 %432  ;;  %v3727_v2 = vpop.eup %3726  ;;  %3738 = vrcp.f32 %v431_v36  ;;  %1062 = vadd.xlane.f32.xlu1 %v4401_v11  ;;  %1060 = vadd.xlane.f32.xlu0 %v4403_v33  ;;  %v4689_v33 = vld [vmem:[%s5462_s1 + $0x6] ss:$0 sm:$0xff] }
 0x218   : > { %v3729_v12 = vpop.eup %3728  ;;  %3740 = vrcp.f32 %v433_v31  ;;  %v442_v37 = vmul.f32 %v3727_v2, %v4285_v61 }
 0x219   : > { %v3731_v39 = vpop.eup %3730  ;;  %v443_v53 = vmul.f32 %v3729_v12, %v4293_v44 }
 0x21a   : > { %v3733_v32 = vpop.eup %3732  ;;  %v710_v1 = vpop.xlane.xlu1 %709  ;;  %v444_v3 = vmul.f32 %v3731_v39, %v4295_v59  ;;  %v4434_v39 = vld [vmem:[%s4027_s24 + $0x8] sm:$0xff] }
 0x21b   : > { %v712_v40 = vpop.xlane.xlu0 %711  ;;  %3742 = vrcp.f32 %v710_v1  ;;  %v450_v60 = vpack.c.bf16 %v443_v53, %v442_v37  ;;  %v445_v42 = vmul.f32 %v3733_v32, %v4306_v5 }
 0x21c   : > { %3744 = vrcp.f32 %v712_v40  ;;  %v4444_v40 = vld [vmem:[%s4027_s24 + $0x10] sm:$0xff] }
 0x21d   : > { %v3735_v43 = vpop.eup %3734  ;;  %3397 = vmatprep.mubr.bf16.mxu0 %v450_v60  ;;  %v451_v6 = vpack.c.bf16 %v445_v42, %v444_v3  ;;  %v4451_v3 = vld [vmem:[%s4027_s24 + $0x18] sm:$0xff]  ;;  %v3635_v60 = vld [vmem:[%s5461_s0 + $0x28] sm:$0xff]   ;;  %v3636_v42 = vld [vmem:[%s5461_s0 + $0x30] sm:$0xff]  }
 0x21e   : > { %v3737_v47 = vpop.eup %3736  ;;  %v714_v63 = vpop.xlane.xlu1 %713  ;;  %v446_v61 = vmul.f32 %v3735_v43, %v4317_v7  ;;  %v3630_v7 = vld [vmem:[%s5461_s0 + $0x8] sm:$0xff]   ;;  %v4468_v43 = vld [vmem:[%s4027_s24 + $0x20] sm:$0xff] }
 0x21f   : > { %v716_v41 = vpop.xlane.xlu0 %715  ;;  %3746 = vrcp.f32 %v714_v63  ;;  %3398 = vmatmul.mubr.bf16.vlgmr.msra.gmra.mrb[0].mxu0 %v451_v6  ;;  %v447_v44 = vmul.f32 %v3737_v47, %v4319_v10  ;;  %v4472_v6 = vld [vmem:[%s4027_s24 + $0x28] sm:$0xff]  ;;  %v4476_v47 = vld [vmem:[%s4027_s24 + $0x30] sm:$0xff]  ;;  %v4480_v63 = vld [vmem:[%s4027_s24 + $0x38] sm:$0xff] }
 0x220   : > { %3748 = vrcp.f32 %v716_v41  ;;  %v3972_v41 = vmov 4  }
 0x221   : > { %v3739_v45 = vpop.eup %3738  ;;  %v452_v59 = vpack.c.bf16 %v447_v44, %v446_v61  ;;  %v3973_v61 = vmov 5   ;;  %v3974_v44 = vmov 6  }
 0x222   : > { %v3741_v51 = vpop.eup %3740  ;;  %v718_v8 = vpop.xlane.xlu1 %717  ;;  %v448_v5 = vmul.f32 %v3739_v45, %v4330_v17  ;;  %v3975_v45 = vmov 7  }
 0x223   : > { %v720_v0 = vpop.xlane.xlu0 %719  ;;  %3750 = vrcp.f32 %v718_v8  ;;  %3401 = vmatprep.mubr.bf16.mxu0 %v452_v59  ;;  %v449_v16 = vmul.f32 %v3741_v51, %v4332_v48  ;;  %v3631_v48 = vld [vmem:[%s5461_s0 + $0x10] sm:$0xff]  }
 0x224   : > { %3752 = vrcp.f32 %v720_v0 }
 0x225   : > { %v3743_v15 = vpop.eup %3742  ;;  %v453_v9 = vpack.c.bf16 %v449_v16, %v448_v5 }
 0x226   : > { %v3745_v10 = vpop.eup %3744  ;;  %v722_v49 = vpop.xlane.xlu1 %721  ;;  %v733_v18 = vmul.f32 %v3743_v15, %v4339_v24 }
 0x227   : > { %v724_v35 = vpop.xlane.xlu0 %723  ;;  %3754 = vrcp.f32 %v722_v49  ;;  %3402 = vmatmul.mubr.bf16.gmra.mrb[4].mxu0 %v453_v9  ;;  %v734_v17 = vmul.f32 %v3745_v10, %v4341_v27 }
 0x228   : > { %3756 = vrcp.f32 %v724_v35  ;;  %1142 = vrot.lane.b32.xlu1 %v3630_v7, %s3971_s28 }
 0x229   : > { %v3747_v56 = vpop.eup %3746  ;;  %v741_v50 = vpack.c.bf16 %v734_v17, %v733_v18 }
 0x22a   : > { %v3749_v24 = vpop.eup %3748  ;;  %v735_v55 = vmul.f32 %v3747_v56, %v4348_v25 }
 0x22b   : > { %3421 = vmatprep.mubr.bf16.mxu1 %v741_v50  ;;  %v736_v27 = vmul.f32 %v3749_v24, %v4350_v26  ;;  %v4438_v26 = vld [vmem:[%s4027_s24] sm:$0xff] }
 0x22c   : > { %1144 = vrot.lane.b32.xlu1 %v3631_v48, %s3971_s28  ;;  %v4524_v50 = vld [vmem:[%s5462_s1 + $0x3] ss:$0 sm:$0xff] }
 0x22d   : > { %v3751_v36 = vpop.eup %3750  ;;  %1140 = vrot.lane.b32.xlu0 %v3632_v23, %s3971_s28  ;;  %v742_v31 = vpack.c.bf16 %v736_v27, %v735_v55 }
 0x22e   : > { %v3753_v2 = vpop.eup %3752  ;;  %v737_v12 = vmul.f32 %v3751_v36, %v4357_v29 }
 0x22f   : > { %3422 = vmatmul.mubr.bf16.vlgmr.msra.gmra.mrb[0].mxu1 %v742_v31  ;;  %v738_v37 = vmul.f32 %v3753_v2, %v4359_v20  ;;  %v3633_v20 = vld [vmem:[%s5461_s0 + $0x18] sm:$0xff]  }
 0x230   : > { %1276 = vperm.xlu1 %3603, %v4434_v39  }
 0x231   : > { %v3755_v25 = vpop.eup %3754  ;;  %1272 = vperm.xlu0 %3602, %v4438_v26   ;;  %v743_v53 = vpack.c.bf16 %v738_v37, %v737_v12 }
 0x232   : > { %v3757_v32 = vpop.eup %3756  ;;  %v739_v1 = vmul.f32 %v3755_v25, %v4366_v34 }
 0x233   : > { %3425 = vmatprep.mubr.bf16.mxu1 %v743_v53  ;;  %v740_v29 = vmul.f32 %v3757_v32, %v4368_v4  ;;  %v3634_v4 = vld [vmem:[%s5461_s0 + $0x20] sm:$0xff]  }
 0x234   : > { %1280 = vperm.xlu1 %3603, %v4444_v40  }
 0x235   : > { %1284 = vperm.xlu0 %3602, %v4451_v3   ;;  %v744_v34 = vpack.c.bf16 %v740_v29, %v739_v1 }
 0x237   : > { %3426 = vmatmul.mubr.bf16.gmra.mrb[4].mxu1 %v744_v34 }
 0x238   : > { %1146 = vrot.lane.b32.xlu1 %v3633_v20, %s3971_s28 }
 0x239   : > { %1148 = vrot.lane.b32.xlu0 %v3634_v4, %s3971_s28 }
 0x23c   : > { %1150 = vrot.lane.b32.xlu1 %v3635_v60, %s3971_s28 }
 0x23d   : > { %1152 = vrot.lane.b32.xlu0 %v3636_v42, %s3971_s28 }
 0x240   : > { %1288 = vperm.xlu1 %3603, %v4468_v43  }
 0x241   : > { %1292 = vperm.xlu0 %3602, %v4472_v6  }
 0x244   : > { %1296 = vperm.xlu1 %3603, %v4476_v47  }
 0x245   : > { %1300 = vperm.xlu0 %3602, %v4480_v63  }
 0x248   : > { %3604 = vset.pattern.permute.xlu1 %v3972_v41 }
 0x249   : > { %1611 = vperm.xlu1 %3604, %v4438_v26   ;;  %3605 = vset.pattern.permute.xlu0 %v3972_v41 }
 0x24a   : > { %1615 = vperm.xlu0 %3605, %v4434_v39  }
 0x24d   : > { %1619 = vperm.xlu1 %3604, %v4444_v40  }
 0x24e   : > { %1631 = vperm.xlu0 %3605, %v4472_v6  }
 0x251   : > { %1623 = vperm.xlu1 %3604, %v4451_v3  }
 0x252   : > { %3608 = vset.pattern.permute.xlu0 %v3973_v61 }
 0x253   : > { %1950 = vperm.xlu0 %3608, %v4438_v26  }
 0x255   : > { %3606 = vset.pattern.permute.xlu1 %v3973_v61 }
 0x256   : > { %1954 = vperm.xlu1 %3606, %v4434_v39  }
 0x257   : > { %1962 = vperm.xlu0 %3608, %v4451_v3  }
 0x25a   : > { %1958 = vperm.xlu1 %3606, %v4444_v40  }
 0x25b   : > { %1966 = vperm.xlu0 %3608, %v4468_v43  }
 0x25e   : > { %3607 = vset.pattern.permute.xlu1 %v3972_v41 }
 0x25f   : > { %1627 = vperm.xlu1 %3607, %v4468_v43   ;;  %1978 = vperm.xlu0 %3608, %v4480_v63  }
 0x263   : > { %1635 = vperm.xlu1 %3607, %v4476_v47   ;;  %3611 = vset.pattern.permute.xlu0 %v3974_v44 }
 0x264   : > { %2293 = vperm.xlu0 %3611, %v4434_v39  }
 0x267   : > { %1639 = vperm.xlu1 %3607, %v4480_v63  }
 0x268   : > { %2309 = vperm.xlu0 %3611, %v4472_v6  }
 0x26b   : > { %3609 = vset.pattern.permute.xlu1 %v3973_v61 }
 0x26c   : > { %1970 = vperm.xlu1 %3609, %v4472_v6   ;;  %3613 = vset.pattern.permute.xlu0 %v3975_v45 }
 0x270   : > { %1974 = vperm.xlu1 %3609, %v4476_v47  }
 0x274   : > { %3610 = vset.pattern.permute.xlu1 %v3974_v44 }
 0x275   : > { %2289 = vperm.xlu1 %3610, %v4438_v26  }
 0x279   : > { %2297 = vperm.xlu1 %3610, %v4444_v40  }
 0x27d   : > { %2301 = vperm.xlu1 %3610, %v4451_v3  }
 0x281   : > { %2305 = vperm.xlu1 %3610, %v4468_v43  }
 0x285   : > { %2313 = vperm.xlu1 %3610, %v4476_v47  }
 0x289   : > { %2317 = vperm.xlu1 %3610, %v4480_v63  }
 0x28d   : > { %3612 = vset.pattern.permute.xlu1 %v3975_v45 }
 0x297   : > { %v1049_v59 = vpop.xlane.xlu0 %1048 }
 0x298   : > { %v1051_v51 = vpop.xlane.xlu1 %1050  ;;  %3758 = vrcp.f32 %v1049_v59 }
 0x299   : > { %3760 = vrcp.f32 %v1051_v51 }
 0x29c   : > { %v4507_v8 = vpop.xlane.xlu1 %1054  ;;  %v4509_v0 = vpop.xlane.xlu0 %1052 }
 0x2a0   : > { %v4511_v5 = vpop.xlane.xlu1 %1058  ;;  %v4513_v16 = vpop.xlane.xlu0 %1056 }
 0x2a2   : > { %v3759_v7 = vpop.eup %3758 }
 0x2a3   : > { %v3761_v15 = vpop.eup %3760  ;;  %v1072_v9 = vmul.f32 %v3759_v7, %v4383_v57 }
 0x2a4   : > { %v4516_v10 = vpop.xlane.xlu1 %1062  ;;  %v4518_v49 = vpop.xlane.xlu0 %1060  ;;  %v1073_v35 = vmul.f32 %v3761_v15, %v4385_v13 }
 0x2a6   : > { %v1080_v18 = vpack.c.bf16 %v1073_v35, %v1072_v9 }
 0x2a8   : > { %v1143_v17 = vpop.permute.xlu1 %1142  ;;  %3445 = vmatprep.mubr.bf16.mxu0 %v1080_v18  ;;  %v1141_v48 = vpop.permute.xlu0 %1140 }
 0x2a9   : > { %3429 = vmatprep.subr.bf16.mxu0 %v1141_v48 }
 0x2aa   : > { %3430 = vmatpush3.bf16.msra.mxu0 %v1141_v48 }
 0x2ab   : > { %3431 = vmatprep.subr.bf16.mxu0 %v1143_v17 }
 0x2ac   : > { %v1145_v56 = vpop.permute.xlu1 %1144 }
 0x2ae   : > { %3432 = vmatpush3.bf16.msra.mxu0 %v1143_v17 }
 0x2af   : > { %3433 = vmatprep.subr.bf16.mxu0 %v1145_v56 }
 0x2b0   : > { %v1277_v57 = vpop.permute.xlu1 %1276  ;;  %v1273_v23 = vpop.permute.xlu0 %1272 }
 0x2b1   : > { %v1308_v24 = vadd.f32 %v4524_v50, %v1277_v57  ;;  %v1307_v13 = vadd.f32 %v4524_v50, %v1273_v23 }
 0x2b2   : > { %3434 = vmatpush3.bf16.msra.mxu0 %v1145_v56  ;;  %v4561_v56 = vld [vmem:[%s5462_s1 + $0x4] ss:$0 sm:$0xff] }
 0x2b3   : > { %vm1316_vm8 = vcmp.gt.f32.partialorder %v1308_v24, 0.0  ;;  %v1324_v55 = vmul.f32 0.2, %v1308_v24  ;;  %vm1315_vm9 = vcmp.gt.f32.partialorder %v1307_v13, 0.0  ;;  %v1323_v27 = vmul.f32 0.2, %v1307_v13 }
 0x2b4   : > { %v1281_v36 = vpop.permute.xlu1 %1280  ;;  %v1285_v31 = vpop.permute.xlu0 %1284 }
 0x2b5   : > { %v1332_v2 = vsel %vm1316_vm8, %v1308_v24, %v1324_v55  ;;  %v1331_v12 = vsel %vm1315_vm9, %v1307_v13, %v1323_v27 }
 0x2b6   : > { %v4529_v37 = vadd.f32 %v1332_v2, %v4084_v46  ;;  %v4532_v25 = vadd.f32 %v1331_v12, %v4077_v30 }
 0x2b8   : > { %v1147_v53 = vpop.permute.xlu1 %1146  ;;  %1349 = vmax.xlane.f32.xlu0 %v4529_v37  ;;  %1347 = vmax.xlane.f32.xlu1 %v4532_v25  ;;  %v1149_v32 = vpop.permute.xlu0 %1148 }
 0x2b9   : > { %3435 = vmatprep.subr.bf16.mxu0 %v1147_v53 }
 0x2ba   : > { %3436 = vmatpush3.bf16.msra.mxu0 %v1147_v53 }
 0x2bb   : > { %3437 = vmatprep.subr.bf16.mxu0 %v1149_v32 }
 0x2bc   : > { %v1151_v1 = vpop.permute.xlu1 %1150  ;;  %v1153_v29 = vpop.permute.xlu0 %1152 }
 0x2be   : > { %3438 = vmatpush3.bf16.msra.mxu0 %v1149_v32 }
 0x2bf   : > { %3439 = vmatprep.subr.bf16.mxu0 %v1151_v1 }
 0x2c0   : > { %v1289_v20 = vpop.permute.xlu1 %1288 }
 0x2c1   : > { %v1311_v44 = vadd.f32 %v4524_v50, %v1289_v20 }
 0x2c2   : > { %3440 = vmatpush3.bf16.msra.mxu0 %v1151_v1 }
 0x2c3   : > { %3441 = vmatprep.subr.bf16.mxu0 %v1153_v29  ;;  %v1327_v51 = vmul.f32 0.2, %v1311_v44  ;;  %vm1319_vm13 = vcmp.gt.f32.partialorder %v1311_v44, 0.0 }
 0x2c4   : > { %v1297_v34 = vpop.permute.xlu1 %1296 }
 0x2c5   : > { %v1313_v7 = vadd.f32 %v4524_v50, %v1297_v34 }
 0x2c6   : > { %3442 = vmatpush3.bf16.msra.mxu0 %v1153_v29 }
 0x2c7   : > { %v1329_v13 = vmul.f32 0.2, %v1313_v7  ;;  %vm1321_vm15 = vcmp.gt.f32.partialorder %v1313_v7, 0.0 }
 0x2c8   : > { %v1612_v4 = vpop.permute.xlu1 %1611 }
 0x2c9   : > { %2632 = vperm.xlu1 %3612, %v4434_v39   ;;  %v1293_v39 = vpop.permute.xlu0 %1292  ;;  %v1646_v2 = vadd.f32 %v4561_v56, %v1612_v4  ;;  %v1337_v4 = vsel %vm1321_vm15, %v1313_v7, %v1329_v13 }
 0x2cb   : > { %vm1654_vm2 = vcmp.gt.f32.partialorder %v1646_v2, 0.0 }
 0x2cc   : > { %v1620_v60 = vpop.permute.xlu1 %1619 }
 0x2cd   : > { %2636 = vperm.xlu1 %3612, %v4444_v40   ;;  %v1310_v40 = vadd.f32 %v4524_v50, %v1285_v31 }
 0x2ce   : > { %2628 = vperm.xlu0 %3613, %v4438_v26   ;;  %v1309_v26 = vadd.f32 %v4524_v50, %v1281_v36  ;;  %v1335_v36 = vsel %vm1319_vm13, %v1311_v44, %v1327_v51 }
 0x2cf   : > { %vm1318_vm12 = vcmp.gt.f32.partialorder %v1310_v40, 0.0  ;;  %v4584_v20 = vadd.f32 %v1335_v36, %v4095_v62 }
 0x2d0   : > { %v1624_v42 = vpop.permute.xlu1 %1623  ;;  %vm1317_vm10 = vcmp.gt.f32.partialorder %v1309_v26, 0.0 }
 0x2d1   : > { %2648 = vperm.xlu1 %3612, %v4472_v6   ;;  %v1301_v6 = vpop.permute.xlu0 %1300 }
 0x2d2   : > { %2640 = vperm.xlu0 %3613, %v4451_v3   ;;  %v1325_v3 = vmul.f32 0.2, %v1309_v26  ;;  %v1314_v18 = vadd.f32 %v4524_v50, %v1301_v6 }
 0x2d4   : > { %v1333_v9 = vsel %vm1317_vm10, %v1309_v26, %v1325_v3  ;;  %v1330_v31 = vmul.f32 0.2, %v1314_v18  ;;  %vm1322_vm0 = vcmp.gt.f32.partialorder %v1314_v18, 0.0  ;;  %v1648_v26 = vadd.f32 %v4561_v56, %v1620_v60 }
 0x2d5   : > { %2656 = vperm.xlu1 %3612, %v4480_v63   ;;  %v4544_v41 = vpop.permute.xlu1 %1954  ;;  %v1616_v45 = vpop.permute.xlu0 %1615  ;;  %v4571_v55 = vadd.f32 %v1333_v9, %v4079_v38 }
 0x2d6   : > { %2644 = vperm.xlu0 %3613, %v4468_v43   ;;  %v1326_v43 = vmul.f32 0.2, %v1310_v40  ;;  %v1647_v24 = vadd.f32 %v4561_v56, %v1616_v45  ;;  %v1338_v44 = vsel %vm1322_vm0, %v1314_v18, %v1330_v31  ;;  %v4605_v45 = vadd.f32 %v1337_v4, %v4112_v22 }
 0x2d7   : > { %v1664_v51 = vmul.f32 0.2, %v1648_v26  ;;  %vm1656_vm3 = vcmp.gt.f32.partialorder %v1648_v26, 0.0 }
 0x2d8   : > { %v1334_v48 = vsel %vm1318_vm12, %v1310_v40, %v1326_v43  ;;  %v1663_v53 = vmul.f32 0.2, %v1647_v24  ;;  %vm1655_vm1 = vcmp.gt.f32.partialorder %v1647_v24, 0.0  ;;  %v1649_v40 = vadd.f32 %v4561_v56, %v1624_v42  ;;  %v4596_v43 = vld [vmem:[%s5462_s1 + $0x5] ss:$0 sm:$0xff] }
 0x2d9   : > { %v4546_v61 = vpop.permute.xlu1 %1958  ;;  %v4574_v27 = vadd.f32 %v1334_v48, %v4087_v54 }
 0x2da   : > { %2652 = vperm.xlu0 %3613, %v4476_v47   ;;  %v1312_v47 = vadd.f32 %v4524_v50, %v1293_v39  ;;  %v4568_v50 = vpop.permute.xlu0 %1631  ;;  %v1662_v39 = vmul.f32 0.2, %v1646_v2  ;;  %v1671_v42 = vsel %vm1655_vm1, %v1647_v24, %v1663_v53  ;;  %v1665_v7 = vmul.f32 0.2, %v1649_v40 }
 0x2db   : > { %vm1657_vm4 = vcmp.gt.f32.partialorder %v1649_v40, 0.0  ;;  %v4615_v18 = vadd.f32 %v1671_v42, %v4084_v46  ;;  %v1987_v31 = vadd.f32 %v4596_v43, %v4546_v61 }
 0x2dc   : > { %v1328_v35 = vmul.f32 0.2, %v1312_v47  ;;  %vm1320_vm14 = vcmp.gt.f32.partialorder %v1312_v47, 0.0  ;;  %v1670_v9 = vsel %vm1654_vm2, %v1646_v2, %v1662_v39  ;;  %v1673_v53 = vsel %vm1657_vm4, %v1649_v40, %v1665_v7 }
 0x2dd   : > { %5496 = vst [vmem:[#allocation7_spill] sm:$0xff] %v4615_v18  ;;  %v1651_v39 = vadd.f32 %v4561_v56, %v4568_v50  ;;  %v2003_v40 = vmul.f32 0.2, %v1987_v31  ;;  %vm1995_vm8 = vcmp.gt.f32.partialorder %v1987_v31, 0.0 }
 0x2de   : > { %v4551_v63 = vpop.permute.xlu1 %1627  ;;  %v1336_v12 = vsel %vm1320_vm14, %v1312_v47, %v1328_v35  ;;  %v1951_v6 = vpop.permute.xlu0 %1950 }
 0x2df   : > { %v4587_v34 = vadd.f32 %v1336_v12, %v4110_v21  ;;  %v1985_v60 = vadd.f32 %v4596_v43, %v1951_v6  ;;  %v1672_v12 = vsel %vm1656_vm3, %v1648_v26, %v1664_v51  ;;  %v4641_v26 = vadd.f32 %v1673_v53, %v4087_v54 }
 0x2e0   : > { %v4638_v61 = vadd.f32 %v1672_v12, %v4079_v38  ;;  %vm1659_vm9 = vcmp.gt.f32.partialorder %v1651_v39, 0.0  ;;  %v1667_v42 = vmul.f32 0.2, %v1651_v39 }
 0x2e1   : > { %vm1993_vm5 = vcmp.gt.f32.partialorder %v1985_v60, 0.0 }
 0x2e2   : > { %v4563_v57 = vpop.permute.xlu1 %1635  ;;  %v1963_v48 = vpop.permute.xlu0 %1962 }
 0x2e3   : > { %v1988_v24 = vadd.f32 %v4596_v43, %v1963_v48 }
 0x2e5   : > { %v2004_v6 = vmul.f32 0.2, %v1988_v24  ;;  %vm1996_vm7 = vcmp.gt.f32.partialorder %v1988_v24, 0.0 }
 0x2e6   : > { %v4580_v1 = vpop.permute.xlu1 %1639 }
 0x2eb   : > { %v1971_v35 = vpop.permute.xlu1 %1970 }
 0x2ef   : > { %v1975_v4 = vpop.permute.xlu1 %1974 }
 0x2f2   : > { %v3399_v59 = vpop.f32.mrb[0].mxu0 }
 0x2f3   : > { %586 = vst.msk [vmem:[#allocation2 + $0x10] sm:$0xff] %vm583_vm11, %v3399_v59  ;;  %v552_v15 = vpop.f32.mrb[1].mxu0  ;;  %v4608_v59 = vadd.f32 %v1338_v44, %v4116_v28 }
 0x2f4   : > { %584 = vst.msk [vmem:[#allocation2] sm:$0xff] %vm583_vm11, %v552_v15  ;;  %v3400_v17 = vpop.f32.mrb[2].mxu0  ;;  %v1986_v15 = vadd.f32 %v4596_v43, %v4544_v41  ;;  %v4623_v41 = vadd.f32 %v1670_v9, %v4077_v30  ;;  %v1652_v9 = vadd.f32 %v4561_v56, %v4563_v57  ;;  %v2290_v12 = vpop.permute.xlu1 %2289 }
 0x2f5   : > { %587 = vst.msk [vmem:[#allocation2 + $0x18] sm:$0xff] %vm583_vm11, %v3400_v17  ;;  %v555_v23 = vpop.f32.mrb[3].mxu0  ;;  %v2001_v17 = vmul.f32 0.2, %v1985_v60 }
 0x2f6   : > { %585 = vst.msk [vmem:[#allocation2 + $0x8] sm:$0xff] %vm583_vm11, %v555_v23  ;;  %v2002_v36 = vmul.f32 0.2, %v1986_v15  ;;  %vm1994_vm6 = vcmp.gt.f32.partialorder %v1986_v15, 0.0 }
 0x2f8   : > { %v2010_v44 = vsel %vm1994_vm6, %v1986_v15, %v2002_v36  ;;  %v2011_v36 = vsel %vm1995_vm8, %v1987_v31, %v2003_v40 }
 0x2f9   : > { %1351 = vmax.xlane.f32.xlu1 %v4571_v55  ;;  %1353 = vmax.xlane.f32.xlu0 %v4574_v27  ;;  %v4655_v7 = vadd.f32 %v2010_v44, %v4084_v46 }
 0x2fa   : > { %v3403_v32 = vpop.f32.mrb[4].mxu0 }
 0x2fb   : > { %590 = vst.msk [vmem:[#allocation2 + $0x30] sm:$0xff] %vm583_vm11, %v3403_v32  ;;  %v568_v29 = vpop.f32.mrb[5].mxu0 }
 0x2fc   : > { %588 = vst.msk [vmem:[#allocation2 + $0x20] sm:$0xff] %vm583_vm11, %v568_v29  ;;  %v3404_v3 = vpop.f32.mrb[6].mxu0  ;;  %v2009_v29 = vsel %vm1993_vm5, %v1985_v60, %v2001_v17  ;;  %v1653_v17 = vadd.f32 %v4561_v56, %v4580_v1  ;;  %v1668_v1 = vmul.f32 0.2, %v1652_v9 }
 0x2fd   : > { %591 = vst.msk [vmem:[#allocation2 + $0x38] sm:$0xff] %vm583_vm11, %v3404_v3  ;;  %v571_v47 = vpop.f32.mrb[7].mxu0  ;;  %1355 = vmax.xlane.f32.xlu0 %v4584_v20  ;;  %1357 = vmax.xlane.f32.xlu1 %v4587_v34  ;;  %v1650_v3 = vadd.f32 %v4561_v56, %v4551_v63  ;;  %v4648_v50 = vadd.f32 %v2009_v29, %v4077_v30 }
 0x2fe   : > { %589 = vst.msk [vmem:[#allocation2 + $0x28] sm:$0xff] %vm583_vm11, %v571_v47  ;;  %v1967_v47 = vpop.permute.xlu0 %1966  ;;  %v2012_v63 = vsel %vm1996_vm7, %v1988_v24, %v2004_v6  ;;  %v4669_v29 = vadd.f32 %v2011_v36, %v4079_v38  ;;  %v1675_v56 = vsel %vm1659_vm9, %v1651_v39, %v1667_v42  ;;  %v1669_v31 = vmul.f32 0.2, %v1653_v17  ;;  %v2298_v36 = vpop.permute.xlu1 %2297 }
 0x2ff   : > { %v1666_v15 = vmul.f32 0.2, %v1650_v3  ;;  %vm1658_vm10 = vcmp.gt.f32.partialorder %v1650_v3, 0.0  ;;  %v1989_v24 = vadd.f32 %v4596_v43, %v1967_v47  ;;  %v4672_v57 = vadd.f32 %v2012_v63, %v4087_v54 }
 0x300   : > { %v1990_v6 = vadd.f32 %v4596_v43, %v1971_v35  ;;  %vm1660_vm11 = vcmp.gt.f32.partialorder %v1652_v9, 0.0  ;;  %vm1661_vm12 = vcmp.gt.f32.partialorder %v1653_v17, 0.0  ;;  %v4683_v39 = vadd.f32 %v1675_v56, %v4110_v21 }
 0x301   : > { %1359 = vmax.xlane.f32.xlu0 %v4605_v45  ;;  %1361 = vmax.xlane.f32.xlu1 %v4608_v59  ;;  %v1674_v44 = vsel %vm1658_vm10, %v1650_v3, %v1666_v15  ;;  %v2005_v47 = vmul.f32 0.2, %v1989_v24  ;;  %vm1997_vm13 = vcmp.gt.f32.partialorder %v1989_v24, 0.0  ;;  %v1991_v3 = vadd.f32 %v4596_v43, %v1975_v4 }
 0x302   : > { %v4617_v23 = vpop.f32.mrb[0].mxu1  ;;  %v1979_v40 = vpop.permute.xlu0 %1978  ;;  %v4680_v11 = vadd.f32 %v1674_v44, %v4095_v62  ;;  %5498 = vst [vmem:[#allocation9_spill] sm:$0xff] %v4683_v39  ;;  %v2006_v35 = vmul.f32 0.2, %v1990_v6  ;;  %v1676_v42 = vsel %vm1660_vm11, %v1652_v9, %v1668_v1  ;;  %v1677_v15 = vsel %vm1661_vm12, %v1653_v17, %v1669_v31 }
 0x303   : > { %v4620_v13 = vpop.f32.mrb[1].mxu1  ;;  %v1992_v63 = vadd.f32 %v4596_v43, %v1979_v40  ;;  %vm1998_vm14 = vcmp.gt.f32.partialorder %v1990_v6, 0.0  ;;  %v2013_v44 = vsel %vm1997_vm13, %v1989_v24, %v2005_v47  ;;  %v4695_v52 = vadd.f32 %v1676_v42, %v4112_v22  ;;  %v2302_v1 = vpop.permute.xlu1 %2301 }
 0x304   : > { %v4627_v2 = vpop.f32.mrb[2].mxu1  ;;  %5497 = vst [vmem:[#allocation8_spill] sm:$0xff] %v4680_v11  ;;  %v4698_v43 = vadd.f32 %v1677_v15, %v4116_v28  ;;  %v2007_v4 = vmul.f32 0.2, %v1991_v3  ;;  %v2324_v9 = vadd.f32 %v4689_v33, %v2290_v12  ;;  %v2014_v17 = vsel %vm1998_vm14, %v1990_v6, %v2006_v35 }
 0x305   : > { %v4631_v32 = vpop.f32.mrb[3].mxu1  ;;  %1686 = vmax.xlane.f32.xlu0 %v4623_v41  ;;  %1688 = vmax.xlane.f32.xlu1 %v4615_v18  ;;  %v2008_v19 = vmul.f32 0.2, %v1992_v63  ;;  %5499 = vst [vmem:[#allocation10_spill] sm:$0xff] %v4695_v52  ;;  %vm2000_vm15 = vcmp.gt.f32.partialorder %v1992_v63, 0.0  ;;  %vm1999_vm0 = vcmp.gt.f32.partialorder %v1991_v3, 0.0  ;;  %v4704_v31 = vadd.f32 %v2014_v17, %v4110_v21 }
 0x306   : > { %v2294_v40 = vpop.permute.xlu0 %2293  ;;  %5500 = vst [vmem:[#allocation11_spill] sm:$0xff] %v4698_v43  ;;  %v4707_v47 = vadd.f32 %v2013_v44, %v4095_v62  ;;  %v2340_v15 = vmul.f32 0.2, %v2324_v9  ;;  %v2327_v12 = vadd.f32 %v4689_v33, %v2302_v1  ;;  %v2015_v6 = vsel %vm1999_vm0, %v1991_v3, %v2007_v4 }
 0x307   : > { %v2325_v56 = vadd.f32 %v4689_v33, %v2294_v40  ;;  %5501 = vst [vmem:[#allocation12_spill] sm:$0xff] %v4704_v31  ;;  %v2016_v42 = vsel %vm2000_vm15, %v1992_v63, %v2008_v19  ;;  %v2326_v40 = vadd.f32 %v4689_v33, %v2298_v36  ;;  %vm2332_vm1 = vcmp.gt.f32.partialorder %v2324_v9, 0.0 }
 0x308   : > { %5502 = vst [vmem:[#allocation13_spill] sm:$0xff] %v4707_v47  ;;  %v4714_v35 = vadd.f32 %v2015_v6, %v4112_v22  ;;  %v4717_v17 = vadd.f32 %v2016_v42, %v4116_v28  ;;  %v2343_v19 = vmul.f32 0.2, %v2327_v12  ;;  %v2348_v63 = vsel %vm2332_vm1, %v2324_v9, %v2340_v15 }
 0x309   : > { %1690 = vmax.xlane.f32.xlu0 %v4638_v61  ;;  %1692 = vmax.xlane.f32.xlu1 %v4641_v26  ;;  %v2341_v24 = vmul.f32 0.2, %v2325_v56  ;;  %vm2333_vm2 = vcmp.gt.f32.partialorder %v2325_v56, 0.0  ;;  %v2342_v44 = vmul.f32 0.2, %v2326_v40  ;;  %vm2334_vm3 = vcmp.gt.f32.partialorder %v2326_v40, 0.0 }
 0x30a   : > { %v4650_v60 = vpop.f32.mrb[4].mxu1  ;;  %5503 = vst [vmem:[#allocation14_spill] sm:$0xff] %v4714_v35  ;;  %5504 = vst [vmem:[#allocation15_spill] sm:$0xff] %v4717_v17  ;;  %vm2335_vm4 = vcmp.gt.f32.partialorder %v2327_v12, 0.0  ;;  %v4722_v36 = vadd.f32 %v2348_v63, %v4077_v30  ;;  %v2310_v15 = vpop.permute.xlu0 %2309  ;;  %vm922_vm1 = vcmask 261248  }
 0x30b   : > { %v4652_v51 = vpop.f32.mrb[5].mxu1  ;;  %v2350_v4 = vsel %vm2334_vm3, %v2326_v40, %v2342_v44  ;;  %v2351_v1 = vsel %vm2335_vm4, %v2327_v12, %v2343_v19  ;;  %v3226_v12 = vld [vmem:[%s5462_s1 + $0x7] ss:$0 sm:$0xff]  ;;  %vm1600_vm3 = vcmask 523648   ;;  %vm1939_vm4 = vcmask 654848  }
 0x30c   : > { %v4661_v48 = vpop.f32.mrb[6].mxu1  ;;  %5505 = vst [vmem:[#allocation16_spill] sm:$0xff] %v4722_v36  ;;  %v4733_v9 = vadd.f32 %v2351_v1, %v4087_v54 }
 0x30d   : > { %v4663_v53 = vpop.f32.mrb[7].mxu1  ;;  %2027 = vmax.xlane.f32.xlu1 %v4655_v7  ;;  %2025 = vmax.xlane.f32.xlu0 %v4648_v50 }
 0x30e   : > { %5508 = vst [vmem:[#allocation19_spill] sm:$0xff] %v4733_v9 }
 0x311   : > { %2029 = vmax.xlane.f32.xlu0 %v4669_v29  ;;  %2031 = vmax.xlane.f32.xlu1 %v4672_v57 }
 0x315   : > { %1694 = vmax.xlane.f32.xlu0 %v4680_v11  ;;  %1696 = vmax.xlane.f32.xlu1 %v4683_v39  ;;  %v2349_v39 = vsel %vm2333_vm2, %v2325_v56, %v2341_v24  ;;  %v4730_v56 = vadd.f32 %v2350_v4, %v4079_v38  ;;  %v2306_v24 = vpop.permute.xlu1 %2305  ;;  %v2329_v4 = vadd.f32 %v4689_v33, %v2310_v15  ;;  %vm1261_vm2 = vcmask 392448  }
 0x316   : > { %v4725_v3 = vadd.f32 %v2349_v39, %v4084_v46 }
 0x317   : > { %5507 = vst [vmem:[#allocation18_spill] sm:$0xff] %v4730_v56  ;;  %vm2337_vm7 = vcmp.gt.f32.partialorder %v2329_v4, 0.0  ;;  %v2345_v15 = vmul.f32 0.2, %v2329_v4 }
 0x318   : > { %5506 = vst [vmem:[#allocation17_spill] sm:$0xff] %v4725_v3 }
 0x319   : > { %1698 = vmax.xlane.f32.xlu0 %v4695_v52  ;;  %1700 = vmax.xlane.f32.xlu1 %v4698_v43  ;;  %v2314_v42 = vpop.permute.xlu1 %2313 }
 0x31d   : > { %2035 = vmax.xlane.f32.xlu1 %v4704_v31  ;;  %2033 = vmax.xlane.f32.xlu0 %v4707_v47  ;;  %v2318_v39 = vpop.permute.xlu1 %2317 }
 0x321   : > { %2037 = vmax.xlane.f32.xlu0 %v4714_v35  ;;  %2039 = vmax.xlane.f32.xlu1 %v4717_v17 }
 0x325   : > { %2364 = vmax.xlane.f32.xlu0 %v4722_v36  ;;  %2366 = vmax.xlane.f32.xlu1 %v4725_v3  ;;  %v2328_v36 = vadd.f32 %v4689_v33, %v2306_v24  ;;  %v2330_v24 = vadd.f32 %v4689_v33, %v2314_v42 }
 0x327   : > { %v2344_v43 = vmul.f32 0.2, %v2328_v36  ;;  %vm2336_vm9 = vcmp.gt.f32.partialorder %v2328_v36, 0.0  ;;  %vm2338_vm11 = vcmp.gt.f32.partialorder %v2330_v24, 0.0 }
 0x329   : > { %2368 = vmax.xlane.f32.xlu0 %v4730_v56  ;;  %2370 = vmax.xlane.f32.xlu1 %v4733_v9  ;;  %v2352_v18 = vsel %vm2336_vm9, %v2328_v36, %v2344_v43 }
 0x32a   : > { %v4768_v36 = vadd.f32 %v2352_v18, %v4095_v62 }
 0x32c   : > { %5510 = vst [vmem:[#allocation21_spill] sm:$0xff] %v4768_v36 }
 0x345   : > { %v4737_v40 = vpop.xlane.xlu1 %1347  ;;  %v4742_v6 = vpop.xlane.xlu0 %1349 }
 0x346   : > { %v1363_v43 = vsub.f32 %v4532_v25, %v4737_v40  ;;  %v1364_v25 = vsub.f32 %v4529_v37, %v4742_v6 }
 0x349   : > { %v2633_v44 = vpop.permute.xlu1 %2632 }
 0x34a   : > { %v2664_v19 = vadd.f32 %v3226_v12, %v2633_v44 }
 0x34c   : > { %vm2672_vm5 = vcmp.gt.f32.partialorder %v2664_v19, 0.0  ;;  %v2680_v63 = vmul.f32 0.2, %v2664_v19 }
 0x34d   : > { %v2637_v1 = vpop.permute.xlu1 %2636  ;;  %v2629_v56 = vpop.permute.xlu0 %2628 }
 0x34e   : > { %v2665_v9 = vadd.f32 %v3226_v12, %v2637_v1  ;;  %v2663_v3 = vadd.f32 %v3226_v12, %v2629_v56  ;;  %v2688_v47 = vsel %vm2672_vm5, %v2664_v19, %v2680_v63  ;;  %v2331_v56 = vadd.f32 %v4689_v33, %v2318_v39 }
 0x34f   : > { %v4747_v17 = vadd.f32 %v2688_v47, %v4084_v46  ;;  %vm2278_vm5 = vcmask 786048  }
 0x350   : > { %v2681_v35 = vmul.f32 0.2, %v2665_v9  ;;  %vm2671_vm6 = vcmp.gt.f32.partialorder %v2663_v3, 0.0  ;;  %v2679_v31 = vmul.f32 0.2, %v2663_v3  ;;  %vm2673_vm8 = vcmp.gt.f32.partialorder %v2665_v9, 0.0 }
 0x351   : > { %5509 = vst [vmem:[#allocation20_spill] sm:$0xff] %v4747_v17  ;;  %2705 = vmax.xlane.f32.xlu1 %v4747_v17  ;;  %v2641_v44 = vpop.permute.xlu0 %2640  ;;  %v2649_v19 = vpop.permute.xlu1 %2648  ;;  %vm2339_vm12 = vcmp.gt.f32.partialorder %v2331_v56, 0.0 }
 0x352   : > { %v2666_v52 = vadd.f32 %v3226_v12, %v2641_v44  ;;  %v2687_v11 = vsel %vm2671_vm6, %v2663_v3, %v2679_v31  ;;  %v2689_v63 = vsel %vm2673_vm8, %v2665_v9, %v2681_v35  ;;  %v2353_v44 = vsel %vm2337_vm7, %v2329_v4, %v2345_v15 }
 0x353   : > { %v4753_v46 = vadd.f32 %v2687_v11, %v4077_v30  ;;  %v2346_v31 = vmul.f32 0.2, %v2330_v24  ;;  %v2347_v3 = vmul.f32 0.2, %v2331_v56  ;;  %v4758_v42 = vadd.f32 %v2689_v63, %v4079_v38 }
 0x354   : > { %vm2674_vm10 = vcmp.gt.f32.partialorder %v2666_v52, 0.0  ;;  %v2682_v47 = vmul.f32 0.2, %v2666_v52  ;;  %v2668_v30 = vadd.f32 %v3226_v12, %v2649_v19  ;;  %v4771_v38 = vadd.f32 %v2353_v44, %v4110_v21 }
 0x355   : > { %2703 = vmax.xlane.f32.xlu0 %v4753_v46  ;;  %v2645_v1 = vpop.permute.xlu0 %2644  ;;  %v2657_v35 = vpop.permute.xlu1 %2656  ;;  %v1371_v19 = vmul.f32 1.442695, %v1363_v43  ;;  %v1373_v63 = vmul.f32 1.442695, %v1364_v25  ;;  %vm2617_vm6 = vcmask 917248   ;;  %vm2956_vm7 = vcmask 1048448  }
 0x356   : > { %v2690_v17 = vsel %vm2674_vm10, %v2666_v52, %v2682_v47  ;;  %v2667_v11 = vadd.f32 %v3226_v12, %v2645_v1  ;;  %v2684_v9 = vmul.f32 0.2, %v2668_v30  ;;  %v2670_v39 = vadd.f32 %v3226_v12, %v2657_v35 }
 0x357   : > { %v4761_v33 = vadd.f32 %v2690_v17, %v4087_v54  ;;  %v2354_v54 = vsel %vm2338_vm11, %v2330_v24, %v2346_v31  ;;  %v2355_v17 = vsel %vm2339_vm12, %v2331_v56, %v2347_v3  ;;  %vm2676_vm13 = vcmp.gt.f32.partialorder %v2668_v30, 0.0 }
 0x358   : > { %v2683_v4 = vmul.f32 0.2, %v2667_v11  ;;  %vm2675_vm14 = vcmp.gt.f32.partialorder %v2667_v11, 0.0  ;;  %v4778_v18 = vadd.f32 %v2354_v54, %v4112_v22  ;;  %v4781_v40 = vadd.f32 %v2355_v17, %v4116_v28  ;;  %v3640_v54 = vld [vmem:[%s5461_s0 + $0x20] sm:$0xff]  }
 0x359   : > { %2707 = vmax.xlane.f32.xlu0 %v4758_v42  ;;  %2709 = vmax.xlane.f32.xlu1 %v4761_v33  ;;  %v2653_v52 = vpop.permute.xlu0 %2652  ;;  %v2686_v24 = vmul.f32 0.2, %v2670_v39  ;;  %v2692_v47 = vsel %vm2676_vm13, %v2668_v30, %v2684_v9  ;;  %vm2678_vm15 = vcmp.gt.f32.partialorder %v2670_v39, 0.0  ;;  %3762 = vpow2.f32 %v1371_v19  ;;  %v3639_v30 = vld [vmem:[%s5461_s0 + $0x18] sm:$0xff]  }
 0x35a   : > { %v2669_v15 = vadd.f32 %v3226_v12, %v2653_v52  ;;  %5511 = vst [vmem:[#allocation22_spill] sm:$0xff] %v4778_v18  ;;  %v2691_v12 = vsel %vm2675_vm14, %v2667_v11, %v2683_v4  ;;  %v4786_v37 = vadd.f32 %v2692_v47, %v4110_v21  ;;  %3764 = vpow2.f32 %v1373_v63 }
 0x35b   : > { %v4789_v6 = vadd.f32 %v2691_v12, %v4095_v62  ;;  %v2694_v1 = vsel %vm2678_vm15, %v2670_v39, %v2686_v24  ;;  %v3641_v39 = vld [vmem:[%s5461_s0 + $0x28] sm:$0xff]  }
 0x35c   : > { %v2685_v56 = vmul.f32 0.2, %v2669_v15  ;;  %vm2677_vm0 = vcmp.gt.f32.partialorder %v2669_v15, 0.0  ;;  %v4794_v31 = vadd.f32 %v2694_v1, %v4116_v28  ;;  %v3637_v28 = vld [vmem:[%s5461_s0] sm:$0xff]   ;;  %v3643_v1 = vld [vmem:[%s5461_s0 + $0x8] sm:$0xff]  }
 0x35d   : > { %2372 = vmax.xlane.f32.xlu0 %v4768_v36  ;;  %2374 = vmax.xlane.f32.xlu1 %v4771_v38  ;;  %5512 = vst [vmem:[#allocation23_spill] sm:$0xff] %v4789_v6 }
 0x35e   : > { %v2693_v44 = vsel %vm2677_vm0, %v2669_v15, %v2685_v56  ;;  %5513 = vst [vmem:[#allocation24_spill] sm:$0xff] %v4794_v31 }
 0x35f   : > { %v4797_v3 = vadd.f32 %v2693_v44, %v4112_v22  ;;  %v3638_v22 = vld [vmem:[%s5461_s0 + $0x10] sm:$0xff]  }
 0x361   : > { %2376 = vmax.xlane.f32.xlu0 %v4778_v18  ;;  %2378 = vmax.xlane.f32.xlu1 %v4781_v40  ;;  %5514 = vst [vmem:[#allocation25_spill] sm:$0xff] %v4797_v3 }
 0x363   : > { %v4801_v21 = vpop.eup %3762 }
 0x364   : > { %v4804_v62 = vpop.eup %3764 }
 0x365   : > { %2713 = vmax.xlane.f32.xlu1 %v4786_v37  ;;  %2711 = vmax.xlane.f32.xlu0 %v4789_v6 }
 0x369   : > { %2717 = vmax.xlane.f32.xlu1 %v4794_v31  ;;  %2715 = vmax.xlane.f32.xlu0 %v4797_v3 }
 0x36d   : > { %1387 = vadd.xlane.f32.xlu1 %v4801_v21 }
 0x371   : > { %1389 = vadd.xlane.f32.xlu1 %v4804_v62 }
 0x37f   : > { %1479 = vrot.lane.b32.xlu0 %v3637_v28, %s3976_s7 }
 0x383   : > { %1483 = vrot.lane.b32.xlu0 %v3638_v22, %s3976_s7 }
 0x386   : > { %v1352_v11 = vpop.xlane.xlu1 %1351  ;;  %v1354_v35 = vpop.xlane.xlu0 %1353 }
 0x387   : > { %v1365_v52 = vsub.f32 %v4571_v55, %v1352_v11  ;;  %v1366_v43 = vsub.f32 %v4574_v27, %v1354_v35  ;;  %1485 = vrot.lane.b32.xlu0 %v3639_v30, %s3976_s7  ;;  %v3642_v55 = vld [vmem:[%s5461_s0 + $0x38] sm:$0xff]  }
 0x389   : > { %v1375_v17 = vmul.f32 1.442695, %v1365_v52  ;;  %v1377_v9 = vmul.f32 1.442695, %v1366_v43 }
 0x38a   : > { %v1356_v15 = vpop.xlane.xlu0 %1355  ;;  %v1358_v19 = vpop.xlane.xlu1 %1357 }
 0x38b   : > { %3766 = vpow2.f32 %v1375_v17  ;;  %1487 = vrot.lane.b32.xlu0 %v3640_v54, %s3976_s7  ;;  %v1368_v25 = vsub.f32 %v4587_v34, %v1358_v19  ;;  %v3644_v34 = vld [vmem:[%s5461_s0 + $0x30] sm:$0xff]   ;;  %v1367_v17 = vsub.f32 %v4584_v20, %v1356_v15 }
 0x38c   : > { %3768 = vpow2.f32 %v1377_v9 }
 0x38d   : > { %v1381_v47 = vmul.f32 1.442695, %v1368_v25 }
 0x38e   : > { %v1360_v24 = vpop.xlane.xlu0 %1359  ;;  %v1362_v56 = vpop.xlane.xlu1 %1361 }
 0x38f   : > { %1489 = vrot.lane.b32.xlu0 %v3641_v39, %s3976_s7  ;;  %v1369_v12 = vsub.f32 %v4605_v45, %v1360_v24  ;;  %3770 = vpow2.f32 %v1381_v47  ;;  %v1370_v19 = vsub.f32 %v4608_v59, %v1362_v56 }
 0x391   : > { %v1383_v63 = vmul.f32 1.442695, %v1369_v12  ;;  %v1385_v47 = vmul.f32 1.442695, %v1370_v19 }
 0x392   : > { %v4844_v44 = vpop.xlane.xlu1 %1688  ;;  %v1687_v28 = vpop.xlane.xlu0 %1686 }
 0x393   : > { %1154 = vrot.lane.b32.xlu0 %v3642_v55, %s3971_s28  ;;  %3772 = vpow2.f32 %v1383_v63  ;;  %v1379_v55 = vmul.f32 1.442695, %v1367_v17 }
 0x395   : > { %v4833_v27 = vpop.eup %3766  ;;  %3774 = vpow2.f32 %v1379_v55 }
 0x396   : > { %1391 = vadd.xlane.f32.xlu1 %v4833_v27  ;;  %v4836_v4 = vpop.eup %3768  ;;  %v1693_v22 = vpop.xlane.xlu1 %1692  ;;  %3776 = vpow2.f32 %v1385_v47 }
 0x397   : > { %v1691_v30 = vpop.xlane.xlu0 %1690 }
 0x398   : > { %v1704_v36 = vsub.f32 %v4638_v61, %v1691_v30 }
 0x399   : > { %v4851_v45 = vpop.eup %3770 }
 0x39a   : > { %1393 = vadd.xlane.f32.xlu1 %v4836_v4  ;;  %v4854_v11 = vpop.xlane.xlu1 %2027 }
 0x39b   : > { %v2026_v35 = vpop.xlane.xlu0 %2025 }
 0x39c   : > { %v2041_v61 = vsub.f32 %v4648_v50, %v2026_v35  ;;  %v3647_v50 = vld [vmem:[%s5461_s0] sm:$0xff]  }
 0x39d   : > { %v4856_v52 = vpop.eup %3772 }
 0x39e   : > { %v4859_v43 = vpop.xlane.xlu1 %2031 }
 0x39f   : > { %v4861_v54 = vpop.xlane.xlu0 %2029  ;;  %v4881_v20 = vpop.eup %3774 }
 0x3a0   : > { %v4890_v56 = vpop.eup %3776 }
 0x3a2   : > { %v4864_v9 = vpop.xlane.xlu1 %1696 }
 0x3a3   : > { %v4866_v39 = vpop.xlane.xlu0 %1694 }
 0x3a6   : > { %v4869_v25 = vpop.xlane.xlu1 %1700 }
 0x3a7   : > { %v4871_v24 = vpop.xlane.xlu0 %1698 }
 0x3aa   : > { %v4873_v12 = vpop.xlane.xlu1 %2035 }
 0x3ab   : > { %1481 = vrot.lane.b32.xlu1 %v3643_v1, %s3976_s7  ;;  %v4875_v63 = vpop.xlane.xlu0 %2033 }
 0x3ae   : > { %v4883_v59 = vpop.xlane.xlu1 %2039 }
 0x3af   : > { %1491 = vrot.lane.b32.xlu1 %v3644_v34, %s3976_s7  ;;  %v4885_v15 = vpop.xlane.xlu0 %2037 }
 0x3b2   : > { %1397 = vadd.xlane.f32.xlu0 %v4851_v45  ;;  %v4893_v1 = vpop.xlane.xlu1 %2366 }
 0x3b6   : > { %1399 = vadd.xlane.f32.xlu0 %v4856_v52  ;;  %v4903_v34 = vpop.xlane.xlu1 %2370 }
 0x3cc   : > { %902 = vrot.lane.b32.xlu0 %v4617_v23, %s3977_s25  ;;  %v4895_v23 = vpop.xlane.xlu0 %2364 }
 0x3d0   : > { %898 = vrot.lane.b32.xlu0 %v4620_v13, %s3977_s25  ;;  %v3645_v13 = vld [vmem:[%s5461_s0 + $0x38] sm:$0xff]  }
 0x3d3   : > { %1395 = vadd.xlane.f32.xlu1 %v4881_v20 }
 0x3d4   : > { %910 = vrot.lane.b32.xlu0 %v4650_v60, %s3977_s25  ;;  %v4905_v60 = vpop.xlane.xlu0 %2368 }
 0x3d7   : > { %1401 = vadd.xlane.f32.xlu1 %v4890_v56 }
 0x3d8   : > { %906 = vrot.lane.b32.xlu0 %v4652_v51, %s3977_s25  ;;  %v1702_v51 = vsub.f32 %v4623_v41, %v1687_v28  ;;  %v1705_v41 = vsub.f32 %v4641_v26, %v1693_v22  ;;  %v1714_v28 = vmul.f32 1.442695, %v1704_v36 }
 0x3da   : > { %v1710_v18 = vmul.f32 1.442695, %v1702_v51  ;;  %v1716_v51 = vmul.f32 1.442695, %v1705_v41 }
 0x3dc   : > { %1493 = vrot.lane.b32.xlu0 %v3645_v13, %s3976_s7  ;;  %3778 = vpow2.f32 %v1710_v18  ;;  %v2049_v18 = vmul.f32 1.442695, %v2041_v61 }
 0x3dd   : > { %3780 = vpow2.f32 %v1714_v28 }
 0x3de   : > { %v4907_v17 = vpop.xlane.xlu1 %2705  ;;  %3782 = vpow2.f32 %v1716_v51 }
 0x3df   : > { %3784 = vrcp.f32 %v4507_v8 }
 0x3e0   : > { %3786 = vrcp.f32 %v4509_v0  ;;  %v2044_v0 = vsub.f32 %v4672_v57, %v4859_v43 }
 0x3e1   : > { %3788 = vpow2.f32 %v2049_v18 }
 0x3e2   : > { %v4909_v55 = vpop.xlane.xlu0 %2703  ;;  %v2055_v51 = vmul.f32 1.442695, %v2044_v0 }
 0x3e6   : > { %v4911_v19 = vpop.xlane.xlu1 %2709  ;;  %v4913_v47 = vpop.xlane.xlu0 %2707 }
 0x3e8   : > { %904 = vrot.lane.b32.xlu1 %v4627_v2, %s3977_s25 }
 0x3ea   : > { %v4918_v6 = vpop.xlane.xlu1 %2374  ;;  %v4920_v13 = vpop.xlane.xlu0 %2372 }
 0x3eb   : > { %5515 = vst [vmem:[#allocation26_spill] sm:$0xff] %v4920_v13 }
 0x3ec   : > { %900 = vrot.lane.b32.xlu1 %v4631_v32, %s3977_s25  ;;  %v3646_v32 = vld [vmem:[%s5461_s0] sm:$0xff]  }
 0x3ee   : > { %v4925_v31 = vpop.xlane.xlu1 %2378  ;;  %v4927_v3 = vpop.xlane.xlu0 %2376 }
 0x3f0   : > { %912 = vrot.lane.b32.xlu1 %v4661_v48, %s3977_s25  ;;  %v2042_v48 = vsub.f32 %v4655_v7, %v4854_v11  ;;  %v2043_v11 = vsub.f32 %v4669_v29, %v4861_v54 }
 0x3f2   : > { %v4932_v2 = vpop.xlane.xlu1 %2713  ;;  %v4934_v13 = vpop.xlane.xlu0 %2711  ;;  %v2051_v7 = vmul.f32 1.442695, %v2042_v48  ;;  %v2053_v29 = vmul.f32 1.442695, %v2043_v11 }
 0x3f4   : > { %908 = vrot.lane.b32.xlu1 %v4663_v53, %s3977_s25  ;;  %v4952_v53 = vpop.eup %3778 }
 0x3f5   : > { %v4960_v35 = vpop.eup %3780 }
 0x3f6   : > { %v4942_v26 = vpop.xlane.xlu1 %2717  ;;  %v4944_v36 = vpop.xlane.xlu0 %2715  ;;  %5516 = vst [vmem:[#allocation27_spill] sm:$0xff] %v4960_v35 }
 0x3f7   : > { %v4969_v54 = vpop.eup %3782 }
 0x3f8   : > { %1818 = vrot.lane.b32.xlu1 %v3646_v32, %s3978_s6  ;;  %5517 = vst [vmem:[#allocation28_spill] sm:$0xff] %v4969_v54 }
 0x3fa   : > { %v1388_v22 = vpop.xlane.xlu1 %1387  ;;  %v1480_v30 = vpop.permute.xlu0 %1479 }
 0x3fb   : > { %1726 = vadd.xlane.f32.xlu0 %v4952_v53  ;;  %3453 = vmatprep.subr.bf16.mxu1 %v1480_v30  ;;  %3790 = vrcp.f32 %v1388_v22 }
 0x3fc   : > { %2157 = vrot.lane.b32.xlu1 %v3647_v50, %s3979_s10  ;;  %3454 = vmatpush3.bf16.msra.mxu1 %v1480_v30  ;;  %3792 = vrcp.f32 %v4511_v5  ;;  %v3785_v5 = vpop.eup %3784 }
 0x3fd   : > { %v3787_v61 = vpop.eup %3786  ;;  %v1075_v11 = vmul.f32 %v3785_v5, %v4389_v14 }
 0x3fe   : > { %v1390_v8 = vpop.xlane.xlu1 %1389  ;;  %v4963_v41 = vpop.permute.xlu0 %1483 }
 0x3ff   : > { %3794 = vrcp.f32 %v1390_v8  ;;  %1730 = vadd.xlane.f32.xlu0 %v4960_v35  ;;  %v4974_v32 = vpop.eup %3788  ;;  %v5518_v8 = vld [vmem:[#allocation7_spill] sm:$0xff]  ;;  %v5519_v35 = vld [vmem:[#allocation4_spill] sm:$0xff] }
 0x400   : > { %3796 = vpow2.f32 %v2051_v7  ;;  %v1703_v0 = vsub.f32 %v5518_v8, %v4844_v44  ;;  %v5521_v44 = vld [vmem:[#allocation6_spill] sm:$0xff] }
 0x401   : > { %3798 = vrcp.f32 %v4513_v16 }
 0x402   : > { %v4971_v28 = vpop.permute.xlu0 %1485  ;;  %3800 = vpow2.f32 %v2053_v29  ;;  %v1712_v14 = vmul.f32 1.442695, %v1703_v0  ;;  %v3650_v0 = vld [vmem:[%s5461_s0 + $0x8] sm:$0xff]  }
 0x403   : > { %1732 = vadd.xlane.f32.xlu0 %v4969_v54  ;;  %3802 = vrcp.f32 %v4516_v10 }
 0x404   : > { %3804 = vrcp.f32 %v4518_v49  ;;  %v1074_v49 = vmul.f32 %v3787_v61, %v4391_v58 }
 0x405   : > { %v3791_v57 = vpop.eup %3790  ;;  %3806 = vpow2.f32 %v2055_v51 }
 0x406   : > { %v4977_v48 = vpop.permute.xlu0 %1487  ;;  %v3793_v16 = vpop.eup %3792  ;;  %v1411_v22 = vmul.f32 %v3791_v57, %v4801_v21  ;;  %v5520_v21 = vld [vmem:[#allocation3_spill] sm:$0xff]  ;;  %v1081_v5 = vpack.c.bf16 %v1075_v11, %v1074_v49  ;;  %3808 = vpow2.f32 %v1712_v14  ;;  %v3649_v49 = vld [vmem:[%s5461_s0 + $0x28] sm:$0xff]  }
 0x407   : > { %2065 = vadd.xlane.f32.xlu0 %v4974_v32  ;;  %v1077_v57 = vmul.f32 %v3793_v16, %v5520_v21  ;;  %v3652_v21 = vld [vmem:[%s5461_s0 + $0x10] sm:$0xff]  }
 0x409   : > { %v3795_v43 = vpop.eup %3794 }
 0x40a   : > { %v4981_v18 = vpop.eup %3796  ;;  %v1490_v50 = vpop.permute.xlu0 %1489  ;;  %v1412_v30 = vmul.f32 %v3795_v43, %v4804_v62 }
 0x40b   : > { %v3799_v7 = vpop.eup %3798  ;;  %2067 = vadd.xlane.f32.xlu0 %v4981_v18 }
 0x40c   : > { %v1419_v10 = vpack.c.bf16 %v1412_v30, %v1411_v22  ;;  %v4990_v29 = vpop.eup %3800  ;;  %v1076_v54 = vmul.f32 %v3799_v7, %v5519_v35  ;;  %v5522_v22 = vld [vmem:[#allocation5_spill] sm:$0xff] }
 0x40d   : > { %v3803_v62 = vpop.eup %3802 }
 0x40e   : > { %3469 = vmatprep.mubr.bf16.mxu1 %v1419_v10  ;;  %v1155_v51 = vpop.permute.xlu0 %1154  ;;  %v3805_v43 = vpop.eup %3804  ;;  %v1082_v61 = vpack.c.bf16 %v1077_v57, %v1076_v54  ;;  %v1079_v16 = vmul.f32 %v3803_v62, %v5522_v22  ;;  %v3648_v54 = vld [vmem:[%s5461_s0 + $0x8] sm:$0xff]   ;;  %v3653_v57 = vld [vmem:[%s5461_s0 + $0x10] sm:$0xff]   ;;  %v3654_v62 = vld [vmem:[%s5461_s0 + $0x18] sm:$0xff]  }
 0x40f   : > { %2069 = vadd.xlane.f32.xlu0 %v4990_v29  ;;  %3443 = vmatprep.subr.bf16.mxu0 %v1155_v51  ;;  %v4995_v58 = vpop.eup %3806  ;;  %v1078_v35 = vmul.f32 %v3805_v43, %v5521_v44 }
 0x410   : > { %3444 = vmatpush3.bf16.msra.mxu0 %v1155_v51  ;;  %v5000_v7 = vpop.eup %3808  ;;  %v3651_v51 = vld [vmem:[%s5461_s0 + $0x30] sm:$0xff]  }
 0x411   : > { %v1083_v30 = vpack.c.bf16 %v1079_v16, %v1078_v35  ;;  %v5525_v16 = vld [vmem:[#allocation11_spill] sm:$0xff] }
 0x413   : > { %2071 = vadd.xlane.f32.xlu0 %v4995_v58  ;;  %3446 = vmatmul.mubr.bf16.vlgmr.msra.gmra.mrb[8].mxu0 %v1081_v5 }
 0x414   : > { %3449 = vmatprep.mubr.bf16.mxu0 %v1082_v61  ;;  %v5524_v61 = vld [vmem:[#allocation10_spill] sm:$0xff] }
 0x415   : > { %v1708_v44 = vsub.f32 %v5524_v61, %v4871_v24  ;;  %v3657_v24 = vld [vmem:[%s5461_s0 + $0x20] sm:$0xff]  }
 0x417   : > { %v1722_v22 = vmul.f32 1.442695, %v1708_v44 }
 0x41b   : > { %3450 = vmatmul.mubr.bf16.gmra.mrb[12].mxu0 %v1083_v30  ;;  %v1709_v30 = vsub.f32 %v5525_v16, %v4869_v25  ;;  %v3658_v25 = vld [vmem:[%s5461_s0 + $0x28] sm:$0xff]  }
 0x420   : > { %1728 = vadd.xlane.f32.xlu1 %v5000_v7 }
 0x423   : > { %v1392_v10 = vpop.xlane.xlu1 %1391 }
 0x427   : > { %v1394_v11 = vpop.xlane.xlu1 %1393 }
 0x429   : > { %2159 = vrot.lane.b32.xlu0 %v3648_v54, %s3979_s10  ;;  %v1724_v54 = vmul.f32 1.442695, %v1709_v30 }
 0x42b   : > { %v1482_v8 = vpop.permute.xlu1 %1481 }
 0x42c   : > { %3455 = vmatprep.subr.bf16.mxu1 %v1482_v8 }
 0x42d   : > { %1828 = vrot.lane.b32.xlu0 %v3649_v49, %s3978_s6  ;;  %3456 = vmatpush3.bf16.msra.mxu1 %v1482_v8  ;;  %v5526_v49 = vld [vmem:[#allocation12_spill] sm:$0xff] }
 0x42e   : > { %3457 = vmatprep.subr.bf16.mxu1 %v4963_v41  ;;  %v2046_v8 = vsub.f32 %v5526_v49, %v4873_v12  ;;  %v3659_v12 = vld [vmem:[%s5461_s0 + $0x30] sm:$0xff]  }
 0x42f   : > { %v1492_v14 = vpop.permute.xlu1 %1491 }
 0x431   : > { %1820 = vrot.lane.b32.xlu1 %v3650_v0, %s3978_s6  ;;  %1830 = vrot.lane.b32.xlu0 %v3651_v51, %s3978_s6  ;;  %v2059_v51 = vmul.f32 1.442695, %v2046_v8 }
 0x432   : > { %3458 = vmatpush3.bf16.msra.mxu1 %v4963_v41  ;;  %v5523_v41 = vld [vmem:[#allocation8_spill] sm:$0xff] }
 0x433   : > { %3459 = vmatprep.subr.bf16.mxu1 %v4971_v28  ;;  %v1706_v43 = vsub.f32 %v5523_v41, %v4866_v39  ;;  %v3656_v39 = vld [vmem:[%s5461_s0 + $0x20] sm:$0xff]  }
 0x435   : > { %1822 = vrot.lane.b32.xlu1 %v3652_v21, %s3978_s6  ;;  %v1718_v35 = vmul.f32 1.442695, %v1706_v43  ;;  %v5527_v21 = vld [vmem:[#allocation14_spill] sm:$0xff] }
 0x436   : > { %3460 = vmatpush3.bf16.msra.mxu1 %v4971_v28  ;;  %v3655_v28 = vld [vmem:[%s5461_s0 + $0x18] sm:$0xff]  }
 0x437   : > { %3461 = vmatprep.subr.bf16.mxu1 %v4977_v48  ;;  %3810 = vpow2.f32 %v1718_v35 }
 0x438   : > { %3812 = vpow2.f32 %v1722_v22 }
 0x439   : > { %2161 = vrot.lane.b32.xlu1 %v3653_v57, %s3979_s10  ;;  %3814 = vrcp.f32 %v1394_v11  ;;  %v2047_v57 = vsub.f32 %v5527_v21, %v4885_v15 }
 0x43a   : > { %3462 = vmatpush3.bf16.msra.mxu1 %v4977_v48  ;;  %3816 = vrcp.f32 %v1392_v10  ;;  %v5528_v10 = vld [vmem:[#allocation15_spill] sm:$0xff] }
 0x43b   : > { %3463 = vmatprep.subr.bf16.mxu1 %v1490_v50  ;;  %3818 = vpow2.f32 %v1724_v54  ;;  %v2048_v41 = vsub.f32 %v5528_v10, %v4883_v59  ;;  %v2061_v43 = vmul.f32 1.442695, %v2047_v57 }
 0x43c   : > { %3820 = vpow2.f32 %v2059_v51 }
 0x43d   : > { %1824 = vrot.lane.b32.xlu1 %v3654_v62, %s3978_s6  ;;  %v2063_v44 = vmul.f32 1.442695, %v2048_v41  ;;  %3822 = vpow2.f32 %v2061_v43 }
 0x43e   : > { %3464 = vmatpush3.bf16.msra.mxu1 %v1490_v50 }
 0x43f   : > { %3465 = vmatprep.subr.bf16.mxu1 %v1492_v14  ;;  %v1398_v5 = vpop.xlane.xlu0 %1397  ;;  %3824 = vpow2.f32 %v2063_v44 }
 0x440   : > { %3826 = vrcp.f32 %v1398_v5 }
 0x441   : > { %2163 = vrot.lane.b32.xlu1 %v3655_v28, %s3979_s10  ;;  %v5068_v11 = vpop.eup %3810 }
 0x442   : > { %3466 = vmatpush3.bf16.msra.mxu1 %v1492_v14  ;;  %v5075_v15 = vpop.eup %3812 }
 0x443   : > { %v1400_v48 = vpop.xlane.xlu0 %1399  ;;  %v3815_v28 = vpop.eup %3814 }
 0x444   : > { %v3817_v61 = vpop.eup %3816  ;;  %v1414_v35 = vmul.f32 %v3815_v28, %v4836_v4 }
 0x445   : > { %1826 = vrot.lane.b32.xlu1 %v3656_v39, %s3978_s6  ;;  %v5080_v39 = vpop.eup %3818  ;;  %v1413_v59 = vmul.f32 %v3817_v61, %v4833_v27  ;;  %v5529_v27 = vld [vmem:[#allocation9_spill] sm:$0xff] }
 0x446   : > { %v5084_v30 = vpop.eup %3820 }
 0x447   : > { %v903_v50 = vpop.permute.xlu0 %902  ;;  %v1420_v16 = vpack.c.bf16 %v1414_v35, %v1413_v59  ;;  %v5531_v35 = vld [vmem:[#allocation17_spill] sm:$0xff]  ;;  %v3661_v59 = vld [vmem:[%s5461_s0 + $0x38] sm:$0xff]  }
 0x448   : > { %925 = vst.msk [vmem:[#allocation2 + $0x10] sm:$0xff] %vm922_vm1, %v903_v50  ;;  %v1707_v50 = vsub.f32 %v5529_v27, %v4864_v9  ;;  %v5532_v27 = vld [vmem:[#allocation19_spill] sm:$0xff] }
 0x449   : > { %2165 = vrot.lane.b32.xlu1 %v3657_v24, %s3979_s10  ;;  %v5087_v24 = vpop.eup %3822 }
 0x44a   : > { %v5092_v54 = vpop.eup %3824  ;;  %v1720_v8 = vmul.f32 1.442695, %v1707_v50  ;;  %v2383_v50 = vsub.f32 %v5532_v27, %v4903_v34  ;;  %v3663_v34 = vld [vmem:[%s5461_s0] sm:$0xff]  }
 0x44b   : > { %v899_v0 = vpop.permute.xlu0 %898  ;;  %v3827_v5 = vpop.eup %3826 }
 0x44c   : > { %923 = vst.msk [vmem:[#allocation2] sm:$0xff] %vm922_vm1, %v899_v0 }
 0x44d   : > { %2167 = vrot.lane.b32.xlu1 %v3658_v25, %s3979_s10  ;;  %v5530_v25 = vld [vmem:[#allocation13_spill] sm:$0xff] }
 0x44e   : > { %v2045_v0 = vsub.f32 %v5530_v25, %v4875_v63  ;;  %v2394_v25 = vmul.f32 1.442695, %v2383_v50 }
 0x44f   : > { %v911_v62 = vpop.permute.xlu0 %910 }
 0x450   : > { %929 = vst.msk [vmem:[#allocation2 + $0x30] sm:$0xff] %vm922_vm1, %v911_v62  ;;  %1734 = vadd.xlane.f32.xlu0 %v5068_v11  ;;  %v2057_v21 = vmul.f32 1.442695, %v2045_v0 }
 0x451   : > { %2169 = vrot.lane.b32.xlu1 %v3659_v12, %s3979_s10 }
 0x453   : > { %v907_v14 = vpop.permute.xlu0 %906 }
 0x454   : > { %927 = vst.msk [vmem:[#allocation2 + $0x20] sm:$0xff] %vm922_vm1, %v907_v14  ;;  %1738 = vadd.xlane.f32.xlu0 %v5075_v15 }
 0x457   : > { %v1494_v22 = vpop.permute.xlu0 %1493 }
 0x458   : > { %1740 = vadd.xlane.f32.xlu0 %v5080_v39  ;;  %3467 = vmatprep.subr.bf16.mxu1 %v1494_v22 }
 0x459   : > { %3468 = vmatpush3.bf16.msra.mxu1 %v1494_v22  ;;  %v2381_v22 = vsub.f32 %v5531_v35, %v4893_v1  ;;  %v5533_v1 = vld [vmem:[#allocation20_spill] sm:$0xff]  ;;  %v5535_v35 = vld [vmem:[#allocation18_spill] sm:$0xff] }
 0x45a   : > { %v2720_v0 = vsub.f32 %v5533_v1, %v4907_v17  ;;  %v2722_v17 = vsub.f32 %v4761_v33, %v4911_v19 }
 0x45c   : > { %2075 = vadd.xlane.f32.xlu0 %v5084_v30  ;;  %3470 = vmatmul.mubr.bf16.vlgmr.msra.gmra.mrb[8].mxu1 %v1420_v16 }
 0x460   : > { %v1396_v4 = vpop.xlane.xlu1 %1395  ;;  %2077 = vadd.xlane.f32.xlu0 %v5087_v24 }
 0x461   : > { %3828 = vrcp.f32 %v1396_v4  ;;  %v2390_v4 = vmul.f32 1.442695, %v2381_v22  ;;  %v2382_v22 = vsub.f32 %v5535_v35, %v4905_v60 }
 0x462   : > { %3830 = vrcp.f32 %v1400_v48  ;;  %v1416_v48 = vmul.f32 %v3827_v5, %v4851_v45  ;;  %v3660_v45 = vld [vmem:[%s5461_s0 + $0x38] sm:$0xff]   ;;  %v2729_v5 = vmul.f32 1.442695, %v2720_v0 }
 0x464   : > { %v1402_v49 = vpop.xlane.xlu1 %1401  ;;  %2079 = vadd.xlane.f32.xlu0 %v5092_v54 }
 0x465   : > { %3832 = vrcp.f32 %v1402_v49  ;;  %v3662_v49 = vld [vmem:[%s5461_s0] sm:$0xff]  }
 0x466   : > { %3834 = vpow2.f32 %v1720_v8 }
 0x467   : > { %3836 = vpow2.f32 %v2057_v21  ;;  %v2721_v21 = vsub.f32 %v4758_v42, %v4913_v47 }
 0x468   : > { %v905_v51 = vpop.permute.xlu1 %904  ;;  %3838 = vpow2.f32 %v2390_v4 }
 0x469   : > { %926 = vst.msk [vmem:[#allocation2 + $0x18] sm:$0xff] %vm922_vm1, %v905_v51  ;;  %3840 = vpow2.f32 %v2394_v25 }
 0x46a   : > { %3842 = vpow2.f32 %v2729_v5 }
 0x46b   : > { %v3829_v57 = vpop.eup %3828 }
 0x46c   : > { %v901_v12 = vpop.permute.xlu1 %900  ;;  %v1415_v9 = vmul.f32 %v3829_v57, %v4881_v20  ;;  %v3831_v62 = vpop.eup %3830 }
 0x46d   : > { %924 = vst.msk [vmem:[#allocation2 + $0x8] sm:$0xff] %vm922_vm1, %v901_v12  ;;  %v1417_v63 = vmul.f32 %v3831_v62, %v4856_v52  ;;  %v2731_v12 = vmul.f32 1.442695, %v2721_v21  ;;  %v2733_v62 = vmul.f32 1.442695, %v2722_v17 }
 0x46e   : > { %v1421_v10 = vpack.c.bf16 %v1416_v48, %v1415_v9 }
 0x46f   : > { %v3833_v41 = vpop.eup %3832 }
 0x470   : > { %v913_v43 = vpop.permute.xlu1 %912  ;;  %3473 = vmatprep.mubr.bf16.mxu1 %v1421_v10  ;;  %v1418_v28 = vmul.f32 %v3833_v41, %v4890_v56  ;;  %v5104_v61 = vpop.eup %3834 }
 0x471   : > { %930 = vst.msk [vmem:[#allocation2 + $0x38] sm:$0xff] %vm922_vm1, %v913_v43  ;;  %v5111_v44 = vpop.eup %3836  ;;  %v5534_v43 = vld [vmem:[#allocation16_spill] sm:$0xff] }
 0x472   : > { %v1422_v14 = vpack.c.bf16 %v1418_v28, %v1417_v63  ;;  %v5141_v9 = vpop.eup %3838  ;;  %v2380_v63 = vsub.f32 %v5534_v43, %v4895_v23  ;;  %v2392_v23 = vmul.f32 1.442695, %v2382_v22  ;;  %v2387_v43 = vsub.f32 %v4781_v40, %v4925_v31  ;;  %v3667_v40 = vld [vmem:[%s5461_s0 + $0x10] sm:$0xff]  }
 0x473   : > { %v5144_v10 = vpop.eup %3840 }
 0x474   : > { %v909_v20 = vpop.permute.xlu1 %908  ;;  %3474 = vmatmul.mubr.bf16.gmra.mrb[12].mxu1 %v1422_v14  ;;  %v5149_v47 = vpop.eup %3842 }
 0x475   : > { %928 = vst.msk [vmem:[#allocation2 + $0x28] sm:$0xff] %vm922_vm1, %v909_v20  ;;  %1736 = vadd.xlane.f32.xlu1 %v5104_v61 }
 0x478   : > { %v1819_v52 = vpop.permute.xlu1 %1818 }
 0x479   : > { %2073 = vadd.xlane.f32.xlu1 %v5111_v44  ;;  %3477 = vmatprep.subr.bf16.mxu0 %v1819_v52 }
 0x47a   : > { %2171 = vrot.lane.b32.xlu0 %v3660_v45, %s3979_s10  ;;  %3478 = vmatpush3.bf16.msra.mxu0 %v1819_v52 }
 0x47c   : > { %v2158_v56 = vpop.permute.xlu1 %2157 }
 0x47d   : > { %3501 = vmatprep.subr.bf16.mxu1 %v2158_v56 }
 0x47e   : > { %3502 = vmatpush3.bf16.msra.mxu1 %v2158_v56  ;;  %v2388_v56 = vmul.f32 1.442695, %v2380_v63  ;;  %v2402_v63 = vmul.f32 1.442695, %v2387_v43 }
 0x488   : > { %v1727_v16 = vpop.xlane.xlu0 %1726 }
 0x48a   : > { %1832 = vrot.lane.b32.xlu1 %v3661_v59, %s3978_s6 }
 0x48c   : > { %v5126_v8 = vpop.xlane.xlu0 %1730 }
 0x48e   : > { %2496 = vrot.lane.b32.xlu1 %v3662_v49, %s3980_s29 }
 0x490   : > { %v5134_v51 = vpop.xlane.xlu0 %1732 }
 0x492   : > { %2835 = vrot.lane.b32.xlu1 %v3663_v34, %s3977_s25  ;;  %v3664_v34 = vld [vmem:[%s5461_s0 + $0x8] sm:$0xff]  }
 0x494   : > { %v2066_v57 = vpop.xlane.xlu0 %2065 }
 0x495   : > { %3844 = vrcp.f32 %v2066_v57 }
 0x498   : > { %v2068_v48 = vpop.xlane.xlu0 %2067 }
 0x499   : > { %3846 = vrcp.f32 %v2068_v48  ;;  %2406 = vadd.xlane.f32.xlu0 %v5141_v9 }
 0x49a   : > { %3848 = vpow2.f32 %v2731_v12  ;;  %v2385_v12 = vsub.f32 %v4771_v38, %v4918_v6  ;;  %v3666_v38 = vld [vmem:[%s5461_s0 + $0x10] sm:$0xff]  }
 0x49b   : > { %3850 = vpow2.f32 %v2733_v62  ;;  %v3665_v62 = vld [vmem:[%s5461_s0 + $0x8] sm:$0xff]  }
 0x49c   : > { %v5146_v42 = vpop.xlane.xlu0 %2069  ;;  %3852 = vpow2.f32 %v2388_v56 }
 0x49d   : > { %2410 = vadd.xlane.f32.xlu0 %v5144_v10  ;;  %3854 = vrcp.f32 %v1727_v16 }
 0x49f   : > { %v3845_v19 = vpop.eup %3844 }
 0x4a0   : > { %v5151_v33 = vpop.xlane.xlu0 %2071  ;;  %v2089_v14 = vmul.f32 %v3845_v19, %v4974_v32  ;;  %v2719_v32 = vsub.f32 %v4753_v46, %v4909_v55 }
 0x4a1   : > { %2745 = vadd.xlane.f32.xlu0 %v5149_v47 }
 0x4a2   : > { %v2727_v4 = vmul.f32 1.442695, %v2719_v32 }
 0x4a3   : > { %v3847_v41 = vpop.eup %3846 }
 0x4a4   : > { %v5156_v28 = vpop.eup %3848  ;;  %v2090_v20 = vmul.f32 %v3847_v41, %v4981_v18  ;;  %v2160_v45 = vpop.permute.xlu0 %2159  ;;  %v2398_v41 = vmul.f32 1.442695, %v2385_v12 }
 0x4a5   : > { %2747 = vadd.xlane.f32.xlu0 %v5156_v28  ;;  %3503 = vmatprep.subr.bf16.mxu1 %v2160_v45  ;;  %v5163_v59 = vpop.eup %3850 }
 0x4a6   : > { %v2097_v52 = vpack.c.bf16 %v2090_v20, %v2089_v14  ;;  %3504 = vmatpush3.bf16.msra.mxu1 %v2160_v45  ;;  %v5168_v60 = vpop.eup %3852  ;;  %v2724_v14 = vsub.f32 %v4786_v37, %v4932_v2  ;;  %v5536_v20 = vld [vmem:[#allocation25_spill] sm:$0xff] }
 0x4a7   : > { %v3855_v49 = vpop.eup %3854  ;;  %v2725_v45 = vsub.f32 %v5536_v20, %v4944_v36 }
 0x4a8   : > { %3517 = vmatprep.mubr.bf16.mxu1 %v2097_v52  ;;  %v1750_v55 = vmul.f32 %v3855_v49, %v4952_v53  ;;  %v2737_v31 = vmul.f32 1.442695, %v2724_v14  ;;  %v5537_v52 = vld [vmem:[#allocation24_spill] sm:$0xff] }
 0x4a9   : > { %2749 = vadd.xlane.f32.xlu0 %v5163_v59  ;;  %v2726_v56 = vsub.f32 %v5537_v52, %v4942_v26  ;;  %v2739_v35 = vmul.f32 1.442695, %v2725_v45  ;;  %v3670_v52 = vld [vmem:[%s5461_s0 + $0x38] sm:$0xff]  }
 0x4ab   : > { %v2741_v22 = vmul.f32 1.442695, %v2726_v56  ;;  %v5542_v56 = vld [vmem:[#allocation28_spill] sm:$0xff] }
 0x4ad   : > { %v1729_v18 = vpop.xlane.xlu1 %1728 }
 0x4ae   : > { %3856 = vrcp.f32 %v1729_v18 }
 0x4af   : > { %3858 = vpow2.f32 %v2392_v23 }
 0x4b0   : > { %3860 = vpow2.f32 %v2727_v4 }
 0x4b1   : > { %v1821_v27 = vpop.permute.xlu1 %1820  ;;  %3862 = vpow2.f32 %v2398_v41 }
 0x4b2   : > { %3479 = vmatprep.subr.bf16.mxu0 %v1821_v27  ;;  %3864 = vpow2.f32 %v2402_v63 }
 0x4b3   : > { %3480 = vmatpush3.bf16.msra.mxu0 %v1821_v27  ;;  %3866 = vpow2.f32 %v2737_v31  ;;  %v5538_v27 = vld [vmem:[#allocation26_spill] sm:$0xff] }
 0x4b4   : > { %3868 = vpow2.f32 %v2739_v35 }
 0x4b5   : > { %v1823_v50 = vpop.permute.xlu1 %1822  ;;  %3870 = vpow2.f32 %v2741_v22 }
 0x4b6   : > { %2404 = vadd.xlane.f32.xlu1 %v5168_v60  ;;  %3481 = vmatprep.subr.bf16.mxu0 %v1823_v50  ;;  %3872 = vrcp.f32 %v5151_v33 }
 0x4b7   : > { %3482 = vmatpush3.bf16.msra.mxu0 %v1823_v50  ;;  %v5539_v50 = vld [vmem:[#allocation21_spill] sm:$0xff]  ;;  %3874 = vrcp.f32 %v5146_v42 }
 0x4b8   : > { %v3857_v25 = vpop.eup %3856  ;;  %v2384_v49 = vsub.f32 %v5539_v50, %v5538_v27 }
 0x4b9   : > { %v5171_v1 = vpop.eup %3858  ;;  %v2162_v46 = vpop.permute.xlu1 %2161  ;;  %v1751_v16 = vmul.f32 %v3857_v25, %v5000_v7 }
 0x4ba   : > { %2408 = vadd.xlane.f32.xlu1 %v5171_v1  ;;  %3505 = vmatprep.subr.bf16.mxu1 %v2162_v46  ;;  %v5179_v5 = vpop.eup %3860  ;;  %v1829_v7 = vpop.permute.xlu0 %1828 }
 0x4bb   : > { %3506 = vmatpush3.bf16.msra.mxu1 %v2162_v46  ;;  %v1758_v0 = vpack.c.bf16 %v1751_v16, %v1750_v55  ;;  %v5205_v37 = vpop.eup %3862 }
 0x4bc   : > { %v5208_v23 = vpop.eup %3864 }
 0x4bd   : > { %v1825_v21 = vpop.permute.xlu1 %1824  ;;  %3493 = vmatprep.mubr.bf16.mxu0 %v1758_v0  ;;  %v5211_v36 = vpop.eup %3866  ;;  %v2396_v0 = vmul.f32 1.442695, %v2384_v49 }
 0x4be   : > { %2743 = vadd.xlane.f32.xlu1 %v5179_v5  ;;  %3483 = vmatprep.subr.bf16.mxu0 %v1825_v21  ;;  %v1831_v48 = vpop.permute.xlu0 %1830  ;;  %v5223_v46 = vpop.eup %3868 }
 0x4bf   : > { %2837 = vrot.lane.b32.xlu0 %v3664_v34, %s3977_s25  ;;  %3484 = vmatpush3.bf16.msra.mxu0 %v1825_v21  ;;  %v5540_v34 = vld [vmem:[#allocation22_spill] sm:$0xff]  ;;  %v5231_v21 = vpop.eup %3870  ;;  %3876 = vpow2.f32 %v2396_v0 }
 0x4c0   : > { %v2386_v33 = vsub.f32 %v5540_v34, %v4927_v3 }
 0x4c1   : > { %v2164_v53 = vpop.permute.xlu1 %2163 }
 0x4c2   : > { %3507 = vmatprep.subr.bf16.mxu1 %v2164_v53  ;;  %v2400_v42 = vmul.f32 1.442695, %v2386_v33 }
 0x4c3   : > { %3508 = vmatpush3.bf16.msra.mxu1 %v2164_v53 }
 0x4c4   : > { %3878 = vpow2.f32 %v2400_v42 }
 0x4c5   : > { %v1827_v57 = vpop.permute.xlu1 %1826 }
 0x4c6   : > { %3485 = vmatprep.subr.bf16.mxu0 %v1827_v57 }
 0x4c7   : > { %3486 = vmatpush3.bf16.msra.mxu0 %v1827_v57 }
 0x4c8   : > { %3487 = vmatprep.subr.bf16.mxu0 %v1829_v7 }
 0x4c9   : > { %v2166_v17 = vpop.permute.xlu1 %2165 }
 0x4ca   : > { %3509 = vmatprep.subr.bf16.mxu1 %v2166_v17 }
 0x4cb   : > { %3488 = vmatpush3.bf16.msra.mxu0 %v1829_v7  ;;  %3510 = vmatpush3.bf16.msra.mxu1 %v2166_v17  ;;  %v5541_v17 = vld [vmem:[#allocation23_spill] sm:$0xff] }
 0x4cc   : > { %3489 = vmatprep.subr.bf16.mxu0 %v1831_v48  ;;  %v2723_v12 = vsub.f32 %v5541_v17, %v4934_v13 }
 0x4cd   : > { %v2168_v19 = vpop.permute.xlu1 %2167 }
 0x4ce   : > { %3511 = vmatprep.subr.bf16.mxu1 %v2168_v19  ;;  %v2735_v43 = vmul.f32 1.442695, %v2723_v12 }
 0x4cf   : > { %2498 = vrot.lane.b32.xlu1 %v3665_v62, %s3980_s29  ;;  %3490 = vmatpush3.bf16.msra.mxu0 %v1831_v48  ;;  %v3873_v62 = vpop.eup %3872 }
 0x4d0   : > { %3512 = vmatpush3.bf16.msra.mxu1 %v2168_v19  ;;  %v3875_v41 = vpop.eup %3874  ;;  %3880 = vpow2.f32 %v2735_v43 }
 0x4d1   : > { %v2170_v6 = vpop.permute.xlu1 %2169  ;;  %v2091_v63 = vmul.f32 %v3875_v41, %v4990_v29  ;;  %3882 = vrcp.f32 %v5134_v51  ;;  %v3668_v29 = vld [vmem:[%s5461_s0 + $0x18] sm:$0xff]  }
 0x4d2   : > { %3513 = vmatprep.subr.bf16.mxu1 %v2170_v6  ;;  %3884 = vrcp.f32 %v5126_v8  ;;  %v3669_v8 = vld [vmem:[%s5461_s0 + $0x30] sm:$0xff]  }
 0x4d3   : > { %2500 = vrot.lane.b32.xlu1 %v3666_v38, %s3980_s29  ;;  %v2092_v38 = vmul.f32 %v3873_v62, %v4995_v58  ;;  %v3671_v62 = vld [vmem:[%s5461_s0 + $0x18] sm:$0xff]  }
 0x4d4   : > { %3514 = vmatpush3.bf16.msra.mxu1 %v2170_v6 }
 0x4d5   : > { %v2098_v14 = vpack.c.bf16 %v2092_v38, %v2091_v63 }
 0x4d7   : > { %2839 = vrot.lane.b32.xlu1 %v3667_v40, %s3977_s25  ;;  %v5246_v40 = vpop.eup %3876 }
 0x4d8   : > { %v5250_v13 = vpop.eup %3878 }
 0x4da   : > { %v5257_v58 = vpop.eup %3880 }
 0x4db   : > { %v3883_v51 = vpop.eup %3882 }
 0x4dc   : > { %v3885_v45 = vpop.eup %3884  ;;  %v1753_v35 = vmul.f32 %v3883_v51, %v5542_v56 }
 0x4dd   : > { %v1735_v2 = vpop.xlane.xlu0 %1734 }
 0x4de   : > { %2414 = vadd.xlane.f32.xlu0 %v5205_v37  ;;  %3886 = vrcp.f32 %v1735_v2 }
 0x4e1   : > { %v1739_v32 = vpop.xlane.xlu0 %1738 }
 0x4e2   : > { %2418 = vadd.xlane.f32.xlu0 %v5208_v23  ;;  %3888 = vrcp.f32 %v1739_v32 }
 0x4e5   : > { %v1741_v18 = vpop.xlane.xlu0 %1740 }
 0x4e6   : > { %2753 = vadd.xlane.f32.xlu0 %v5211_v36  ;;  %v5214_v26 = vpop.f32.mrb[8].mxu0  ;;  %3890 = vrcp.f32 %v1741_v18  ;;  %v5543_v18 = vld [vmem:[#allocation27_spill] sm:$0xff] }
 0x4e7   : > { %v5217_v4 = vpop.f32.mrb[9].mxu0  ;;  %v1752_v27 = vmul.f32 %v3885_v45, %v5543_v18 }
 0x4e8   : > { %v5221_v25 = vpop.f32.mrb[10].mxu0  ;;  %v3887_v2 = vpop.eup %3886 }
 0x4e9   : > { %v5226_v55 = vpop.f32.mrb[11].mxu0  ;;  %v2076_v16 = vpop.xlane.xlu0 %2075  ;;  %v1754_v33 = vmul.f32 %v3887_v2, %v5068_v11 }
 0x4ea   : > { %2755 = vadd.xlane.f32.xlu0 %v5223_v46 }
 0x4ec   : > { %v3889_v32 = vpop.eup %3888 }
 0x4ed   : > { %v2078_v53 = vpop.xlane.xlu0 %2077 }
 0x4ee   : > { %2757 = vadd.xlane.f32.xlu0 %v5231_v21  ;;  %v5234_v7 = vpop.f32.mrb[12].mxu0 }
 0x4ef   : > { %v5236_v57 = vpop.f32.mrb[13].mxu0 }
 0x4f0   : > { %v5240_v48 = vpop.f32.mrb[14].mxu0  ;;  %v3891_v50 = vpop.eup %3890 }
 0x4f1   : > { %v5242_v19 = vpop.f32.mrb[15].mxu0  ;;  %v2080_v3 = vpop.xlane.xlu0 %2079  ;;  %v1757_v41 = vmul.f32 %v3891_v50, %v5080_v39  ;;  %v3672_v39 = vld [vmem:[%s5461_s0 + $0x20] sm:$0xff]  }
 0x4f5   : > { %v2172_v6 = vpop.permute.xlu0 %2171 }
 0x4f6   : > { %3515 = vmatprep.subr.bf16.mxu1 %v2172_v6 }
 0x4f7   : > { %3516 = vmatpush3.bf16.msra.mxu1 %v2172_v6 }
 0x4fa   : > { %3518 = vmatmul.mubr.bf16.vlgmr.msra.gmra.mrb[16].mxu1 %v2098_v14 }
 0x4fb   : > { %2412 = vadd.xlane.f32.xlu1 %v5246_v40 }
 0x4ff   : > { %2416 = vadd.xlane.f32.xlu1 %v5250_v13 }
 0x502   : > { %v1737_v31 = vpop.xlane.xlu1 %1736 }
 0x503   : > { %3892 = vrcp.f32 %v1737_v31  ;;  %2751 = vadd.xlane.f32.xlu1 %v5257_v58 }
 0x504   : > { %3894 = vrcp.f32 %v2080_v3  ;;  %2841 = vrot.lane.b32.xlu0 %v3668_v29, %s3977_s25 }
 0x505   : > { %3896 = vrcp.f32 %v2076_v16  ;;  %v1759_v16 = vpack.c.bf16 %v1753_v35, %v1752_v27 }
 0x506   : > { %3898 = vrcp.f32 %v2078_v53  ;;  %v2074_v20 = vpop.xlane.xlu1 %2073 }
 0x507   : > { %3900 = vrcp.f32 %v2074_v20 }
 0x508   : > { %2508 = vrot.lane.b32.xlu0 %v3669_v8, %s3980_s29 }
 0x50a   : > { %v1833_v22 = vpop.permute.xlu1 %1832 }
 0x50b   : > { %3491 = vmatprep.subr.bf16.mxu0 %v1833_v22 }
 0x50c   : > { %2510 = vrot.lane.b32.xlu0 %v3670_v52, %s3980_s29  ;;  %3492 = vmatpush3.bf16.msra.mxu0 %v1833_v22 }
 0x50d   : > { %v3893_v49 = vpop.eup %3892 }
 0x50e   : > { %v3895_v0 = vpop.eup %3894  ;;  %v2497_v34 = vpop.permute.xlu1 %2496  ;;  %v1755_v53 = vmul.f32 %v3893_v49, %v5104_v61 }
 0x50f   : > { %v3897_v42 = vpop.eup %3896  ;;  %3494 = vmatmul.mubr.bf16.vlgmr.msra.gmra.mrb[16].mxu0 %v1759_v16  ;;  %3525 = vmatprep.subr.bf16.mxu0 %v2497_v34  ;;  %v2096_v11 = vmul.f32 %v3895_v0, %v5092_v54 }
 0x510   : > { %v3899_v17 = vpop.eup %3898  ;;  %1237 = vrot.lane.b32.xlu0 %v5217_v4, %s3980_s29  ;;  %3526 = vmatpush3.bf16.msra.mxu0 %v2497_v34  ;;  %v1760_v12 = vpack.c.bf16 %v1755_v53, %v1754_v33  ;;  %v2094_v38 = vmul.f32 %v3897_v42, %v5084_v30  ;;  %v1756_v4 = vmul.f32 %v3889_v32, %v5075_v15  ;;  %v3673_v15 = vld [vmem:[%s5461_s0 + $0x20] sm:$0xff]   ;;  %v3674_v30 = vld [vmem:[%s5461_s0 + $0x28] sm:$0xff]  }
 0x511   : > { %v3901_v3 = vpop.eup %3900  ;;  %v2095_v6 = vmul.f32 %v3899_v17, %v5087_v24  ;;  %v3675_v24 = vld [vmem:[%s5461_s0 + $0x28] sm:$0xff]  }
 0x512   : > { %v2836_v43 = vpop.permute.xlu1 %2835  ;;  %3497 = vmatprep.mubr.bf16.mxu0 %v1760_v12  ;;  %v2093_v61 = vmul.f32 %v3901_v3, %v5111_v44  ;;  %v1761_v54 = vpack.c.bf16 %v1757_v41, %v1756_v4 }
 0x513   : > { %3549 = vmatprep.subr.bf16.mxu1 %v2836_v43  ;;  %v2100_v44 = vpack.c.bf16 %v2096_v11, %v2095_v6 }
 0x514   : > { %2502 = vrot.lane.b32.xlu1 %v3671_v62, %s3980_s29  ;;  %1241 = vrot.lane.b32.xlu0 %v5214_v26, %s3980_s29  ;;  %v2099_v63 = vpack.c.bf16 %v2094_v38, %v2093_v61  ;;  %v3676_v26 = vld [vmem:[%s5461_s0 + $0x30] sm:$0xff]  }
 0x515   : > { %3550 = vmatpush3.bf16.msra.mxu1 %v2836_v43 }
 0x516   : > { %3521 = vmatprep.mubr.bf16.mxu1 %v2099_v63 }
 0x517   : > { %3498 = vmatmul.mubr.bf16.gmra.mrb[20].mxu0 %v1761_v54  ;;  %3522 = vmatmul.mubr.bf16.gmra.mrb[20].mxu1 %v2100_v44 }
 0x518   : > { %2504 = vrot.lane.b32.xlu1 %v3672_v39, %s3980_s29  ;;  %1245 = vrot.lane.b32.xlu0 %v5236_v57, %s3980_s29 }
 0x51c   : > { %2843 = vrot.lane.b32.xlu1 %v3673_v15, %s3977_s25  ;;  %1249 = vrot.lane.b32.xlu0 %v5234_v7, %s3980_s29  ;;  %v3677_v7 = vld [vmem:[%s5461_s0 + $0x38] sm:$0xff]  }
 0x520   : > { %2506 = vrot.lane.b32.xlu1 %v3674_v30, %s3980_s29 }
 0x524   : > { %2845 = vrot.lane.b32.xlu1 %v3675_v24, %s3977_s25 }
 0x526   : > { %v2407_v57 = vpop.xlane.xlu0 %2406 }
 0x528   : > { %2847 = vrot.lane.b32.xlu1 %v3676_v26, %s3977_s25 }
 0x52a   : > { %v2411_v14 = vpop.xlane.xlu0 %2410 }
 0x52c   : > { %2849 = vrot.lane.b32.xlu1 %v3677_v7, %s3977_s25 }
 0x52e   : > { %v2746_v29 = vpop.xlane.xlu0 %2745 }
 0x52f   : > { %v3471_v31 = vpop.f32.mrb[8].mxu1 }
 0x530   : > { %1239 = vrot.lane.b32.xlu1 %v5226_v55, %s3980_s29  ;;  %v1537_v8 = vpop.f32.mrb[9].mxu1 }
 0x531   : > { %1576 = vrot.lane.b32.xlu0 %v1537_v8, %s3979_s10  ;;  %v3472_v51 = vpop.f32.mrb[10].mxu1 }
 0x532   : > { %v1540_v20 = vpop.f32.mrb[11].mxu1  ;;  %v2748_v45 = vpop.xlane.xlu0 %2747 }
 0x533   : > { %3902 = vrcp.f32 %v2748_v45 }
 0x534   : > { %1243 = vrot.lane.b32.xlu1 %v5221_v25, %s3980_s29 }
 0x535   : > { %1580 = vrot.lane.b32.xlu0 %v3471_v31, %s3979_s10 }
 0x536   : > { %v2750_v52 = vpop.xlane.xlu0 %2749 }
 0x537   : > { %3904 = vrcp.f32 %v2750_v52 }
 0x538   : > { %1247 = vrot.lane.b32.xlu1 %v5242_v19, %s3980_s29  ;;  %3906 = vrcp.f32 %v2407_v57 }
 0x53a   : > { %v2838_v56 = vpop.permute.xlu0 %2837 }
 0x53b   : > { %3551 = vmatprep.subr.bf16.mxu1 %v2838_v56 }
 0x53c   : > { %1251 = vrot.lane.b32.xlu1 %v5240_v48, %s3980_s29  ;;  %3552 = vmatpush3.bf16.msra.mxu1 %v2838_v56 }
 0x53d   : > { %v3903_v55 = vpop.eup %3902 }
 0x53e   : > { %v5327_v25 = vmul.f32 %v3903_v55, %v5156_v28 }
 0x540   : > { %1578 = vrot.lane.b32.xlu1 %v1540_v20, %s3979_s10 }
 0x541   : > { %v3905_v35 = vpop.eup %3904 }
 0x542   : > { %v5330_v2 = vmul.f32 %v3905_v35, %v5163_v59  ;;  %v3907_v59 = vpop.eup %3906 }
 0x543   : > { %v2405_v22 = vpop.xlane.xlu1 %2404  ;;  %v2429_v34 = vmul.f32 %v3907_v59, %v5141_v9 }
 0x544   : > { %3908 = vrcp.f32 %v2405_v22  ;;  %1582 = vrot.lane.b32.xlu1 %v3472_v51, %s3979_s10  ;;  %v2776_v19 = vpack.c.bf16 %v5330_v2, %v5327_v25 }
 0x545   : > { %3910 = vrcp.f32 %v2411_v14 }
 0x547   : > { %v2409_v48 = vpop.xlane.xlu1 %2408  ;;  %v3475_v32 = vpop.f32.mrb[12].mxu1 }
 0x548   : > { %3912 = vrcp.f32 %v2409_v48  ;;  %v1553_v18 = vpop.f32.mrb[13].mxu1 }
 0x549   : > { %1584 = vrot.lane.b32.xlu0 %v1553_v18, %s3979_s10  ;;  %v3476_v27 = vpop.f32.mrb[14].mxu1  ;;  %3914 = vrcp.f32 %v2746_v29 }
 0x54a   : > { %v1556_v28 = vpop.f32.mrb[15].mxu1 }
 0x54b   : > { %v2744_v50 = vpop.xlane.xlu1 %2743  ;;  %1586 = vrot.lane.b32.xlu1 %v1556_v28, %s3979_s10 }
 0x54c   : > { %3916 = vrcp.f32 %v2744_v50 }
 0x54d   : > { %1588 = vrot.lane.b32.xlu0 %v3475_v32, %s3979_s10 }
 0x54e   : > { %v3909_v49 = vpop.eup %3908 }
 0x54f   : > { %v2499_v16 = vpop.permute.xlu1 %2498  ;;  %1590 = vrot.lane.b32.xlu1 %v3476_v27, %s3979_s10  ;;  %v2428_v0 = vmul.f32 %v3909_v49, %v5168_v60  ;;  %v3911_v33 = vpop.eup %3910 }
 0x550   : > { %3527 = vmatprep.subr.bf16.mxu0 %v2499_v16  ;;  %v5342_v17 = vmul.f32 %v3911_v33, %v5144_v10 }
 0x551   : > { %3528 = vmatpush3.bf16.msra.mxu0 %v2499_v16  ;;  %v2436_v53 = vpack.c.bf16 %v2429_v34, %v2428_v0 }
 0x552   : > { %v3913_v42 = vpop.eup %3912 }
 0x553   : > { %v5345_v12 = vmul.f32 %v3913_v42, %v5171_v1  ;;  %v2501_v62 = vpop.permute.xlu1 %2500  ;;  %3541 = vmatprep.mubr.bf16.mxu0 %v2436_v53  ;;  %v3915_v3 = vpop.eup %3914 }
 0x554   : > { %3529 = vmatprep.subr.bf16.mxu0 %v2501_v62  ;;  %v2768_v43 = vmul.f32 %v3915_v3, %v5149_v47 }
 0x555   : > { %3530 = vmatpush3.bf16.msra.mxu0 %v2501_v62  ;;  %v2437_v60 = vpack.c.bf16 %v5342_v17, %v5345_v12 }
 0x556   : > { %v3917_v9 = vpop.eup %3916 }
 0x557   : > { %v2840_v41 = vpop.permute.xlu1 %2839  ;;  %v2767_v11 = vmul.f32 %v3917_v9, %v5179_v5 }
 0x558   : > { %3553 = vmatprep.subr.bf16.mxu1 %v2840_v41 }
 0x559   : > { %3554 = vmatpush3.bf16.msra.mxu1 %v2840_v41  ;;  %v2775_v10 = vpack.c.bf16 %v2768_v43, %v2767_v11 }
 0x55b   : > { %3565 = vmatprep.mubr.bf16.mxu1 %v2775_v10 }
 0x56b   : > { %v2415_v1 = vpop.xlane.xlu0 %2414 }
 0x56f   : > { %v2419_v61 = vpop.xlane.xlu0 %2418 }
 0x573   : > { %v2754_v38 = vpop.xlane.xlu0 %2753 }
 0x577   : > { %v2756_v4 = vpop.xlane.xlu0 %2755 }
 0x57b   : > { %v2758_v6 = vpop.xlane.xlu0 %2757 }
 0x57f   : > { %v2842_v63 = vpop.permute.xlu0 %2841 }
 0x580   : > { %3555 = vmatprep.subr.bf16.mxu1 %v2842_v63 }
 0x581   : > { %3556 = vmatpush3.bf16.msra.mxu1 %v2842_v63 }
 0x583   : > { %v2509_v39 = vpop.permute.xlu0 %2508 }
 0x587   : > { %v2511_v54 = vpop.permute.xlu0 %2510 }
 0x588   : > { %v2413_v44 = vpop.xlane.xlu1 %2412 }
 0x589   : > { %3918 = vrcp.f32 %v2413_v44 }
 0x58a   : > { %3920 = vrcp.f32 %v2415_v1 }
 0x58b   : > { %v1238_v15 = vpop.permute.xlu0 %1237 }
 0x58c   : > { %1262 = vst.msk [vmem:[#allocation2] sm:$0xff] %vm1261_vm2, %v1238_v15  ;;  %v2417_v47 = vpop.xlane.xlu1 %2416 }
 0x58f   : > { %v1242_v5 = vpop.permute.xlu0 %1241 }
 0x590   : > { %1264 = vst.msk [vmem:[#allocation2 + $0x10] sm:$0xff] %vm1261_vm2, %v1242_v5  ;;  %v2752_v30 = vpop.xlane.xlu1 %2751 }
 0x591   : > { %3922 = vrcp.f32 %v2752_v30 }
 0x592   : > { %3924 = vrcp.f32 %v2754_v38 }
 0x593   : > { %v1246_v24 = vpop.permute.xlu0 %1245  ;;  %3926 = vrcp.f32 %v2417_v47  ;;  %v3919_v51 = vpop.eup %3918 }
 0x594   : > { %1266 = vst.msk [vmem:[#allocation2 + $0x20] sm:$0xff] %vm1261_vm2, %v1246_v24  ;;  %v2503_v26 = vpop.permute.xlu1 %2502  ;;  %3928 = vrcp.f32 %v2419_v61  ;;  %v3921_v20 = vpop.eup %3920  ;;  %v2432_v56 = vmul.f32 %v3919_v51, %v5246_v40 }
 0x595   : > { %3531 = vmatprep.subr.bf16.mxu0 %v2503_v26  ;;  %3930 = vrcp.f32 %v2758_v6  ;;  %v2433_v35 = vmul.f32 %v3921_v20, %v5205_v37 }
 0x596   : > { %3532 = vmatpush3.bf16.msra.mxu0 %v2503_v26  ;;  %3932 = vrcp.f32 %v2756_v4 }
 0x597   : > { %v1250_v57 = vpop.permute.xlu0 %1249  ;;  %v2438_v18 = vpack.c.bf16 %v2433_v35, %v2432_v56 }
 0x598   : > { %1268 = vst.msk [vmem:[#allocation2 + $0x30] sm:$0xff] %vm1261_vm2, %v1250_v57  ;;  %v2505_v7 = vpop.permute.xlu1 %2504 }
 0x599   : > { %3533 = vmatprep.subr.bf16.mxu0 %v2505_v7 }
 0x59a   : > { %3534 = vmatpush3.bf16.msra.mxu0 %v2505_v7 }
 0x59b   : > { %v3923_v55 = vpop.eup %3922 }
 0x59c   : > { %v2844_v14 = vpop.permute.xlu1 %2843  ;;  %v3925_v22 = vpop.eup %3924  ;;  %v2771_v27 = vmul.f32 %v3923_v55, %v5257_v58 }
 0x59d   : > { %3557 = vmatprep.subr.bf16.mxu1 %v2844_v14  ;;  %v3927_v48 = vpop.eup %3926  ;;  %v2772_v40 = vmul.f32 %v3925_v22, %v5211_v36 }
 0x59e   : > { %3558 = vmatpush3.bf16.msra.mxu1 %v2844_v14  ;;  %v3929_v28 = vpop.eup %3928  ;;  %v2434_v50 = vmul.f32 %v3927_v48, %v5250_v13 }
 0x59f   : > { %v3931_v59 = vpop.eup %3930  ;;  %v2777_v49 = vpack.c.bf16 %v2772_v40, %v2771_v27  ;;  %v2435_v58 = vmul.f32 %v3929_v28, %v5208_v23 }
 0x5a0   : > { %v2507_v29 = vpop.permute.xlu1 %2506  ;;  %v3933_v16 = vpop.eup %3932  ;;  %v2774_v34 = vmul.f32 %v3931_v59, %v5231_v21 }
 0x5a1   : > { %3535 = vmatprep.subr.bf16.mxu0 %v2507_v29  ;;  %v2439_v0 = vpack.c.bf16 %v2435_v58, %v2434_v50  ;;  %v2773_v36 = vmul.f32 %v3933_v16, %v5223_v46 }
 0x5a2   : > { %3536 = vmatpush3.bf16.msra.mxu0 %v2507_v29 }
 0x5a3   : > { %v1577_v31 = vpop.permute.xlu0 %1576  ;;  %3537 = vmatprep.subr.bf16.mxu0 %v2509_v39  ;;  %v2778_v13 = vpack.c.bf16 %v2774_v34, %v2773_v36 }
 0x5a4   : > { %1601 = vst.msk [vmem:[#allocation2] sm:$0xff] %vm1600_vm3, %v1577_v31  ;;  %v2846_v8 = vpop.permute.xlu1 %2845 }
 0x5a5   : > { %3559 = vmatprep.subr.bf16.mxu1 %v2846_v8 }
 0x5a6   : > { %3538 = vmatpush3.bf16.msra.mxu0 %v2509_v39  ;;  %3560 = vmatpush3.bf16.msra.mxu1 %v2846_v8 }
 0x5a7   : > { %v1581_v45 = vpop.permute.xlu0 %1580  ;;  %3539 = vmatprep.subr.bf16.mxu0 %v2511_v54 }
 0x5a8   : > { %1603 = vst.msk [vmem:[#allocation2 + $0x10] sm:$0xff] %vm1600_vm3, %v1581_v45  ;;  %v2848_v52 = vpop.permute.xlu1 %2847 }
 0x5a9   : > { %3561 = vmatprep.subr.bf16.mxu1 %v2848_v52 }
 0x5aa   : > { %3540 = vmatpush3.bf16.msra.mxu0 %v2511_v54  ;;  %3562 = vmatpush3.bf16.msra.mxu1 %v2848_v52 }
 0x5ac   : > { %v2850_v32 = vpop.permute.xlu1 %2849 }
 0x5ad   : > { %3542 = vmatmul.mubr.bf16.vlgmr.msra.gmra.mrb[24].mxu0 %v2437_v60  ;;  %3563 = vmatprep.subr.bf16.mxu1 %v2850_v32 }
 0x5ae   : > { %3545 = vmatprep.mubr.bf16.mxu0 %v2438_v18  ;;  %3564 = vmatpush3.bf16.msra.mxu1 %v2850_v32 }
 0x5b0   : > { %v1240_v37 = vpop.permute.xlu1 %1239 }
 0x5b1   : > { %1263 = vst.msk [vmem:[#allocation2 + $0x8] sm:$0xff] %vm1261_vm2, %v1240_v37  ;;  %3566 = vmatmul.mubr.bf16.vlgmr.msra.gmra.mrb[24].mxu1 %v2776_v19 }
 0x5b2   : > { %3569 = vmatprep.mubr.bf16.mxu1 %v2777_v49 }
 0x5b4   : > { %v1244_v33 = vpop.permute.xlu1 %1243 }
 0x5b5   : > { %1265 = vst.msk [vmem:[#allocation2 + $0x18] sm:$0xff] %vm1261_vm2, %v1244_v33  ;;  %3546 = vmatmul.mubr.bf16.gmra.mrb[28].mxu0 %v2439_v0 }
 0x5b8   : > { %v1248_v53 = vpop.permute.xlu1 %1247 }
 0x5b9   : > { %1267 = vst.msk [vmem:[#allocation2 + $0x28] sm:$0xff] %vm1261_vm2, %v1248_v53  ;;  %3570 = vmatmul.mubr.bf16.gmra.mrb[28].mxu1 %v2778_v13 }
 0x5bb   : > { %v1585_v25 = vpop.permute.xlu0 %1584 }
 0x5bc   : > { %1605 = vst.msk [vmem:[#allocation2 + $0x20] sm:$0xff] %vm1600_vm3, %v1585_v25  ;;  %v1252_v23 = vpop.permute.xlu1 %1251 }
 0x5bd   : > { %1269 = vst.msk [vmem:[#allocation2 + $0x38] sm:$0xff] %vm1261_vm2, %v1252_v23 }
 0x5bf   : > { %v1589_v2 = vpop.permute.xlu0 %1588 }
 0x5c0   : > { %1607 = vst.msk [vmem:[#allocation2 + $0x30] sm:$0xff] %vm1600_vm3, %v1589_v2  ;;  %v1579_v21 = vpop.permute.xlu1 %1578  ;;  %v3235_v2 = vld [vmem:[%s5465_s4] ss:$0 sm:$0xff] }
 0x5c1   : > { %1602 = vst.msk [vmem:[#allocation2 + $0x8] sm:$0xff] %vm1600_vm3, %v1579_v21 }
 0x5c4   : > { %v1583_v19 = vpop.permute.xlu1 %1582 }
 0x5c5   : > { %1604 = vst.msk [vmem:[#allocation2 + $0x18] sm:$0xff] %vm1600_vm3, %v1583_v19 }
 0x5c8   : > { %v1587_v46 = vpop.permute.xlu1 %1586 }
 0x5c9   : > { %1606 = vst.msk [vmem:[#allocation2 + $0x28] sm:$0xff] %vm1600_vm3, %v1587_v46 }
 0x5cc   : > { %v1591_v42 = vpop.permute.xlu1 %1590 }
 0x5cd   : > { %1608 = vst.msk [vmem:[#allocation2 + $0x38] sm:$0xff] %vm1600_vm3, %v1591_v42  ;;  %v3519_v17 = vpop.f32.mrb[16].mxu1 }
 0x5ce   : > { %v2215_v12 = vpop.f32.mrb[17].mxu1 }
 0x5cf   : > { %v3520_v62 = vpop.f32.mrb[18].mxu1 }
 0x5d0   : > { %v2218_v3 = vpop.f32.mrb[19].mxu1 }
 0x5e2   : > { %v3495_v60 = vpop.f32.mrb[16].mxu0 }
 0x5e3   : > { %v1876_v9 = vpop.f32.mrb[17].mxu0 }
 0x5e4   : > { %1915 = vrot.lane.b32.xlu0 %v1876_v9, %s3978_s6  ;;  %v3496_v41 = vpop.f32.mrb[18].mxu0 }
 0x5e5   : > { %v1879_v11 = vpop.f32.mrb[19].mxu0 }
 0x5e6   : > { %1917 = vrot.lane.b32.xlu1 %v1879_v11, %s3978_s6 }
 0x5e8   : > { %1919 = vrot.lane.b32.xlu0 %v3495_v60, %s3978_s6 }
 0x5ea   : > { %1921 = vrot.lane.b32.xlu1 %v3496_v41, %s3978_s6  ;;  %v3499_v43 = vpop.f32.mrb[20].mxu0  ;;  %v3523_v10 = vpop.f32.mrb[20].mxu1 }
 0x5eb   : > { %v1892_v1 = vpop.f32.mrb[21].mxu0  ;;  %v2231_v61 = vpop.f32.mrb[21].mxu1 }
 0x5ec   : > { %1923 = vrot.lane.b32.xlu0 %v1892_v1, %s3978_s6  ;;  %v3500_v38 = vpop.f32.mrb[22].mxu0  ;;  %v3524_v4 = vpop.f32.mrb[22].mxu1 }
 0x5ed   : > { %v1895_v6 = vpop.f32.mrb[23].mxu0  ;;  %v2234_v63 = vpop.f32.mrb[23].mxu1 }
 0x5ee   : > { %1925 = vrot.lane.b32.xlu1 %v1895_v6, %s3978_s6 }
 0x5f0   : > { %1927 = vrot.lane.b32.xlu0 %v3499_v43, %s3978_s6 }
 0x5f2   : > { %1929 = vrot.lane.b32.xlu1 %v3500_v38, %s3978_s6 }
 0x5f4   : > { %2254 = vrot.lane.b32.xlu0 %v2215_v12, %s3976_s7 }
 0x5f6   : > { %2256 = vrot.lane.b32.xlu1 %v2218_v3, %s3976_s7 }
 0x5f8   : > { %2258 = vrot.lane.b32.xlu0 %v3519_v17, %s3976_s7 }
 0x5fa   : > { %2260 = vrot.lane.b32.xlu1 %v3520_v62, %s3976_s7 }
 0x5fc   : > { %2262 = vrot.lane.b32.xlu0 %v2231_v61, %s3976_s7 }
 0x5fe   : > { %2264 = vrot.lane.b32.xlu1 %v2234_v63, %s3976_s7 }
 0x600   : > { %2266 = vrot.lane.b32.xlu0 %v3523_v10, %s3976_s7 }
 0x602   : > { %2268 = vrot.lane.b32.xlu1 %v3524_v4, %s3976_s7  ;;  %s3154_s7 = sshll.u32 %s5545_s20, 2 }
 0x603   : > { %s5452_s10 = scalar_lea.vmem %s5466_s5, %s3154_s7 }
 0x656   : > { %v1916_v39 = vpop.permute.xlu0 %1915 }
 0x657   : > { %1940 = vst.msk [vmem:[#allocation2] sm:$0xff] %vm1939_vm4, %v1916_v39 }
 0x658   : > { %v1918_v54 = vpop.permute.xlu1 %1917 }
 0x659   : > { %1941 = vst.msk [vmem:[#allocation2 + $0x8] sm:$0xff] %vm1939_vm4, %v1918_v54 }
 0x65a   : > { %v1920_v44 = vpop.permute.xlu0 %1919 }
 0x65b   : > { %1942 = vst.msk [vmem:[#allocation2 + $0x10] sm:$0xff] %vm1939_vm4, %v1920_v44 }
 0x65c   : > { %v1922_v15 = vpop.permute.xlu1 %1921 }
 0x65d   : > { %1943 = vst.msk [vmem:[#allocation2 + $0x18] sm:$0xff] %vm1939_vm4, %v1922_v15 }
 0x65e   : > { %v1924_v47 = vpop.permute.xlu0 %1923 }
 0x65f   : > { %1944 = vst.msk [vmem:[#allocation2 + $0x20] sm:$0xff] %vm1939_vm4, %v1924_v47 }
 0x660   : > { %v1926_v5 = vpop.permute.xlu1 %1925 }
 0x661   : > { %1945 = vst.msk [vmem:[#allocation2 + $0x28] sm:$0xff] %vm1939_vm4, %v1926_v5 }
 0x662   : > { %v1928_v30 = vpop.permute.xlu0 %1927 }
 0x663   : > { %1946 = vst.msk [vmem:[#allocation2 + $0x30] sm:$0xff] %vm1939_vm4, %v1928_v30 }
 0x664   : > { %v1930_v24 = vpop.permute.xlu1 %1929 }
 0x665   : > { %1947 = vst.msk [vmem:[#allocation2 + $0x38] sm:$0xff] %vm1939_vm4, %v1930_v24 }
 0x666   : > { %v2255_v26 = vpop.permute.xlu0 %2254 }
 0x667   : > { %2279 = vst.msk [vmem:[#allocation2] sm:$0xff] %vm2278_vm5, %v2255_v26 }
 0x668   : > { %v2257_v57 = vpop.permute.xlu1 %2256 }
 0x669   : > { %2280 = vst.msk [vmem:[#allocation2 + $0x8] sm:$0xff] %vm2278_vm5, %v2257_v57 }
 0x66a   : > { %v2259_v7 = vpop.permute.xlu0 %2258 }
 0x66b   : > { %2281 = vst.msk [vmem:[#allocation2 + $0x10] sm:$0xff] %vm2278_vm5, %v2259_v7 }
 0x66c   : > { %v2261_v14 = vpop.permute.xlu1 %2260 }
 0x66d   : > { %2282 = vst.msk [vmem:[#allocation2 + $0x18] sm:$0xff] %vm2278_vm5, %v2261_v14 }
 0x66e   : > { %v2263_v29 = vpop.permute.xlu0 %2262 }
 0x66f   : > { %2283 = vst.msk [vmem:[#allocation2 + $0x20] sm:$0xff] %vm2278_vm5, %v2263_v29 }
 0x670   : > { %v2265_v31 = vpop.permute.xlu1 %2264 }
 0x671   : > { %2284 = vst.msk [vmem:[#allocation2 + $0x28] sm:$0xff] %vm2278_vm5, %v2265_v31 }
 0x672   : > { %v2267_v8 = vpop.permute.xlu0 %2266 }
 0x673   : > { %2285 = vst.msk [vmem:[#allocation2 + $0x30] sm:$0xff] %vm2278_vm5, %v2267_v8 }
 0x674   : > { %v2269_v51 = vpop.permute.xlu1 %2268 }
 0x675   : > { %2286 = vst.msk [vmem:[#allocation2 + $0x38] sm:$0xff] %vm2278_vm5, %v2269_v51 }
 0x680   : > { %v3543_v20 = vpop.f32.mrb[24].mxu0 }
 0x681   : > { %v2554_v45 = vpop.f32.mrb[25].mxu0 }
 0x682   : > { %2593 = vrot.lane.b32.xlu0 %v2554_v45, %s3971_s28  ;;  %v3544_v52 = vpop.f32.mrb[26].mxu0 }
 0x683   : > { %v2557_v56 = vpop.f32.mrb[27].mxu0 }
 0x684   : > { %v3567_v55 = vpop.f32.mrb[24].mxu1  ;;  %2595 = vrot.lane.b32.xlu1 %v2557_v56, %s3971_s28 }
 0x685   : > { %v2893_v35 = vpop.f32.mrb[25].mxu1 }
 0x686   : > { %v3568_v22 = vpop.f32.mrb[26].mxu1  ;;  %2597 = vrot.lane.b32.xlu0 %v3543_v20, %s3971_s28 }
 0x687   : > { %v2896_v48 = vpop.f32.mrb[27].mxu1 }
 0x688   : > { %2599 = vrot.lane.b32.xlu1 %v3544_v52, %s3971_s28  ;;  %v3547_v32 = vpop.f32.mrb[28].mxu0 }
 0x689   : > { %v2570_v18 = vpop.f32.mrb[29].mxu0 }
 0x68a   : > { %2601 = vrot.lane.b32.xlu0 %v2570_v18, %s3971_s28  ;;  %v3548_v27 = vpop.f32.mrb[30].mxu0 }
 0x68b   : > { %v2573_v28 = vpop.f32.mrb[31].mxu0 }
 0x68c   : > { %v3571_v40 = vpop.f32.mrb[28].mxu1  ;;  %2603 = vrot.lane.b32.xlu1 %v2573_v28, %s3971_s28 }
 0x68d   : > { %v2909_v50 = vpop.f32.mrb[29].mxu1 }
 0x68e   : > { %v3572_v59 = vpop.f32.mrb[30].mxu1  ;;  %2605 = vrot.lane.b32.xlu0 %v3547_v32, %s3971_s28 }
 0x68f   : > { %v2912_v37 = vpop.f32.mrb[31].mxu1 }
 0x690   : > { %2607 = vrot.lane.b32.xlu1 %v3548_v27, %s3971_s28 }
 0x692   : > { %2932 = vrot.lane.b32.xlu0 %v2893_v35, %s3969_s11 }
 0x694   : > { %2934 = vrot.lane.b32.xlu1 %v2896_v48, %s3969_s11 }
 0x696   : > { %2936 = vrot.lane.b32.xlu0 %v3567_v55, %s3969_s11 }
 0x698   : > { %2938 = vrot.lane.b32.xlu1 %v3568_v22, %s3969_s11 }
 0x69a   : > { %2940 = vrot.lane.b32.xlu0 %v2909_v50, %s3969_s11 }
 0x69c   : > { %2942 = vrot.lane.b32.xlu1 %v2912_v37, %s3969_s11 }
 0x69e   : > { %2944 = vrot.lane.b32.xlu0 %v3571_v40, %s3969_s11 }
 0x6a0   : > { %2946 = vrot.lane.b32.xlu1 %v3572_v59, %s3969_s11 }
 0x6f4   : > { %v2594_v49 = vpop.permute.xlu0 %2593 }
 0x6f5   : > { %2618 = vst.msk [vmem:[#allocation2] sm:$0xff] %vm2617_vm6, %v2594_v49 }
 0x6f6   : > { %v2596_v58 = vpop.permute.xlu1 %2595 }
 0x6f7   : > { %2619 = vst.msk [vmem:[#allocation2 + $0x8] sm:$0xff] %vm2617_vm6, %v2596_v58 }
 0x6f8   : > { %v2598_v16 = vpop.permute.xlu0 %2597 }
 0x6f9   : > { %2620 = vst.msk [vmem:[#allocation2 + $0x10] sm:$0xff] %vm2617_vm6, %v2598_v16 }
 0x6fa   : > { %v2600_v0 = vpop.permute.xlu1 %2599 }
 0x6fb   : > { %2621 = vst.msk [vmem:[#allocation2 + $0x18] sm:$0xff] %vm2617_vm6, %v2600_v0 }
 0x6fc   : > { %v2602_v34 = vpop.permute.xlu0 %2601 }
 0x6fd   : > { %2622 = vst.msk [vmem:[#allocation2 + $0x20] sm:$0xff] %vm2617_vm6, %v2602_v34 }
 0x6fe   : > { %v2604_v33 = vpop.permute.xlu1 %2603 }
 0x6ff   : > { %2623 = vst.msk [vmem:[#allocation2 + $0x28] sm:$0xff] %vm2617_vm6, %v2604_v33 }
 0x700   : > { %v2606_v36 = vpop.permute.xlu0 %2605 }
 0x701   : > { %2624 = vst.msk [vmem:[#allocation2 + $0x30] sm:$0xff] %vm2617_vm6, %v2606_v36 }
 0x702   : > { %v2608_v13 = vpop.permute.xlu1 %2607 }
 0x703   : > { %2625 = vst.msk [vmem:[#allocation2 + $0x38] sm:$0xff] %vm2617_vm6, %v2608_v13 }
 0x704   : > { %v2933_v53 = vpop.permute.xlu0 %2932 }
 0x705   : > { %2957 = vst.msk [vmem:[#allocation2] sm:$0xff] %vm2956_vm7, %v2933_v53 }
 0x706   : > { %v2935_v25 = vpop.permute.xlu1 %2934 }
 0x707   : > { %2958 = vst.msk [vmem:[#allocation2 + $0x8] sm:$0xff] %vm2956_vm7, %v2935_v25 }
 0x708   : > { %v2937_v23 = vpop.permute.xlu0 %2936 }
 0x709   : > { %2959 = vst.msk [vmem:[#allocation2 + $0x10] sm:$0xff] %vm2956_vm7, %v2937_v23 }
 0x70a   : > { %v2939_v21 = vpop.permute.xlu1 %2938 }
 0x70b   : > { %2960 = vst.msk [vmem:[#allocation2 + $0x18] sm:$0xff] %vm2956_vm7, %v2939_v21 }
 0x70c   : > { %v2965_v19 = vld [vmem:[#allocation2] sm:$0xff]  ;;  %v2941_v46 = vpop.permute.xlu0 %2940 }
 0x70d   : > { %v2980_v42 = vadd.f32 %v3235_v2, %v2965_v19  ;;  %2961 = vst.msk [vmem:[#allocation2 + $0x20] sm:$0xff] %vm2956_vm7, %v2941_v46 }
 0x70e   : > { %v2966_v17 = vld [vmem:[#allocation2 + $0x8] sm:$0xff]  ;;  %v2943_v12 = vpop.permute.xlu1 %2942 }
 0x70f   : > { %v2996_v62 = vmin.f32 %v2980_v42, 0.0  ;;  %v2981_v3 = vadd.f32 %v3235_v2, %v2966_v17  ;;  %2962 = vst.msk [vmem:[#allocation2 + $0x28] sm:$0xff] %vm2956_vm7, %v2943_v12  ;;  %v2988_v56 = vmax.f32 %v2980_v42, 0.0 }
 0x710   : > { %v2967_v60 = vld [vmem:[#allocation2 + $0x10] sm:$0xff]  ;;  %v2945_v9 = vpop.permute.xlu0 %2944 }
 0x711   : > { %v3004_v41 = vmul.f32 1.442695, %v2996_v62  ;;  %v2997_v11 = vmin.f32 %v2981_v3, 0.0  ;;  %v2982_v43 = vadd.f32 %v3235_v2, %v2967_v60  ;;  %2963 = vst.msk [vmem:[#allocation2 + $0x30] sm:$0xff] %vm2956_vm7, %v2945_v9  ;;  %v2989_v55 = vmax.f32 %v2981_v3, 0.0 }
 0x712   : > { %v2968_v10 = vld [vmem:[#allocation2 + $0x18] sm:$0xff]  ;;  %v2947_v1 = vpop.permute.xlu1 %2946 }
 0x713   : > { %3934 = vpow2.f32 %v3004_v41  ;;  %v3006_v61 = vmul.f32 1.442695, %v2997_v11  ;;  %v2998_v38 = vmin.f32 %v2982_v43, 0.0  ;;  %2964 = vst.msk [vmem:[#allocation2 + $0x38] sm:$0xff] %vm2956_vm7, %v2947_v1  ;;  %v2983_v4 = vadd.f32 %v3235_v2, %v2968_v10 }
 0x714   : > { %v2969_v6 = vld [vmem:[#allocation2 + $0x20] sm:$0xff]  ;;  %v2990_v59 = vmax.f32 %v2982_v43, 0.0 }
 0x715   : > { %3936 = vpow2.f32 %v3006_v61  ;;  %v3008_v63 = vmul.f32 1.442695, %v2998_v38  ;;  %v2984_v39 = vadd.f32 %v3235_v2, %v2969_v6  ;;  %v2999_v54 = vmin.f32 %v2983_v4, 0.0 }
 0x716   : > { %v2970_v44 = vld [vmem:[#allocation2 + $0x28] sm:$0xff]  ;;  %v2991_v37 = vmax.f32 %v2983_v4, 0.0 }
 0x717   : > { %3938 = vpow2.f32 %v3008_v63  ;;  %v3000_v15 = vmin.f32 %v2984_v39, 0.0  ;;  %v2985_v47 = vadd.f32 %v3235_v2, %v2970_v44  ;;  %v3010_v5 = vmul.f32 1.442695, %v2999_v54 }
 0x718   : > { %v2971_v30 = vld [vmem:[#allocation2 + $0x30] sm:$0xff]  ;;  %v2992_v33 = vmax.f32 %v2984_v39, 0.0 }
 0x719   : > { %v3012_v24 = vmul.f32 1.442695, %v3000_v15  ;;  %v3001_v26 = vmin.f32 %v2985_v47, 0.0  ;;  %v2986_v57 = vadd.f32 %v3235_v2, %v2971_v30  ;;  %3940 = vpow2.f32 %v3010_v5 }
 0x71a   : > { %v2972_v7 = vld [vmem:[#allocation2 + $0x38] sm:$0xff]  ;;  %v2993_v36 = vmax.f32 %v2985_v47, 0.0 }
 0x71b   : > { %3942 = vpow2.f32 %v3012_v24  ;;  %v3014_v14 = vmul.f32 1.442695, %v3001_v26  ;;  %v3002_v29 = vmin.f32 %v2986_v57, 0.0  ;;  %v2987_v31 = vadd.f32 %v3235_v2, %v2972_v7 }
 0x71c   : > { %v2994_v42 = vmax.f32 %v2986_v57, 0.0 }
 0x71d   : > { %v3935_v8 = vpop.eup %3934  ;;  %3944 = vpow2.f32 %v3014_v14  ;;  %v3016_v51 = vmul.f32 1.442695, %v3002_v29  ;;  %v3003_v45 = vmin.f32 %v2987_v31, 0.0  ;;  %v2995_v17 = vmax.f32 %v2987_v31, 0.0 }
 0x71e   : > { %v3236_v20 = vadd.f32 -1.0, %v3935_v8 }
 0x71f   : > { %v3937_v52 = vpop.eup %3936  ;;  %3946 = vpow2.f32 %v3016_v51  ;;  %v3018_v22 = vmul.f32 1.442695, %v3003_v45 }
 0x720   : > { %v3237_v35 = vadd.f32 -1.0, %v3937_v52  ;;  %v3028_v32 = vadd.f32 %v3236_v20, %v2988_v56 }
 0x721   : > { %v3939_v48 = vpop.eup %3938  ;;  %3948 = vpow2.f32 %v3018_v22 }
 0x722   : > { %v3029_v18 = vadd.f32 %v3237_v35, %v2989_v55  ;;  %v3238_v27 = vadd.f32 -1.0, %v3939_v48 }
 0x723   : > { %v3941_v28 = vpop.eup %3940 }
 0x724   : > { %v3265_v40 = vpack.c.bf16 %v3029_v18, %v3028_v32  ;;  %v3239_v49 = vadd.f32 -1.0, %v3941_v28  ;;  %v3030_v0 = vadd.f32 %v3238_v27, %v2990_v59 }
 0x725   : > { %v3943_v50 = vpop.eup %3942 }
 0x726   : > { %3266 = vst [vmem:[%s5452_s10] sm:$0xff] %v3265_v40   ;;  %v3240_v58 = vadd.f32 -1.0, %v3943_v50  ;;  %v3031_v34 = vadd.f32 %v3239_v49, %v2991_v37 }
 0x727   : > { %v3945_v16 = vpop.eup %3944 }
 0x728   : > { %v3241_v13 = vadd.f32 -1.0, %v3945_v16  ;;  %v3270_v25 = vpack.c.bf16 %v3031_v34, %v3030_v0  ;;  %v3032_v23 = vadd.f32 %v3240_v58, %v2992_v33 }
 0x729   : > { %v3947_v53 = vpop.eup %3946 }
 0x72a   : > { %v3033_v2 = vadd.f32 %v3241_v13, %v2993_v36  ;;  %3282 = vst [vmem:[%s5452_s10 + $0x8] sm:$0xff] %v3270_v25   ;;  %v3242_v21 = vadd.f32 -1.0, %v3947_v53 }
 0x72b   : > { %v3949_v19 = vpop.eup %3948 }
 0x72c   : > { %v3275_v46 = vpack.c.bf16 %v3033_v2, %v3032_v23  ;;  %v3243_v12 = vadd.f32 -1.0, %v3949_v19  ;;  %v3034_v62 = vadd.f32 %v3242_v21, %v2994_v42 }
 0x72e   : > { %3283 = vst [vmem:[%s5452_s10 + $0x10] sm:$0xff] %v3275_v46   ;;  %v3035_v3 = vadd.f32 %v3243_v12, %v2995_v17 }
 0x730   : > { %v3280_v60 = vpack.c.bf16 %v3035_v3, %v3034_v62 }
 0x732   : > { %3284 = vst [vmem:[%s5452_s10 + $0x18] sm:$0xff] %v3280_v60  }
 0x733 PF: > { %s15_s18 = sadd.s32 1, %s3964_s18  }
 0x734   : > { %p12_p5 = scmp.ge.s32.totalorder %s15_s18, 4  }
 0x736   :  { %14 = sbr.rel (!%p12_p5) target bundleno = 1 (0x1), region = 73 }

// kernel: gat_forward.4
= control target key start
LH: loop header
LB: loop body
LE: loop exit
PB: predicated region body
PF: predicated region fallthrough
CT: control target
= control target key end

     0   :  { %s1167_s21 = smov 0   ;;  %s1286_s0 = inlined_call_operand.vmem [shape: bf16[128,128], index: 0, kind: input, shape index: {}]   ;;  %s1287_s1 = inlined_call_operand.vmem [shape: bf16[128,128], index: 1, kind: input, shape index: {}]   ;;  %s1288_s2 = inlined_call_operand.vmem [shape: bf16[128,128], index: 2, kind: input, shape index: {}]   ;;  %s1289_s3 = inlined_call_operand.vmem [shape: bf16[128,128], index: 3, kind: input, shape index: {}]   ;;  %s1290_s4 = inlined_call_operand.vmem [shape: bf16[128,128], index: 4, kind: output, shape index: {0}]   ;;  %s1291_s5 = inlined_call_operand.vmem [shape: f32[128,128], index: 5, kind: output, shape index: {1}]   ;;  %s1292_s6 = inlined_call_operand.vmem [shape: f32[128,128], index: 6, kind: output, shape index: {2}]  }
   0x1 LB: > { %s882_s22 = sadd.s32 4294967295, %s1130_s21   ;;  %p886_p0 = scmp.ge.s32.totalorder %s1130_s21, 1  ;;  %s1130_s21 = sphi %s1167_s21, %s17_s21  }
   0x2   : > { %p218_p1 = scmp.lt.s32.totalorder %s1130_s21, 3 }
   0x4   : > { %p219_p2 = pnand %p886_p0, %p218_p1 }
   0x5   : > { %v1096_v0 = vld [vmem:[%s1287_s1] sm:$0xff] (!%p219_p2)   ;;  %s887_s25 = sshll.u32 (!%p219_p2), %s882_s22, 3  ;;  %v1097_v1 = vld [vmem:[%s1287_s1 + $0x8] sm:$0xff] (!%p219_p2)   ;;  %v1098_v2 = vld [vmem:[%s1287_s1 + $0x10] sm:$0xff] (!%p219_p2)  }
   0x6   : > { %222 = sbr.rel (%p219_p2) target bundleno = 504 (0x1f8), region = 36  ;;  %p259_p3 = scmp.lt.s32.totalorder (!%p219_p2), %s887_s25, 15  ;;  %1000 = vmatprep.subr.bf16.mxu0 (!%p219_p2), %v1096_v0  ;;  %v1099_v3 = vld [vmem:[%s1287_s1 + $0x18] sm:$0xff] (!%p219_p2)   ;;  %v1100_v5 = vld [vmem:[%s1287_s1 + $0x20] sm:$0xff] (!%p219_p2)   ;;  %v1110_v7 = vld [vmem:[%s1288_s2 + $0x8] sm:$0xff] (!%p219_p2)  }
   0x7   : > { %1001 = vmatpush3.bf16.msra.mxu0 (!%p219_p2), %v1096_v0  ;;  %v1108_v6 = vld [vmem:[%s1288_s2] sm:$0xff] (!%p219_p2)   ;;  %v1101_v8 = vld [vmem:[%s1287_s1 + $0x28] sm:$0xff] (!%p219_p2)   ;;  %v1112_v9 = vld [vmem:[%s1288_s2 + $0x10] sm:$0xff] (!%p219_p2)  }
   0x8   : > { %1002 = vmatprep.subr.bf16.mxu0 (!%p219_p2), %v1097_v1  ;;  %1024 = vmatprep.subr.bf16.mxu1 (!%p219_p2), %v1108_v6  ;;  %v1102_v10 = vld [vmem:[%s1287_s1 + $0x30] sm:$0xff] (!%p219_p2)   ;;  %v1114_v11 = vld [vmem:[%s1288_s2 + $0x18] sm:$0xff] (!%p219_p2)   ;;  %v1116_v13 = vld [vmem:[%s1288_s2 + $0x20] sm:$0xff] (!%p219_p2)  }
   0x9   : > { %1025 = vmatpush3.bf16.msra.mxu1 (!%p219_p2), %v1108_v6  ;;  %v1103_v12 = vld [vmem:[%s1287_s1 + $0x38] sm:$0xff] (!%p219_p2)   ;;  %v1109_v14 = vld [vmem:[%s1289_s3] sm:$0xff] (!%p219_p2)   ;;  %v1118_v15 = vld [vmem:[%s1288_s2 + $0x28] sm:$0xff] (!%p219_p2)  }
   0xa   : > { %1026 = vmatprep.subr.bf16.mxu1 (!%p219_p2), %v1110_v7  ;;  %v1111_v18 = vld [vmem:[%s1289_s3 + $0x8] sm:$0xff] (!%p219_p2)   ;;  %v1120_v19 = vld [vmem:[%s1288_s2 + $0x30] sm:$0xff] (!%p219_p2)   ;;  %v1115_v22 = vld [vmem:[%s1289_s3 + $0x18] sm:$0xff] (!%p219_p2)  }
   0xb   : > { %1003 = vmatpush3.bf16.msra.mxu0 (!%p219_p2), %v1097_v1  ;;  %v1113_v20 = vld [vmem:[%s1289_s3 + $0x10] sm:$0xff] (!%p219_p2)   ;;  %v1117_v23 = vld [vmem:[%s1289_s3 + $0x20] sm:$0xff] (!%p219_p2)   ;;  %v1119_v24 = vld [vmem:[%s1289_s3 + $0x28] sm:$0xff] (!%p219_p2)  }
   0xc   : > { %1004 = vmatprep.subr.bf16.mxu0 (!%p219_p2), %v1098_v2  ;;  %v1121_v25 = vld [vmem:[%s1289_s3 + $0x30] sm:$0xff] (!%p219_p2)   ;;  %v1122_v26 = vld [vmem:[%s1288_s2 + $0x38] sm:$0xff] (!%p219_p2)  }
   0xd   : > { %s1294_s25 = smov (!%p259_p3, %s887_s25), 15  ;;  %1027 = vmatpush3.bf16.msra.mxu1 %v1110_v7  ;;  %v1123_v27 = vld [vmem:[%s1289_s3 + $0x38] sm:$0xff]  }
   0xe   : > { %s888_s30 = sshll.u32 %s1294_s25, 2  ;;  %1028 = vmatprep.subr.bf16.mxu1 %v1112_v9 }
   0xf   : > { %s1192_s9 = scalar_lea.vmem %s1286_s0, %s888_s30  ;;  %1005 = vmatpush3.bf16.msra.mxu0 %v1098_v2  ;;  %s268_s13 = scalar_lea.vmem %s1290_s4, %s888_s30 }
  0x10   : > { %v1104_v4 = vld [vmem:[%s1192_s9] sm:$0xff]   ;;  %1006 = vmatprep.subr.bf16.mxu0 %v1099_v3  ;;  %v1105_v16 = vld [vmem:[%s1192_s9 + $0x8] sm:$0xff]   ;;  %v1106_v17 = vld [vmem:[%s1192_s9 + $0x10] sm:$0xff]   ;;  %s892_s30 = sshll.u32 %s1294_s25, 3 }
  0x11   : > { %1016 = vmatprep.mubr.bf16.mxu0 %v1104_v4  ;;  %1029 = vmatpush3.bf16.msra.mxu1 %v1112_v9  ;;  %v1107_v21 = vld [vmem:[%s1192_s9 + $0x18] sm:$0xff]   ;;  %s274_s16 = scalar_lea.vmem %s1291_s5, %s892_s30  ;;  %s1273_s19 = scalar_lea.vmem %s1292_s6, %s892_s30 }
  0x12   : > { %1030 = vmatprep.subr.bf16.mxu1 %v1114_v11 }
  0x13   : > { %1007 = vmatpush3.bf16.msra.mxu0 %v1099_v3 }
  0x14   : > { %1008 = vmatprep.subr.bf16.mxu0 %v1100_v5 }
  0x15   : > { %1031 = vmatpush3.bf16.msra.mxu1 %v1114_v11 }
  0x16   : > { %1032 = vmatprep.subr.bf16.mxu1 %v1116_v13 }
  0x17   : > { %1009 = vmatpush3.bf16.msra.mxu0 %v1100_v5 }
  0x18   : > { %1010 = vmatprep.subr.bf16.mxu0 %v1101_v8 }
  0x19   : > { %1033 = vmatpush3.bf16.msra.mxu1 %v1116_v13 }
  0x1a   : > { %1034 = vmatprep.subr.bf16.mxu1 %v1118_v15 }
  0x1b   : > { %1011 = vmatpush3.bf16.msra.mxu0 %v1101_v8 }
  0x1c   : > { %1012 = vmatprep.subr.bf16.mxu0 %v1102_v10 }
  0x1d   : > { %1035 = vmatpush3.bf16.msra.mxu1 %v1118_v15 }
  0x1e   : > { %1036 = vmatprep.subr.bf16.mxu1 %v1120_v19 }
  0x1f   : > { %1013 = vmatpush3.bf16.msra.mxu0 %v1102_v10 }
  0x20   : > { %1014 = vmatprep.subr.bf16.mxu0 %v1103_v12 }
  0x21   : > { %1037 = vmatpush3.bf16.msra.mxu1 %v1120_v19 }
  0x22   : > { %1038 = vmatprep.subr.bf16.mxu1 %v1122_v26 }
  0x23   : > { %1015 = vmatpush3.bf16.msra.mxu0 %v1103_v12 }
  0x24   : > { %1048 = vmatprep.subr.bf16.mxu0 %v1109_v14 }
  0x25   : > { %1039 = vmatpush3.bf16.msra.mxu1 %v1122_v26 }
  0x26   : > { %1017 = vmatmul.mubr.bf16.vlgmr.msra.gmra.mrb[0].mxu0 %v1105_v16  ;;  %1072 = vmatprep.subr.bf16.mxu1 %v1109_v14 }
  0x27   : > { %1020 = vmatprep.mubr.bf16.mxu0 %v1106_v17  ;;  %1049 = vmatpush3.bf16.msra.mxu0 %v1109_v14 }
  0x28   : > { %1050 = vmatprep.subr.bf16.mxu0 %v1111_v18 }
  0x2b   : > { %1051 = vmatpush3.bf16.msra.mxu0 %v1111_v18 }
  0x2c   : > { %1052 = vmatprep.subr.bf16.mxu0 %v1113_v20 }
  0x2e   : > { %1021 = vmatmul.mubr.bf16.gmra.mrb[4].mxu0 %v1107_v21 }
  0x2f   : > { %1053 = vmatpush3.bf16.msra.mxu0 %v1113_v20 }
  0x30   : > { %1054 = vmatprep.subr.bf16.mxu0 %v1115_v22 }
  0x33   : > { %1055 = vmatpush3.bf16.msra.mxu0 %v1115_v22 }
  0x34   : > { %1056 = vmatprep.subr.bf16.mxu0 %v1117_v23 }
  0x37   : > { %1057 = vmatpush3.bf16.msra.mxu0 %v1117_v23 }
  0x38   : > { %1058 = vmatprep.subr.bf16.mxu0 %v1119_v24 }
  0x3b   : > { %1059 = vmatpush3.bf16.msra.mxu0 %v1119_v24 }
  0x3c   : > { %1060 = vmatprep.subr.bf16.mxu0 %v1121_v25 }
  0x3f   : > { %1061 = vmatpush3.bf16.msra.mxu0 %v1121_v25 }
  0x40   : > { %1062 = vmatprep.subr.bf16.mxu0 %v1123_v27 }
  0x43   : > { %1063 = vmatpush3.bf16.msra.mxu0 %v1123_v27 }
  0xf9   : > { %v1018_v28 = vpop.f32.mrb[0].mxu0 }
  0xfa   : > { %v413_v29 = vpop.f32.mrb[1].mxu0 }
  0xfb   : > { %v1019_v30 = vpop.f32.mrb[2].mxu0 }
  0xfc   : > { %v445_v31 = vpack.c.bf16 %v1019_v30, %v1018_v28  ;;  %v416_v32 = vpop.f32.mrb[3].mxu0 }
  0xfd   : > { %v444_v33 = vpack.c.bf16 %v416_v32, %v413_v29 }
  0xfe   : > { %961 = vst [vmem:[%s268_s13 + $0x8] sm:$0xff] %v445_v31  }
  0xff   : > { %945 = vst [vmem:[%s268_s13] sm:$0xff] %v444_v33   ;;  %1040 = vmatprep.mubr.bf16.mxu1 %v444_v33  ;;  %1064 = vmatprep.mubr.bf16.mxu0 %v444_v33 }
 0x100   : > { %1041 = vmatmul.mubr.bf16.vlgmr.msra.gmra.mrb[0].mxu1 %v445_v31  ;;  %1065 = vmatmul.mubr.bf16.vlgmr.msra.gmra.mrb[8].mxu0 %v445_v31 }
 0x101   : > { %1080 = vmatpush3.bf16.msra.mxu1 %v1109_v14  ;;  %v1022_v34 = vpop.f32.mrb[4].mxu0 }
 0x102   : > { %1073 = vmatprep.subr.bf16.mxu1 %v1111_v18  ;;  %v429_v35 = vpop.f32.mrb[5].mxu0 }
 0x103   : > { %v1023_v36 = vpop.f32.mrb[6].mxu0 }
 0x104   : > { %v447_v37 = vpack.c.bf16 %v1023_v36, %v1022_v34  ;;  %v432_v38 = vpop.f32.mrb[7].mxu0 }
 0x105   : > { %1081 = vmatpush3.bf16.msra.mxu1 %v1111_v18  ;;  %v446_v39 = vpack.c.bf16 %v432_v38, %v429_v35 }
 0x106   : > { %1074 = vmatprep.subr.bf16.mxu1 %v1113_v20  ;;  %963 = vst [vmem:[%s268_s13 + $0x18] sm:$0xff] %v447_v37  }
 0x107   : > { %962 = vst [vmem:[%s268_s13 + $0x10] sm:$0xff] %v446_v39   ;;  %1044 = vmatprep.mubr.bf16.mxu1 %v446_v39 }
 0x108   : > { %1045 = vmatmul.mubr.bf16.gmra.mrb[4].mxu1 %v447_v37 }
 0x109   : > { %1082 = vmatpush3.bf16.msra.mxu1 %v1113_v20  ;;  %1068 = vmatprep.mubr.bf16.mxu1 %v446_v39 }
 0x10a   : > { %1075 = vmatprep.subr.bf16.mxu1 %v1115_v22 }
 0x10d   : > { %1083 = vmatpush3.bf16.msra.mxu1 %v1115_v22 }
 0x10e   : > { %1076 = vmatprep.subr.bf16.mxu1 %v1117_v23 }
 0x111   : > { %1084 = vmatpush3.bf16.msra.mxu1 %v1117_v23 }
 0x112   : > { %1077 = vmatprep.subr.bf16.mxu1 %v1119_v24 }
 0x115   : > { %1085 = vmatpush3.bf16.msra.mxu1 %v1119_v24 }
 0x116   : > { %1078 = vmatprep.subr.bf16.mxu1 %v1121_v25 }
 0x119   : > { %1086 = vmatpush3.bf16.msra.mxu1 %v1121_v25 }
 0x11a   : > { %1079 = vmatprep.subr.bf16.mxu1 %v1123_v27 }
 0x11d   : > { %1087 = vmatpush3.bf16.msra.mxu1 %v1123_v27 }
 0x120   : > { %1069 = vmatmul.mubr.bf16.vlgmr.msra.gmra.mrb[8].mxu1 %v447_v37 }
 0x1d3   : > { %v1042_v40 = vpop.f32.mrb[0].mxu1  ;;  %v1066_v41 = vpop.f32.mrb[8].mxu0 }
 0x1d4   : > { %615 = vst [vmem:[%s274_s16 + $0x10] sm:$0xff] %v1042_v40  ;;  %752 = vst [vmem:[%s1273_s19 + $0x10] sm:$0xff] %v1066_v41  ;;  %v582_v42 = vpop.f32.mrb[1].mxu1  ;;  %v719_v43 = vpop.f32.mrb[9].mxu0 }
 0x1d5   : > { %613 = vst [vmem:[%s274_s16] sm:$0xff] %v582_v42  ;;  %750 = vst [vmem:[%s1273_s19] sm:$0xff] %v719_v43  ;;  %v1043_v44 = vpop.f32.mrb[2].mxu1  ;;  %v1067_v45 = vpop.f32.mrb[10].mxu0 }
 0x1d6   : > { %616 = vst [vmem:[%s274_s16 + $0x18] sm:$0xff] %v1043_v44  ;;  %753 = vst [vmem:[%s1273_s19 + $0x18] sm:$0xff] %v1067_v45  ;;  %v585_v46 = vpop.f32.mrb[3].mxu1  ;;  %v722_v47 = vpop.f32.mrb[11].mxu0 }
 0x1d7   : > { %614 = vst [vmem:[%s274_s16 + $0x8] sm:$0xff] %v585_v46  ;;  %751 = vst [vmem:[%s1273_s19 + $0x8] sm:$0xff] %v722_v47 }
 0x1db   : > { %v1046_v48 = vpop.f32.mrb[4].mxu1 }
 0x1dc   : > { %619 = vst [vmem:[%s274_s16 + $0x30] sm:$0xff] %v1046_v48  ;;  %v598_v49 = vpop.f32.mrb[5].mxu1 }
 0x1dd   : > { %617 = vst [vmem:[%s274_s16 + $0x20] sm:$0xff] %v598_v49  ;;  %v1047_v50 = vpop.f32.mrb[6].mxu1 }
 0x1de   : > { %620 = vst [vmem:[%s274_s16 + $0x38] sm:$0xff] %v1047_v50  ;;  %v601_v51 = vpop.f32.mrb[7].mxu1 }
 0x1df   : > { %618 = vst [vmem:[%s274_s16 + $0x28] sm:$0xff] %v601_v51 }
 0x1f3   : > { %v1070_v52 = vpop.f32.mrb[8].mxu1 }
 0x1f4   : > { %756 = vst [vmem:[%s1273_s19 + $0x30] sm:$0xff] %v1070_v52  ;;  %v735_v53 = vpop.f32.mrb[9].mxu1 }
 0x1f5   : > { %754 = vst [vmem:[%s1273_s19 + $0x20] sm:$0xff] %v735_v53  ;;  %v1071_v54 = vpop.f32.mrb[10].mxu1 }
 0x1f6   : > { %757 = vst [vmem:[%s1273_s19 + $0x38] sm:$0xff] %v1071_v54  ;;  %v738_v55 = vpop.f32.mrb[11].mxu1 }
 0x1f7   : > { %755 = vst [vmem:[%s1273_s19 + $0x28] sm:$0xff] %v738_v55 }
 0x1f8 PF: > { %s17_s21 = sadd.s32 1, %s1130_s21  }
 0x1f9   : > { %p14_p4 = scmp.ge.s32.totalorder %s17_s21, 4  }
 0x1fb   :  { %16 = sbr.rel (!%p14_p4) target bundleno = 1 (0x1), region = 90 }

// kernel: gat_forward.7
= control target key start
LH: loop header
LB: loop body
LE: loop exit
PB: predicated region body
PF: predicated region fallthrough
CT: control target
= control target key end

     0   :  { %s863_s18 = smov 0   ;;  %s956_s0 = inlined_call_operand.vmem [shape: bf16[128,128], index: 0, kind: input, shape index: {}]   ;;  %s957_s1 = inlined_call_operand.vmem [shape: f32[128,128], index: 1, kind: input, shape index: {}]   ;;  %s958_s2 = inlined_call_operand.vmem [shape: f32[128,128], index: 2, kind: input, shape index: {}]   ;;  %s959_s3 = inlined_call_operand.vmem [shape: s8[128,128], index: 3, kind: input, shape index: {}]   ;;  %s960_s4 = inlined_call_operand.vmem [shape: f32[1,128], index: 4, kind: input, shape index: {}]   ;;  %s961_s5 = inlined_call_operand.vmem [shape: f32[128,128], index: 5, kind: output, shape index: {}]  }
   0x1 LB: > { %s690_s19 = sadd.s32 4294967295, %s830_s18   ;;  %p694_p0 = scmp.ge.s32.totalorder %s830_s18, 1  ;;  %s830_s18 = sphi %s863_s18, %s15_s18  }
   0x2   : > { %p199_p1 = scmp.lt.s32.totalorder %s830_s18, 3 }
   0x4   : > { %p200_p2 = pnand %p694_p0, %p199_p1 }
   0x5   : > { %s695_s20 = sshll.u32 (!%p200_p2), %s690_s19, 3  ;;  %v832_v0 = vmov (!%p200_p2), 0   ;;  %s697_s25 = sshll.u32 (!%p200_p2), %s690_s19, 1  ;;  %v709_v18 = vld [vmem:[%s957_s1] ss:$0 sm:$0xff] (!%p200_p2) }
   0x6   : > { %203 = sbr.rel (%p200_p2) target bundleno = 702 (0x2be), region = 40  ;;  %783 = vset.pattern.permute.xlu1 (!%p200_p2), %v832_v0  ;;  %782 = vset.pattern.permute.xlu0 (!%p200_p2), %v832_v0  ;;  %p233_p3 = scmp.lt.s32.totalorder (!%p200_p2), %s695_s20, 15 }
   0x7   : > { %p239_p4 = scmp.lt.s32.totalorder (!%p200_p2), %s697_s25, 3 }
   0xd   : > { %s963_s20 = smov (!%p233_p3, %s695_s20), 15  ;;  %s965_s25 = smov (!%p239_p4, %s697_s25), 3 }
   0xe   : > { %s696_s21 = sshll.u32 %s963_s20, 3  ;;  %s698_s26 = sshll.u32 %s965_s25, 3 }
   0xf   : > { %s236_s24 = scalar_lea.vmem %s958_s2, %s696_s21  ;;  %s242_s29 = scalar_lea.vmem %s959_s3, %s698_s26 }
  0x10   : > { %v289_v1 = vld [vmem:[%s236_s24 + $0x20] sm:$0xff]  ;;  %v290_v3 = vld [vmem:[%s236_s24 + $0x28] sm:$0xff]  ;;  %v288_v5 = vld [vmem:[%s236_s24 + $0x18] sm:$0xff]  ;;  %s248_s30 = scalar_lea.vmem %s961_s5, %s696_s21 }
  0x11   : > { %v285_v2 = vld [vmem:[%s236_s24] sm:$0xff]  ;;  %316 = vperm.xlu1 %783, %v289_v1   ;;  %v286_v4 = vld [vmem:[%s236_s24 + $0x8] sm:$0xff]  ;;  %v287_v6 = vld [vmem:[%s236_s24 + $0x10] sm:$0xff] }
  0x12   : > { %296 = vperm.xlu0 %782, %v285_v2   ;;  %v292_v7 = vld [vmem:[%s236_s24 + $0x38] sm:$0xff]  ;;  %v291_v8 = vld [vmem:[%s236_s24 + $0x30] sm:$0xff]  ;;  %v251_v9 = vld [vmem:[%s242_s29] sm:$0xff] }
  0x13   : > { %v253_v10 = vunpack.c.0.s8 %v251_v9  ;;  %v252_v11 = vld [vmem:[%s242_s29 + $0x8] sm:$0xff]  ;;  %v254_v12 = vunpack.c.1.s8 %v251_v9  ;;  %v255_v17 = vunpack.c.2.s8 %v251_v9  ;;  %v256_v25 = vunpack.c.3.s8 %v251_v9 }
  0x14   : > { %v257_v14 = vunpack.c.0.s8 %v252_v11  ;;  %v258_v16 = vunpack.c.1.s8 %v252_v11  ;;  %v259_v31 = vunpack.c.2.s8 %v252_v11  ;;  %v260_v46 = vunpack.c.3.s8 %v252_v11 }
  0x15   : > { %321 = vperm.xlu1 %783, %v290_v3   ;;  %v261_v13 = vcvt.s32.f32 %v253_v10  ;;  %v262_v15 = vcvt.s32.f32 %v254_v12  ;;  %v263_v28 = vcvt.s32.f32 %v255_v17  ;;  %v264_v38 = vcvt.s32.f32 %v256_v25 }
  0x16   : > { %301 = vperm.xlu0 %782, %v286_v4   ;;  %v265_v20 = vcvt.s32.f32 %v257_v14  ;;  %v266_v24 = vcvt.s32.f32 %v258_v16  ;;  %v267_v45 = vcvt.s32.f32 %v259_v31  ;;  %v268_v61 = vcvt.s32.f32 %v260_v46 }
  0x17   : > { %v701_v19 = vadd.f32 -1.0, %v261_v13  ;;  %v702_v23 = vadd.f32 -1.0, %v262_v15  ;;  %v703_v42 = vadd.f32 -1.0, %v263_v28  ;;  %v704_v53 = vadd.f32 -1.0, %v264_v38 }
  0x18   : > { %v705_v30 = vadd.f32 -1.0, %v265_v20  ;;  %v706_v37 = vadd.f32 -1.0, %v266_v24  ;;  %v707_v60 = vadd.f32 -1.0, %v267_v45  ;;  %v708_v10 = vadd.f32 -1.0, %v268_v61  ;;  %v784_v20 = vld [vmem:[%s956_s0] sm:$0xff]  }
  0x19   : > { %311 = vperm.xlu1 %783, %v288_v5   ;;  %v277_v29 = vmul.f32 1e+09, %v701_v19  ;;  %v278_v36 = vmul.f32 1e+09, %v702_v23  ;;  %v279_v57 = vmul.f32 1e+09, %v703_v42  ;;  %733 = vmatprep.subr.bf16.mxu0 %v784_v20 }
  0x1a   : > { %306 = vperm.xlu0 %782, %v287_v6   ;;  %v281_v44 = vmul.f32 1e+09, %v705_v30  ;;  %v282_v52 = vmul.f32 1e+09, %v706_v37  ;;  %v280_v6 = vmul.f32 1e+09, %v704_v53  ;;  %757 = vmatprep.subr.bf16.mxu1 %v784_v20 }
  0x1b   : > { %v283_v9 = vmul.f32 1e+09, %v707_v60  ;;  %v284_v17 = vmul.f32 1e+09, %v708_v10  ;;  %734 = vmatpush3.bf16.msra.mxu0 %v784_v20  ;;  %765 = vmatpush3.bf16.msra.mxu1 %v784_v20  ;;  %v786_v53 = vld [vmem:[%s956_s0 + $0x10] sm:$0xff]  }
  0x1d   : > { %331 = vperm.xlu1 %783, %v292_v7  }
  0x1e   : > { %326 = vperm.xlu0 %782, %v291_v8  }
  0x90   : > { %v317_v21 = vpop.permute.xlu1 %316 }
  0x91   : > { %v297_v22 = vpop.permute.xlu0 %296  ;;  %v342_v26 = vadd.f32 %v709_v18, %v317_v21  ;;  %v785_v21 = vld [vmem:[%s956_s0 + $0x8] sm:$0xff]  }
  0x92   : > { %v338_v27 = vadd.f32 %v709_v18, %v297_v22  ;;  %735 = vmatprep.subr.bf16.mxu0 %v785_v21  ;;  %758 = vmatprep.subr.bf16.mxu1 %v785_v21 }
  0x93   : > { %v358_v32 = vmul.f32 0.2, %v342_v26  ;;  %vm350_vm1 = vcmp.gt.f32.partialorder %v342_v26, 0.0  ;;  %736 = vmatpush3.bf16.msra.mxu0 %v785_v21  ;;  %766 = vmatpush3.bf16.msra.mxu1 %v785_v21 }
  0x94   : > { %v354_v33 = vmul.f32 0.2, %v338_v27  ;;  %vm346_vm0 = vcmp.gt.f32.partialorder %v338_v27, 0.0  ;;  %v322_v34 = vpop.permute.xlu1 %321  ;;  %737 = vmatprep.subr.bf16.mxu0 %v786_v53  ;;  %759 = vmatprep.subr.bf16.mxu1 %v786_v53 }
  0x95   : > { %v302_v35 = vpop.permute.xlu0 %301  ;;  %v343_v39 = vadd.f32 %v709_v18, %v322_v34  ;;  %v366_v49 = vsel %vm350_vm1, %v342_v26, %v358_v32 }
  0x96   : > { %v339_v40 = vadd.f32 %v709_v18, %v302_v35  ;;  %v362_v41 = vsel %vm346_vm0, %v338_v27, %v354_v33  ;;  %v374_v58 = vadd.f32 %v366_v49, %v281_v44 }
  0x97   : > { %v885_v43 = vadd.f32 %v362_v41, %v277_v29  ;;  %v359_v47 = vmul.f32 0.2, %v343_v39  ;;  %vm351_vm3 = vcmp.gt.f32.partialorder %v343_v39, 0.0  ;;  %738 = vmatpush3.bf16.msra.mxu0 %v786_v53  ;;  %767 = vmatpush3.bf16.msra.mxu1 %v786_v53 }
  0x98   : > { %v355_v48 = vmul.f32 0.2, %v339_v40  ;;  %vm347_vm2 = vcmp.gt.f32.partialorder %v339_v40, 0.0  ;;  %v312_v50 = vpop.permute.xlu1 %311 }
  0x99   : > { %378 = vmax.xlane.f32.xlu0 %v885_v43  ;;  %v307_v51 = vpop.permute.xlu0 %306  ;;  %v341_v54 = vadd.f32 %v709_v18, %v312_v50  ;;  %v367_v0 = vsel %vm351_vm3, %v343_v39, %v359_v47 }
  0x9a   : > { %v340_v55 = vadd.f32 %v709_v18, %v307_v51  ;;  %v363_v56 = vsel %vm347_vm2, %v339_v40, %v355_v48  ;;  %v375_v7 = vadd.f32 %v367_v0, %v282_v52 }
  0x9b   : > { %v371_v59 = vadd.f32 %v363_v56, %v278_v36  ;;  %v357_v62 = vmul.f32 0.2, %v341_v54  ;;  %vm349_vm5 = vcmp.gt.f32.partialorder %v341_v54, 0.0  ;;  %v788_v56 = vld [vmem:[%s956_s0 + $0x20] sm:$0xff]  }
  0x9c   : > { %v356_v63 = vmul.f32 0.2, %v340_v55  ;;  %vm348_vm4 = vcmp.gt.f32.partialorder %v340_v55, 0.0  ;;  %v332_v1 = vpop.permute.xlu1 %331 }
  0x9d   : > { %386 = vmax.xlane.f32.xlu0 %v374_v58  ;;  %380 = vmax.xlane.f32.xlu1 %v371_v59  ;;  %v327_v2 = vpop.permute.xlu0 %326  ;;  %v345_v3 = vadd.f32 %v709_v18, %v332_v1  ;;  %v365_v13 = vsel %vm349_vm5, %v341_v54, %v357_v62 }
  0x9e   : > { %v344_v4 = vadd.f32 %v709_v18, %v327_v2  ;;  %v364_v5 = vsel %vm348_vm4, %v340_v55, %v356_v63  ;;  %v373_v15 = vadd.f32 %v365_v13, %v280_v6  ;;  %v787_v55 = vld [vmem:[%s956_s0 + $0x18] sm:$0xff]  }
  0x9f   : > { %v372_v8 = vadd.f32 %v364_v5, %v279_v57  ;;  %v361_v11 = vmul.f32 0.2, %v345_v3  ;;  %vm353_vm7 = vcmp.gt.f32.partialorder %v345_v3, 0.0  ;;  %739 = vmatprep.subr.bf16.mxu0 %v787_v55  ;;  %760 = vmatprep.subr.bf16.mxu1 %v787_v55  ;;  %v789_v57 = vld [vmem:[%s956_s0 + $0x28] sm:$0xff]  }
  0xa0   : > { %v360_v12 = vmul.f32 0.2, %v344_v4  ;;  %vm352_vm6 = vcmp.gt.f32.partialorder %v344_v4, 0.0  ;;  %740 = vmatpush3.bf16.msra.mxu0 %v787_v55  ;;  %768 = vmatpush3.bf16.msra.mxu1 %v787_v55 }
  0xa1   : > { %388 = vmax.xlane.f32.xlu0 %v375_v7  ;;  %382 = vmax.xlane.f32.xlu1 %v372_v8  ;;  %v369_v19 = vsel %vm353_vm7, %v345_v3, %v361_v11 }
  0xa2   : > { %v368_v14 = vsel %vm352_vm6, %v344_v4, %v360_v12  ;;  %v377_v18 = vadd.f32 %v369_v19, %v284_v17  ;;  %741 = vmatprep.subr.bf16.mxu0 %v788_v56  ;;  %761 = vmatprep.subr.bf16.mxu1 %v788_v56 }
  0xa3   : > { %v376_v16 = vadd.f32 %v368_v14, %v283_v9 }
  0xa4   : > { %742 = vmatpush3.bf16.msra.mxu0 %v788_v56  ;;  %769 = vmatpush3.bf16.msra.mxu1 %v788_v56 }
  0xa5   : > { %384 = vmax.xlane.f32.xlu0 %v373_v15  ;;  %390 = vmax.xlane.f32.xlu1 %v376_v16 }
  0xa6   : > { %743 = vmatprep.subr.bf16.mxu0 %v789_v57  ;;  %762 = vmatprep.subr.bf16.mxu1 %v789_v57 }
  0xa8   : > { %744 = vmatpush3.bf16.msra.mxu0 %v789_v57  ;;  %770 = vmatpush3.bf16.msra.mxu1 %v789_v57 }
  0xa9   : > { %392 = vmax.xlane.f32.xlu0 %v377_v18 }
 0x126   : > { %v379_v22 = vpop.xlane.xlu0 %378 }
 0x127   : > { %v394_v23 = vsub.f32 %v885_v43, %v379_v22 }
 0x129   : > { %v402_v24 = vmul.f32 1.442695, %v394_v23 }
 0x12a   : > { %v381_v25 = vpop.xlane.xlu1 %380  ;;  %v387_v26 = vpop.xlane.xlu0 %386 }
 0x12b   : > { %792 = vpow2.f32 %v402_v24  ;;  %v395_v27 = vsub.f32 %v371_v59, %v381_v25  ;;  %v398_v28 = vsub.f32 %v374_v58, %v387_v26  ;;  %v790_v58 = vld [vmem:[%s956_s0 + $0x30] sm:$0xff]   ;;  %v791_v59 = vld [vmem:[%s956_s0 + $0x38] sm:$0xff]   ;;  %v718_v24 = vld [vmem:[%s960_s4] ss:$0 sm:$0xff] }
 0x12c   : > { %745 = vmatprep.subr.bf16.mxu0 %v790_v58  ;;  %763 = vmatprep.subr.bf16.mxu1 %v790_v58 }
 0x12d   : > { %v404_v29 = vmul.f32 1.442695, %v395_v27  ;;  %v410_v30 = vmul.f32 1.442695, %v398_v28  ;;  %746 = vmatpush3.bf16.msra.mxu0 %v790_v58  ;;  %771 = vmatpush3.bf16.msra.mxu1 %v790_v58 }
 0x12e   : > { %v383_v31 = vpop.xlane.xlu1 %382  ;;  %v389_v32 = vpop.xlane.xlu0 %388  ;;  %747 = vmatprep.subr.bf16.mxu0 %v791_v59  ;;  %764 = vmatprep.subr.bf16.mxu1 %v791_v59 }
 0x12f   : > { %794 = vpow2.f32 %v404_v29  ;;  %v396_v33 = vsub.f32 %v372_v8, %v383_v31  ;;  %v399_v34 = vsub.f32 %v375_v7, %v389_v32 }
 0x130   : > { %796 = vpow2.f32 %v410_v30 }
 0x131   : > { %v406_v35 = vmul.f32 1.442695, %v396_v33  ;;  %v412_v36 = vmul.f32 1.442695, %v399_v34  ;;  %748 = vmatpush3.bf16.msra.mxu0 %v791_v59  ;;  %772 = vmatpush3.bf16.msra.mxu1 %v791_v59 }
 0x132   : > { %v391_v37 = vpop.xlane.xlu1 %390  ;;  %v385_v38 = vpop.xlane.xlu0 %384 }
 0x133   : > { %798 = vpow2.f32 %v406_v35  ;;  %v400_v39 = vsub.f32 %v376_v16, %v391_v37  ;;  %v397_v40 = vsub.f32 %v373_v15, %v385_v38 }
 0x134   : > { %800 = vpow2.f32 %v412_v36 }
 0x135   : > { %v895_v41 = vpop.eup %792  ;;  %v414_v42 = vmul.f32 1.442695, %v400_v39  ;;  %v408_v43 = vmul.f32 1.442695, %v397_v40 }
 0x136   : > { %418 = vadd.xlane.f32.xlu1 %v895_v41  ;;  %v393_v44 = vpop.xlane.xlu0 %392 }
 0x137   : > { %802 = vpow2.f32 %v414_v42  ;;  %v401_v45 = vsub.f32 %v377_v18, %v393_v44 }
 0x138   : > { %804 = vpow2.f32 %v408_v43 }
 0x139   : > { %v898_v46 = vpop.eup %794  ;;  %v416_v47 = vmul.f32 1.442695, %v401_v45 }
 0x13a   : > { %v900_v48 = vpop.eup %796  ;;  %420 = vadd.xlane.f32.xlu0 %v898_v46 }
 0x13b   : > { %806 = vpow2.f32 %v416_v47  ;;  %426 = vadd.xlane.f32.xlu1 %v900_v48 }
 0x13d   : > { %v904_v49 = vpop.eup %798 }
 0x13e   : > { %v906_v50 = vpop.eup %800 }
 0x13f   : > { %422 = vadd.xlane.f32.xlu1 %v904_v49  ;;  %428 = vadd.xlane.f32.xlu0 %v906_v50 }
 0x141   : > { %v910_v51 = vpop.eup %802 }
 0x142   : > { %v912_v52 = vpop.eup %804 }
 0x143   : > { %430 = vadd.xlane.f32.xlu1 %v910_v51  ;;  %424 = vadd.xlane.f32.xlu0 %v912_v52 }
 0x145   : > { %v919_v54 = vpop.eup %806 }
 0x147   : > { %432 = vadd.xlane.f32.xlu0 %v919_v54 }
 0x1c3   : > { %v419_v60 = vpop.xlane.xlu1 %418 }
 0x1c4   : > { %808 = vrcp.f32 %v419_v60 }
 0x1c7   : > { %v421_v61 = vpop.xlane.xlu0 %420 }
 0x1c8   : > { %v427_v62 = vpop.xlane.xlu1 %426  ;;  %810 = vrcp.f32 %v421_v61 }
 0x1c9   : > { %812 = vrcp.f32 %v427_v62 }
 0x1cc   : > { %v423_v63 = vpop.xlane.xlu1 %422  ;;  %v429_v0 = vpop.xlane.xlu0 %428 }
 0x1cd   : > { %814 = vrcp.f32 %v429_v0 }
 0x1ce   : > { %v809_v1 = vpop.eup %808  ;;  %816 = vrcp.f32 %v423_v63 }
 0x1cf   : > { %v442_v5 = vmul.f32 %v809_v1, %v895_v41 }
 0x1d0   : > { %v431_v2 = vpop.xlane.xlu1 %430  ;;  %v425_v3 = vpop.xlane.xlu0 %424 }
 0x1d1   : > { %818 = vrcp.f32 %v425_v3 }
 0x1d2   : > { %v811_v4 = vpop.eup %810  ;;  %820 = vrcp.f32 %v431_v2 }
 0x1d3   : > { %v443_v6 = vmul.f32 %v811_v4, %v898_v46  ;;  %v813_v9 = vpop.eup %812 }
 0x1d4   : > { %v433_v7 = vpop.xlane.xlu0 %432  ;;  %v446_v11 = vmul.f32 %v813_v9, %v900_v48 }
 0x1d5   : > { %822 = vrcp.f32 %v433_v7  ;;  %v450_v8 = vpack.c.bf16 %v443_v6, %v442_v5 }
 0x1d7   : > { %749 = vmatprep.mubr.bf16.mxu0 %v450_v8  ;;  %v815_v10 = vpop.eup %814 }
 0x1d8   : > { %v447_v12 = vmul.f32 %v815_v10, %v906_v50  ;;  %v817_v13 = vpop.eup %816 }
 0x1d9   : > { %v444_v17 = vmul.f32 %v817_v13, %v904_v49 }
 0x1da   : > { %v452_v14 = vpack.c.bf16 %v447_v12, %v446_v11 }
 0x1db   : > { %v819_v15 = vpop.eup %818 }
 0x1dc   : > { %v821_v16 = vpop.eup %820  ;;  %753 = vmatprep.mubr.bf16.mxu1 %v452_v14  ;;  %v445_v19 = vmul.f32 %v819_v15, %v912_v52 }
 0x1dd   : > { %v448_v21 = vmul.f32 %v821_v16, %v910_v51 }
 0x1de   : > { %v451_v20 = vpack.c.bf16 %v445_v19, %v444_v17 }
 0x1df   : > { %v823_v18 = vpop.eup %822 }
 0x1e0   : > { %v449_v22 = vmul.f32 %v823_v18, %v919_v54  ;;  %750 = vmatmul.mubr.bf16.vlgmr.msra.gmra.mrb[0].mxu0 %v451_v20 }
 0x1e2   : > { %v453_v23 = vpack.c.bf16 %v449_v22, %v448_v21 }
 0x1e4   : > { %754 = vmatmul.mubr.bf16.vlgmr.msra.gmra.mrb[0].mxu1 %v453_v23 }
 0x2b3   : > { %v751_v25 = vpop.f32.mrb[0].mxu0 }
 0x2b4   : > { %v608_v26 = vadd.f32 %v751_v25, %v718_v24  ;;  %v552_v27 = vpop.f32.mrb[1].mxu0 }
 0x2b5   : > { %v606_v28 = vadd.f32 %v718_v24, %v552_v27  ;;  %v752_v29 = vpop.f32.mrb[2].mxu0 }
 0x2b6   : > { %616 = vst [vmem:[%s248_s30 + $0x10] sm:$0xff] %v608_v26  ;;  %v609_v30 = vadd.f32 %v752_v29, %v718_v24  ;;  %v555_v31 = vpop.f32.mrb[3].mxu0 }
 0x2b7   : > { %v755_v32 = vpop.f32.mrb[0].mxu1  ;;  %614 = vst [vmem:[%s248_s30] sm:$0xff] %v606_v28  ;;  %v607_v33 = vadd.f32 %v718_v24, %v555_v31 }
 0x2b8   : > { %v612_v34 = vadd.f32 %v755_v32, %v718_v24  ;;  %v568_v35 = vpop.f32.mrb[1].mxu1  ;;  %617 = vst [vmem:[%s248_s30 + $0x18] sm:$0xff] %v609_v30 }
 0x2b9   : > { %v610_v36 = vadd.f32 %v718_v24, %v568_v35  ;;  %v756_v37 = vpop.f32.mrb[2].mxu1  ;;  %615 = vst [vmem:[%s248_s30 + $0x8] sm:$0xff] %v607_v33 }
 0x2ba   : > { %620 = vst [vmem:[%s248_s30 + $0x30] sm:$0xff] %v612_v34  ;;  %v613_v38 = vadd.f32 %v756_v37, %v718_v24  ;;  %v571_v39 = vpop.f32.mrb[3].mxu1 }
 0x2bb   : > { %618 = vst [vmem:[%s248_s30 + $0x20] sm:$0xff] %v610_v36  ;;  %v611_v40 = vadd.f32 %v718_v24, %v571_v39 }
 0x2bc   : > { %621 = vst [vmem:[%s248_s30 + $0x38] sm:$0xff] %v613_v38 }
 0x2bd   : > { %619 = vst [vmem:[%s248_s30 + $0x28] sm:$0xff] %v611_v40 }
 0x2be PF: > { %s15_s18 = sadd.s32 1, %s830_s18  }
 0x2bf   : > { %p12_p5 = scmp.ge.s32.totalorder %s15_s18, 4  }
 0x2c1   :  { %14 = sbr.rel (!%p12_p5) target bundleno = 1 (0x1), region = 73 }

// kernel: gat_forward.5
= control target key start
LH: loop header
LB: loop body
LE: loop exit
PB: predicated region body
PF: predicated region fallthrough
CT: control target
= control target key end

     0   :  { %s4011_s18 = smov 0   ;;  %s5461_s0 = inlined_call_operand.vmem [shape: bf16[128,128], index: 0, kind: input, shape index: {}]   ;;  %s5462_s1 = inlined_call_operand.vmem [shape: f32[128,128], index: 1, kind: input, shape index: {}]   ;;  %s5463_s2 = inlined_call_operand.vmem [shape: f32[128,128], index: 2, kind: input, shape index: {}]   ;;  %s5464_s3 = inlined_call_operand.vmem [shape: s8[128,128], index: 3, kind: input, shape index: {}]   ;;  %s5465_s4 = inlined_call_operand.vmem [shape: f32[1,128], index: 4, kind: input, shape index: {}]   ;;  %s5466_s5 = inlined_call_operand.vmem [shape: bf16[128,128], index: 5, kind: output, shape index: {}]  }
   0x1 LB: > { %s3144_s19 = sadd.s32 4294967295, %s3964_s18   ;;  %p3148_p0 = scmp.ge.s32.totalorder %s3964_s18, 1  ;;  %s3964_s18 = sphi %s4011_s18, %s15_s18  }
   0x2   : > { %p199_p1 = scmp.lt.s32.totalorder %s3964_s18, 3 }
   0x4   : > { %p200_p2 = pnand %p3148_p0, %p199_p1 }
   0x6   : > { %203 = sbr.rel (%p200_p2) target bundleno = 1843 (0x733), region = 40 }
   0xd   : > { %s3149_s20 = sshll.u32 %s3144_s19, 3  ;;  %v3966_v0 = vmov 0   ;;  %v3967_v9 = vmov 1   ;;  %v3968_v10 = vmov 2   ;;  %s3151_s25 = sshll.u32 %s3144_s19, 1 }
   0xe   : > { %3597 = vset.pattern.permute.xlu1 %v3966_v0  ;;  %3596 = vset.pattern.permute.xlu0 %v3966_v0  ;;  %p233_p3 = scmp.lt.s32.totalorder %s3149_s20, 15  ;;  %p239_p4 = scmp.lt.s32.totalorder %s3151_s25, 3  ;;  %v3163_v19 = vld [vmem:[%s5462_s1] ss:$0 sm:$0xff] }
   0xf   : > { %s3969_s11 = smov 112   ;;  %s3971_s28 = smov 96  }
  0x10   : > { %s5545_s20 = smov (!%p233_p3, %s3149_s20), 15  ;;  %s5547_s25 = smov (!%p239_p4, %s3151_s25), 3 }
  0x11   : > { %s3150_s21 = sshll.u32 %s5545_s20, 3  ;;  %s3152_s26 = sshll.u32 %s5547_s25, 3 }
  0x12   : > { %s4027_s24 = scalar_lea.vmem %s5463_s2, %s3150_s21  ;;  %s242_s29 = scalar_lea.vmem %s5464_s3, %s3152_s26 }
  0x13   : > { %v4030_v1 = vld [vmem:[%s4027_s24 + $0x10] sm:$0xff]  ;;  %v4033_v2 = vld [vmem:[%s4027_s24] sm:$0xff]  ;;  %v4038_v3 = vld [vmem:[%s4027_s24 + $0x18] sm:$0xff]  ;;  %s3976_s7 = smov 80   ;;  %s3977_s25 = smov 16  }
  0x14   : > { %306 = vperm.xlu1 %3597, %v4030_v1   ;;  %296 = vperm.xlu0 %3596, %v4033_v2   ;;  %v4041_v4 = vld [vmem:[%s4027_s24 + $0x8] sm:$0xff]  ;;  %v4049_v6 = vld [vmem:[%s4027_s24 + $0x20] sm:$0xff]  ;;  %v4054_v7 = vld [vmem:[%s4027_s24 + $0x38] sm:$0xff]  ;;  %s3978_s6 = smov 64   ;;  %s3979_s10 = smov 48  }
  0x15   : > { %v4044_v5 = vld [vmem:[%s4027_s24 + $0x28] sm:$0xff]  ;;  %v4057_v8 = vld [vmem:[%s4027_s24 + $0x30] sm:$0xff]  ;;  %v251_v11 = vld [vmem:[%s242_s29] sm:$0xff] }
  0x16   : > { %v253_v12 = vunpack.c.0.s8 %v251_v11  ;;  %v255_v13 = vunpack.c.2.s8 %v251_v11  ;;  %v254_v15 = vunpack.c.1.s8 %v251_v11  ;;  %v252_v16 = vld [vmem:[%s242_s29 + $0x8] sm:$0xff]  ;;  %v256_v18 = vunpack.c.3.s8 %v251_v11  ;;  %s3980_s29 = smov 32  }
  0x17   : > { %v257_v22 = vunpack.c.0.s8 %v252_v16  ;;  %v258_v27 = vunpack.c.1.s8 %v252_v16  ;;  %v259_v33 = vunpack.c.2.s8 %v252_v16  ;;  %v260_v44 = vunpack.c.3.s8 %v252_v16 }
  0x18   : > { %311 = vperm.xlu1 %3597, %v4038_v3   ;;  %301 = vperm.xlu0 %3596, %v4041_v4   ;;  %v261_v14 = vcvt.s32.f32 %v253_v12  ;;  %v263_v17 = vcvt.s32.f32 %v255_v13  ;;  %v262_v21 = vcvt.s32.f32 %v254_v15  ;;  %v264_v26 = vcvt.s32.f32 %v256_v18 }
  0x19   : > { %v265_v32 = vcvt.s32.f32 %v257_v22  ;;  %v266_v40 = vcvt.s32.f32 %v258_v27  ;;  %v267_v48 = vcvt.s32.f32 %v259_v33  ;;  %v268_v59 = vcvt.s32.f32 %v260_v44 }
  0x1a   : > { %v3155_v20 = vadd.f32 -1.0, %v261_v14  ;;  %v3157_v25 = vadd.f32 -1.0, %v263_v17  ;;  %v3156_v31 = vadd.f32 -1.0, %v262_v21  ;;  %v3158_v39 = vadd.f32 -1.0, %v264_v26 }
  0x1b   : > { %v3159_v47 = vadd.f32 -1.0, %v265_v32  ;;  %v3160_v55 = vadd.f32 -1.0, %v266_v40  ;;  %v3161_v63 = vadd.f32 -1.0, %v267_v48  ;;  %v3162_v16 = vadd.f32 -1.0, %v268_v59 }
  0x1c   : > { %321 = vperm.xlu1 %3597, %v4044_v5   ;;  %316 = vperm.xlu0 %3596, %v4049_v6   ;;  %v4077_v30 = vmul.f32 1e+09, %v3155_v20  ;;  %v4079_v38 = vmul.f32 1e+09, %v3157_v25  ;;  %v4084_v46 = vmul.f32 1e+09, %v3156_v31 }
  0x1d   : > { %v4087_v54 = vmul.f32 1e+09, %v3158_v39  ;;  %v4095_v62 = vmul.f32 1e+09, %v3159_v47  ;;  %v4108_v20 = vld [vmem:[%s5462_s1 + $0x1] ss:$0 sm:$0xff] }
  0x1e   : > { %v4110_v21 = vmul.f32 1e+09, %v3160_v55  ;;  %v4112_v22 = vmul.f32 1e+09, %v3161_v63 }
  0x20   : > { %331 = vperm.xlu1 %3597, %v4054_v7   ;;  %326 = vperm.xlu0 %3596, %v4057_v8  }
  0x24   : > { %3598 = vset.pattern.permute.xlu1 %v3967_v9  ;;  %3599 = vset.pattern.permute.xlu0 %v3967_v9 }
  0x25   : > { %594 = vperm.xlu1 %3598, %v4033_v2   ;;  %598 = vperm.xlu0 %3599, %v4041_v4  }
  0x29   : > { %602 = vperm.xlu1 %3598, %v4030_v1   ;;  %3600 = vset.pattern.permute.xlu0 %v3968_v10 }
  0x2d   : > { %606 = vperm.xlu1 %3598, %v4038_v3  }
  0x31   : > { %610 = vperm.xlu1 %3598, %v4049_v6  }
  0x35   : > { %614 = vperm.xlu1 %3598, %v4044_v5  }
  0x39   : > { %618 = vperm.xlu1 %3598, %v4057_v8  }
  0x3d   : > { %622 = vperm.xlu1 %3598, %v4054_v7  }
  0x41   : > { %3601 = vset.pattern.permute.xlu1 %v3968_v10 }
  0x93   : > { %v307_v23 = vpop.permute.xlu1 %306  ;;  %v297_v24 = vpop.permute.xlu0 %296 }
  0x94   : > { %v340_v28 = vadd.f32 %v3163_v19, %v307_v23  ;;  %v338_v29 = vadd.f32 %v3163_v19, %v297_v24 }
  0x96   : > { %v356_v34 = vmul.f32 0.2, %v340_v28  ;;  %v354_v35 = vmul.f32 0.2, %v338_v29  ;;  %vm346_vm0 = vcmp.gt.f32.partialorder %v338_v29, 0.0  ;;  %vm348_vm1 = vcmp.gt.f32.partialorder %v340_v28, 0.0 }
  0x97   : > { %v312_v36 = vpop.permute.xlu1 %311  ;;  %v302_v37 = vpop.permute.xlu0 %301 }
  0x98   : > { %v341_v41 = vadd.f32 %v3163_v19, %v312_v36  ;;  %v339_v42 = vadd.f32 %v3163_v19, %v302_v37  ;;  %v362_v43 = vsel %vm346_vm0, %v338_v29, %v354_v35  ;;  %v364_v51 = vsel %vm348_vm1, %v340_v28, %v356_v34 }
  0x99   : > { %v4082_v45 = vadd.f32 %v362_v43, %v4077_v30  ;;  %v4090_v60 = vadd.f32 %v364_v51, %v4079_v38  ;;  %v4116_v28 = vmul.f32 1e+09, %v3162_v16 }
  0x9a   : > { %v357_v49 = vmul.f32 0.2, %v341_v41  ;;  %v355_v50 = vmul.f32 0.2, %v339_v42  ;;  %vm347_vm2 = vcmp.gt.f32.partialorder %v339_v42, 0.0  ;;  %vm349_vm3 = vcmp.gt.f32.partialorder %v341_v41, 0.0 }
  0x9b   : > { %v322_v52 = vpop.permute.xlu1 %321  ;;  %378 = vmax.xlane.f32.xlu0 %v4082_v45  ;;  %v317_v53 = vpop.permute.xlu0 %316 }
  0x9c   : > { %v343_v56 = vadd.f32 %v3163_v19, %v322_v52  ;;  %v342_v57 = vadd.f32 %v3163_v19, %v317_v53  ;;  %v363_v58 = vsel %vm347_vm2, %v339_v42, %v355_v50  ;;  %v365_v10 = vsel %vm349_vm3, %v341_v41, %v357_v49 }
  0x9d   : > { %v4093_v61 = vadd.f32 %v363_v58, %v4084_v46  ;;  %v4100_v17 = vadd.f32 %v365_v10, %v4087_v54 }
  0x9e   : > { %v359_v0 = vmul.f32 0.2, %v343_v56  ;;  %v358_v9 = vmul.f32 0.2, %v342_v57  ;;  %vm350_vm4 = vcmp.gt.f32.partialorder %v342_v57, 0.0  ;;  %vm351_vm5 = vcmp.gt.f32.partialorder %v343_v56, 0.0 }
  0x9f   : > { %v332_v11 = vpop.permute.xlu1 %331  ;;  %382 = vmax.xlane.f32.xlu0 %v4090_v60  ;;  %380 = vmax.xlane.f32.xlu1 %v4093_v61  ;;  %v327_v12 = vpop.permute.xlu0 %326 }
  0xa0   : > { %v345_v13 = vadd.f32 %v3163_v19, %v332_v11  ;;  %v344_v14 = vadd.f32 %v3163_v19, %v327_v12  ;;  %v366_v15 = vsel %vm350_vm4, %v342_v57, %v358_v9  ;;  %v367_v19 = vsel %vm351_vm5, %v343_v56, %v359_v0 }
  0xa1   : > { %v4103_v18 = vadd.f32 %v366_v15, %v4095_v62  ;;  %v4120_v31 = vadd.f32 %v367_v19, %v4110_v21 }
  0xa2   : > { %v361_v23 = vmul.f32 0.2, %v345_v13  ;;  %v360_v24 = vmul.f32 0.2, %v344_v14  ;;  %vm352_vm6 = vcmp.gt.f32.partialorder %v344_v14, 0.0  ;;  %vm353_vm7 = vcmp.gt.f32.partialorder %v345_v13, 0.0 }
  0xa3   : > { %384 = vmax.xlane.f32.xlu0 %v4100_v17  ;;  %386 = vmax.xlane.f32.xlu1 %v4103_v18 }
  0xa4   : > { %v595_v25 = vpop.permute.xlu1 %594  ;;  %v368_v26 = vsel %vm352_vm6, %v344_v14, %v360_v24  ;;  %v599_v27 = vpop.permute.xlu0 %598  ;;  %v369_v34 = vsel %vm353_vm7, %v345_v13, %v361_v23 }
  0xa5   : > { %v629_v29 = vadd.f32 %v4108_v20, %v595_v25  ;;  %v4123_v32 = vadd.f32 %v368_v26, %v4112_v22  ;;  %v630_v33 = vadd.f32 %v4108_v20, %v599_v27  ;;  %v4130_v40 = vadd.f32 %v369_v34, %v4116_v28  ;;  %v3617_v34 = vld [vmem:[%s5461_s0 + $0x8] sm:$0xff]  }
  0xa7   : > { %v645_v35 = vmul.f32 0.2, %v629_v29  ;;  %388 = vmax.xlane.f32.xlu0 %v4120_v31  ;;  %390 = vmax.xlane.f32.xlu1 %v4123_v32  ;;  %v646_v36 = vmul.f32 0.2, %v630_v33  ;;  %vm637_vm8 = vcmp.gt.f32.partialorder %v629_v29, 0.0  ;;  %vm638_vm9 = vcmp.gt.f32.partialorder %v630_v33, 0.0 }
  0xa8   : > { %v603_v37 = vpop.permute.xlu1 %602 }
  0xa9   : > { %v631_v39 = vadd.f32 %v4108_v20, %v603_v37  ;;  %v653_v41 = vsel %vm637_vm8, %v629_v29, %v645_v35  ;;  %v654_v42 = vsel %vm638_vm9, %v630_v33, %v646_v36  ;;  %v3614_v29 = vld [vmem:[%s5461_s0] sm:$0xff]   ;;  %v3616_v33 = vld [vmem:[%s5461_s0 + $0x18] sm:$0xff]   ;;  %v3618_v35 = vld [vmem:[%s5461_s0 + $0x28] sm:$0xff]  }
  0xaa   : > { %v4133_v43 = vadd.f32 %v653_v41, %v4077_v30  ;;  %v4137_v47 = vadd.f32 %v654_v42, %v4084_v46  ;;  %v3619_v36 = vld [vmem:[%s5461_s0 + $0x20] sm:$0xff]   ;;  %v3620_v37 = vld [vmem:[%s5461_s0 + $0x38] sm:$0xff]  }
  0xab   : > { %v647_v44 = vmul.f32 0.2, %v631_v39  ;;  %392 = vmax.xlane.f32.xlu0 %v4130_v40  ;;  %vm639_vm10 = vcmp.gt.f32.partialorder %v631_v39, 0.0 }
  0xac   : > { %v607_v48 = vpop.permute.xlu1 %606  ;;  %669 = vmax.xlane.f32.xlu1 %v4133_v43 }
  0xad   : > { %v632_v49 = vadd.f32 %v4108_v20, %v607_v48  ;;  %v655_v50 = vsel %vm639_vm10, %v631_v39, %v647_v44  ;;  %v3621_v39 = vld [vmem:[%s5461_s0 + $0x30] sm:$0xff]  }
  0xae   : > { %v4142_v51 = vadd.f32 %v655_v50, %v4079_v38 }
  0xaf   : > { %v648_v52 = vmul.f32 0.2, %v632_v49  ;;  %671 = vmax.xlane.f32.xlu0 %v4137_v47  ;;  %vm640_vm11 = vcmp.gt.f32.partialorder %v632_v49, 0.0 }
  0xb0   : > { %v611_v53 = vpop.permute.xlu1 %610  ;;  %673 = vmax.xlane.f32.xlu1 %v4142_v51 }
  0xb1   : > { %v633_v55 = vadd.f32 %v4108_v20, %v611_v53  ;;  %v656_v56 = vsel %vm640_vm11, %v632_v49, %v648_v52  ;;  %vm583_vm11 = vcmask 130048  }
  0xb2   : > { %v4148_v57 = vadd.f32 %v656_v56, %v4087_v54 }
  0xb3   : > { %v649_v58 = vmul.f32 0.2, %v633_v55  ;;  %vm641_vm12 = vcmp.gt.f32.partialorder %v633_v55, 0.0 }
  0xb4   : > { %v615_v59 = vpop.permute.xlu1 %614  ;;  %675 = vmax.xlane.f32.xlu0 %v4148_v57 }
  0xb5   : > { %v634_v63 = vadd.f32 %v4108_v20, %v615_v59  ;;  %v657_v0 = vsel %vm641_vm12, %v633_v55, %v649_v58 }
  0xb6   : > { %v4153_v9 = vadd.f32 %v657_v0, %v4095_v62 }
  0xb7   : > { %v650_v10 = vmul.f32 0.2, %v634_v63  ;;  %vm642_vm13 = vcmp.gt.f32.partialorder %v634_v63, 0.0 }
  0xb8   : > { %v619_v11 = vpop.permute.xlu1 %618  ;;  %677 = vmax.xlane.f32.xlu1 %v4153_v9 }
  0xb9   : > { %v635_v12 = vadd.f32 %v4108_v20, %v619_v11  ;;  %v658_v13 = vsel %vm642_vm13, %v634_v63, %v650_v10 }
  0xba   : > { %v4158_v14 = vadd.f32 %v658_v13, %v4110_v21 }
  0xbb   : > { %v651_v15 = vmul.f32 0.2, %v635_v12  ;;  %vm643_vm14 = vcmp.gt.f32.partialorder %v635_v12, 0.0 }
  0xbc   : > { %v623_v16 = vpop.permute.xlu1 %622  ;;  %679 = vmax.xlane.f32.xlu0 %v4158_v14 }
  0xbd   : > { %v636_v23 = vadd.f32 %v4108_v20, %v623_v16  ;;  %v659_v24 = vsel %vm643_vm14, %v635_v12, %v651_v15  ;;  %v3615_v20 = vld [vmem:[%s5461_s0 + $0x10] sm:$0xff]   ;;  %v3181_v12 = vld [vmem:[%s5462_s1 + $0x2] ss:$0 sm:$0xff] }
  0xbe   : > { %v4163_v19 = vadd.f32 %v659_v24, %v4112_v22 }
  0xbf   : > { %v652_v25 = vmul.f32 0.2, %v636_v23  ;;  %vm644_vm15 = vcmp.gt.f32.partialorder %v636_v23, 0.0 }
  0xc0   : > { %681 = vmax.xlane.f32.xlu1 %v4163_v19 }
  0xc1   : > { %v660_v26 = vsel %vm644_vm15, %v636_v23, %v652_v25 }
  0xc2   : > { %v4167_v27 = vadd.f32 %v660_v26, %v4116_v28 }
  0xc4   : > { %683 = vmax.xlane.f32.xlu0 %v4167_v27 }
  0xd1   : > { %801 = vrot.lane.b32.xlu1 %v3614_v29, %s3969_s11 }
  0xd5   : > { %805 = vrot.lane.b32.xlu1 %v3615_v20, %s3969_s11 }
  0xd9   : > { %807 = vrot.lane.b32.xlu1 %v3616_v33, %s3969_s11 }
  0xda   : > { %803 = vrot.lane.b32.xlu0 %v3617_v34, %s3969_s11 }
  0xdd   : > { %811 = vrot.lane.b32.xlu1 %v3618_v35, %s3969_s11 }
  0xde   : > { %809 = vrot.lane.b32.xlu0 %v3619_v36, %s3969_s11 }
  0xe1   : > { %815 = vrot.lane.b32.xlu1 %v3620_v37, %s3969_s11 }
  0xe2   : > { %813 = vrot.lane.b32.xlu0 %v3621_v39, %s3969_s11 }
  0xe5   : > { %937 = vperm.xlu1 %3601, %v4041_v4  }
  0xe6   : > { %933 = vperm.xlu0 %3600, %v4033_v2  }
  0xe9   : > { %941 = vperm.xlu1 %3601, %v4030_v1  }
  0xea   : > { %945 = vperm.xlu0 %3600, %v4038_v3  }
  0xed   : > { %949 = vperm.xlu1 %3601, %v4049_v6  }
  0xee   : > { %953 = vperm.xlu0 %3600, %v4044_v5  }
  0xf1   : > { %957 = vperm.xlu1 %3601, %v4057_v8  }
  0xf2   : > { %961 = vperm.xlu0 %3600, %v4054_v7  }
 0x128   : > { %v379_v41 = vpop.xlane.xlu0 %378 }
 0x129   : > { %v394_v24 = vsub.f32 %v4082_v45, %v379_v41 }
 0x12b   : > { %v402_v39 = vmul.f32 1.442695, %v394_v24 }
 0x12c   : > { %v4210_v42 = vpop.xlane.xlu0 %382  ;;  %v381_v44 = vpop.xlane.xlu1 %380 }
 0x12d   : > { %v395_v29 = vsub.f32 %v4093_v61, %v381_v44  ;;  %3678 = vpow2.f32 %v402_v39 }
 0x12f   : > { %v404_v61 = vmul.f32 1.442695, %v395_v29 }
 0x130   : > { %v4212_v48 = vpop.xlane.xlu0 %384  ;;  %v4214_v4 = vpop.xlane.xlu1 %386 }
 0x131   : > { %v397_v44 = vsub.f32 %v4100_v17, %v4212_v48  ;;  %3680 = vpow2.f32 %v404_v61 }
 0x133   : > { %v408_v24 = vmul.f32 1.442695, %v397_v44 }
 0x134   : > { %v4216_v2 = vpop.xlane.xlu0 %388  ;;  %v4218_v1 = vpop.xlane.xlu1 %390 }
 0x137   : > { %v4285_v61 = vpop.eup %3678 }
 0x138   : > { %v4220_v3 = vpop.xlane.xlu0 %392 }
 0x139   : > { %v4222_v6 = vpop.xlane.xlu1 %669 }
 0x13b   : > { %v4293_v44 = vpop.eup %3680 }
 0x13c   : > { %v4224_v5 = vpop.xlane.xlu0 %671 }
 0x13d   : > { %v4226_v8 = vpop.xlane.xlu1 %673 }
 0x141   : > { %v4228_v7 = vpop.xlane.xlu0 %675 }
 0x145   : > { %v4230_v49 = vpop.xlane.xlu1 %677 }
 0x149   : > { %v4232_v50 = vpop.xlane.xlu0 %679 }
 0x14d   : > { %v4234_v52 = vpop.xlane.xlu1 %681 }
 0x151   : > { %v802_v53 = vpop.permute.xlu1 %801  ;;  %v4236_v55 = vpop.xlane.xlu0 %683 }
 0x152   : > { %3405 = vmatprep.subr.bf16.mxu1 %v802_v53 }
 0x153   : > { %3406 = vmatpush3.bf16.msra.mxu1 %v802_v53  ;;  %v396_v53 = vsub.f32 %v4090_v60, %v4210_v42 }
 0x155   : > { %v806_v56 = vpop.permute.xlu1 %805  ;;  %v804_v58 = vpop.permute.xlu0 %803 }
 0x156   : > { %3407 = vmatprep.subr.bf16.mxu1 %v804_v58 }
 0x157   : > { %3408 = vmatpush3.bf16.msra.mxu1 %v804_v58 }
 0x158   : > { %3409 = vmatprep.subr.bf16.mxu1 %v806_v56 }
 0x159   : > { %v808_v59 = vpop.permute.xlu1 %807  ;;  %v810_v63 = vpop.permute.xlu0 %809 }
 0x15b   : > { %3410 = vmatpush3.bf16.msra.mxu1 %v806_v56 }
 0x15c   : > { %3411 = vmatprep.subr.bf16.mxu1 %v808_v59 }
 0x15d   : > { %v812_v0 = vpop.permute.xlu1 %811  ;;  %v814_v10 = vpop.permute.xlu0 %813 }
 0x15f   : > { %3412 = vmatpush3.bf16.msra.mxu1 %v808_v59 }
 0x160   : > { %3413 = vmatprep.subr.bf16.mxu1 %v810_v63 }
 0x161   : > { %v816_v11 = vpop.permute.xlu1 %815 }
 0x163   : > { %3414 = vmatpush3.bf16.msra.mxu1 %v810_v63 }
 0x164   : > { %3415 = vmatprep.subr.bf16.mxu1 %v812_v0 }
 0x165   : > { %v938_v13 = vpop.permute.xlu1 %937  ;;  %v934_v15 = vpop.permute.xlu0 %933 }
 0x166   : > { %v969_v16 = vadd.f32 %v3181_v12, %v938_v13  ;;  %v968_v23 = vadd.f32 %v3181_v12, %v934_v15  ;;  %v406_v13 = vmul.f32 1.442695, %v396_v53 }
 0x167   : > { %3416 = vmatpush3.bf16.msra.mxu1 %v812_v0 }
 0x168   : > { %v985_v25 = vmul.f32 0.2, %v969_v16  ;;  %v984_v26 = vmul.f32 0.2, %v968_v23  ;;  %3417 = vmatprep.subr.bf16.mxu1 %v814_v10  ;;  %vm977_vm0 = vcmp.gt.f32.partialorder %v969_v16, 0.0  ;;  %vm976_vm1 = vcmp.gt.f32.partialorder %v968_v23, 0.0 }
 0x169   : > { %v942_v20 = vpop.permute.xlu1 %941  ;;  %v946_v33 = vpop.permute.xlu0 %945  ;;  %3682 = vpow2.f32 %v406_v13  ;;  %v3624_v13 = vld [vmem:[%s5461_s0 + $0x10] sm:$0xff]  }
 0x16a   : > { %v970_v34 = vadd.f32 %v3181_v12, %v942_v20  ;;  %v971_v35 = vadd.f32 %v3181_v12, %v946_v33  ;;  %v993_v36 = vsel %vm977_vm0, %v969_v16, %v985_v25  ;;  %v992_v37 = vsel %vm976_vm1, %v968_v23, %v984_v26 }
 0x16b   : > { %3418 = vmatpush3.bf16.msra.mxu1 %v814_v10  ;;  %v4246_v45 = vadd.f32 %v993_v36, %v4084_v46  ;;  %v4249_v41 = vadd.f32 %v992_v37, %v4077_v30  ;;  %v398_v23 = vsub.f32 %v4103_v18, %v4214_v4  ;;  %v399_v25 = vsub.f32 %v4120_v31, %v4216_v2 }
 0x16c   : > { %v986_v56 = vmul.f32 0.2, %v970_v34  ;;  %v987_v58 = vmul.f32 0.2, %v971_v35  ;;  %3419 = vmatprep.subr.bf16.mxu1 %v816_v11  ;;  %vm978_vm2 = vcmp.gt.f32.partialorder %v970_v34, 0.0  ;;  %vm979_vm3 = vcmp.gt.f32.partialorder %v971_v35, 0.0 }
 0x16d   : > { %v950_v59 = vpop.permute.xlu1 %949  ;;  %1010 = vmax.xlane.f32.xlu0 %v4246_v45  ;;  %1008 = vmax.xlane.f32.xlu1 %v4249_v41  ;;  %v954_v60 = vpop.permute.xlu0 %953  ;;  %v410_v31 = vmul.f32 1.442695, %v398_v23  ;;  %3684 = vpow2.f32 %v408_v24  ;;  %v400_v2 = vsub.f32 %v4123_v32, %v4218_v1  ;;  %v401_v37 = vsub.f32 %v4130_v40, %v4220_v3 }
 0x16e   : > { %v972_v42 = vadd.f32 %v3181_v12, %v950_v59  ;;  %v973_v63 = vadd.f32 %v3181_v12, %v954_v60  ;;  %v994_v0 = vsel %vm978_vm2, %v970_v34, %v986_v56  ;;  %v995_v10 = vsel %vm979_vm3, %v971_v35, %v987_v58 }
 0x16f   : > { %3420 = vmatpush3.bf16.msra.mxu1 %v816_v11  ;;  %v4256_v15 = vadd.f32 %v994_v0, %v4079_v38  ;;  %v4259_v16 = vadd.f32 %v995_v10, %v4087_v54  ;;  %3686 = vpow2.f32 %v410_v31  ;;  %v414_v32 = vmul.f32 1.442695, %v400_v2 }
 0x170   : > { %v988_v17 = vmul.f32 0.2, %v972_v42  ;;  %v989_v48 = vmul.f32 0.2, %v973_v63  ;;  %vm980_vm4 = vcmp.gt.f32.partialorder %v972_v42, 0.0  ;;  %vm981_vm5 = vcmp.gt.f32.partialorder %v973_v63, 0.0 }
 0x171   : > { %v958_v26 = vpop.permute.xlu1 %957  ;;  %1012 = vmax.xlane.f32.xlu0 %v4256_v15  ;;  %1014 = vmax.xlane.f32.xlu1 %v4259_v16  ;;  %v962_v11 = vpop.permute.xlu0 %961  ;;  %v685_v1 = vsub.f32 %v4133_v43, %v4222_v6  ;;  %v416_v40 = vmul.f32 1.442695, %v401_v37  ;;  %v686_v3 = vsub.f32 %v4137_v47, %v4224_v5  ;;  %v3622_v43 = vld [vmem:[%s5461_s0] sm:$0xff]   ;;  %v688_v47 = vsub.f32 %v4148_v57, %v4228_v7 }
 0x172   : > { %v974_v29 = vadd.f32 %v3181_v12, %v958_v26  ;;  %v975_v20 = vadd.f32 %v3181_v12, %v962_v11  ;;  %v996_v33 = vsel %vm980_vm4, %v972_v42, %v988_v17  ;;  %v997_v34 = vsel %vm981_vm5, %v973_v63, %v989_v48  ;;  %3381 = vmatprep.subr.bf16.mxu0 %v3622_v43  ;;  %v3627_v11 = vld [vmem:[%s5461_s0 + $0x28] sm:$0xff]  }
 0x173   : > { %v4268_v35 = vadd.f32 %v996_v33, %v4095_v62  ;;  %v4271_v18 = vadd.f32 %v997_v34, %v4110_v21  ;;  %v412_v12 = vmul.f32 1.442695, %v399_v25  ;;  %v4295_v59 = vpop.eup %3682  ;;  %v693_v60 = vmul.f32 1.442695, %v685_v1  ;;  %3382 = vmatpush3.bf16.msra.mxu0 %v3622_v43  ;;  %v3628_v33 = vld [vmem:[%s5461_s0 + $0x30] sm:$0xff]  }
 0x174   : > { %v990_v4 = vmul.f32 0.2, %v974_v29  ;;  %v991_v36 = vmul.f32 0.2, %v975_v20  ;;  %vm982_vm6 = vcmp.gt.f32.partialorder %v974_v29, 0.0  ;;  %vm983_vm7 = vcmp.gt.f32.partialorder %v975_v20, 0.0 }
 0x175   : > { %1016 = vmax.xlane.f32.xlu0 %v4268_v35  ;;  %1018 = vmax.xlane.f32.xlu1 %v4271_v18  ;;  %3688 = vpow2.f32 %v412_v12  ;;  %v687_v42 = vsub.f32 %v4142_v51, %v4226_v8  ;;  %v695_v6 = vmul.f32 1.442695, %v686_v3  ;;  %v689_v51 = vsub.f32 %v4153_v9, %v4230_v49  ;;  %v3623_v8 = vld [vmem:[%s5461_s0 + $0x8] sm:$0xff]  }
 0x176   : > { %v998_v39 = vsel %vm982_vm6, %v974_v29, %v990_v4  ;;  %v999_v53 = vsel %vm983_vm7, %v975_v20, %v991_v36  ;;  %3690 = vpow2.f32 %v414_v32  ;;  %v699_v0 = vmul.f32 1.442695, %v688_v47  ;;  %3383 = vmatprep.subr.bf16.mxu0 %v3623_v8  ;;  %v3629_v36 = vld [vmem:[%s5461_s0 + $0x38] sm:$0xff]  }
 0x177   : > { %v4280_v56 = vadd.f32 %v998_v39, %v4112_v22  ;;  %v4283_v58 = vadd.f32 %v999_v53, %v4116_v28  ;;  %3692 = vpow2.f32 %v416_v40  ;;  %v4306_v5 = vpop.eup %3684  ;;  %v697_v63 = vmul.f32 1.442695, %v687_v42  ;;  %3384 = vmatpush3.bf16.msra.mxu0 %v3623_v8 }
 0x178   : > { %3694 = vpow2.f32 %v693_v60  ;;  %v690_v57 = vsub.f32 %v4158_v14, %v4232_v50  ;;  %v701_v9 = vmul.f32 1.442695, %v689_v51  ;;  %v691_v49 = vsub.f32 %v4163_v19, %v4234_v52  ;;  %3385 = vmatprep.subr.bf16.mxu0 %v3624_v13  ;;  %v3625_v52 = vld [vmem:[%s5461_s0 + $0x18] sm:$0xff]  }
 0x179   : > { %1020 = vmax.xlane.f32.xlu0 %v4280_v56  ;;  %1022 = vmax.xlane.f32.xlu1 %v4283_v58  ;;  %3696 = vpow2.f32 %v695_v6  ;;  %v4317_v7 = vpop.eup %3686  ;;  %v692_v50 = vsub.f32 %v4167_v27, %v4236_v55  ;;  %v3626_v55 = vld [vmem:[%s5461_s0 + $0x20] sm:$0xff]   ;;  %v3970_v31 = vmov 3  }
 0x17a   : > { %3698 = vpow2.f32 %v697_v63  ;;  %v703_v14 = vmul.f32 1.442695, %v690_v57  ;;  %v705_v19 = vmul.f32 1.442695, %v691_v49  ;;  %3603 = vset.pattern.permute.xlu1 %v3970_v31  ;;  %3602 = vset.pattern.permute.xlu0 %v3970_v31 }
 0x17b   : > { %3700 = vpow2.f32 %v699_v0  ;;  %3386 = vmatpush3.bf16.msra.mxu0 %v3624_v13  ;;  %v707_v23 = vmul.f32 1.442695, %v692_v50 }
 0x17c   : > { %3702 = vpow2.f32 %v701_v9  ;;  %3387 = vmatprep.subr.bf16.mxu0 %v3625_v52 }
 0x17d   : > { %420 = vadd.xlane.f32.xlu0 %v4293_v44  ;;  %418 = vadd.xlane.f32.xlu1 %v4285_v61  ;;  %3704 = vpow2.f32 %v703_v14 }
 0x17e   : > { %3706 = vpow2.f32 %v705_v19 }
 0x17f   : > { %v4319_v10 = vpop.eup %3688  ;;  %3388 = vmatpush3.bf16.msra.mxu0 %v3625_v52  ;;  %3708 = vpow2.f32 %v707_v23 }
 0x180   : > { %v4330_v17 = vpop.eup %3690  ;;  %3389 = vmatprep.subr.bf16.mxu0 %v3626_v55 }
 0x181   : > { %424 = vadd.xlane.f32.xlu0 %v4306_v5  ;;  %422 = vadd.xlane.f32.xlu1 %v4295_v59  ;;  %v4332_v48 = vpop.eup %3692 }
 0x182   : > { %v4339_v24 = vpop.eup %3694 }
 0x183   : > { %v4341_v27 = vpop.eup %3696  ;;  %3390 = vmatpush3.bf16.msra.mxu0 %v3626_v55 }
 0x184   : > { %v4348_v25 = vpop.eup %3698  ;;  %3391 = vmatprep.subr.bf16.mxu0 %v3627_v11 }
 0x185   : > { %428 = vadd.xlane.f32.xlu0 %v4319_v10  ;;  %426 = vadd.xlane.f32.xlu1 %v4317_v7  ;;  %v4350_v26 = vpop.eup %3700 }
 0x186   : > { %v4357_v29 = vpop.eup %3702 }
 0x187   : > { %v4359_v20 = vpop.eup %3704  ;;  %3392 = vmatpush3.bf16.msra.mxu0 %v3627_v11 }
 0x188   : > { %v4366_v34 = vpop.eup %3706  ;;  %3393 = vmatprep.subr.bf16.mxu0 %v3628_v33 }
 0x189   : > { %432 = vadd.xlane.f32.xlu0 %v4332_v48  ;;  %430 = vadd.xlane.f32.xlu1 %v4330_v17  ;;  %v4368_v4 = vpop.eup %3708 }
 0x18b   : > { %3394 = vmatpush3.bf16.msra.mxu0 %v3628_v33 }
 0x18c   : > { %3395 = vmatprep.subr.bf16.mxu0 %v3629_v36 }
 0x18d   : > { %711 = vadd.xlane.f32.xlu0 %v4341_v27  ;;  %709 = vadd.xlane.f32.xlu1 %v4339_v24 }
 0x18f   : > { %3396 = vmatpush3.bf16.msra.mxu0 %v3629_v36 }
 0x191   : > { %715 = vadd.xlane.f32.xlu0 %v4350_v26  ;;  %713 = vadd.xlane.f32.xlu1 %v4348_v25 }
 0x195   : > { %719 = vadd.xlane.f32.xlu0 %v4359_v20  ;;  %717 = vadd.xlane.f32.xlu1 %v4357_v29 }
 0x199   : > { %723 = vadd.xlane.f32.xlu0 %v4368_v4  ;;  %721 = vadd.xlane.f32.xlu1 %v4366_v34 }
 0x1fa   : > { %v1009_v2 = vpop.xlane.xlu1 %1008  ;;  %v1011_v12 = vpop.xlane.xlu0 %1010 }
 0x1fb   : > { %v1024_v37 = vsub.f32 %v4249_v41, %v1009_v2  ;;  %v1025_v39 = vsub.f32 %v4246_v45, %v1011_v12 }
 0x1fd   : > { %v1032_v53 = vmul.f32 1.442695, %v1024_v37  ;;  %v1034_v32 = vmul.f32 1.442695, %v1025_v39 }
 0x1fe   : > { %v1015_v1 = vpop.xlane.xlu1 %1014  ;;  %v1013_v40 = vpop.xlane.xlu0 %1012 }
 0x1ff   : > { %3710 = vpow2.f32 %v1032_v53  ;;  %v1027_v3 = vsub.f32 %v4259_v16, %v1015_v1  ;;  %v1026_v60 = vsub.f32 %v4256_v15, %v1013_v40 }
 0x200   : > { %3712 = vpow2.f32 %v1034_v32 }
 0x201   : > { %v1038_v42 = vmul.f32 1.442695, %v1027_v3  ;;  %v1036_v43 = vmul.f32 1.442695, %v1026_v60 }
 0x202   : > { %v1019_v6 = vpop.xlane.xlu1 %1018  ;;  %v1017_v47 = vpop.xlane.xlu0 %1016 }
 0x203   : > { %3714 = vpow2.f32 %v1038_v42  ;;  %v1029_v63 = vsub.f32 %v4271_v18, %v1019_v6  ;;  %v1028_v41 = vsub.f32 %v4268_v35, %v1017_v47 }
 0x204   : > { %3716 = vpow2.f32 %v1036_v43 }
 0x205   : > { %v1042_v45 = vmul.f32 1.442695, %v1029_v63  ;;  %v1040_v51 = vmul.f32 1.442695, %v1028_v41 }
 0x206   : > { %v1023_v8 = vpop.xlane.xlu1 %1022  ;;  %v1021_v0 = vpop.xlane.xlu0 %1020 }
 0x207   : > { %3718 = vpow2.f32 %v1042_v45  ;;  %v1031_v16 = vsub.f32 %v4283_v58, %v1023_v8  ;;  %v1030_v15 = vsub.f32 %v4280_v56, %v1021_v0 }
 0x208   : > { %3720 = vpow2.f32 %v1040_v51 }
 0x209   : > { %v4383_v57 = vpop.eup %3710  ;;  %v1046_v9 = vmul.f32 1.442695, %v1031_v16  ;;  %v1044_v49 = vmul.f32 1.442695, %v1030_v15 }
 0x20a   : > { %v4385_v13 = vpop.eup %3712  ;;  %1048 = vadd.xlane.f32.xlu0 %v4383_v57  ;;  %v419_v35 = vpop.xlane.xlu1 %418 }
 0x20b   : > { %v421_v18 = vpop.xlane.xlu0 %420  ;;  %3722 = vpow2.f32 %v1046_v9  ;;  %1050 = vadd.xlane.f32.xlu1 %v4385_v13 }
 0x20c   : > { %3724 = vpow2.f32 %v1044_v49 }
 0x20d   : > { %v4389_v14 = vpop.eup %3714  ;;  %3726 = vrcp.f32 %v419_v35 }
 0x20e   : > { %v4391_v58 = vpop.eup %3716  ;;  %3728 = vrcp.f32 %v421_v18  ;;  %v423_v56 = vpop.xlane.xlu1 %422 }
 0x20f   : > { %v425_v50 = vpop.xlane.xlu0 %424  ;;  %3730 = vrcp.f32 %v423_v56  ;;  %1054 = vadd.xlane.f32.xlu1 %v4389_v14  ;;  %1052 = vadd.xlane.f32.xlu0 %v4391_v58 }
 0x210   : > { %3732 = vrcp.f32 %v425_v50 }
 0x211   : > { %v4395_v19 = vpop.eup %3718 }
 0x212   : > { %5492 = vst [vmem:[#allocation3_spill] sm:$0xff] %v4395_v19  ;;  %v4397_v52 = vpop.eup %3720  ;;  %v427_v23 = vpop.xlane.xlu1 %426 }
 0x213   : > { %5493 = vst [vmem:[#allocation4_spill] sm:$0xff] %v4397_v52  ;;  %v429_v55 = vpop.xlane.xlu0 %428  ;;  %3734 = vrcp.f32 %v427_v23  ;;  %1058 = vadd.xlane.f32.xlu1 %v4395_v19  ;;  %1056 = vadd.xlane.f32.xlu0 %v4397_v52  ;;  %v3632_v23 = vld [vmem:[%s5461_s0] sm:$0xff]  }
 0x214   : > { %3736 = vrcp.f32 %v429_v55 }
 0x215   : > { %v4401_v11 = vpop.eup %3722 }
 0x216   : > { %5494 = vst [vmem:[#allocation5_spill] sm:$0xff] %v4401_v11  ;;  %v4403_v33 = vpop.eup %3724  ;;  %v431_v36 = vpop.xlane.xlu1 %430 }
 0x217   : > { %5495 = vst [vmem:[#allocation6_spill] sm:$0xff] %v4403_v33  ;;  %v433_v31 = vpop.xlane.xlu0 %432  ;;  %v3727_v2 = vpop.eup %3726  ;;  %3738 = vrcp.f32 %v431_v36  ;;  %1062 = vadd.xlane.f32.xlu1 %v4401_v11  ;;  %1060 = vadd.xlane.f32.xlu0 %v4403_v33  ;;  %v4689_v33 = vld [vmem:[%s5462_s1 + $0x6] ss:$0 sm:$0xff] }
 0x218   : > { %v3729_v12 = vpop.eup %3728  ;;  %3740 = vrcp.f32 %v433_v31  ;;  %v442_v37 = vmul.f32 %v3727_v2, %v4285_v61 }
 0x219   : > { %v3731_v39 = vpop.eup %3730  ;;  %v443_v53 = vmul.f32 %v3729_v12, %v4293_v44 }
 0x21a   : > { %v3733_v32 = vpop.eup %3732  ;;  %v710_v1 = vpop.xlane.xlu1 %709  ;;  %v444_v3 = vmul.f32 %v3731_v39, %v4295_v59  ;;  %v4434_v39 = vld [vmem:[%s4027_s24 + $0x8] sm:$0xff] }
 0x21b   : > { %v712_v40 = vpop.xlane.xlu0 %711  ;;  %3742 = vrcp.f32 %v710_v1  ;;  %v450_v60 = vpack.c.bf16 %v443_v53, %v442_v37  ;;  %v445_v42 = vmul.f32 %v3733_v32, %v4306_v5 }
 0x21c   : > { %3744 = vrcp.f32 %v712_v40  ;;  %v4444_v40 = vld [vmem:[%s4027_s24 + $0x10] sm:$0xff] }
 0x21d   : > { %v3735_v43 = vpop.eup %3734  ;;  %3397 = vmatprep.mubr.bf16.mxu0 %v450_v60  ;;  %v451_v6 = vpack.c.bf16 %v445_v42, %v444_v3  ;;  %v4451_v3 = vld [vmem:[%s4027_s24 + $0x18] sm:$0xff]  ;;  %v3635_v60 = vld [vmem:[%s5461_s0 + $0x28] sm:$0xff]   ;;  %v3636_v42 = vld [vmem:[%s5461_s0 + $0x30] sm:$0xff]  }
 0x21e   : > { %v3737_v47 = vpop.eup %3736  ;;  %v714_v63 = vpop.xlane.xlu1 %713  ;;  %v446_v61 = vmul.f32 %v3735_v43, %v4317_v7  ;;  %v3630_v7 = vld [vmem:[%s5461_s0 + $0x8] sm:$0xff]   ;;  %v4468_v43 = vld [vmem:[%s4027_s24 + $0x20] sm:$0xff] }
 0x21f   : > { %v716_v41 = vpop.xlane.xlu0 %715  ;;  %3746 = vrcp.f32 %v714_v63  ;;  %3398 = vmatmul.mubr.bf16.vlgmr.msra.gmra.mrb[0].mxu0 %v451_v6  ;;  %v447_v44 = vmul.f32 %v3737_v47, %v4319_v10  ;;  %v4472_v6 = vld [vmem:[%s4027_s24 + $0x28] sm:$0xff]  ;;  %v4476_v47 = vld [vmem:[%s4027_s24 + $0x30] sm:$0xff]  ;;  %v4480_v63 = vld [vmem:[%s4027_s24 + $0x38] sm:$0xff] }
 0x220   : > { %3748 = vrcp.f32 %v716_v41  ;;  %v3972_v41 = vmov 4  }
 0x221   : > { %v3739_v45 = vpop.eup %3738  ;;  %v452_v59 = vpack.c.bf16 %v447_v44, %v446_v61  ;;  %v3973_v61 = vmov 5   ;;  %v3974_v44 = vmov 6  }
 0x222   : > { %v3741_v51 = vpop.eup %3740  ;;  %v718_v8 = vpop.xlane.xlu1 %717  ;;  %v448_v5 = vmul.f32 %v3739_v45, %v4330_v17  ;;  %v3975_v45 = vmov 7  }
 0x223   : > { %v720_v0 = vpop.xlane.xlu0 %719  ;;  %3750 = vrcp.f32 %v718_v8  ;;  %3401 = vmatprep.mubr.bf16.mxu0 %v452_v59  ;;  %v449_v16 = vmul.f32 %v3741_v51, %v4332_v48  ;;  %v3631_v48 = vld [vmem:[%s5461_s0 + $0x10] sm:$0xff]  }
 0x224   : > { %3752 = vrcp.f32 %v720_v0 }
 0x225   : > { %v3743_v15 = vpop.eup %3742  ;;  %v453_v9 = vpack.c.bf16 %v449_v16, %v448_v5 }
 0x226   : > { %v3745_v10 = vpop.eup %3744  ;;  %v722_v49 = vpop.xlane.xlu1 %721  ;;  %v733_v18 = vmul.f32 %v3743_v15, %v4339_v24 }
 0x227   : > { %v724_v35 = vpop.xlane.xlu0 %723  ;;  %3754 = vrcp.f32 %v722_v49  ;;  %3402 = vmatmul.mubr.bf16.gmra.mrb[4].mxu0 %v453_v9  ;;  %v734_v17 = vmul.f32 %v3745_v10, %v4341_v27 }
 0x228   : > { %3756 = vrcp.f32 %v724_v35  ;;  %1142 = vrot.lane.b32.xlu1 %v3630_v7, %s3971_s28 }
 0x229   : > { %v3747_v56 = vpop.eup %3746  ;;  %v741_v50 = vpack.c.bf16 %v734_v17, %v733_v18 }
 0x22a   : > { %v3749_v24 = vpop.eup %3748  ;;  %v735_v55 = vmul.f32 %v3747_v56, %v4348_v25 }
 0x22b   : > { %3421 = vmatprep.mubr.bf16.mxu1 %v741_v50  ;;  %v736_v27 = vmul.f32 %v3749_v24, %v4350_v26  ;;  %v4438_v26 = vld [vmem:[%s4027_s24] sm:$0xff] }
 0x22c   : > { %1144 = vrot.lane.b32.xlu1 %v3631_v48, %s3971_s28  ;;  %v4524_v50 = vld [vmem:[%s5462_s1 + $0x3] ss:$0 sm:$0xff] }
 0x22d   : > { %v3751_v36 = vpop.eup %3750  ;;  %1140 = vrot.lane.b32.xlu0 %v3632_v23, %s3971_s28  ;;  %v742_v31 = vpack.c.bf16 %v736_v27, %v735_v55 }
 0x22e   : > { %v3753_v2 = vpop.eup %3752  ;;  %v737_v12 = vmul.f32 %v3751_v36, %v4357_v29 }
 0x22f   : > { %3422 = vmatmul.mubr.bf16.vlgmr.msra.gmra.mrb[0].mxu1 %v742_v31  ;;  %v738_v37 = vmul.f32 %v3753_v2, %v4359_v20  ;;  %v3633_v20 = vld [vmem:[%s5461_s0 + $0x18] sm:$0xff]  }
 0x230   : > { %1276 = vperm.xlu1 %3603, %v4434_v39  }
 0x231   : > { %v3755_v25 = vpop.eup %3754  ;;  %1272 = vperm.xlu0 %3602, %v4438_v26   ;;  %v743_v53 = vpack.c.bf16 %v738_v37, %v737_v12 }
 0x232   : > { %v3757_v32 = vpop.eup %3756  ;;  %v739_v1 = vmul.f32 %v3755_v25, %v4366_v34 }
 0x233   : > { %3425 = vmatprep.mubr.bf16.mxu1 %v743_v53  ;;  %v740_v29 = vmul.f32 %v3757_v32, %v4368_v4  ;;  %v3634_v4 = vld [vmem:[%s5461_s0 + $0x20] sm:$0xff]  }
 0x234   : > { %1280 = vperm.xlu1 %3603, %v4444_v40  }
 0x235   : > { %1284 = vperm.xlu0 %3602, %v4451_v3   ;;  %v744_v34 = vpack.c.bf16 %v740_v29, %v739_v1 }
 0x237   : > { %3426 = vmatmul.mubr.bf16.gmra.mrb[4].mxu1 %v744_v34 }
 0x238   : > { %1146 = vrot.lane.b32.xlu1 %v3633_v20, %s3971_s28 }
 0x239   : > { %1148 = vrot.lane.b32.xlu0 %v3634_v4, %s3971_s28 }
 0x23c   : > { %1150 = vrot.lane.b32.xlu1 %v3635_v60, %s3971_s28 }
 0x23d   : > { %1152 = vrot.lane.b32.xlu0 %v3636_v42, %s3971_s28 }
 0x240   : > { %1288 = vperm.xlu1 %3603, %v4468_v43  }
 0x241   : > { %1292 = vperm.xlu0 %3602, %v4472_v6  }
 0x244   : > { %1296 = vperm.xlu1 %3603, %v4476_v47  }
 0x245   : > { %1300 = vperm.xlu0 %3602, %v4480_v63  }
 0x248   : > { %3604 = vset.pattern.permute.xlu1 %v3972_v41 }
 0x249   : > { %1611 = vperm.xlu1 %3604, %v4438_v26   ;;  %3605 = vset.pattern.permute.xlu0 %v3972_v41 }
 0x24a   : > { %1615 = vperm.xlu0 %3605, %v4434_v39  }
 0x24d   : > { %1619 = vperm.xlu1 %3604, %v4444_v40  }
 0x24e   : > { %1631 = vperm.xlu0 %3605, %v4472_v6  }
 0x251   : > { %1623 = vperm.xlu1 %3604, %v4451_v3  }
 0x252   : > { %3608 = vset.pattern.permute.xlu0 %v3973_v61 }
 0x253   : > { %1950 = vperm.xlu0 %3608, %v4438_v26  }
 0x255   : > { %3606 = vset.pattern.permute.xlu1 %v3973_v61 }
 0x256   : > { %1954 = vperm.xlu1 %3606, %v4434_v39  }
 0x257   : > { %1962 = vperm.xlu0 %3608, %v4451_v3  }
 0x25a   : > { %1958 = vperm.xlu1 %3606, %v4444_v40  }
 0x25b   : > { %1966 = vperm.xlu0 %3608, %v4468_v43  }
 0x25e   : > { %3607 = vset.pattern.permute.xlu1 %v3972_v41 }
 0x25f   : > { %1627 = vperm.xlu1 %3607, %v4468_v43   ;;  %1978 = vperm.xlu0 %3608, %v4480_v63  }
 0x263   : > { %1635 = vperm.xlu1 %3607, %v4476_v47   ;;  %3611 = vset.pattern.permute.xlu0 %v3974_v44 }
 0x264   : > { %2293 = vperm.xlu0 %3611, %v4434_v39  }
 0x267   : > { %1639 = vperm.xlu1 %3607, %v4480_v63  }
 0x268   : > { %2309 = vperm.xlu0 %3611, %v4472_v6  }
 0x26b   : > { %3609 = vset.pattern.permute.xlu1 %v3973_v61 }
 0x26c   : > { %1970 = vperm.xlu1 %3609, %v4472_v6   ;;  %3613 = vset.pattern.permute.xlu0 %v3975_v45 }
 0x270   : > { %1974 = vperm.xlu1 %3609, %v4476_v47  }
 0x274   : > { %3610 = vset.pattern.permute.xlu1 %v3974_v44 }
 0x275   : > { %2289 = vperm.xlu1 %3610, %v4438_v26  }
 0x279   : > { %2297 = vperm.xlu1 %3610, %v4444_v40  }
 0x27d   : > { %2301 = vperm.xlu1 %3610, %v4451_v3  }
 0x281   : > { %2305 = vperm.xlu1 %3610, %v4468_v43  }
 0x285   : > { %2313 = vperm.xlu1 %3610, %v4476_v47  }
 0x289   : > { %2317 = vperm.xlu1 %3610, %v4480_v63  }
 0x28d   : > { %3612 = vset.pattern.permute.xlu1 %v3975_v45 }
 0x297   : > { %v1049_v59 = vpop.xlane.xlu0 %1048 }
 0x298   : > { %v1051_v51 = vpop.xlane.xlu1 %1050  ;;  %3758 = vrcp.f32 %v1049_v59 }
 0x299   : > { %3760 = vrcp.f32 %v1051_v51 }
 0x29c   : > { %v4507_v8 = vpop.xlane.xlu1 %1054  ;;  %v4509_v0 = vpop.xlane.xlu0 %1052 }
 0x2a0   : > { %v4511_v5 = vpop.xlane.xlu1 %1058  ;;  %v4513_v16 = vpop.xlane.xlu0 %1056 }
 0x2a2   : > { %v3759_v7 = vpop.eup %3758 }
 0x2a3   : > { %v3761_v15 = vpop.eup %3760  ;;  %v1072_v9 = vmul.f32 %v3759_v7, %v4383_v57 }
 0x2a4   : > { %v4516_v10 = vpop.xlane.xlu1 %1062  ;;  %v4518_v49 = vpop.xlane.xlu0 %1060  ;;  %v1073_v35 = vmul.f32 %v3761_v15, %v4385_v13 }
 0x2a6   : > { %v1080_v18 = vpack.c.bf16 %v1073_v35, %v1072_v9 }
 0x2a8   : > { %v1143_v17 = vpop.permute.xlu1 %1142  ;;  %3445 = vmatprep.mubr.bf16.mxu0 %v1080_v18  ;;  %v1141_v48 = vpop.permute.xlu0 %1140 }
 0x2a9   : > { %3429 = vmatprep.subr.bf16.mxu0 %v1141_v48 }
 0x2aa   : > { %3430 = vmatpush3.bf16.msra.mxu0 %v1141_v48 }
 0x2ab   : > { %3431 = vmatprep.subr.bf16.mxu0 %v1143_v17 }
 0x2ac   : > { %v1145_v56 = vpop.permute.xlu1 %1144 }
 0x2ae   : > { %3432 = vmatpush3.bf16.msra.mxu0 %v1143_v17 }
 0x2af   : > { %3433 = vmatprep.subr.bf16.mxu0 %v1145_v56 }
 0x2b0   : > { %v1277_v57 = vpop.permute.xlu1 %1276  ;;  %v1273_v23 = vpop.permute.xlu0 %1272 }
 0x2b1   : > { %v1308_v24 = vadd.f32 %v4524_v50, %v1277_v57  ;;  %v1307_v13 = vadd.f32 %v4524_v50, %v1273_v23 }
 0x2b2   : > { %3434 = vmatpush3.bf16.msra.mxu0 %v1145_v56  ;;  %v4561_v56 = vld [vmem:[%s5462_s1 + $0x4] ss:$0 sm:$0xff] }
 0x2b3   : > { %vm1316_vm8 = vcmp.gt.f32.partialorder %v1308_v24, 0.0  ;;  %v1324_v55 = vmul.f32 0.2, %v1308_v24  ;;  %vm1315_vm9 = vcmp.gt.f32.partialorder %v1307_v13, 0.0  ;;  %v1323_v27 = vmul.f32 0.2, %v1307_v13 }
 0x2b4   : > { %v1281_v36 = vpop.permute.xlu1 %1280  ;;  %v1285_v31 = vpop.permute.xlu0 %1284 }
 0x2b5   : > { %v1332_v2 = vsel %vm1316_vm8, %v1308_v24, %v1324_v55  ;;  %v1331_v12 = vsel %vm1315_vm9, %v1307_v13, %v1323_v27 }
 0x2b6   : > { %v4529_v37 = vadd.f32 %v1332_v2, %v4084_v46  ;;  %v4532_v25 = vadd.f32 %v1331_v12, %v4077_v30 }
 0x2b8   : > { %v1147_v53 = vpop.permute.xlu1 %1146  ;;  %1349 = vmax.xlane.f32.xlu0 %v4529_v37  ;;  %1347 = vmax.xlane.f32.xlu1 %v4532_v25  ;;  %v1149_v32 = vpop.permute.xlu0 %1148 }
 0x2b9   : > { %3435 = vmatprep.subr.bf16.mxu0 %v1147_v53 }
 0x2ba   : > { %3436 = vmatpush3.bf16.msra.mxu0 %v1147_v53 }
 0x2bb   : > { %3437 = vmatprep.subr.bf16.mxu0 %v1149_v32 }
 0x2bc   : > { %v1151_v1 = vpop.permute.xlu1 %1150  ;;  %v1153_v29 = vpop.permute.xlu0 %1152 }
 0x2be   : > { %3438 = vmatpush3.bf16.msra.mxu0 %v1149_v32 }
 0x2bf   : > { %3439 = vmatprep.subr.bf16.mxu0 %v1151_v1 }
 0x2c0   : > { %v1289_v20 = vpop.permute.xlu1 %1288 }
 0x2c1   : > { %v1311_v44 = vadd.f32 %v4524_v50, %v1289_v20 }
 0x2c2   : > { %3440 = vmatpush3.bf16.msra.mxu0 %v1151_v1 }
 0x2c3   : > { %3441 = vmatprep.subr.bf16.mxu0 %v1153_v29  ;;  %v1327_v51 = vmul.f32 0.2, %v1311_v44  ;;  %vm1319_vm13 = vcmp.gt.f32.partialorder %v1311_v44, 0.0 }
 0x2c4   : > { %v1297_v34 = vpop.permute.xlu1 %1296 }
 0x2c5   : > { %v1313_v7 = vadd.f32 %v4524_v50, %v1297_v34 }
 0x2c6   : > { %3442 = vmatpush3.bf16.msra.mxu0 %v1153_v29 }
 0x2c7   : > { %v1329_v13 = vmul.f32 0.2, %v1313_v7  ;;  %vm1321_vm15 = vcmp.gt.f32.partialorder %v1313_v7, 0.0 }
 0x2c8   : > { %v1612_v4 = vpop.permute.xlu1 %1611 }
 0x2c9   : > { %2632 = vperm.xlu1 %3612, %v4434_v39   ;;  %v1293_v39 = vpop.permute.xlu0 %1292  ;;  %v1646_v2 = vadd.f32 %v4561_v56, %v1612_v4  ;;  %v1337_v4 = vsel %vm1321_vm15, %v1313_v7, %v1329_v13 }
 0x2cb   : > { %vm1654_vm2 = vcmp.gt.f32.partialorder %v1646_v2, 0.0 }
 0x2cc   : > { %v1620_v60 = vpop.permute.xlu1 %1619 }
 0x2cd   : > { %2636 = vperm.xlu1 %3612, %v4444_v40   ;;  %v1310_v40 = vadd.f32 %v4524_v50, %v1285_v31 }
 0x2ce   : > { %2628 = vperm.xlu0 %3613, %v4438_v26   ;;  %v1309_v26 = vadd.f32 %v4524_v50, %v1281_v36  ;;  %v1335_v36 = vsel %vm1319_vm13, %v1311_v44, %v1327_v51 }
 0x2cf   : > { %vm1318_vm12 = vcmp.gt.f32.partialorder %v1310_v40, 0.0  ;;  %v4584_v20 = vadd.f32 %v1335_v36, %v4095_v62 }
 0x2d0   : > { %v1624_v42 = vpop.permute.xlu1 %1623  ;;  %vm1317_vm10 = vcmp.gt.f32.partialorder %v1309_v26, 0.0 }
 0x2d1   : > { %2648 = vperm.xlu1 %3612, %v4472_v6   ;;  %v1301_v6 = vpop.permute.xlu0 %1300 }
 0x2d2   : > { %2640 = vperm.xlu0 %3613, %v4451_v3   ;;  %v1325_v3 = vmul.f32 0.2, %v1309_v26  ;;  %v1314_v18 = vadd.f32 %v4524_v50, %v1301_v6 }
 0x2d4   : > { %v1333_v9 = vsel %vm1317_vm10, %v1309_v26, %v1325_v3  ;;  %v1330_v31 = vmul.f32 0.2, %v1314_v18  ;;  %vm1322_vm0 = vcmp.gt.f32.partialorder %v1314_v18, 0.0  ;;  %v1648_v26 = vadd.f32 %v4561_v56, %v1620_v60 }
 0x2d5   : > { %2656 = vperm.xlu1 %3612, %v4480_v63   ;;  %v4544_v41 = vpop.permute.xlu1 %1954  ;;  %v1616_v45 = vpop.permute.xlu0 %1615  ;;  %v4571_v55 = vadd.f32 %v1333_v9, %v4079_v38 }
 0x2d6   : > { %2644 = vperm.xlu0 %3613, %v4468_v43   ;;  %v1326_v43 = vmul.f32 0.2, %v1310_v40  ;;  %v1647_v24 = vadd.f32 %v4561_v56, %v1616_v45  ;;  %v1338_v44 = vsel %vm1322_vm0, %v1314_v18, %v1330_v31  ;;  %v4605_v45 = vadd.f32 %v1337_v4, %v4112_v22 }
 0x2d7   : > { %v1664_v51 = vmul.f32 0.2, %v1648_v26  ;;  %vm1656_vm3 = vcmp.gt.f32.partialorder %v1648_v26, 0.0 }
 0x2d8   : > { %v1334_v48 = vsel %vm1318_vm12, %v1310_v40, %v1326_v43  ;;  %v1663_v53 = vmul.f32 0.2, %v1647_v24  ;;  %vm1655_vm1 = vcmp.gt.f32.partialorder %v1647_v24, 0.0  ;;  %v1649_v40 = vadd.f32 %v4561_v56, %v1624_v42  ;;  %v4596_v43 = vld [vmem:[%s5462_s1 + $0x5] ss:$0 sm:$0xff] }
 0x2d9   : > { %v4546_v61 = vpop.permute.xlu1 %1958  ;;  %v4574_v27 = vadd.f32 %v1334_v48, %v4087_v54 }
 0x2da   : > { %2652 = vperm.xlu0 %3613, %v4476_v47   ;;  %v1312_v47 = vadd.f32 %v4524_v50, %v1293_v39  ;;  %v4568_v50 = vpop.permute.xlu0 %1631  ;;  %v1662_v39 = vmul.f32 0.2, %v1646_v2  ;;  %v1671_v42 = vsel %vm1655_vm1, %v1647_v24, %v1663_v53  ;;  %v1665_v7 = vmul.f32 0.2, %v1649_v40 }
 0x2db   : > { %vm1657_vm4 = vcmp.gt.f32.partialorder %v1649_v40, 0.0  ;;  %v4615_v18 = vadd.f32 %v1671_v42, %v4084_v46  ;;  %v1987_v31 = vadd.f32 %v4596_v43, %v4546_v61 }
 0x2dc   : > { %v1328_v35 = vmul.f32 0.2, %v1312_v47  ;;  %vm1320_vm14 = vcmp.gt.f32.partialorder %v1312_v47, 0.0  ;;  %v1670_v9 = vsel %vm1654_vm2, %v1646_v2, %v1662_v39  ;;  %v1673_v53 = vsel %vm1657_vm4, %v1649_v40, %v1665_v7 }
 0x2dd   : > { %5496 = vst [vmem:[#allocation7_spill] sm:$0xff] %v4615_v18  ;;  %v1651_v39 = vadd.f32 %v4561_v56, %v4568_v50  ;;  %v2003_v40 = vmul.f32 0.2, %v1987_v31  ;;  %vm1995_vm8 = vcmp.gt.f32.partialorder %v1987_v31, 0.0 }
 0x2de   : > { %v4551_v63 = vpop.permute.xlu1 %1627  ;;  %v1336_v12 = vsel %vm1320_vm14, %v1312_v47, %v1328_v35  ;;  %v1951_v6 = vpop.permute.xlu0 %1950 }
 0x2df   : > { %v4587_v34 = vadd.f32 %v1336_v12, %v4110_v21  ;;  %v1985_v60 = vadd.f32 %v4596_v43, %v1951_v6  ;;  %v1672_v12 = vsel %vm1656_vm3, %v1648_v26, %v1664_v51  ;;  %v4641_v26 = vadd.f32 %v1673_v53, %v4087_v54 }
 0x2e0   : > { %v4638_v61 = vadd.f32 %v1672_v12, %v4079_v38  ;;  %vm1659_vm9 = vcmp.gt.f32.partialorder %v1651_v39, 0.0  ;;  %v1667_v42 = vmul.f32 0.2, %v1651_v39 }
 0x2e1   : > { %vm1993_vm5 = vcmp.gt.f32.partialorder %v1985_v60, 0.0 }
 0x2e2   : > { %v4563_v57 = vpop.permute.xlu1 %1635  ;;  %v1963_v48 = vpop.permute.xlu0 %1962 }
 0x2e3   : > { %v1988_v24 = vadd.f32 %v4596_v43, %v1963_v48 }
 0x2e5   : > { %v2004_v6 = vmul.f32 0.2, %v1988_v24  ;;  %vm1996_vm7 = vcmp.gt.f32.partialorder %v1988_v24, 0.0 }
 0x2e6   : > { %v4580_v1 = vpop.permute.xlu1 %1639 }
 0x2eb   : > { %v1971_v35 = vpop.permute.xlu1 %1970 }
 0x2ef   : > { %v1975_v4 = vpop.permute.xlu1 %1974 }
 0x2f2   : > { %v3399_v59 = vpop.f32.mrb[0].mxu0 }
 0x2f3   : > { %586 = vst.msk [vmem:[#allocation2 + $0x10] sm:$0xff] %vm583_vm11, %v3399_v59  ;;  %v552_v15 = vpop.f32.mrb[1].mxu0  ;;  %v4608_v59 = vadd.f32 %v1338_v44, %v4116_v28 }
 0x2f4   : > { %584 = vst.msk [vmem:[#allocation2] sm:$0xff] %vm583_vm11, %v552_v15  ;;  %v3400_v17 = vpop.f32.mrb[2].mxu0  ;;  %v1986_v15 = vadd.f32 %v4596_v43, %v4544_v41  ;;  %v4623_v41 = vadd.f32 %v1670_v9, %v4077_v30  ;;  %v1652_v9 = vadd.f32 %v4561_v56, %v4563_v57  ;;  %v2290_v12 = vpop.permute.xlu1 %2289 }
 0x2f5   : > { %587 = vst.msk [vmem:[#allocation2 + $0x18] sm:$0xff] %vm583_vm11, %v3400_v17  ;;  %v555_v23 = vpop.f32.mrb[3].mxu0  ;;  %v2001_v17 = vmul.f32 0.2, %v1985_v60 }
 0x2f6   : > { %585 = vst.msk [vmem:[#allocation2 + $0x8] sm:$0xff] %vm583_vm11, %v555_v23  ;;  %v2002_v36 = vmul.f32 0.2, %v1986_v15  ;;  %vm1994_vm6 = vcmp.gt.f32.partialorder %v1986_v15, 0.0 }
 0x2f8   : > { %v2010_v44 = vsel %vm1994_vm6, %v1986_v15, %v2002_v36  ;;  %v2011_v36 = vsel %vm1995_vm8, %v1987_v31, %v2003_v40 }
 0x2f9   : > { %1351 = vmax.xlane.f32.xlu1 %v4571_v55  ;;  %1353 = vmax.xlane.f32.xlu0 %v4574_v27  ;;  %v4655_v7 = vadd.f32 %v2010_v44, %v4084_v46 }
 0x2fa   : > { %v3403_v32 = vpop.f32.mrb[4].mxu0 }
 0x2fb   : > { %590 = vst.msk [vmem:[#allocation2 + $0x30] sm:$0xff] %vm583_vm11, %v3403_v32  ;;  %v568_v29 = vpop.f32.mrb[5].mxu0 }
 0x2fc   : > { %588 = vst.msk [vmem:[#allocation2 + $0x20] sm:$0xff] %vm583_vm11, %v568_v29  ;;  %v3404_v3 = vpop.f32.mrb[6].mxu0  ;;  %v2009_v29 = vsel %vm1993_vm5, %v1985_v60, %v2001_v17  ;;  %v1653_v17 = vadd.f32 %v4561_v56, %v4580_v1  ;;  %v1668_v1 = vmul.f32 0.2, %v1652_v9 }
 0x2fd   : > { %591 = vst.msk [vmem:[#allocation2 + $0x38] sm:$0xff] %vm583_vm11, %v3404_v3  ;;  %v571_v47 = vpop.f32.mrb[7].mxu0  ;;  %1355 = vmax.xlane.f32.xlu0 %v4584_v20  ;;  %1357 = vmax.xlane.f32.xlu1 %v4587_v34  ;;  %v1650_v3 = vadd.f32 %v4561_v56, %v4551_v63  ;;  %v4648_v50 = vadd.f32 %v2009_v29, %v4077_v30 }
 0x2fe   : > { %589 = vst.msk [vmem:[#allocation2 + $0x28] sm:$0xff] %vm583_vm11, %v571_v47  ;;  %v1967_v47 = vpop.permute.xlu0 %1966  ;;  %v2012_v63 = vsel %vm1996_vm7, %v1988_v24, %v2004_v6  ;;  %v4669_v29 = vadd.f32 %v2011_v36, %v4079_v38  ;;  %v1675_v56 = vsel %vm1659_vm9, %v1651_v39, %v1667_v42  ;;  %v1669_v31 = vmul.f32 0.2, %v1653_v17  ;;  %v2298_v36 = vpop.permute.xlu1 %2297 }
 0x2ff   : > { %v1666_v15 = vmul.f32 0.2, %v1650_v3  ;;  %vm1658_vm10 = vcmp.gt.f32.partialorder %v1650_v3, 0.0  ;;  %v1989_v24 = vadd.f32 %v4596_v43, %v1967_v47  ;;  %v4672_v57 = vadd.f32 %v2012_v63, %v4087_v54 }
 0x300   : > { %v1990_v6 = vadd.f32 %v4596_v43, %v1971_v35  ;;  %vm1660_vm11 = vcmp.gt.f32.partialorder %v1652_v9, 0.0  ;;  %vm1661_vm12 = vcmp.gt.f32.partialorder %v1653_v17, 0.0  ;;  %v4683_v39 = vadd.f32 %v1675_v56, %v4110_v21 }
 0x301   : > { %1359 = vmax.xlane.f32.xlu0 %v4605_v45  ;;  %1361 = vmax.xlane.f32.xlu1 %v4608_v59  ;;  %v1674_v44 = vsel %vm1658_vm10, %v1650_v3, %v1666_v15  ;;  %v2005_v47 = vmul.f32 0.2, %v1989_v24  ;;  %vm1997_vm13 = vcmp.gt.f32.partialorder %v1989_v24, 0.0  ;;  %v1991_v3 = vadd.f32 %v4596_v43, %v1975_v4 }
 0x302   : > { %v4617_v23 = vpop.f32.mrb[0].mxu1  ;;  %v1979_v40 = vpop.permute.xlu0 %1978  ;;  %v4680_v11 = vadd.f32 %v1674_v44, %v4095_v62  ;;  %5498 = vst [vmem:[#allocation9_spill] sm:$0xff] %v4683_v39  ;;  %v2006_v35 = vmul.f32 0.2, %v1990_v6  ;;  %v1676_v42 = vsel %vm1660_vm11, %v1652_v9, %v1668_v1  ;;  %v1677_v15 = vsel %vm1661_vm12, %v1653_v17, %v1669_v31 }
 0x303   : > { %v4620_v13 = vpop.f32.mrb[1].mxu1  ;;  %v1992_v63 = vadd.f32 %v4596_v43, %v1979_v40  ;;  %vm1998_vm14 = vcmp.gt.f32.partialorder %v1990_v6, 0.0  ;;  %v2013_v44 = vsel %vm1997_vm13, %v1989_v24, %v2005_v47  ;;  %v4695_v52 = vadd.f32 %v1676_v42, %v4112_v22  ;;  %v2302_v1 = vpop.permute.xlu1 %2301 }
 0x304   : > { %v4627_v2 = vpop.f32.mrb[2].mxu1  ;;  %5497 = vst [vmem:[#allocation8_spill] sm:$0xff] %v4680_v11  ;;  %v4698_v43 = vadd.f32 %v1677_v15, %v4116_v28  ;;  %v2007_v4 = vmul.f32 0.2, %v1991_v3  ;;  %v2324_v9 = vadd.f32 %v4689_v33, %v2290_v12  ;;  %v2014_v17 = vsel %vm1998_vm14, %v1990_v6, %v2006_v35 }
 0x305   : > { %v4631_v32 = vpop.f32.mrb[3].mxu1  ;;  %1686 = vmax.xlane.f32.xlu0 %v4623_v41  ;;  %1688 = vmax.xlane.f32.xlu1 %v4615_v18  ;;  %v2008_v19 = vmul.f32 0.2, %v1992_v63  ;;  %5499 = vst [vmem:[#allocation10_spill] sm:$0xff] %v4695_v52  ;;  %vm2000_vm15 = vcmp.gt.f32.partialorder %v1992_v63, 0.0  ;;  %vm1999_vm0 = vcmp.gt.f32.partialorder %v1991_v3, 0.0  ;;  %v4704_v31 = vadd.f32 %v2014_v17, %v4110_v21 }
 0x306   : > { %v2294_v40 = vpop.permute.xlu0 %2293  ;;  %5500 = vst [vmem:[#allocation11_spill] sm:$0xff] %v4698_v43  ;;  %v4707_v47 = vadd.f32 %v2013_v44, %v4095_v62  ;;  %v2340_v15 = vmul.f32 0.2, %v2324_v9  ;;  %v2327_v12 = vadd.f32 %v4689_v33, %v2302_v1  ;;  %v2015_v6 = vsel %vm1999_vm0, %v1991_v3, %v2007_v4 }
 0x307   : > { %v2325_v56 = vadd.f32 %v4689_v33, %v2294_v40  ;;  %5501 = vst [vmem:[#allocation12_spill] sm:$0xff] %v4704_v31  ;;  %v2016_v42 = vsel %vm2000_vm15, %v1992_v63, %v2008_v19  ;;  %v2326_v40 = vadd.f32 %v4689_v33, %v2298_v36  ;;  %vm2332_vm1 = vcmp.gt.f32.partialorder %v2324_v9, 0.0 }
 0x308   : > { %5502 = vst [vmem:[#allocation13_spill] sm:$0xff] %v4707_v47  ;;  %v4714_v35 = vadd.f32 %v2015_v6, %v4112_v22  ;;  %v4717_v17 = vadd.f32 %v2016_v42, %v4116_v28  ;;  %v2343_v19 = vmul.f32 0.2, %v2327_v12  ;;  %v2348_v63 = vsel %vm2332_vm1, %v2324_v9, %v2340_v15 }
 0x309   : > { %1690 = vmax.xlane.f32.xlu0 %v4638_v61  ;;  %1692 = vmax.xlane.f32.xlu1 %v4641_v26  ;;  %v2341_v24 = vmul.f32 0.2, %v2325_v56  ;;  %vm2333_vm2 = vcmp.gt.f32.partialorder %v2325_v56, 0.0  ;;  %v2342_v44 = vmul.f32 0.2, %v2326_v40  ;;  %vm2334_vm3 = vcmp.gt.f32.partialorder %v2326_v40, 0.0 }
 0x30a   : > { %v4650_v60 = vpop.f32.mrb[4].mxu1  ;;  %5503 = vst [vmem:[#allocation14_spill] sm:$0xff] %v4714_v35  ;;  %5504 = vst [vmem:[#allocation15_spill] sm:$0xff] %v4717_v17  ;;  %vm2335_vm4 = vcmp.gt.f32.partialorder %v2327_v12, 0.0  ;;  %v4722_v36 = vadd.f32 %v2348_v63, %v4077_v30  ;;  %v2310_v15 = vpop.permute.xlu0 %2309  ;;  %vm922_vm1 = vcmask 261248  }
 0x30b   : > { %v4652_v51 = vpop.f32.mrb[5].mxu1  ;;  %v2350_v4 = vsel %vm2334_vm3, %v2326_v40, %v2342_v44  ;;  %v2351_v1 = vsel %vm2335_vm4, %v2327_v12, %v2343_v19  ;;  %v3226_v12 = vld [vmem:[%s5462_s1 + $0x7] ss:$0 sm:$0xff]  ;;  %vm1600_vm3 = vcmask 523648   ;;  %vm1939_vm4 = vcmask 654848  }
 0x30c   : > { %v4661_v48 = vpop.f32.mrb[6].mxu1  ;;  %5505 = vst [vmem:[#allocation16_spill] sm:$0xff] %v4722_v36  ;;  %v4733_v9 = vadd.f32 %v2351_v1, %v4087_v54 }
 0x30d   : > { %v4663_v53 = vpop.f32.mrb[7].mxu1  ;;  %2027 = vmax.xlane.f32.xlu1 %v4655_v7  ;;  %2025 = vmax.xlane.f32.xlu0 %v4648_v50 }
 0x30e   : > { %5508 = vst [vmem:[#allocation19_spill] sm:$0xff] %v4733_v9 }
 0x311   : > { %2029 = vmax.xlane.f32.xlu0 %v4669_v29  ;;  %2031 = vmax.xlane.f32.xlu1 %v4672_v57 }
 0x315   : > { %1694 = vmax.xlane.f32.xlu0 %v4680_v11  ;;  %1696 = vmax.xlane.f32.xlu1 %v4683_v39  ;;  %v2349_v39 = vsel %vm2333_vm2, %v2325_v56, %v2341_v24  ;;  %v4730_v56 = vadd.f32 %v2350_v4, %v4079_v38  ;;  %v2306_v24 = vpop.permute.xlu1 %2305  ;;  %v2329_v4 = vadd.f32 %v4689_v33, %v2310_v15  ;;  %vm1261_vm2 = vcmask 392448  }
 0x316   : > { %v4725_v3 = vadd.f32 %v2349_v39, %v4084_v46 }
 0x317   : > { %5507 = vst [vmem:[#allocation18_spill] sm:$0xff] %v4730_v56  ;;  %vm2337_vm7 = vcmp.gt.f32.partialorder %v2329_v4, 0.0  ;;  %v2345_v15 = vmul.f32 0.2, %v2329_v4 }
 0x318   : > { %5506 = vst [vmem:[#allocation17_spill] sm:$0xff] %v4725_v3 }
 0x319   : > { %1698 = vmax.xlane.f32.xlu0 %v4695_v52  ;;  %1700 = vmax.xlane.f32.xlu1 %v4698_v43  ;;  %v2314_v42 = vpop.permute.xlu1 %2313 }
 0x31d   : > { %2035 = vmax.xlane.f32.xlu1 %v4704_v31  ;;  %2033 = vmax.xlane.f32.xlu0 %v4707_v47  ;;  %v2318_v39 = vpop.permute.xlu1 %2317 }
 0x321   : > { %2037 = vmax.xlane.f32.xlu0 %v4714_v35  ;;  %2039 = vmax.xlane.f32.xlu1 %v4717_v17 }
 0x325   : > { %2364 = vmax.xlane.f32.xlu0 %v4722_v36  ;;  %2366 = vmax.xlane.f32.xlu1 %v4725_v3  ;;  %v2328_v36 = vadd.f32 %v4689_v33, %v2306_v24  ;;  %v2330_v24 = vadd.f32 %v4689_v33, %v2314_v42 }
 0x327   : > { %v2344_v43 = vmul.f32 0.2, %v2328_v36  ;;  %vm2336_vm9 = vcmp.gt.f32.partialorder %v2328_v36, 0.0  ;;  %vm2338_vm11 = vcmp.gt.f32.partialorder %v2330_v24, 0.0 }
 0x329   : > { %2368 = vmax.xlane.f32.xlu0 %v4730_v56  ;;  %2370 = vmax.xlane.f32.xlu1 %v4733_v9  ;;  %v2352_v18 = vsel %vm2336_vm9, %v2328_v36, %v2344_v43 }
 0x32a   : > { %v4768_v36 = vadd.f32 %v2352_v18, %v4095_v62 }
 0x32c   : > { %5510 = vst [vmem:[#allocation21_spill] sm:$0xff] %v4768_v36 }
 0x345   : > { %v4737_v40 = vpop.xlane.xlu1 %1347  ;;  %v4742_v6 = vpop.xlane.xlu0 %1349 }
 0x346   : > { %v1363_v43 = vsub.f32 %v4532_v25, %v4737_v40  ;;  %v1364_v25 = vsub.f32 %v4529_v37, %v4742_v6 }
 0x349   : > { %v2633_v44 = vpop.permute.xlu1 %2632 }
 0x34a   : > { %v2664_v19 = vadd.f32 %v3226_v12, %v2633_v44 }
 0x34c   : > { %vm2672_vm5 = vcmp.gt.f32.partialorder %v2664_v19, 0.0  ;;  %v2680_v63 = vmul.f32 0.2, %v2664_v19 }
 0x34d   : > { %v2637_v1 = vpop.permute.xlu1 %2636  ;;  %v2629_v56 = vpop.permute.xlu0 %2628 }
 0x34e   : > { %v2665_v9 = vadd.f32 %v3226_v12, %v2637_v1  ;;  %v2663_v3 = vadd.f32 %v3226_v12, %v2629_v56  ;;  %v2688_v47 = vsel %vm2672_vm5, %v2664_v19, %v2680_v63  ;;  %v2331_v56 = vadd.f32 %v4689_v33, %v2318_v39 }
 0x34f   : > { %v4747_v17 = vadd.f32 %v2688_v47, %v4084_v46  ;;  %vm2278_vm5 = vcmask 786048  }
 0x350   : > { %v2681_v35 = vmul.f32 0.2, %v2665_v9  ;;  %vm2671_vm6 = vcmp.gt.f32.partialorder %v2663_v3, 0.0  ;;  %v2679_v31 = vmul.f32 0.2, %v2663_v3  ;;  %vm2673_vm8 = vcmp.gt.f32.partialorder %v2665_v9, 0.0 }
 0x351   : > { %5509 = vst [vmem:[#allocation20_spill] sm:$0xff] %v4747_v17  ;;  %2705 = vmax.xlane.f32.xlu1 %v4747_v17  ;;  %v2641_v44 = vpop.permute.xlu0 %2640  ;;  %v2649_v19 = vpop.permute.xlu1 %2648  ;;  %vm2339_vm12 = vcmp.gt.f32.partialorder %v2331_v56, 0.0 }
 0x352   : > { %v2666_v52 = vadd.f32 %v3226_v12, %v2641_v44  ;;  %v2687_v11 = vsel %vm2671_vm6, %v2663_v3, %v2679_v31  ;;  %v2689_v63 = vsel %vm2673_vm8, %v2665_v9, %v2681_v35  ;;  %v2353_v44 = vsel %vm2337_vm7, %v2329_v4, %v2345_v15 }
 0x353   : > { %v4753_v46 = vadd.f32 %v2687_v11, %v4077_v30  ;;  %v2346_v31 = vmul.f32 0.2, %v2330_v24  ;;  %v2347_v3 = vmul.f32 0.2, %v2331_v56  ;;  %v4758_v42 = vadd.f32 %v2689_v63, %v4079_v38 }
 0x354   : > { %vm2674_vm10 = vcmp.gt.f32.partialorder %v2666_v52, 0.0  ;;  %v2682_v47 = vmul.f32 0.2, %v2666_v52  ;;  %v2668_v30 = vadd.f32 %v3226_v12, %v2649_v19  ;;  %v4771_v38 = vadd.f32 %v2353_v44, %v4110_v21 }
 0x355   : > { %2703 = vmax.xlane.f32.xlu0 %v4753_v46  ;;  %v2645_v1 = vpop.permute.xlu0 %2644  ;;  %v2657_v35 = vpop.permute.xlu1 %2656  ;;  %v1371_v19 = vmul.f32 1.442695, %v1363_v43  ;;  %v1373_v63 = vmul.f32 1.442695, %v1364_v25  ;;  %vm2617_vm6 = vcmask 917248   ;;  %vm2956_vm7 = vcmask 1048448  }
 0x356   : > { %v2690_v17 = vsel %vm2674_vm10, %v2666_v52, %v2682_v47  ;;  %v2667_v11 = vadd.f32 %v3226_v12, %v2645_v1  ;;  %v2684_v9 = vmul.f32 0.2, %v2668_v30  ;;  %v2670_v39 = vadd.f32 %v3226_v12, %v2657_v35 }
 0x357   : > { %v4761_v33 = vadd.f32 %v2690_v17, %v4087_v54  ;;  %v2354_v54 = vsel %vm2338_vm11, %v2330_v24, %v2346_v31  ;;  %v2355_v17 = vsel %vm2339_vm12, %v2331_v56, %v2347_v3  ;;  %vm2676_vm13 = vcmp.gt.f32.partialorder %v2668_v30, 0.0 }
 0x358   : > { %v2683_v4 = vmul.f32 0.2, %v2667_v11  ;;  %vm2675_vm14 = vcmp.gt.f32.partialorder %v2667_v11, 0.0  ;;  %v4778_v18 = vadd.f32 %v2354_v54, %v4112_v22  ;;  %v4781_v40 = vadd.f32 %v2355_v17, %v4116_v28  ;;  %v3640_v54 = vld [vmem:[%s5461_s0 + $0x20] sm:$0xff]  }
 0x359   : > { %2707 = vmax.xlane.f32.xlu0 %v4758_v42  ;;  %2709 = vmax.xlane.f32.xlu1 %v4761_v33  ;;  %v2653_v52 = vpop.permute.xlu0 %2652  ;;  %v2686_v24 = vmul.f32 0.2, %v2670_v39  ;;  %v2692_v47 = vsel %vm2676_vm13, %v2668_v30, %v2684_v9  ;;  %vm2678_vm15 = vcmp.gt.f32.partialorder %v2670_v39, 0.0  ;;  %3762 = vpow2.f32 %v1371_v19  ;;  %v3639_v30 = vld [vmem:[%s5461_s0 + $0x18] sm:$0xff]  }
 0x35a   : > { %v2669_v15 = vadd.f32 %v3226_v12, %v2653_v52  ;;  %5511 = vst [vmem:[#allocation22_spill] sm:$0xff] %v4778_v18  ;;  %v2691_v12 = vsel %vm2675_vm14, %v2667_v11, %v2683_v4  ;;  %v4786_v37 = vadd.f32 %v2692_v47, %v4110_v21  ;;  %3764 = vpow2.f32 %v1373_v63 }
 0x35b   : > { %v4789_v6 = vadd.f32 %v2691_v12, %v4095_v62  ;;  %v2694_v1 = vsel %vm2678_vm15, %v2670_v39, %v2686_v24  ;;  %v3641_v39 = vld [vmem:[%s5461_s0 + $0x28] sm:$0xff]  }
 0x35c   : > { %v2685_v56 = vmul.f32 0.2, %v2669_v15  ;;  %vm2677_vm0 = vcmp.gt.f32.partialorder %v2669_v15, 0.0  ;;  %v4794_v31 = vadd.f32 %v2694_v1, %v4116_v28  ;;  %v3637_v28 = vld [vmem:[%s5461_s0] sm:$0xff]   ;;  %v3643_v1 = vld [vmem:[%s5461_s0 + $0x8] sm:$0xff]  }
 0x35d   : > { %2372 = vmax.xlane.f32.xlu0 %v4768_v36  ;;  %2374 = vmax.xlane.f32.xlu1 %v4771_v38  ;;  %5512 = vst [vmem:[#allocation23_spill] sm:$0xff] %v4789_v6 }
 0x35e   : > { %v2693_v44 = vsel %vm2677_vm0, %v2669_v15, %v2685_v56  ;;  %5513 = vst [vmem:[#allocation24_spill] sm:$0xff] %v4794_v31 }
 0x35f   : > { %v4797_v3 = vadd.f32 %v2693_v44, %v4112_v22  ;;  %v3638_v22 = vld [vmem:[%s5461_s0 + $0x10] sm:$0xff]  }
 0x361   : > { %2376 = vmax.xlane.f32.xlu0 %v4778_v18  ;;  %2378 = vmax.xlane.f32.xlu1 %v4781_v40  ;;  %5514 = vst [vmem:[#allocation25_spill] sm:$0xff] %v4797_v3 }
 0x363   : > { %v4801_v21 = vpop.eup %3762 }
 0x364   : > { %v4804_v62 = vpop.eup %3764 }
 0x365   : > { %2713 = vmax.xlane.f32.xlu1 %v4786_v37  ;;  %2711 = vmax.xlane.f32.xlu0 %v4789_v6 }
 0x369   : > { %2717 = vmax.xlane.f32.xlu1 %v4794_v31  ;;  %2715 = vmax.xlane.f32.xlu0 %v4797_v3 }
 0x36d   : > { %1387 = vadd.xlane.f32.xlu1 %v4801_v21 }
 0x371   : > { %1389 = vadd.xlane.f32.xlu1 %v4804_v62 }
 0x37f   : > { %1479 = vrot.lane.b32.xlu0 %v3637_v28, %s3976_s7 }
 0x383   : > { %1483 = vrot.lane.b32.xlu0 %v3638_v22, %s3976_s7 }
 0x386   : > { %v1352_v11 = vpop.xlane.xlu1 %1351  ;;  %v1354_v35 = vpop.xlane.xlu0 %1353 }
 0x387   : > { %v1365_v52 = vsub.f32 %v4571_v55, %v1352_v11  ;;  %v1366_v43 = vsub.f32 %v4574_v27, %v1354_v35  ;;  %1485 = vrot.lane.b32.xlu0 %v3639_v30, %s3976_s7  ;;  %v3642_v55 = vld [vmem:[%s5461_s0 + $0x38] sm:$0xff]  }
 0x389   : > { %v1375_v17 = vmul.f32 1.442695, %v1365_v52  ;;  %v1377_v9 = vmul.f32 1.442695, %v1366_v43 }
 0x38a   : > { %v1356_v15 = vpop.xlane.xlu0 %1355  ;;  %v1358_v19 = vpop.xlane.xlu1 %1357 }
 0x38b   : > { %3766 = vpow2.f32 %v1375_v17  ;;  %1487 = vrot.lane.b32.xlu0 %v3640_v54, %s3976_s7  ;;  %v1368_v25 = vsub.f32 %v4587_v34, %v1358_v19  ;;  %v3644_v34 = vld [vmem:[%s5461_s0 + $0x30] sm:$0xff]   ;;  %v1367_v17 = vsub.f32 %v4584_v20, %v1356_v15 }
 0x38c   : > { %3768 = vpow2.f32 %v1377_v9 }
 0x38d   : > { %v1381_v47 = vmul.f32 1.442695, %v1368_v25 }
 0x38e   : > { %v1360_v24 = vpop.xlane.xlu0 %1359  ;;  %v1362_v56 = vpop.xlane.xlu1 %1361 }
 0x38f   : > { %1489 = vrot.lane.b32.xlu0 %v3641_v39, %s3976_s7  ;;  %v1369_v12 = vsub.f32 %v4605_v45, %v1360_v24  ;;  %3770 = vpow2.f32 %v1381_v47  ;;  %v1370_v19 = vsub.f32 %v4608_v59, %v1362_v56 }
 0x391   : > { %v1383_v63 = vmul.f32 1.442695, %v1369_v12  ;;  %v1385_v47 = vmul.f32 1.442695, %v1370_v19 }
 0x392   : > { %v4844_v44 = vpop.xlane.xlu1 %1688  ;;  %v1687_v28 = vpop.xlane.xlu0 %1686 }
 0x393   : > { %1154 = vrot.lane.b32.xlu0 %v3642_v55, %s3971_s28  ;;  %3772 = vpow2.f32 %v1383_v63  ;;  %v1379_v55 = vmul.f32 1.442695, %v1367_v17 }
 0x395   : > { %v4833_v27 = vpop.eup %3766  ;;  %3774 = vpow2.f32 %v1379_v55 }
 0x396   : > { %1391 = vadd.xlane.f32.xlu1 %v4833_v27  ;;  %v4836_v4 = vpop.eup %3768  ;;  %v1693_v22 = vpop.xlane.xlu1 %1692  ;;  %3776 = vpow2.f32 %v1385_v47 }
 0x397   : > { %v1691_v30 = vpop.xlane.xlu0 %1690 }
 0x398   : > { %v1704_v36 = vsub.f32 %v4638_v61, %v1691_v30 }
 0x399   : > { %v4851_v45 = vpop.eup %3770 }
 0x39a   : > { %1393 = vadd.xlane.f32.xlu1 %v4836_v4  ;;  %v4854_v11 = vpop.xlane.xlu1 %2027 }
 0x39b   : > { %v2026_v35 = vpop.xlane.xlu0 %2025 }
 0x39c   : > { %v2041_v61 = vsub.f32 %v4648_v50, %v2026_v35  ;;  %v3647_v50 = vld [vmem:[%s5461_s0] sm:$0xff]  }
 0x39d   : > { %v4856_v52 = vpop.eup %3772 }
 0x39e   : > { %v4859_v43 = vpop.xlane.xlu1 %2031 }
 0x39f   : > { %v4861_v54 = vpop.xlane.xlu0 %2029  ;;  %v4881_v20 = vpop.eup %3774 }
 0x3a0   : > { %v4890_v56 = vpop.eup %3776 }
 0x3a2   : > { %v4864_v9 = vpop.xlane.xlu1 %1696 }
 0x3a3   : > { %v4866_v39 = vpop.xlane.xlu0 %1694 }
 0x3a6   : > { %v4869_v25 = vpop.xlane.xlu1 %1700 }
 0x3a7   : > { %v4871_v24 = vpop.xlane.xlu0 %1698 }
 0x3aa   : > { %v4873_v12 = vpop.xlane.xlu1 %2035 }
 0x3ab   : > { %1481 = vrot.lane.b32.xlu1 %v3643_v1, %s3976_s7  ;;  %v4875_v63 = vpop.xlane.xlu0 %2033 }
 0x3ae   : > { %v4883_v59 = vpop.xlane.xlu1 %2039 }
 0x3af   : > { %1491 = vrot.lane.b32.xlu1 %v3644_v34, %s3976_s7  ;;  %v4885_v15 = vpop.xlane.xlu0 %2037 }
 0x3b2   : > { %1397 = vadd.xlane.f32.xlu0 %v4851_v45  ;;  %v4893_v1 = vpop.xlane.xlu1 %2366 }
 0x3b6   : > { %1399 = vadd.xlane.f32.xlu0 %v4856_v52  ;;  %v4903_v34 = vpop.xlane.xlu1 %2370 }
 0x3cc   : > { %902 = vrot.lane.b32.xlu0 %v4617_v23, %s3977_s25  ;;  %v4895_v23 = vpop.xlane.xlu0 %2364 }
 0x3d0   : > { %898 = vrot.lane.b32.xlu0 %v4620_v13, %s3977_s25  ;;  %v3645_v13 = vld [vmem:[%s5461_s0 + $0x38] sm:$0xff]  }
 0x3d3   : > { %1395 = vadd.xlane.f32.xlu1 %v4881_v20 }
 0x3d4   : > { %910 = vrot.lane.b32.xlu0 %v4650_v60, %s3977_s25  ;;  %v4905_v60 = vpop.xlane.xlu0 %2368 }
 0x3d7   : > { %1401 = vadd.xlane.f32.xlu1 %v4890_v56 }
 0x3d8   : > { %906 = vrot.lane.b32.xlu0 %v4652_v51, %s3977_s25  ;;  %v1702_v51 = vsub.f32 %v4623_v41, %v1687_v28  ;;  %v1705_v41 = vsub.f32 %v4641_v26, %v1693_v22  ;;  %v1714_v28 = vmul.f32 1.442695, %v1704_v36 }
 0x3da   : > { %v1710_v18 = vmul.f32 1.442695, %v1702_v51  ;;  %v1716_v51 = vmul.f32 1.442695, %v1705_v41 }
 0x3dc   : > { %1493 = vrot.lane.b32.xlu0 %v3645_v13, %s3976_s7  ;;  %3778 = vpow2.f32 %v1710_v18  ;;  %v2049_v18 = vmul.f32 1.442695, %v2041_v61 }
 0x3dd   : > { %3780 = vpow2.f32 %v1714_v28 }
 0x3de   : > { %v4907_v17 = vpop.xlane.xlu1 %2705  ;;  %3782 = vpow2.f32 %v1716_v51 }
 0x3df   : > { %3784 = vrcp.f32 %v4507_v8 }
 0x3e0   : > { %3786 = vrcp.f32 %v4509_v0  ;;  %v2044_v0 = vsub.f32 %v4672_v57, %v4859_v43 }
 0x3e1   : > { %3788 = vpow2.f32 %v2049_v18 }
 0x3e2   : > { %v4909_v55 = vpop.xlane.xlu0 %2703  ;;  %v2055_v51 = vmul.f32 1.442695, %v2044_v0 }
 0x3e6   : > { %v4911_v19 = vpop.xlane.xlu1 %2709  ;;  %v4913_v47 = vpop.xlane.xlu0 %2707 }
 0x3e8   : > { %904 = vrot.lane.b32.xlu1 %v4627_v2, %s3977_s25 }
 0x3ea   : > { %v4918_v6 = vpop.xlane.xlu1 %2374  ;;  %v4920_v13 = vpop.xlane.xlu0 %2372 }
 0x3eb   : > { %5515 = vst [vmem:[#allocation26_spill] sm:$0xff] %v4920_v13 }
 0x3ec   : > { %900 = vrot.lane.b32.xlu1 %v4631_v32, %s3977_s25  ;;  %v3646_v32 = vld [vmem:[%s5461_s0] sm:$0xff]  }
 0x3ee   : > { %v4925_v31 = vpop.xlane.xlu1 %2378  ;;  %v4927_v3 = vpop.xlane.xlu0 %2376 }
 0x3f0   : > { %912 = vrot.lane.b32.xlu1 %v4661_v48, %s3977_s25  ;;  %v2042_v48 = vsub.f32 %v4655_v7, %v4854_v11  ;;  %v2043_v11 = vsub.f32 %v4669_v29, %v4861_v54 }
 0x3f2   : > { %v4932_v2 = vpop.xlane.xlu1 %2713  ;;  %v4934_v13 = vpop.xlane.xlu0 %2711  ;;  %v2051_v7 = vmul.f32 1.442695, %v2042_v48  ;;  %v2053_v29 = vmul.f32 1.442695, %v2043_v11 }
 0x3f4   : > { %908 = vrot.lane.b32.xlu1 %v4663_v53, %s3977_s25  ;;  %v4952_v53 = vpop.eup %3778 }
 0x3f5   : > { %v4960_v35 = vpop.eup %3780 }
 0x3f6   : > { %v4942_v26 = vpop.xlane.xlu1 %2717  ;;  %v4944_v36 = vpop.xlane.xlu0 %2715  ;;  %5516 = vst [vmem:[#allocation27_spill] sm:$0xff] %v4960_v35 }
 0x3f7   : > { %v4969_v54 = vpop.eup %3782 }
 0x3f8   : > { %1818 = vrot.lane.b32.xlu1 %v3646_v32, %s3978_s6  ;;  %5517 = vst [vmem:[#allocation28_spill] sm:$0xff] %v4969_v54 }
 0x3fa   : > { %v1388_v22 = vpop.xlane.xlu1 %1387  ;;  %v1480_v30 = vpop.permute.xlu0 %1479 }
 0x3fb   : > { %1726 = vadd.xlane.f32.xlu0 %v4952_v53  ;;  %3453 = vmatprep.subr.bf16.mxu1 %v1480_v30  ;;  %3790 = vrcp.f32 %v1388_v22 }
 0x3fc   : > { %2157 = vrot.lane.b32.xlu1 %v3647_v50, %s3979_s10  ;;  %3454 = vmatpush3.bf16.msra.mxu1 %v1480_v30  ;;  %3792 = vrcp.f32 %v4511_v5  ;;  %v3785_v5 = vpop.eup %3784 }
 0x3fd   : > { %v3787_v61 = vpop.eup %3786  ;;  %v1075_v11 = vmul.f32 %v3785_v5, %v4389_v14 }
 0x3fe   : > { %v1390_v8 = vpop.xlane.xlu1 %1389  ;;  %v4963_v41 = vpop.permute.xlu0 %1483 }
 0x3ff   : > { %3794 = vrcp.f32 %v1390_v8  ;;  %1730 = vadd.xlane.f32.xlu0 %v4960_v35  ;;  %v4974_v32 = vpop.eup %3788  ;;  %v5518_v8 = vld [vmem:[#allocation7_spill] sm:$0xff]  ;;  %v5519_v35 = vld [vmem:[#allocation4_spill] sm:$0xff] }
 0x400   : > { %3796 = vpow2.f32 %v2051_v7  ;;  %v1703_v0 = vsub.f32 %v5518_v8, %v4844_v44  ;;  %v5521_v44 = vld [vmem:[#allocation6_spill] sm:$0xff] }
 0x401   : > { %3798 = vrcp.f32 %v4513_v16 }
 0x402   : > { %v4971_v28 = vpop.permute.xlu0 %1485  ;;  %3800 = vpow2.f32 %v2053_v29  ;;  %v1712_v14 = vmul.f32 1.442695, %v1703_v0  ;;  %v3650_v0 = vld [vmem:[%s5461_s0 + $0x8] sm:$0xff]  }
 0x403   : > { %1732 = vadd.xlane.f32.xlu0 %v4969_v54  ;;  %3802 = vrcp.f32 %v4516_v10 }
 0x404   : > { %3804 = vrcp.f32 %v4518_v49  ;;  %v1074_v49 = vmul.f32 %v3787_v61, %v4391_v58 }
 0x405   : > { %v3791_v57 = vpop.eup %3790  ;;  %3806 = vpow2.f32 %v2055_v51 }
 0x406   : > { %v4977_v48 = vpop.permute.xlu0 %1487  ;;  %v3793_v16 = vpop.eup %3792  ;;  %v1411_v22 = vmul.f32 %v3791_v57, %v4801_v21  ;;  %v5520_v21 = vld [vmem:[#allocation3_spill] sm:$0xff]  ;;  %v1081_v5 = vpack.c.bf16 %v1075_v11, %v1074_v49  ;;  %3808 = vpow2.f32 %v1712_v14  ;;  %v3649_v49 = vld [vmem:[%s5461_s0 + $0x28] sm:$0xff]  }
 0x407   : > { %2065 = vadd.xlane.f32.xlu0 %v4974_v32  ;;  %v1077_v57 = vmul.f32 %v3793_v16, %v5520_v21  ;;  %v3652_v21 = vld [vmem:[%s5461_s0 + $0x10] sm:$0xff]  }
 0x409   : > { %v3795_v43 = vpop.eup %3794 }
 0x40a   : > { %v4981_v18 = vpop.eup %3796  ;;  %v1490_v50 = vpop.permute.xlu0 %1489  ;;  %v1412_v30 = vmul.f32 %v3795_v43, %v4804_v62 }
 0x40b   : > { %v3799_v7 = vpop.eup %3798  ;;  %2067 = vadd.xlane.f32.xlu0 %v4981_v18 }
 0x40c   : > { %v1419_v10 = vpack.c.bf16 %v1412_v30, %v1411_v22  ;;  %v4990_v29 = vpop.eup %3800  ;;  %v1076_v54 = vmul.f32 %v3799_v7, %v5519_v35  ;;  %v5522_v22 = vld [vmem:[#allocation5_spill] sm:$0xff] }
 0x40d   : > { %v3803_v62 = vpop.eup %3802 }
 0x40e   : > { %3469 = vmatprep.mubr.bf16.mxu1 %v1419_v10  ;;  %v1155_v51 = vpop.permute.xlu0 %1154  ;;  %v3805_v43 = vpop.eup %3804  ;;  %v1082_v61 = vpack.c.bf16 %v1077_v57, %v1076_v54  ;;  %v1079_v16 = vmul.f32 %v3803_v62, %v5522_v22  ;;  %v3648_v54 = vld [vmem:[%s5461_s0 + $0x8] sm:$0xff]   ;;  %v3653_v57 = vld [vmem:[%s5461_s0 + $0x10] sm:$0xff]   ;;  %v3654_v62 = vld [vmem:[%s5461_s0 + $0x18] sm:$0xff]  }
 0x40f   : > { %2069 = vadd.xlane.f32.xlu0 %v4990_v29  ;;  %3443 = vmatprep.subr.bf16.mxu0 %v1155_v51  ;;  %v4995_v58 = vpop.eup %3806  ;;  %v1078_v35 = vmul.f32 %v3805_v43, %v5521_v44 }
 0x410   : > { %3444 = vmatpush3.bf16.msra.mxu0 %v1155_v51  ;;  %v5000_v7 = vpop.eup %3808  ;;  %v3651_v51 = vld [vmem:[%s5461_s0 + $0x30] sm:$0xff]  }
 0x411   : > { %v1083_v30 = vpack.c.bf16 %v1079_v16, %v1078_v35  ;;  %v5525_v16 = vld [vmem:[#allocation11_spill] sm:$0xff] }
 0x413   : > { %2071 = vadd.xlane.f32.xlu0 %v4995_v58  ;;  %3446 = vmatmul.mubr.bf16.vlgmr.msra.gmra.mrb[8].mxu0 %v1081_v5 }
 0x414   : > { %3449 = vmatprep.mubr.bf16.mxu0 %v1082_v61  ;;  %v5524_v61 = vld [vmem:[#allocation10_spill] sm:$0xff] }
 0x415   : > { %v1708_v44 = vsub.f32 %v5524_v61, %v4871_v24  ;;  %v3657_v24 = vld [vmem:[%s5461_s0 + $0x20] sm:$0xff]  }
 0x417   : > { %v1722_v22 = vmul.f32 1.442695, %v1708_v44 }
 0x41b   : > { %3450 = vmatmul.mubr.bf16.gmra.mrb[12].mxu0 %v1083_v30  ;;  %v1709_v30 = vsub.f32 %v5525_v16, %v4869_v25  ;;  %v3658_v25 = vld [vmem:[%s5461_s0 + $0x28] sm:$0xff]  }
 0x420   : > { %1728 = vadd.xlane.f32.xlu1 %v5000_v7 }
 0x423   : > { %v1392_v10 = vpop.xlane.xlu1 %1391 }
 0x427   : > { %v1394_v11 = vpop.xlane.xlu1 %1393 }
 0x429   : > { %2159 = vrot.lane.b32.xlu0 %v3648_v54, %s3979_s10  ;;  %v1724_v54 = vmul.f32 1.442695, %v1709_v30 }
 0x42b   : > { %v1482_v8 = vpop.permute.xlu1 %1481 }
 0x42c   : > { %3455 = vmatprep.subr.bf16.mxu1 %v1482_v8 }
 0x42d   : > { %1828 = vrot.lane.b32.xlu0 %v3649_v49, %s3978_s6  ;;  %3456 = vmatpush3.bf16.msra.mxu1 %v1482_v8  ;;  %v5526_v49 = vld [vmem:[#allocation12_spill] sm:$0xff] }
 0x42e   : > { %3457 = vmatprep.subr.bf16.mxu1 %v4963_v41  ;;  %v2046_v8 = vsub.f32 %v5526_v49, %v4873_v12  ;;  %v3659_v12 = vld [vmem:[%s5461_s0 + $0x30] sm:$0xff]  }
 0x42f   : > { %v1492_v14 = vpop.permute.xlu1 %1491 }
 0x431   : > { %1820 = vrot.lane.b32.xlu1 %v3650_v0, %s3978_s6  ;;  %1830 = vrot.lane.b32.xlu0 %v3651_v51, %s3978_s6  ;;  %v2059_v51 = vmul.f32 1.442695, %v2046_v8 }
 0x432   : > { %3458 = vmatpush3.bf16.msra.mxu1 %v4963_v41  ;;  %v5523_v41 = vld [vmem:[#allocation8_spill] sm:$0xff] }
 0x433   : > { %3459 = vmatprep.subr.bf16.mxu1 %v4971_v28  ;;  %v1706_v43 = vsub.f32 %v5523_v41, %v4866_v39  ;;  %v3656_v39 = vld [vmem:[%s5461_s0 + $0x20] sm:$0xff]  }
 0x435   : > { %1822 = vrot.lane.b32.xlu1 %v3652_v21, %s3978_s6  ;;  %v1718_v35 = vmul.f32 1.442695, %v1706_v43  ;;  %v5527_v21 = vld [vmem:[#allocation14_spill] sm:$0xff] }
 0x436   : > { %3460 = vmatpush3.bf16.msra.mxu1 %v4971_v28  ;;  %v3655_v28 = vld [vmem:[%s5461_s0 + $0x18] sm:$0xff]  }
 0x437   : > { %3461 = vmatprep.subr.bf16.mxu1 %v4977_v48  ;;  %3810 = vpow2.f32 %v1718_v35 }
 0x438   : > { %3812 = vpow2.f32 %v1722_v22 }
 0x439   : > { %2161 = vrot.lane.b32.xlu1 %v3653_v57, %s3979_s10  ;;  %3814 = vrcp.f32 %v1394_v11  ;;  %v2047_v57 = vsub.f32 %v5527_v21, %v4885_v15 }
 0x43a   : > { %3462 = vmatpush3.bf16.msra.mxu1 %v4977_v48  ;;  %3816 = vrcp.f32 %v1392_v10  ;;  %v5528_v10 = vld [vmem:[#allocation15_spill] sm:$0xff] }
 0x43b   : > { %3463 = vmatprep.subr.bf16.mxu1 %v1490_v50  ;;  %3818 = vpow2.f32 %v1724_v54  ;;  %v2048_v41 = vsub.f32 %v5528_v10, %v4883_v59  ;;  %v2061_v43 = vmul.f32 1.442695, %v2047_v57 }
 0x43c   : > { %3820 = vpow2.f32 %v2059_v51 }
 0x43d   : > { %1824 = vrot.lane.b32.xlu1 %v3654_v62, %s3978_s6  ;;  %v2063_v44 = vmul.f32 1.442695, %v2048_v41  ;;  %3822 = vpow2.f32 %v2061_v43 }
 0x43e   : > { %3464 = vmatpush3.bf16.msra.mxu1 %v1490_v50 }
 0x43f   : > { %3465 = vmatprep.subr.bf16.mxu1 %v1492_v14  ;;  %v1398_v5 = vpop.xlane.xlu0 %1397  ;;  %3824 = vpow2.f32 %v2063_v44 }
 0x440   : > { %3826 = vrcp.f32 %v1398_v5 }
 0x441   : > { %2163 = vrot.lane.b32.xlu1 %v3655_v28, %s3979_s10  ;;  %v5068_v11 = vpop.eup %3810 }
 0x442   : > { %3466 = vmatpush3.bf16.msra.mxu1 %v1492_v14  ;;  %v5075_v15 = vpop.eup %3812 }
 0x443   : > { %v1400_v48 = vpop.xlane.xlu0 %1399  ;;  %v3815_v28 = vpop.eup %3814 }
 0x444   : > { %v3817_v61 = vpop.eup %3816  ;;  %v1414_v35 = vmul.f32 %v3815_v28, %v4836_v4 }
 0x445   : > { %1826 = vrot.lane.b32.xlu1 %v3656_v39, %s3978_s6  ;;  %v5080_v39 = vpop.eup %3818  ;;  %v1413_v59 = vmul.f32 %v3817_v61, %v4833_v27  ;;  %v5529_v27 = vld [vmem:[#allocation9_spill] sm:$0xff] }
 0x446   : > { %v5084_v30 = vpop.eup %3820 }
 0x447   : > { %v903_v50 = vpop.permute.xlu0 %902  ;;  %v1420_v16 = vpack.c.bf16 %v1414_v35, %v1413_v59  ;;  %v5531_v35 = vld [vmem:[#allocation17_spill] sm:$0xff]  ;;  %v3661_v59 = vld [vmem:[%s5461_s0 + $0x38] sm:$0xff]  }
 0x448   : > { %925 = vst.msk [vmem:[#allocation2 + $0x10] sm:$0xff] %vm922_vm1, %v903_v50  ;;  %v1707_v50 = vsub.f32 %v5529_v27, %v4864_v9  ;;  %v5532_v27 = vld [vmem:[#allocation19_spill] sm:$0xff] }
 0x449   : > { %2165 = vrot.lane.b32.xlu1 %v3657_v24, %s3979_s10  ;;  %v5087_v24 = vpop.eup %3822 }
 0x44a   : > { %v5092_v54 = vpop.eup %3824  ;;  %v1720_v8 = vmul.f32 1.442695, %v1707_v50  ;;  %v2383_v50 = vsub.f32 %v5532_v27, %v4903_v34  ;;  %v3663_v34 = vld [vmem:[%s5461_s0] sm:$0xff]  }
 0x44b   : > { %v899_v0 = vpop.permute.xlu0 %898  ;;  %v3827_v5 = vpop.eup %3826 }
 0x44c   : > { %923 = vst.msk [vmem:[#allocation2] sm:$0xff] %vm922_vm1, %v899_v0 }
 0x44d   : > { %2167 = vrot.lane.b32.xlu1 %v3658_v25, %s3979_s10  ;;  %v5530_v25 = vld [vmem:[#allocation13_spill] sm:$0xff] }
 0x44e   : > { %v2045_v0 = vsub.f32 %v5530_v25, %v4875_v63  ;;  %v2394_v25 = vmul.f32 1.442695, %v2383_v50 }
 0x44f   : > { %v911_v62 = vpop.permute.xlu0 %910 }
 0x450   : > { %929 = vst.msk [vmem:[#allocation2 + $0x30] sm:$0xff] %vm922_vm1, %v911_v62  ;;  %1734 = vadd.xlane.f32.xlu0 %v5068_v11  ;;  %v2057_v21 = vmul.f32 1.442695, %v2045_v0 }
 0x451   : > { %2169 = vrot.lane.b32.xlu1 %v3659_v12, %s3979_s10 }
 0x453   : > { %v907_v14 = vpop.permute.xlu0 %906 }
 0x454   : > { %927 = vst.msk [vmem:[#allocation2 + $0x20] sm:$0xff] %vm922_vm1, %v907_v14  ;;  %1738 = vadd.xlane.f32.xlu0 %v5075_v15 }
 0x457   : > { %v1494_v22 = vpop.permute.xlu0 %1493 }
 0x458   : > { %1740 = vadd.xlane.f32.xlu0 %v5080_v39  ;;  %3467 = vmatprep.subr.bf16.mxu1 %v1494_v22 }
 0x459   : > { %3468 = vmatpush3.bf16.msra.mxu1 %v1494_v22  ;;  %v2381_v22 = vsub.f32 %v5531_v35, %v4893_v1  ;;  %v5533_v1 = vld [vmem:[#allocation20_spill] sm:$0xff]  ;;  %v5535_v35 = vld [vmem:[#allocation18_spill] sm:$0xff] }
 0x45a   : > { %v2720_v0 = vsub.f32 %v5533_v1, %v4907_v17  ;;  %v2722_v17 = vsub.f32 %v4761_v33, %v4911_v19 }
 0x45c   : > { %2075 = vadd.xlane.f32.xlu0 %v5084_v30  ;;  %3470 = vmatmul.mubr.bf16.vlgmr.msra.gmra.mrb[8].mxu1 %v1420_v16 }
 0x460   : > { %v1396_v4 = vpop.xlane.xlu1 %1395  ;;  %2077 = vadd.xlane.f32.xlu0 %v5087_v24 }
 0x461   : > { %3828 = vrcp.f32 %v1396_v4  ;;  %v2390_v4 = vmul.f32 1.442695, %v2381_v22  ;;  %v2382_v22 = vsub.f32 %v5535_v35, %v4905_v60 }
 0x462   : > { %3830 = vrcp.f32 %v1400_v48  ;;  %v1416_v48 = vmul.f32 %v3827_v5, %v4851_v45  ;;  %v3660_v45 = vld [vmem:[%s5461_s0 + $0x38] sm:$0xff]   ;;  %v2729_v5 = vmul.f32 1.442695, %v2720_v0 }
 0x464   : > { %v1402_v49 = vpop.xlane.xlu1 %1401  ;;  %2079 = vadd.xlane.f32.xlu0 %v5092_v54 }
 0x465   : > { %3832 = vrcp.f32 %v1402_v49  ;;  %v3662_v49 = vld [vmem:[%s5461_s0] sm:$0xff]  }
 0x466   : > { %3834 = vpow2.f32 %v1720_v8 }
 0x467   : > { %3836 = vpow2.f32 %v2057_v21  ;;  %v2721_v21 = vsub.f32 %v4758_v42, %v4913_v47 }
 0x468   : > { %v905_v51 = vpop.permute.xlu1 %904  ;;  %3838 = vpow2.f32 %v2390_v4 }
 0x469   : > { %926 = vst.msk [vmem:[#allocation2 + $0x18] sm:$0xff] %vm922_vm1, %v905_v51  ;;  %3840 = vpow2.f32 %v2394_v25 }
 0x46a   : > { %3842 = vpow2.f32 %v2729_v5 }
 0x46b   : > { %v3829_v57 = vpop.eup %3828 }
 0x46c   : > { %v901_v12 = vpop.permute.xlu1 %900  ;;  %v1415_v9 = vmul.f32 %v3829_v57, %v4881_v20  ;;  %v3831_v62 = vpop.eup %3830 }
 0x46d   : > { %924 = vst.msk [vmem:[#allocation2 + $0x8] sm:$0xff] %vm922_vm1, %v901_v12  ;;  %v1417_v63 = vmul.f32 %v3831_v62, %v4856_v52  ;;  %v2731_v12 = vmul.f32 1.442695, %v2721_v21  ;;  %v2733_v62 = vmul.f32 1.442695, %v2722_v17 }
 0x46e   : > { %v1421_v10 = vpack.c.bf16 %v1416_v48, %v1415_v9 }
 0x46f   : > { %v3833_v41 = vpop.eup %3832 }
 0x470   : > { %v913_v43 = vpop.permute.xlu1 %912  ;;  %3473 = vmatprep.mubr.bf16.mxu1 %v1421_v10  ;;  %v1418_v28 = vmul.f32 %v3833_v41, %v4890_v56  ;;  %v5104_v61 = vpop.eup %3834 }
 0x471   : > { %930 = vst.msk [vmem:[#allocation2 + $0x38] sm:$0xff] %vm922_vm1, %v913_v43  ;;  %v5111_v44 = vpop.eup %3836  ;;  %v5534_v43 = vld [vmem:[#allocation16_spill] sm:$0xff] }
 0x472   : > { %v1422_v14 = vpack.c.bf16 %v1418_v28, %v1417_v63  ;;  %v5141_v9 = vpop.eup %3838  ;;  %v2380_v63 = vsub.f32 %v5534_v43, %v4895_v23  ;;  %v2392_v23 = vmul.f32 1.442695, %v2382_v22  ;;  %v2387_v43 = vsub.f32 %v4781_v40, %v4925_v31  ;;  %v3667_v40 = vld [vmem:[%s5461_s0 + $0x10] sm:$0xff]  }
 0x473   : > { %v5144_v10 = vpop.eup %3840 }
 0x474   : > { %v909_v20 = vpop.permute.xlu1 %908  ;;  %3474 = vmatmul.mubr.bf16.gmra.mrb[12].mxu1 %v1422_v14  ;;  %v5149_v47 = vpop.eup %3842 }
 0x475   : > { %928 = vst.msk [vmem:[#allocation2 + $0x28] sm:$0xff] %vm922_vm1, %v909_v20  ;;  %1736 = vadd.xlane.f32.xlu1 %v5104_v61 }
 0x478   : > { %v1819_v52 = vpop.permute.xlu1 %1818 }
 0x479   : > { %2073 = vadd.xlane.f32.xlu1 %v5111_v44  ;;  %3477 = vmatprep.subr.bf16.mxu0 %v1819_v52 }
 0x47a   : > { %2171 = vrot.lane.b32.xlu0 %v3660_v45, %s3979_s10  ;;  %3478 = vmatpush3.bf16.msra.mxu0 %v1819_v52 }
 0x47c   : > { %v2158_v56 = vpop.permute.xlu1 %2157 }
 0x47d   : > { %3501 = vmatprep.subr.bf16.mxu1 %v2158_v56 }
 0x47e   : > { %3502 = vmatpush3.bf16.msra.mxu1 %v2158_v56  ;;  %v2388_v56 = vmul.f32 1.442695, %v2380_v63  ;;  %v2402_v63 = vmul.f32 1.442695, %v2387_v43 }
 0x488   : > { %v1727_v16 = vpop.xlane.xlu0 %1726 }
 0x48a   : > { %1832 = vrot.lane.b32.xlu1 %v3661_v59, %s3978_s6 }
 0x48c   : > { %v5126_v8 = vpop.xlane.xlu0 %1730 }
 0x48e   : > { %2496 = vrot.lane.b32.xlu1 %v3662_v49, %s3980_s29 }
 0x490   : > { %v5134_v51 = vpop.xlane.xlu0 %1732 }
 0x492   : > { %2835 = vrot.lane.b32.xlu1 %v3663_v34, %s3977_s25  ;;  %v3664_v34 = vld [vmem:[%s5461_s0 + $0x8] sm:$0xff]  }
 0x494   : > { %v2066_v57 = vpop.xlane.xlu0 %2065 }
 0x495   : > { %3844 = vrcp.f32 %v2066_v57 }
 0x498   : > { %v2068_v48 = vpop.xlane.xlu0 %2067 }
 0x499   : > { %3846 = vrcp.f32 %v2068_v48  ;;  %2406 = vadd.xlane.f32.xlu0 %v5141_v9 }
 0x49a   : > { %3848 = vpow2.f32 %v2731_v12  ;;  %v2385_v12 = vsub.f32 %v4771_v38, %v4918_v6  ;;  %v3666_v38 = vld [vmem:[%s5461_s0 + $0x10] sm:$0xff]  }
 0x49b   : > { %3850 = vpow2.f32 %v2733_v62  ;;  %v3665_v62 = vld [vmem:[%s5461_s0 + $0x8] sm:$0xff]  }
 0x49c   : > { %v5146_v42 = vpop.xlane.xlu0 %2069  ;;  %3852 = vpow2.f32 %v2388_v56 }
 0x49d   : > { %2410 = vadd.xlane.f32.xlu0 %v5144_v10  ;;  %3854 = vrcp.f32 %v1727_v16 }
 0x49f   : > { %v3845_v19 = vpop.eup %3844 }
 0x4a0   : > { %v5151_v33 = vpop.xlane.xlu0 %2071  ;;  %v2089_v14 = vmul.f32 %v3845_v19, %v4974_v32  ;;  %v2719_v32 = vsub.f32 %v4753_v46, %v4909_v55 }
 0x4a1   : > { %2745 = vadd.xlane.f32.xlu0 %v5149_v47 }
 0x4a2   : > { %v2727_v4 = vmul.f32 1.442695, %v2719_v32 }
 0x4a3   : > { %v3847_v41 = vpop.eup %3846 }
 0x4a4   : > { %v5156_v28 = vpop.eup %3848  ;;  %v2090_v20 = vmul.f32 %v3847_v41, %v4981_v18  ;;  %v2160_v45 = vpop.permute.xlu0 %2159  ;;  %v2398_v41 = vmul.f32 1.442695, %v2385_v12 }
 0x4a5   : > { %2747 = vadd.xlane.f32.xlu0 %v5156_v28  ;;  %3503 = vmatprep.subr.bf16.mxu1 %v2160_v45  ;;  %v5163_v59 = vpop.eup %3850 }
 0x4a6   : > { %v2097_v52 = vpack.c.bf16 %v2090_v20, %v2089_v14  ;;  %3504 = vmatpush3.bf16.msra.mxu1 %v2160_v45  ;;  %v5168_v60 = vpop.eup %3852  ;;  %v2724_v14 = vsub.f32 %v4786_v37, %v4932_v2  ;;  %v5536_v20 = vld [vmem:[#allocation25_spill] sm:$0xff] }
 0x4a7   : > { %v3855_v49 = vpop.eup %3854  ;;  %v2725_v45 = vsub.f32 %v5536_v20, %v4944_v36 }
 0x4a8   : > { %3517 = vmatprep.mubr.bf16.mxu1 %v2097_v52  ;;  %v1750_v55 = vmul.f32 %v3855_v49, %v4952_v53  ;;  %v2737_v31 = vmul.f32 1.442695, %v2724_v14  ;;  %v5537_v52 = vld [vmem:[#allocation24_spill] sm:$0xff] }
 0x4a9   : > { %2749 = vadd.xlane.f32.xlu0 %v5163_v59  ;;  %v2726_v56 = vsub.f32 %v5537_v52, %v4942_v26  ;;  %v2739_v35 = vmul.f32 1.442695, %v2725_v45  ;;  %v3670_v52 = vld [vmem:[%s5461_s0 + $0x38] sm:$0xff]  }
 0x4ab   : > { %v2741_v22 = vmul.f32 1.442695, %v2726_v56  ;;  %v5542_v56 = vld [vmem:[#allocation28_spill] sm:$0xff] }
 0x4ad   : > { %v1729_v18 = vpop.xlane.xlu1 %1728 }
 0x4ae   : > { %3856 = vrcp.f32 %v1729_v18 }
 0x4af   : > { %3858 = vpow2.f32 %v2392_v23 }
 0x4b0   : > { %3860 = vpow2.f32 %v2727_v4 }
 0x4b1   : > { %v1821_v27 = vpop.permute.xlu1 %1820  ;;  %3862 = vpow2.f32 %v2398_v41 }
 0x4b2   : > { %3479 = vmatprep.subr.bf16.mxu0 %v1821_v27  ;;  %3864 = vpow2.f32 %v2402_v63 }
 0x4b3   : > { %3480 = vmatpush3.bf16.msra.mxu0 %v1821_v27  ;;  %3866 = vpow2.f32 %v2737_v31  ;;  %v5538_v27 = vld [vmem:[#allocation26_spill] sm:$0xff] }
 0x4b4   : > { %3868 = vpow2.f32 %v2739_v35 }
 0x4b5   : > { %v1823_v50 = vpop.permute.xlu1 %1822  ;;  %3870 = vpow2.f32 %v2741_v22 }
 0x4b6   : > { %2404 = vadd.xlane.f32.xlu1 %v5168_v60  ;;  %3481 = vmatprep.subr.bf16.mxu0 %v1823_v50  ;;  %3872 = vrcp.f32 %v5151_v33 }
 0x4b7   : > { %3482 = vmatpush3.bf16.msra.mxu0 %v1823_v50  ;;  %v5539_v50 = vld [vmem:[#allocation21_spill] sm:$0xff]  ;;  %3874 = vrcp.f32 %v5146_v42 }
 0x4b8   : > { %v3857_v25 = vpop.eup %3856  ;;  %v2384_v49 = vsub.f32 %v5539_v50, %v5538_v27 }
 0x4b9   : > { %v5171_v1 = vpop.eup %3858  ;;  %v2162_v46 = vpop.permute.xlu1 %2161  ;;  %v1751_v16 = vmul.f32 %v3857_v25, %v5000_v7 }
 0x4ba   : > { %2408 = vadd.xlane.f32.xlu1 %v5171_v1  ;;  %3505 = vmatprep.subr.bf16.mxu1 %v2162_v46  ;;  %v5179_v5 = vpop.eup %3860  ;;  %v1829_v7 = vpop.permute.xlu0 %1828 }
 0x4bb   : > { %3506 = vmatpush3.bf16.msra.mxu1 %v2162_v46  ;;  %v1758_v0 = vpack.c.bf16 %v1751_v16, %v1750_v55  ;;  %v5205_v37 = vpop.eup %3862 }
 0x4bc   : > { %v5208_v23 = vpop.eup %3864 }
 0x4bd   : > { %v1825_v21 = vpop.permute.xlu1 %1824  ;;  %3493 = vmatprep.mubr.bf16.mxu0 %v1758_v0  ;;  %v5211_v36 = vpop.eup %3866  ;;  %v2396_v0 = vmul.f32 1.442695, %v2384_v49 }
 0x4be   : > { %2743 = vadd.xlane.f32.xlu1 %v5179_v5  ;;  %3483 = vmatprep.subr.bf16.mxu0 %v1825_v21  ;;  %v1831_v48 = vpop.permute.xlu0 %1830  ;;  %v5223_v46 = vpop.eup %3868 }
 0x4bf   : > { %2837 = vrot.lane.b32.xlu0 %v3664_v34, %s3977_s25  ;;  %3484 = vmatpush3.bf16.msra.mxu0 %v1825_v21  ;;  %v5540_v34 = vld [vmem:[#allocation22_spill] sm:$0xff]  ;;  %v5231_v21 = vpop.eup %3870  ;;  %3876 = vpow2.f32 %v2396_v0 }
 0x4c0   : > { %v2386_v33 = vsub.f32 %v5540_v34, %v4927_v3 }
 0x4c1   : > { %v2164_v53 = vpop.permute.xlu1 %2163 }
 0x4c2   : > { %3507 = vmatprep.subr.bf16.mxu1 %v2164_v53  ;;  %v2400_v42 = vmul.f32 1.442695, %v2386_v33 }
 0x4c3   : > { %3508 = vmatpush3.bf16.msra.mxu1 %v2164_v53 }
 0x4c4   : > { %3878 = vpow2.f32 %v2400_v42 }
 0x4c5   : > { %v1827_v57 = vpop.permute.xlu1 %1826 }
 0x4c6   : > { %3485 = vmatprep.subr.bf16.mxu0 %v1827_v57 }
 0x4c7   : > { %3486 = vmatpush3.bf16.msra.mxu0 %v1827_v57 }
 0x4c8   : > { %3487 = vmatprep.subr.bf16.mxu0 %v1829_v7 }
 0x4c9   : > { %v2166_v17 = vpop.permute.xlu1 %2165 }
 0x4ca   : > { %3509 = vmatprep.subr.bf16.mxu1 %v2166_v17 }
 0x4cb   : > { %3488 = vmatpush3.bf16.msra.mxu0 %v1829_v7  ;;  %3510 = vmatpush3.bf16.msra.mxu1 %v2166_v17  ;;  %v5541_v17 = vld [vmem:[#allocation23_spill] sm:$0xff] }
 0x4cc   : > { %3489 = vmatprep.subr.bf16.mxu0 %v1831_v48  ;;  %v2723_v12 = vsub.f32 %v5541_v17, %v4934_v13 }
 0x4cd   : > { %v2168_v19 = vpop.permute.xlu1 %2167 }
 0x4ce   : > { %3511 = vmatprep.subr.bf16.mxu1 %v2168_v19  ;;  %v2735_v43 = vmul.f32 1.442695, %v2723_v12 }
 0x4cf   : > { %2498 = vrot.lane.b32.xlu1 %v3665_v62, %s3980_s29  ;;  %3490 = vmatpush3.bf16.msra.mxu0 %v1831_v48  ;;  %v3873_v62 = vpop.eup %3872 }
 0x4d0   : > { %3512 = vmatpush3.bf16.msra.mxu1 %v2168_v19  ;;  %v3875_v41 = vpop.eup %3874  ;;  %3880 = vpow2.f32 %v2735_v43 }
 0x4d1   : > { %v2170_v6 = vpop.permute.xlu1 %2169  ;;  %v2091_v63 = vmul.f32 %v3875_v41, %v4990_v29  ;;  %3882 = vrcp.f32 %v5134_v51  ;;  %v3668_v29 = vld [vmem:[%s5461_s0 + $0x18] sm:$0xff]  }
 0x4d2   : > { %3513 = vmatprep.subr.bf16.mxu1 %v2170_v6  ;;  %3884 = vrcp.f32 %v5126_v8  ;;  %v3669_v8 = vld [vmem:[%s5461_s0 + $0x30] sm:$0xff]  }
 0x4d3   : > { %2500 = vrot.lane.b32.xlu1 %v3666_v38, %s3980_s29  ;;  %v2092_v38 = vmul.f32 %v3873_v62, %v4995_v58  ;;  %v3671_v62 = vld [vmem:[%s5461_s0 + $0x18] sm:$0xff]  }
 0x4d4   : > { %3514 = vmatpush3.bf16.msra.mxu1 %v2170_v6 }
 0x4d5   : > { %v2098_v14 = vpack.c.bf16 %v2092_v38, %v2091_v63 }
 0x4d7   : > { %2839 = vrot.lane.b32.xlu1 %v3667_v40, %s3977_s25  ;;  %v5246_v40 = vpop.eup %3876 }
 0x4d8   : > { %v5250_v13 = vpop.eup %3878 }
 0x4da   : > { %v5257_v58 = vpop.eup %3880 }
 0x4db   : > { %v3883_v51 = vpop.eup %3882 }
 0x4dc   : > { %v3885_v45 = vpop.eup %3884  ;;  %v1753_v35 = vmul.f32 %v3883_v51, %v5542_v56 }
 0x4dd   : > { %v1735_v2 = vpop.xlane.xlu0 %1734 }
 0x4de   : > { %2414 = vadd.xlane.f32.xlu0 %v5205_v37  ;;  %3886 = vrcp.f32 %v1735_v2 }
 0x4e1   : > { %v1739_v32 = vpop.xlane.xlu0 %1738 }
 0x4e2   : > { %2418 = vadd.xlane.f32.xlu0 %v5208_v23  ;;  %3888 = vrcp.f32 %v1739_v32 }
 0x4e5   : > { %v1741_v18 = vpop.xlane.xlu0 %1740 }
 0x4e6   : > { %2753 = vadd.xlane.f32.xlu0 %v5211_v36  ;;  %v5214_v26 = vpop.f32.mrb[8].mxu0  ;;  %3890 = vrcp.f32 %v1741_v18  ;;  %v5543_v18 = vld [vmem:[#allocation27_spill] sm:$0xff] }
 0x4e7   : > { %v5217_v4 = vpop.f32.mrb[9].mxu0  ;;  %v1752_v27 = vmul.f32 %v3885_v45, %v5543_v18 }
 0x4e8   : > { %v5221_v25 = vpop.f32.mrb[10].mxu0  ;;  %v3887_v2 = vpop.eup %3886 }
 0x4e9   : > { %v5226_v55 = vpop.f32.mrb[11].mxu0  ;;  %v2076_v16 = vpop.xlane.xlu0 %2075  ;;  %v1754_v33 = vmul.f32 %v3887_v2, %v5068_v11 }
 0x4ea   : > { %2755 = vadd.xlane.f32.xlu0 %v5223_v46 }
 0x4ec   : > { %v3889_v32 = vpop.eup %3888 }
 0x4ed   : > { %v2078_v53 = vpop.xlane.xlu0 %2077 }
 0x4ee   : > { %2757 = vadd.xlane.f32.xlu0 %v5231_v21  ;;  %v5234_v7 = vpop.f32.mrb[12].mxu0 }
 0x4ef   : > { %v5236_v57 = vpop.f32.mrb[13].mxu0 }
 0x4f0   : > { %v5240_v48 = vpop.f32.mrb[14].mxu0  ;;  %v3891_v50 = vpop.eup %3890 }
 0x4f1   : > { %v5242_v19 = vpop.f32.mrb[15].mxu0  ;;  %v2080_v3 = vpop.xlane.xlu0 %2079  ;;  %v1757_v41 = vmul.f32 %v3891_v50, %v5080_v39  ;;  %v3672_v39 = vld [vmem:[%s5461_s0 + $0x20] sm:$0xff]  }
 0x4f5   : > { %v2172_v6 = vpop.permute.xlu0 %2171 }
 0x4f6   : > { %3515 = vmatprep.subr.bf16.mxu1 %v2172_v6 }
 0x4f7   : > { %3516 = vmatpush3.bf16.msra.mxu1 %v2172_v6 }
 0x4fa   : > { %3518 = vmatmul.mubr.bf16.vlgmr.msra.gmra.mrb[16].mxu1 %v2098_v14 }
 0x4fb   : > { %2412 = vadd.xlane.f32.xlu1 %v5246_v40 }
 0x4ff   : > { %2416 = vadd.xlane.f32.xlu1 %v5250_v13 }
 0x502   : > { %v1737_v31 = vpop.xlane.xlu1 %1736 }
 0x503   : > { %3892 = vrcp.f32 %v1737_v31  ;;  %2751 = vadd.xlane.f32.xlu1 %v5257_v58 }
 0x504   : > { %3894 = vrcp.f32 %v2080_v3  ;;  %2841 = vrot.lane.b32.xlu0 %v3668_v29, %s3977_s25 }
 0x505   : > { %3896 = vrcp.f32 %v2076_v16  ;;  %v1759_v16 = vpack.c.bf16 %v1753_v35, %v1752_v27 }
 0x506   : > { %3898 = vrcp.f32 %v2078_v53  ;;  %v2074_v20 = vpop.xlane.xlu1 %2073 }
 0x507   : > { %3900 = vrcp.f32 %v2074_v20 }
 0x508   : > { %2508 = vrot.lane.b32.xlu0 %v3669_v8, %s3980_s29 }
 0x50a   : > { %v1833_v22 = vpop.permute.xlu1 %1832 }
 0x50b   : > { %3491 = vmatprep.subr.bf16.mxu0 %v1833_v22 }
 0x50c   : > { %2510 = vrot.lane.b32.xlu0 %v3670_v52, %s3980_s29  ;;  %3492 = vmatpush3.bf16.msra.mxu0 %v1833_v22 }
 0x50d   : > { %v3893_v49 = vpop.eup %3892 }
 0x50e   : > { %v3895_v0 = vpop.eup %3894  ;;  %v2497_v34 = vpop.permute.xlu1 %2496  ;;  %v1755_v53 = vmul.f32 %v3893_v49, %v5104_v61 }
 0x50f   : > { %v3897_v42 = vpop.eup %3896  ;;  %3494 = vmatmul.mubr.bf16.vlgmr.msra.gmra.mrb[16].mxu0 %v1759_v16  ;;  %3525 = vmatprep.subr.bf16.mxu0 %v2497_v34  ;;  %v2096_v11 = vmul.f32 %v3895_v0, %v5092_v54 }
 0x510   : > { %v3899_v17 = vpop.eup %3898  ;;  %1237 = vrot.lane.b32.xlu0 %v5217_v4, %s3980_s29  ;;  %3526 = vmatpush3.bf16.msra.mxu0 %v2497_v34  ;;  %v1760_v12 = vpack.c.bf16 %v1755_v53, %v1754_v33  ;;  %v2094_v38 = vmul.f32 %v3897_v42, %v5084_v30  ;;  %v1756_v4 = vmul.f32 %v3889_v32, %v5075_v15  ;;  %v3673_v15 = vld [vmem:[%s5461_s0 + $0x20] sm:$0xff]   ;;  %v3674_v30 = vld [vmem:[%s5461_s0 + $0x28] sm:$0xff]  }
 0x511   : > { %v3901_v3 = vpop.eup %3900  ;;  %v2095_v6 = vmul.f32 %v3899_v17, %v5087_v24  ;;  %v3675_v24 = vld [vmem:[%s5461_s0 + $0x28] sm:$0xff]  }
 0x512   : > { %v2836_v43 = vpop.permute.xlu1 %2835  ;;  %3497 = vmatprep.mubr.bf16.mxu0 %v1760_v12  ;;  %v2093_v61 = vmul.f32 %v3901_v3, %v5111_v44  ;;  %v1761_v54 = vpack.c.bf16 %v1757_v41, %v1756_v4 }
 0x513   : > { %3549 = vmatprep.subr.bf16.mxu1 %v2836_v43  ;;  %v2100_v44 = vpack.c.bf16 %v2096_v11, %v2095_v6 }
 0x514   : > { %2502 = vrot.lane.b32.xlu1 %v3671_v62, %s3980_s29  ;;  %1241 = vrot.lane.b32.xlu0 %v5214_v26, %s3980_s29  ;;  %v2099_v63 = vpack.c.bf16 %v2094_v38, %v2093_v61  ;;  %v3676_v26 = vld [vmem:[%s5461_s0 + $0x30] sm:$0xff]  }
 0x515   : > { %3550 = vmatpush3.bf16.msra.mxu1 %v2836_v43 }
 0x516   : > { %3521 = vmatprep.mubr.bf16.mxu1 %v2099_v63 }
 0x517   : > { %3498 = vmatmul.mubr.bf16.gmra.mrb[20].mxu0 %v1761_v54  ;;  %3522 = vmatmul.mubr.bf16.gmra.mrb[20].mxu1 %v2100_v44 }
 0x518   : > { %2504 = vrot.lane.b32.xlu1 %v3672_v39, %s3980_s29  ;;  %1245 = vrot.lane.b32.xlu0 %v5236_v57, %s3980_s29 }
 0x51c   : > { %2843 = vrot.lane.b32.xlu1 %v3673_v15, %s3977_s25  ;;  %1249 = vrot.lane.b32.xlu0 %v5234_v7, %s3980_s29  ;;  %v3677_v7 = vld [vmem:[%s5461_s0 + $0x38] sm:$0xff]  }
 0x520   : > { %2506 = vrot.lane.b32.xlu1 %v3674_v30, %s3980_s29 }
 0x524   : > { %2845 = vrot.lane.b32.xlu1 %v3675_v24, %s3977_s25 }
 0x526   : > { %v2407_v57 = vpop.xlane.xlu0 %2406 }
 0x528   : > { %2847 = vrot.lane.b32.xlu1 %v3676_v26, %s3977_s25 }
 0x52a   : > { %v2411_v14 = vpop.xlane.xlu0 %2410 }
 0x52c   : > { %2849 = vrot.lane.b32.xlu1 %v3677_v7, %s3977_s25 }
 0x52e   : > { %v2746_v29 = vpop.xlane.xlu0 %2745 }
 0x52f   : > { %v3471_v31 = vpop.f32.mrb[8].mxu1 }
 0x530   : > { %1239 = vrot.lane.b32.xlu1 %v5226_v55, %s3980_s29  ;;  %v1537_v8 = vpop.f32.mrb[9].mxu1 }
 0x531   : > { %1576 = vrot.lane.b32.xlu0 %v1537_v8, %s3979_s10  ;;  %v3472_v51 = vpop.f32.mrb[10].mxu1 }
 0x532   : > { %v1540_v20 = vpop.f32.mrb[11].mxu1  ;;  %v2748_v45 = vpop.xlane.xlu0 %2747 }
 0x533   : > { %3902 = vrcp.f32 %v2748_v45 }
 0x534   : > { %1243 = vrot.lane.b32.xlu1 %v5221_v25, %s3980_s29 }
 0x535   : > { %1580 = vrot.lane.b32.xlu0 %v3471_v31, %s3979_s10 }
 0x536   : > { %v2750_v52 = vpop.xlane.xlu0 %2749 }
 0x537   : > { %3904 = vrcp.f32 %v2750_v52 }
 0x538   : > { %1247 = vrot.lane.b32.xlu1 %v5242_v19, %s3980_s29  ;;  %3906 = vrcp.f32 %v2407_v57 }
 0x53a   : > { %v2838_v56 = vpop.permute.xlu0 %2837 }
 0x53b   : > { %3551 = vmatprep.subr.bf16.mxu1 %v2838_v56 }
 0x53c   : > { %1251 = vrot.lane.b32.xlu1 %v5240_v48, %s3980_s29  ;;  %3552 = vmatpush3.bf16.msra.mxu1 %v2838_v56 }
 0x53d   : > { %v3903_v55 = vpop.eup %3902 }
 0x53e   : > { %v5327_v25 = vmul.f32 %v3903_v55, %v5156_v28 }
 0x540   : > { %1578 = vrot.lane.b32.xlu1 %v1540_v20, %s3979_s10 }
 0x541   : > { %v3905_v35 = vpop.eup %3904 }
 0x542   : > { %v5330_v2 = vmul.f32 %v3905_v35, %v5163_v59  ;;  %v3907_v59 = vpop.eup %3906 }
 0x543   : > { %v2405_v22 = vpop.xlane.xlu1 %2404  ;;  %v2429_v34 = vmul.f32 %v3907_v59, %v5141_v9 }
 0x544   : > { %3908 = vrcp.f32 %v2405_v22  ;;  %1582 = vrot.lane.b32.xlu1 %v3472_v51, %s3979_s10  ;;  %v2776_v19 = vpack.c.bf16 %v5330_v2, %v5327_v25 }
 0x545   : > { %3910 = vrcp.f32 %v2411_v14 }
 0x547   : > { %v2409_v48 = vpop.xlane.xlu1 %2408  ;;  %v3475_v32 = vpop.f32.mrb[12].mxu1 }
 0x548   : > { %3912 = vrcp.f32 %v2409_v48  ;;  %v1553_v18 = vpop.f32.mrb[13].mxu1 }
 0x549   : > { %1584 = vrot.lane.b32.xlu0 %v1553_v18, %s3979_s10  ;;  %v3476_v27 = vpop.f32.mrb[14].mxu1  ;;  %3914 = vrcp.f32 %v2746_v29 }
 0x54a   : > { %v1556_v28 = vpop.f32.mrb[15].mxu1 }
 0x54b   : > { %v2744_v50 = vpop.xlane.xlu1 %2743  ;;  %1586 = vrot.lane.b32.xlu1 %v1556_v28, %s3979_s10 }
 0x54c   : > { %3916 = vrcp.f32 %v2744_v50 }
 0x54d   : > { %1588 = vrot.lane.b32.xlu0 %v3475_v32, %s3979_s10 }
 0x54e   : > { %v3909_v49 = vpop.eup %3908 }
 0x54f   : > { %v2499_v16 = vpop.permute.xlu1 %2498  ;;  %1590 = vrot.lane.b32.xlu1 %v3476_v27, %s3979_s10  ;;  %v2428_v0 = vmul.f32 %v3909_v49, %v5168_v60  ;;  %v3911_v33 = vpop.eup %3910 }
 0x550   : > { %3527 = vmatprep.subr.bf16.mxu0 %v2499_v16  ;;  %v5342_v17 = vmul.f32 %v3911_v33, %v5144_v10 }
 0x551   : > { %3528 = vmatpush3.bf16.msra.mxu0 %v2499_v16  ;;  %v2436_v53 = vpack.c.bf16 %v2429_v34, %v2428_v0 }
 0x552   : > { %v3913_v42 = vpop.eup %3912 }
 0x553   : > { %v5345_v12 = vmul.f32 %v3913_v42, %v5171_v1  ;;  %v2501_v62 = vpop.permute.xlu1 %2500  ;;  %3541 = vmatprep.mubr.bf16.mxu0 %v2436_v53  ;;  %v3915_v3 = vpop.eup %3914 }
 0x554   : > { %3529 = vmatprep.subr.bf16.mxu0 %v2501_v62  ;;  %v2768_v43 = vmul.f32 %v3915_v3, %v5149_v47 }
 0x555   : > { %3530 = vmatpush3.bf16.msra.mxu0 %v2501_v62  ;;  %v2437_v60 = vpack.c.bf16 %v5342_v17, %v5345_v12 }
 0x556   : > { %v3917_v9 = vpop.eup %3916 }
 0x557   : > { %v2840_v41 = vpop.permute.xlu1 %2839  ;;  %v2767_v11 = vmul.f32 %v3917_v9, %v5179_v5 }
 0x558   : > { %3553 = vmatprep.subr.bf16.mxu1 %v2840_v41 }
 0x559   : > { %3554 = vmatpush3.bf16.msra.mxu1 %v2840_v41  ;;  %v2775_v10 = vpack.c.bf16 %v2768_v43, %v2767_v11 }
 0x55b   : > { %3565 = vmatprep.mubr.bf16.mxu1 %v2775_v10 }
 0x56b   : > { %v2415_v1 = vpop.xlane.xlu0 %2414 }
 0x56f   : > { %v2419_v61 = vpop.xlane.xlu0 %2418 }
 0x573   : > { %v2754_v38 = vpop.xlane.xlu0 %2753 }
 0x577   : > { %v2756_v4 = vpop.xlane.xlu0 %2755 }
 0x57b   : > { %v2758_v6 = vpop.xlane.xlu0 %2757 }
 0x57f   : > { %v2842_v63 = vpop.permute.xlu0 %2841 }
 0x580   : > { %3555 = vmatprep.subr.bf16.mxu1 %v2842_v63 }
 0x581   : > { %3556 = vmatpush3.bf16.msra.mxu1 %v2842_v63 }
 0x583   : > { %v2509_v39 = vpop.permute.xlu0 %2508 }
 0x587   : > { %v2511_v54 = vpop.permute.xlu0 %2510 }
 0x588   : > { %v2413_v44 = vpop.xlane.xlu1 %2412 }
 0x589   : > { %3918 = vrcp.f32 %v2413_v44 }
 0x58a   : > { %3920 = vrcp.f32 %v2415_v1 }
 0x58b   : > { %v1238_v15 = vpop.permute.xlu0 %1237 }
 0x58c   : > { %1262 = vst.msk [vmem:[#allocation2] sm:$0xff] %vm1261_vm2, %v1238_v15  ;;  %v2417_v47 = vpop.xlane.xlu1 %2416 }
 0x58f   : > { %v1242_v5 = vpop.permute.xlu0 %1241 }
 0x590   : > { %1264 = vst.msk [vmem:[#allocation2 + $0x10] sm:$0xff] %vm1261_vm2, %v1242_v5  ;;  %v2752_v30 = vpop.xlane.xlu1 %2751 }
 0x591   : > { %3922 = vrcp.f32 %v2752_v30 }
 0x592   : > { %3924 = vrcp.f32 %v2754_v38 }
 0x593   : > { %v1246_v24 = vpop.permute.xlu0 %1245  ;;  %3926 = vrcp.f32 %v2417_v47  ;;  %v3919_v51 = vpop.eup %3918 }
 0x594   : > { %1266 = vst.msk [vmem:[#allocation2 + $0x20] sm:$0xff] %vm1261_vm2, %v1246_v24  ;;  %v2503_v26 = vpop.permute.xlu1 %2502  ;;  %3928 = vrcp.f32 %v2419_v61  ;;  %v3921_v20 = vpop.eup %3920  ;;  %v2432_v56 = vmul.f32 %v3919_v51, %v5246_v40 }
 0x595   : > { %3531 = vmatprep.subr.bf16.mxu0 %v2503_v26  ;;  %3930 = vrcp.f32 %v2758_v6  ;;  %v2433_v35 = vmul.f32 %v3921_v20, %v5205_v37 }
 0x596   : > { %3532 = vmatpush3.bf16.msra.mxu0 %v2503_v26  ;;  %3932 = vrcp.f32 %v2756_v4 }
 0x597   : > { %v1250_v57 = vpop.permute.xlu0 %1249  ;;  %v2438_v18 = vpack.c.bf16 %v2433_v35, %v2432_v56 }
 0x598   : > { %1268 = vst.msk [vmem:[#allocation2 + $0x30] sm:$0xff] %vm1261_vm2, %v1250_v57  ;;  %v2505_v7 = vpop.permute.xlu1 %2504 }
 0x599   : > { %3533 = vmatprep.subr.bf16.mxu0 %v2505_v7 }
 0x59a   : > { %3534 = vmatpush3.bf16.msra.mxu0 %v2505_v7 }
 0x59b   : > { %v3923_v55 = vpop.eup %3922 }
 0x59c   : > { %v2844_v14 = vpop.permute.xlu1 %2843  ;;  %v3925_v22 = vpop.eup %3924  ;;  %v2771_v27 = vmul.f32 %v3923_v55, %v5257_v58 }
 0x59d   : > { %3557 = vmatprep.subr.bf16.mxu1 %v2844_v14  ;;  %v3927_v48 = vpop.eup %3926  ;;  %v2772_v40 = vmul.f32 %v3925_v22, %v5211_v36 }
 0x59e   : > { %3558 = vmatpush3.bf16.msra.mxu1 %v2844_v14  ;;  %v3929_v28 = vpop.eup %3928  ;;  %v2434_v50 = vmul.f32 %v3927_v48, %v5250_v13 }
 0x59f   : > { %v3931_v59 = vpop.eup %3930  ;;  %v2777_v49 = vpack.c.bf16 %v2772_v40, %v2771_v27  ;;  %v2435_v58 = vmul.f32 %v3929_v28, %v5208_v23 }
 0x5a0   : > { %v2507_v29 = vpop.permute.xlu1 %2506  ;;  %v3933_v16 = vpop.eup %3932  ;;  %v2774_v34 = vmul.f32 %v3931_v59, %v5231_v21 }
 0x5a1   : > { %3535 = vmatprep.subr.bf16.mxu0 %v2507_v29  ;;  %v2439_v0 = vpack.c.bf16 %v2435_v58, %v2434_v50  ;;  %v2773_v36 = vmul.f32 %v3933_v16, %v5223_v46 }
 0x5a2   : > { %3536 = vmatpush3.bf16.msra.mxu0 %v2507_v29 }
 0x5a3   : > { %v1577_v31 = vpop.permute.xlu0 %1576  ;;  %3537 = vmatprep.subr.bf16.mxu0 %v2509_v39  ;;  %v2778_v13 = vpack.c.bf16 %v2774_v34, %v2773_v36 }
 0x5a4   : > { %1601 = vst.msk [vmem:[#allocation2] sm:$0xff] %vm1600_vm3, %v1577_v31  ;;  %v2846_v8 = vpop.permute.xlu1 %2845 }
 0x5a5   : > { %3559 = vmatprep.subr.bf16.mxu1 %v2846_v8 }
 0x5a6   : > { %3538 = vmatpush3.bf16.msra.mxu0 %v2509_v39  ;;  %3560 = vmatpush3.bf16.msra.mxu1 %v2846_v8 }
 0x5a7   : > { %v1581_v45 = vpop.permute.xlu0 %1580  ;;  %3539 = vmatprep.subr.bf16.mxu0 %v2511_v54 }
 0x5a8   : > { %1603 = vst.msk [vmem:[#allocation2 + $0x10] sm:$0xff] %vm1600_vm3, %v1581_v45  ;;  %v2848_v52 = vpop.permute.xlu1 %2847 }
 0x5a9   : > { %3561 = vmatprep.subr.bf16.mxu1 %v2848_v52 }
 0x5aa   : > { %3540 = vmatpush3.bf16.msra.mxu0 %v2511_v54  ;;  %3562 = vmatpush3.bf16.msra.mxu1 %v2848_v52 }
 0x5ac   : > { %v2850_v32 = vpop.permute.xlu1 %2849 }
 0x5ad   : > { %3542 = vmatmul.mubr.bf16.vlgmr.msra.gmra.mrb[24].mxu0 %v2437_v60  ;;  %3563 = vmatprep.subr.bf16.mxu1 %v2850_v32 }
 0x5ae   : > { %3545 = vmatprep.mubr.bf16.mxu0 %v2438_v18  ;;  %3564 = vmatpush3.bf16.msra.mxu1 %v2850_v32 }
 0x5b0   : > { %v1240_v37 = vpop.permute.xlu1 %1239 }
 0x5b1   : > { %1263 = vst.msk [vmem:[#allocation2 + $0x8] sm:$0xff] %vm1261_vm2, %v1240_v37  ;;  %3566 = vmatmul.mubr.bf16.vlgmr.msra.gmra.mrb[24].mxu1 %v2776_v19 }
 0x5b2   : > { %3569 = vmatprep.mubr.bf16.mxu1 %v2777_v49 }
 0x5b4   : > { %v1244_v33 = vpop.permute.xlu1 %1243 }
 0x5b5   : > { %1265 = vst.msk [vmem:[#allocation2 + $0x18] sm:$0xff] %vm1261_vm2, %v1244_v33  ;;  %3546 = vmatmul.mubr.bf16.gmra.mrb[28].mxu0 %v2439_v0 }
 0x5b8   : > { %v1248_v53 = vpop.permute.xlu1 %1247 }
 0x5b9   : > { %1267 = vst.msk [vmem:[#allocation2 + $0x28] sm:$0xff] %vm1261_vm2, %v1248_v53  ;;  %3570 = vmatmul.mubr.bf16.gmra.mrb[28].mxu1 %v2778_v13 }
 0x5bb   : > { %v1585_v25 = vpop.permute.xlu0 %1584 }
 0x5bc   : > { %1605 = vst.msk [vmem:[#allocation2 + $0x20] sm:$0xff] %vm1600_vm3, %v1585_v25  ;;  %v1252_v23 = vpop.permute.xlu1 %1251 }
 0x5bd   : > { %1269 = vst.msk [vmem:[#allocation2 + $0x38] sm:$0xff] %vm1261_vm2, %v1252_v23 }
 0x5bf   : > { %v1589_v2 = vpop.permute.xlu0 %1588 }
 0x5c0   : > { %1607 = vst.msk [vmem:[#allocation2 + $0x30] sm:$0xff] %vm1600_vm3, %v1589_v2  ;;  %v1579_v21 = vpop.permute.xlu1 %1578  ;;  %v3235_v2 = vld [vmem:[%s5465_s4] ss:$0 sm:$0xff] }
 0x5c1   : > { %1602 = vst.msk [vmem:[#allocation2 + $0x8] sm:$0xff] %vm1600_vm3, %v1579_v21 }
 0x5c4   : > { %v1583_v19 = vpop.permute.xlu1 %1582 }
 0x5c5   : > { %1604 = vst.msk [vmem:[#allocation2 + $0x18] sm:$0xff] %vm1600_vm3, %v1583_v19 }
 0x5c8   : > { %v1587_v46 = vpop.permute.xlu1 %1586 }
 0x5c9   : > { %1606 = vst.msk [vmem:[#allocation2 + $0x28] sm:$0xff] %vm1600_vm3, %v1587_v46 }
 0x5cc   : > { %v1591_v42 = vpop.permute.xlu1 %1590 }
 0x5cd   : > { %1608 = vst.msk [vmem:[#allocation2 + $0x38] sm:$0xff] %vm1600_vm3, %v1591_v42  ;;  %v3519_v17 = vpop.f32.mrb[16].mxu1 }
 0x5ce   : > { %v2215_v12 = vpop.f32.mrb[17].mxu1 }
 0x5cf   : > { %v3520_v62 = vpop.f32.mrb[18].mxu1 }
 0x5d0   : > { %v2218_v3 = vpop.f32.mrb[19].mxu1 }
 0x5e2   : > { %v3495_v60 = vpop.f32.mrb[16].mxu0 }
 0x5e3   : > { %v1876_v9 = vpop.f32.mrb[17].mxu0 }
 0x5e4   : > { %1915 = vrot.lane.b32.xlu0 %v1876_v9, %s3978_s6  ;;  %v3496_v41 = vpop.f32.mrb[18].mxu0 }
 0x5e5   : > { %v1879_v11 = vpop.f32.mrb[19].mxu0 }
 0x5e6   : > { %1917 = vrot.lane.b32.xlu1 %v1879_v11, %s3978_s6 }
 0x5e8   : > { %1919 = vrot.lane.b32.xlu0 %v3495_v60, %s3978_s6 }
 0x5ea   : > { %1921 = vrot.lane.b32.xlu1 %v3496_v41, %s3978_s6  ;;  %v3499_v43 = vpop.f32.mrb[20].mxu0  ;;  %v3523_v10 = vpop.f32.mrb[20].mxu1 }
 0x5eb   : > { %v1892_v1 = vpop.f32.mrb[21].mxu0  ;;  %v2231_v61 = vpop.f32.mrb[21].mxu1 }
 0x5ec   : > { %1923 = vrot.lane.b32.xlu0 %v1892_v1, %s3978_s6  ;;  %v3500_v38 = vpop.f32.mrb[22].mxu0  ;;  %v3524_v4 = vpop.f32.mrb[22].mxu1 }
 0x5ed   : > { %v1895_v6 = vpop.f32.mrb[23].mxu0  ;;  %v2234_v63 = vpop.f32.mrb[23].mxu1 }
 0x5ee   : > { %1925 = vrot.lane.b32.xlu1 %v1895_v6, %s3978_s6 }
 0x5f0   : > { %1927 = vrot.lane.b32.xlu0 %v3499_v43, %s3978_s6 }
 0x5f2   : > { %1929 = vrot.lane.b32.xlu1 %v3500_v38, %s3978_s6 }
 0x5f4   : > { %2254 = vrot.lane.b32.xlu0 %v2215_v12, %s3976_s7 }
 0x5f6   : > { %2256 = vrot.lane.b32.xlu1 %v2218_v3, %s3976_s7 }
 0x5f8   : > { %2258 = vrot.lane.b32.xlu0 %v3519_v17, %s3976_s7 }
 0x5fa   : > { %2260 = vrot.lane.b32.xlu1 %v3520_v62, %s3976_s7 }
 0x5fc   : > { %2262 = vrot.lane.b32.xlu0 %v2231_v61, %s3976_s7 }
 0x5fe   : > { %2264 = vrot.lane.b32.xlu1 %v2234_v63, %s3976_s7 }
 0x600   : > { %2266 = vrot.lane.b32.xlu0 %v3523_v10, %s3976_s7 }
 0x602   : > { %2268 = vrot.lane.b32.xlu1 %v3524_v4, %s3976_s7  ;;  %s3154_s7 = sshll.u32 %s5545_s20, 2 }
 0x603   : > { %s5452_s10 = scalar_lea.vmem %s5466_s5, %s3154_s7 }
 0x656   : > { %v1916_v39 = vpop.permute.xlu0 %1915 }
 0x657   : > { %1940 = vst.msk [vmem:[#allocation2] sm:$0xff] %vm1939_vm4, %v1916_v39 }
 0x658   : > { %v1918_v54 = vpop.permute.xlu1 %1917 }
 0x659   : > { %1941 = vst.msk [vmem:[#allocation2 + $0x8] sm:$0xff] %vm1939_vm4, %v1918_v54 }
 0x65a   : > { %v1920_v44 = vpop.permute.xlu0 %1919 }
 0x65b   : > { %1942 = vst.msk [vmem:[#allocation2 + $0x10] sm:$0xff] %vm1939_vm4, %v1920_v44 }
 0x65c   : > { %v1922_v15 = vpop.permute.xlu1 %1921 }
 0x65d   : > { %1943 = vst.msk [vmem:[#allocation2 + $0x18] sm:$0xff] %vm1939_vm4, %v1922_v15 }
 0x65e   : > { %v1924_v47 = vpop.permute.xlu0 %1923 }
 0x65f   : > { %1944 = vst.msk [vmem:[#allocation2 + $0x20] sm:$0xff] %vm1939_vm4, %v1924_v47 }
 0x660   : > { %v1926_v5 = vpop.permute.xlu1 %1925 }
 0x661   : > { %1945 = vst.msk [vmem:[#allocation2 + $0x28] sm:$0xff] %vm1939_vm4, %v1926_v5 }
 0x662   : > { %v1928_v30 = vpop.permute.xlu0 %1927 }
 0x663   : > { %1946 = vst.msk [vmem:[#allocation2 + $0x30] sm:$0xff] %vm1939_vm4, %v1928_v30 }
 0x664   : > { %v1930_v24 = vpop.permute.xlu1 %1929 }
 0x665   : > { %1947 = vst.msk [vmem:[#allocation2 + $0x38] sm:$0xff] %vm1939_vm4, %v1930_v24 }
 0x666   : > { %v2255_v26 = vpop.permute.xlu0 %2254 }
 0x667   : > { %2279 = vst.msk [vmem:[#allocation2] sm:$0xff] %vm2278_vm5, %v2255_v26 }
 0x668   : > { %v2257_v57 = vpop.permute.xlu1 %2256 }
 0x669   : > { %2280 = vst.msk [vmem:[#allocation2 + $0x8] sm:$0xff] %vm2278_vm5, %v2257_v57 }
 0x66a   : > { %v2259_v7 = vpop.permute.xlu0 %2258 }
 0x66b   : > { %2281 = vst.msk [vmem:[#allocation2 + $0x10] sm:$0xff] %vm2278_vm5, %v2259_v7 }
 0x66c   : > { %v2261_v14 = vpop.permute.xlu1 %2260 }
 0x66d   : > { %2282 = vst.msk [vmem:[#allocation2 + $0x18] sm:$0xff] %vm2278_vm5, %v2261_v14 }
 0x66e   : > { %v2263_v29 = vpop.permute.xlu0 %2262 }
 0x66f   : > { %2283 = vst.msk [vmem:[#allocation2 + $0x20] sm:$0xff] %vm2278_vm5, %v2263_v29 }
 0x670   : > { %v2265_v31 = vpop.permute.xlu1 %2264 }
 0x671   : > { %2284 = vst.msk [vmem:[#allocation2 + $0x28] sm:$0xff] %vm2278_vm5, %v2265_v31 }
 0x672   : > { %v2267_v8 = vpop.permute.xlu0 %2266 }
 0x673   : > { %2285 = vst.msk [vmem:[#allocation2 + $0x30] sm:$0xff] %vm2278_vm5, %v2267_v8 }
 0x674   : > { %v2269_v51 = vpop.permute.xlu1 %2268 }
 0x675   : > { %2286 = vst.msk [vmem:[#allocation2 + $0x38] sm:$0xff] %vm2278_vm5, %v2269_v51 }
 0x680   : > { %v3543_v20 = vpop.f32.mrb[24].mxu0 }
 0x681   : > { %v2554_v45 = vpop.f32.mrb[25].mxu0 }
 0x682   : > { %2593 = vrot.lane.b32.xlu0 %v2554_v45, %s3971_s28  ;;  %v3544_v52 = vpop.f32.mrb[26].mxu0 }
 0x683   : > { %v2557_v56 = vpop.f32.mrb[27].mxu0 }
 0x684   : > { %v3567_v55 = vpop.f32.mrb[24].mxu1  ;;  %2595 = vrot.lane.b32.xlu1 %v2557_v56, %s3971_s28 }
 0x685   : > { %v2893_v35 = vpop.f32.mrb[25].mxu1 }
 0x686   : > { %v3568_v22 = vpop.f32.mrb[26].mxu1  ;;  %2597 = vrot.lane.b32.xlu0 %v3543_v20, %s3971_s28 }
 0x687   : > { %v2896_v48 = vpop.f32.mrb[27].mxu1 }
 0x688   : > { %2599 = vrot.lane.b32.xlu1 %v3544_v52, %s3971_s28  ;;  %v3547_v32 = vpop.f32.mrb[28].mxu0 }
 0x689   : > { %v2570_v18 = vpop.f32.mrb[29].mxu0 }
 0x68a   : > { %2601 = vrot.lane.b32.xlu0 %v2570_v18, %s3971_s28  ;;  %v3548_v27 = vpop.f32.mrb[30].mxu0 }
 0x68b   : > { %v2573_v28 = vpop.f32.mrb[31].mxu0 }
 0x68c   : > { %v3571_v40 = vpop.f32.mrb[28].mxu1  ;;  %2603 = vrot.lane.b32.xlu1 %v2573_v28, %s3971_s28 }
 0x68d   : > { %v2909_v50 = vpop.f32.mrb[29].mxu1 }
 0x68e   : > { %v3572_v59 = vpop.f32.mrb[30].mxu1  ;;  %2605 = vrot.lane.b32.xlu0 %v3547_v32, %s3971_s28 }
 0x68f   : > { %v2912_v37 = vpop.f32.mrb[31].mxu1 }
 0x690   : > { %2607 = vrot.lane.b32.xlu1 %v3548_v27, %s3971_s28 }
 0x692   : > { %2932 = vrot.lane.b32.xlu0 %v2893_v35, %s3969_s11 }
 0x694   : > { %2934 = vrot.lane.b32.xlu1 %v2896_v48, %s3969_s11 }
 0x696   : > { %2936 = vrot.lane.b32.xlu0 %v3567_v55, %s3969_s11 }
 0x698   : > { %2938 = vrot.lane.b32.xlu1 %v3568_v22, %s3969_s11 }
 0x69a   : > { %2940 = vrot.lane.b32.xlu0 %v2909_v50, %s3969_s11 }
 0x69c   : > { %2942 = vrot.lane.b32.xlu1 %v2912_v37, %s3969_s11 }
 0x69e   : > { %2944 = vrot.lane.b32.xlu0 %v3571_v40, %s3969_s11 }
 0x6a0   : > { %2946 = vrot.lane.b32.xlu1 %v3572_v59, %s3969_s11 }
 0x6f4   : > { %v2594_v49 = vpop.permute.xlu0 %2593 }
 0x6f5   : > { %2618 = vst.msk [vmem:[#allocation2] sm:$0xff] %vm2617_vm6, %v2594_v49 }
 0x6f6   : > { %v2596_v58 = vpop.permute.xlu1 %2595 }
 0x6f7   : > { %2619 = vst.msk [vmem:[#allocation2 + $0x8] sm:$0xff] %vm2617_vm6, %v2596_v58 }
 0x6f8   : > { %v2598_v16 = vpop.permute.xlu0 %2597 }
 0x6f9   : > { %2620 = vst.msk [vmem:[#allocation2 + $0x10] sm:$0xff] %vm2617_vm6, %v2598_v16 }
 0x6fa   : > { %v2600_v0 = vpop.permute.xlu1 %2599 }
 0x6fb   : > { %2621 = vst.msk [vmem:[#allocation2 + $0x18] sm:$0xff] %vm2617_vm6, %v2600_v0 }
 0x6fc   : > { %v2602_v34 = vpop.permute.xlu0 %2601 }
 0x6fd   : > { %2622 = vst.msk [vmem:[#allocation2 + $0x20] sm:$0xff] %vm2617_vm6, %v2602_v34 }
 0x6fe   : > { %v2604_v33 = vpop.permute.xlu1 %2603 }
 0x6ff   : > { %2623 = vst.msk [vmem:[#allocation2 + $0x28] sm:$0xff] %vm2617_vm6, %v2604_v33 }
 0x700   : > { %v2606_v36 = vpop.permute.xlu0 %2605 }
 0x701   : > { %2624 = vst.msk [vmem:[#allocation2 + $0x30] sm:$0xff] %vm2617_vm6, %v2606_v36 }
 0x702   : > { %v2608_v13 = vpop.permute.xlu1 %2607 }
 0x703   : > { %2625 = vst.msk [vmem:[#allocation2 + $0x38] sm:$0xff] %vm2617_vm6, %v2608_v13 }
 0x704   : > { %v2933_v53 = vpop.permute.xlu0 %2932 }
 0x705   : > { %2957 = vst.msk [vmem:[#allocation2] sm:$0xff] %vm2956_vm7, %v2933_v53 }
 0x706   : > { %v2935_v25 = vpop.permute.xlu1 %2934 }
 0x707   : > { %2958 = vst.msk [vmem:[#allocation2 + $0x8] sm:$0xff] %vm2956_vm7, %v2935_v25 }
 0x708   : > { %v2937_v23 = vpop.permute.xlu0 %2936 }
 0x709   : > { %2959 = vst.msk [vmem:[#allocation2 + $0x10] sm:$0xff] %vm2956_vm7, %v2937_v23 }
 0x70a   : > { %v2939_v21 = vpop.permute.xlu1 %2938 }
 0x70b   : > { %2960 = vst.msk [vmem:[#allocation2 + $0x18] sm:$0xff] %vm2956_vm7, %v2939_v21 }
 0x70c   : > { %v2965_v19 = vld [vmem:[#allocation2] sm:$0xff]  ;;  %v2941_v46 = vpop.permute.xlu0 %2940 }
 0x70d   : > { %v2980_v42 = vadd.f32 %v3235_v2, %v2965_v19  ;;  %2961 = vst.msk [vmem:[#allocation2 + $0x20] sm:$0xff] %vm2956_vm7, %v2941_v46 }
 0x70e   : > { %v2966_v17 = vld [vmem:[#allocation2 + $0x8] sm:$0xff]  ;;  %v2943_v12 = vpop.permute.xlu1 %2942 }
 0x70f   : > { %v2996_v62 = vmin.f32 %v2980_v42, 0.0  ;;  %v2981_v3 = vadd.f32 %v3235_v2, %v2966_v17  ;;  %2962 = vst.msk [vmem:[#allocation2 + $0x28] sm:$0xff] %vm2956_vm7, %v2943_v12  ;;  %v2988_v56 = vmax.f32 %v2980_v42, 0.0 }
 0x710   : > { %v2967_v60 = vld [vmem:[#allocation2 + $0x10] sm:$0xff]  ;;  %v2945_v9 = vpop.permute.xlu0 %2944 }
 0x711   : > { %v3004_v41 = vmul.f32 1.442695, %v2996_v62  ;;  %v2997_v11 = vmin.f32 %v2981_v3, 0.0  ;;  %v2982_v43 = vadd.f32 %v3235_v2, %v2967_v60  ;;  %2963 = vst.msk [vmem:[#allocation2 + $0x30] sm:$0xff] %vm2956_vm7, %v2945_v9  ;;  %v2989_v55 = vmax.f32 %v2981_v3, 0.0 }
 0x712   : > { %v2968_v10 = vld [vmem:[#allocation2 + $0x18] sm:$0xff]  ;;  %v2947_v1 = vpop.permute.xlu1 %2946 }
 0x713   : > { %3934 = vpow2.f32 %v3004_v41  ;;  %v3006_v61 = vmul.f32 1.442695, %v2997_v11  ;;  %v2998_v38 = vmin.f32 %v2982_v43, 0.0  ;;  %2964 = vst.msk [vmem:[#allocation2 + $0x38] sm:$0xff] %vm2956_vm7, %v2947_v1  ;;  %v2983_v4 = vadd.f32 %v3235_v2, %v2968_v10 }
 0x714   : > { %v2969_v6 = vld [vmem:[#allocation2 + $0x20] sm:$0xff]  ;;  %v2990_v59 = vmax.f32 %v2982_v43, 0.0 }
 0x715   : > { %3936 = vpow2.f32 %v3006_v61  ;;  %v3008_v63 = vmul.f32 1.442695, %v2998_v38  ;;  %v2984_v39 = vadd.f32 %v3235_v2, %v2969_v6  ;;  %v2999_v54 = vmin.f32 %v2983_v4, 0.0 }
 0x716   : > { %v2970_v44 = vld [vmem:[#allocation2 + $0x28] sm:$0xff]  ;;  %v2991_v37 = vmax.f32 %v2983_v4, 0.0 }
 0x717   : > { %3938 = vpow2.f32 %v3008_v63  ;;  %v3000_v15 = vmin.f32 %v2984_v39, 0.0  ;;  %v2985_v47 = vadd.f32 %v3235_v2, %v2970_v44  ;;  %v3010_v5 = vmul.f32 1.442695, %v2999_v54 }
 0x718   : > { %v2971_v30 = vld [vmem:[#allocation2 + $0x30] sm:$0xff]  ;;  %v2992_v33 = vmax.f32 %v2984_v39, 0.0 }
 0x719   : > { %v3012_v24 = vmul.f32 1.442695, %v3000_v15  ;;  %v3001_v26 = vmin.f32 %v2985_v47, 0.0  ;;  %v2986_v57 = vadd.f32 %v3235_v2, %v2971_v30  ;;  %3940 = vpow2.f32 %v3010_v5 }
 0x71a   : > { %v2972_v7 = vld [vmem:[#allocation2 + $0x38] sm:$0xff]  ;;  %v2993_v36 = vmax.f32 %v2985_v47, 0.0 }
 0x71b   : > { %3942 = vpow2.f32 %v3012_v24  ;;  %v3014_v14 = vmul.f32 1.442695, %v3001_v26  ;;  %v3002_v29 = vmin.f32 %v2986_v57, 0.0  ;;  %v2987_v31 = vadd.f32 %v3235_v2, %v2972_v7 }
 0x71c   : > { %v2994_v42 = vmax.f32 %v2986_v57, 0.0 }
 0x71d   : > { %v3935_v8 = vpop.eup %3934  ;;  %3944 = vpow2.f32 %v3014_v14  ;;  %v3016_v51 = vmul.f32 1.442695, %v3002_v29  ;;  %v3003_v45 = vmin.f32 %v2987_v31, 0.0  ;;  %v2995_v17 = vmax.f32 %v2987_v31, 0.0 }
 0x71e   : > { %v3236_v20 = vadd.f32 -1.0, %v3935_v8 }
 0x71f   : > { %v3937_v52 = vpop.eup %3936  ;;  %3946 = vpow2.f32 %v3016_v51  ;;  %v3018_v22 = vmul.f32 1.442695, %v3003_v45 }
 0x720   : > { %v3237_v35 = vadd.f32 -1.0, %v3937_v52  ;;  %v3028_v32 = vadd.f32 %v3236_v20, %v2988_v56 }
 0x721   : > { %v3939_v48 = vpop.eup %3938  ;;  %3948 = vpow2.f32 %v3018_v22 }
 0x722   : > { %v3029_v18 = vadd.f32 %v3237_v35, %v2989_v55  ;;  %v3238_v27 = vadd.f32 -1.0, %v3939_v48 }
 0x723   : > { %v3941_v28 = vpop.eup %3940 }
 0x724   : > { %v3265_v40 = vpack.c.bf16 %v3029_v18, %v3028_v32  ;;  %v3239_v49 = vadd.f32 -1.0, %v3941_v28  ;;  %v3030_v0 = vadd.f32 %v3238_v27, %v2990_v59 }
 0x725   : > { %v3943_v50 = vpop.eup %3942 }
 0x726   : > { %3266 = vst [vmem:[%s5452_s10] sm:$0xff] %v3265_v40   ;;  %v3240_v58 = vadd.f32 -1.0, %v3943_v50  ;;  %v3031_v34 = vadd.f32 %v3239_v49, %v2991_v37 }
 0x727   : > { %v3945_v16 = vpop.eup %3944 }
 0x728   : > { %v3241_v13 = vadd.f32 -1.0, %v3945_v16  ;;  %v3270_v25 = vpack.c.bf16 %v3031_v34, %v3030_v0  ;;  %v3032_v23 = vadd.f32 %v3240_v58, %v2992_v33 }
 0x729   : > { %v3947_v53 = vpop.eup %3946 }
 0x72a   : > { %v3033_v2 = vadd.f32 %v3241_v13, %v2993_v36  ;;  %3282 = vst [vmem:[%s5452_s10 + $0x8] sm:$0xff] %v3270_v25   ;;  %v3242_v21 = vadd.f32 -1.0, %v3947_v53 }
 0x72b   : > { %v3949_v19 = vpop.eup %3948 }
 0x72c   : > { %v3275_v46 = vpack.c.bf16 %v3033_v2, %v3032_v23  ;;  %v3243_v12 = vadd.f32 -1.0, %v3949_v19  ;;  %v3034_v62 = vadd.f32 %v3242_v21, %v2994_v42 }
 0x72e   : > { %3283 = vst [vmem:[%s5452_s10 + $0x10] sm:$0xff] %v3275_v46   ;;  %v3035_v3 = vadd.f32 %v3243_v12, %v2995_v17 }
 0x730   : > { %v3280_v60 = vpack.c.bf16 %v3035_v3, %v3034_v62 }
 0x732   : > { %3284 = vst [vmem:[%s5452_s10 + $0x18] sm:$0xff] %v3280_v60  }
 0x733 PF: > { %s15_s18 = sadd.s32 1, %s3964_s18  }
 0x734   : > { %p12_p5 = scmp.ge.s32.totalorder %s15_s18, 4  }
 0x736   :  { %14 = sbr.rel (!%p12_p5) target bundleno = 1 (0x1), region = 73 }

</bundles_post_ra>
